<compile_context>
chip_gen: v7x
topology: tpu7x:2x2x1
jax: 0.10.0
libtpu: 0.0.40
codegen_flags: <defaults>
</compile_context>

<pallas_src>
import functools

import jax
import jax.numpy as jnp
from jax.experimental import pallas as pl
from jax.experimental.pallas import tpu as pltpu


_VMEM = pl.BlockSpec(memory_space=pltpu.MemorySpace.VMEM)
_LANE = 128
_SUBLANE = 8


def _round_up(x, m):
    return (x + m - 1) // m * m


def _cpad(c):
    """Channel count padded to a multiple of 128 (lane-dense)."""
    return _round_up(max(c, _LANE), _LANE)


def _pick_tile(dim, candidates):
    for c in candidates:
        if dim >= c and dim % c == 0:
            return c
    return dim


# ----------------------------- Pallas kernels -------------------------------

def _conv_bn_kernel(x_ref, w_ref, b_ref, *rest, relu, has_res):
    """One (tm, tn) output tile: K-tiled MXU matmul + BN bias [+ res] [+ ReLU]."""
    if has_res:
        res_ref, out_ref, acc_ref = rest
    else:
        out_ref, acc_ref = rest
    k = pl.program_id(2)

    @pl.when(k == 0)
    def _():
        acc_ref[...] = jnp.zeros_like(acc_ref)

    # bf16 x bf16 -> f32 accumulation on the MXU.
    acc_ref[...] += jnp.dot(x_ref[...], w_ref[...],
                            preferred_element_type=jnp.float32)

    @pl.when(k == pl.num_programs(2) - 1)
    def _():
        r = acc_ref[...] + b_ref[...]                 # f32 epilogue (BN bias)
        if has_res:
            r = r + res_ref[...].astype(jnp.float32)  # residual add in f32
        if relu:
            r = jnp.maximum(r, 0.0)
        out_ref[...] = r.astype(out_ref.dtype)        # cast only at the store


def _maxpool_kernel(*refs, k, stride, ho, wo):
    """Elementwise max over the k*k window; inputs are stride-parity quarters,
    so every in-kernel slice is contiguous (no strided loads)."""
    out_ref = refs[-1]
    q_refs = refs[:-1]
    acc = None
    for dy in range(k):
        for dx in range(k):
            q = q_refs[(dy % stride) * stride + (dx % stride)]
            v = q[:, dy // stride:dy // stride + ho,
                  dx // stride:dx // stride + wo, :]
            acc = v if acc is None else jnp.maximum(acc, v)
    out_ref[...] = acc


# ------------------------------ conv wrapper ---------------------------------

def conv_bn(patches, w, bias, residual=None, relu=True):
    """Fused (im2col-matmul + folded-BN bias [+ residual] [+ ReLU]) Pallas call.

    patches : [M, K]  bf16
    w       : [Kp, Cout_p] bf16  (BN scale folded in, K zero-padded to Kp)
    bias    : [1, Cout_p]  f32
    residual: [M, Cout_p]  bf16 or None
    returns : [M, Cout_p]  bf16
    """
    m, k = patches.shape
    kp, coutp = w.shape

    # Pad K (lane dim of patches) up to the weight's zero-padded K.
    if k < kp:
        patches = jnp.pad(patches, ((0, 0), (0, kp - k)))
    # Pad M (sublane dim) to a multiple of 8 so all blocks are tile-aligned.
    mp = _round_up(m, _SUBLANE)
    if mp != m:
        patches = jnp.pad(patches, ((0, mp - m), (0, 0)))
        if residual is not None:
            residual = jnp.pad(residual, ((0, mp - m), (0, 0)))

    tm = _pick_tile(mp, (256, 128, 64, 32, 16, 8))
    tk = _pick_tile(kp, (512, 384, 256, 128))
    tn = _pick_tile(coutp, (256, 128))
    grid = (mp // tm, coutp // tn, kp // tk)

    in_specs = [
        pl.BlockSpec((tm, tk), lambda i, j, kk: (i, kk)),   # patches
        pl.BlockSpec((tk, tn), lambda i, j, kk: (kk, j)),   # folded weight
        pl.BlockSpec((1, tn), lambda i, j, kk: (0, j)),     # BN bias
    ]
    args = [patches, w, bias]
    if residual is not None:
        in_specs.append(pl.BlockSpec((tm, tn), lambda i, j, kk: (i, j)))
        args.append(residual)

    kernel = functools.partial(_conv_bn_kernel, relu=relu,
                               has_res=residual is not None)
    out = pl.pallas_call(
        kernel,
        out_shape=jax.ShapeDtypeStruct((mp, coutp), jnp.bfloat16),
        grid_spec=pltpu.PrefetchScalarGridSpec(
            num_scalar_prefetch=0,
            grid=grid,
            in_specs=in_specs,
            out_specs=pl.BlockSpec((tm, tn), lambda i, j, kk: (i, j)),
            scratch_shapes=[pltpu.VMEM((tm, tn), jnp.float32)],
        ),
        compiler_params=pltpu.CompilerParams(
            dimension_semantics=("parallel", "parallel", "arbitrary"),
            vmem_limit_bytes=32 * 1024 * 1024,
        ),
    )(*args)
    return out[:m] if mp != m else out


# ----------------------------- JAX glue: im2col ------------------------------

def im2col(x, k, stride, pad):
    """x: NHWC -> patches [N*Ho*Wo, k*k*C] (row-major (ky, kx, cin) ordering)."""
    n, h, w, c = x.shape
    ho = (h + 2 * pad - k) // stride + 1
    wo = (w + 2 * pad - k) // stride + 1
    xp = jnp.pad(x, ((0, 0), (pad, pad), (pad, pad), (0, 0)))
    cols = []
    for dy in range(k):
        for dx in range(k):
            cols.append(xp[:, dy:dy + stride * (ho - 1) + 1:stride,
                           dx:dx + stride * (wo - 1) + 1:stride, :])
    patches = jnp.stack(cols, axis=3)            # [N, Ho, Wo, k*k, C]
    return patches.reshape(n * ho * wo, k * k * c), (n, ho, wo)


def maxpool2d(x, k=3, stride=2, pad=1):
    """PyTorch-style MaxPool2d.  The padded map is split into stride-parity
    quarters in glue (~1x HBM traffic); the Pallas kernel maxes the k*k
    shifted windows using only contiguous in-VMEM slices."""
    n, h, w, c = x.shape
    ho = (h + 2 * pad - k) // stride + 1
    wo = (w + 2 * pad - k) // stride + 1
    neg = float(jnp.finfo(x.dtype).min)
    xp = jnp.pad(x, ((0, 0), (pad, pad), (pad, pad), (0, 0)),
                 constant_values=neg)
    hq = (k - 1) // stride + ho
    wq = (k - 1) // stride + wo
    quarters = []
    for pr in range(stride):
        for pc in range(stride):
            q = xp[:, pr::stride, pc::stride, :][:, :hq, :wq, :]
            q = jnp.pad(q, ((0, 0), (0, hq - q.shape[1]),
                            (0, wq - q.shape[2]), (0, 0)),
                        constant_values=neg)
            quarters.append(q)
    kernel = functools.partial(_maxpool_kernel, k=k, stride=stride, ho=ho, wo=wo)
    return pl.pallas_call(
        kernel,
        out_shape=jax.ShapeDtypeStruct((n, ho, wo, c), x.dtype),
        in_specs=[_VMEM] * len(quarters),
        out_specs=_VMEM,
    )(*quarters)


# ------------------------- deterministic parameters --------------------------

def _make_conv_bn(key, k, cin, cin_p, cout, cout_p, eps=1e-5):
    """He-init conv weight with eval-mode BN scale folded in; zero-padded to
    (cin_p, cout_p) and K rounded up to a multiple of 128."""
    kw, kg, kb, km, kv = jax.random.split(key, 5)
    fan_in = k * k * cin
    std = (2.0 / fan_in) ** 0.5
    w = std * jax.random.normal(kw, (k, k, cin, cout), dtype=jnp.float32)
    gamma = 1.0 + 0.1 * jax.random.normal(kg, (cout,), dtype=jnp.float32)
    beta = 0.1 * jax.random.normal(kb, (cout,), dtype=jnp.float32)
    mean = 0.1 * jax.random.normal(km, (cout,), dtype=jnp.float32)
    var = 1.0 + 0.1 * jax.random.uniform(kv, (cout,), dtype=jnp.float32)
    scale = gamma / jnp.sqrt(var + eps)
    bias = beta - mean * scale
    w = w * scale[None, None, None, :]                       # fold BN scale
    w = jnp.pad(w, ((0, 0), (0, 0), (0, cin_p - cin), (0, cout_p - cout)))
    w = w.reshape(k * k * cin_p, cout_p)                     # (ky, kx, cin) order
    kp = _round_up(k * k * cin_p, _LANE)
    w = jnp.pad(w, ((0, kp - k * k * cin_p), (0, 0)))
    bias = jnp.pad(bias, (0, cout_p - cout)).reshape(1, cout_p)
    return w.astype(jnp.bfloat16), bias.astype(jnp.float32)


def init_resnet18_params(seed=1234, inplanes=1, planes=32):
    base = jax.random.PRNGKey(seed)
    counter = [0]

    def nk():
        counter[0] += 1
        return jax.random.fold_in(base, counter[0])

    def block_params(cin, cout, downsample):
        cin_p, cout_p = _cpad(cin), _cpad(cout)
        p = {}
        p['w1'], p['b1'] = _make_conv_bn(nk(), 3, cin, cin_p, cout, cout_p)
        p['w2'], p['b2'] = _make_conv_bn(nk(), 3, cout, cout_p, cout, cout_p)
        if downsample:
            p['wd'], p['bd'] = _make_conv_bn(nk(), 1, cin, cin_p, cout, cout_p)
        return p

    params = {}
    # stem input has `inplanes` (=1) channels; no point lane-padding raw input.
    params['stem_w'], params['stem_b'] = _make_conv_bn(
        nk(), 7, inplanes, inplanes, planes, _cpad(planes))
    params['layer1'] = [block_params(planes, planes, False),
                        block_params(planes, planes, False)]
    params['layer2'] = [block_params(planes, planes * 2, True),
                        block_params(planes * 2, planes * 2, False)]
    params['layer3'] = [block_params(planes * 2, planes * 4, True),
                        block_params(planes * 4, planes * 4, False)]
    params['layer4'] = [block_params(planes * 4, planes * 8, True),
                        block_params(planes * 8, planes * 8, False)]
    return params


# --------------------------------- forward ----------------------------------

def basic_block(x, p, stride):
    """x: NHWC bf16 (channel-padded). conv1/bn1/relu -> conv2/bn2 (+res, relu)."""
    n = x.shape[0]
    patches1, (_, ho, wo) = im2col(x, 3, stride, 1)
    out1 = conv_bn(patches1, p['w1'], p['b1'], relu=True)
    out1_map = out1.reshape(n, ho, wo, -1)

    if 'wd' in p:
        dpatches, _ = im2col(x, 1, stride, 0)
        residual = conv_bn(dpatches, p['wd'], p['bd'], relu=False)
    else:
        residual = x.reshape(n * ho * wo, -1)       # identity (stride 1, same C)

    patches2, _ = im2col(out1_map, 3, 1, 1)
    out2 = conv_bn(patches2, p['w2'], p['b2'], residual=residual, relu=True)
    return out2.reshape(n, ho, wo, -1)


def resnet18_forward(x_nchw, params, planes=32):
    x = jnp.transpose(x_nchw, (0, 2, 3, 1)).astype(jnp.bfloat16)   # NCHW -> NHWC

    # stem: 7x7 conv stride 2 pad 3 -> bn -> relu (one fused Pallas call)
    patches, (n, ho, wo) = im2col(x, 7, 2, 3)
    out = conv_bn(patches, params['stem_w'], params['stem_b'], relu=True)
    out = out.reshape(n, ho, wo, -1)
    # maxpool 3x3 stride 2 pad 1
    out = maxpool2d(out, 3, 2, 1)

    feats = []
    chans = [planes, planes * 2, planes * 4, planes * 8]
    for name, first_stride, c in zip(
            ('layer1', 'layer2', 'layer3', 'layer4'), (1, 2, 2, 2), chans):
        blk0, blk1 = params[name]
        out = basic_block(out, blk0, first_stride)
        out = basic_block(out, blk1, 1)
        # strip lane padding, return NCHW f32 like the PyTorch module
        feats.append(jnp.transpose(out[..., :c], (0, 3, 1, 2)).astype(jnp.float32))
    return tuple(feats)


# ----------------------------------- main ------------------------------------

if __name__ == "__main__":
    inplanes, planes = 1, 32
    params = init_resnet18_params(seed=1234, inplanes=inplanes, planes=planes)

    key = jax.random.PRNGKey(0)
    x = jax.random.normal(key, (2, inplanes, 32, 32), dtype=jnp.float32)

    fwd = jax.jit(functools.partial(resnet18_forward, planes=planes))
    out1, out2, out3, out4 = fwd(x, params)
    jax.block_until_ready((out1, out2, out3, out4))

    assert out1.shape == (2, planes, 8, 8)
    assert out2.shape == (2, planes * 2, 4, 4)
    assert out3.shape == (2, planes * 4, 2, 2)
    assert out4.shape == (2, planes * 8, 1, 1)
    assert all(bool(jnp.isfinite(o).all()) for o in (out1, out2, out3, out4))

    print("KERNEL_OK")
</pallas_src>

<mosaic_0001>
module attributes {stable_mosaic.version = 11 : i64} {
  func.func @_conv_bn_kernel(%arg0: i32, %arg1: i32, %arg2: i32, %arg3: memref<256x128xbf16, #tpu.memory_space<vmem>>, %arg4: memref<128x128xbf16, #tpu.memory_space<vmem>>, %arg5: memref<1x128xf32, #tpu.memory_space<vmem>>, %arg6: memref<256x128xbf16, #tpu.memory_space<vmem>>, %arg7: memref<256x128xf32, #tpu.memory_space<vmem>>) attributes {dimension_semantics = [#tpu.dimension_semantics<parallel>, #tpu.dimension_semantics<parallel>, #tpu.dimension_semantics<arbitrary>], iteration_bounds = array<i64: 2, 1, 1>, scalar_prefetch = 0 : i64, scratch_operands = 1 : i64, tpu.core_type = #tpu.core_type<tc>, window_params = [{transform_indices = @transform_0, window_bounds = array<i64: 256, 128>}, {transform_indices = @transform_1, window_bounds = array<i64: 128, 128>}, {transform_indices = @transform_2, window_bounds = array<i64: 1, 128>}, {transform_indices = @transform_3, window_bounds = array<i64: 256, 128>}]} {
    %c0_i32 = arith.constant 0 : i32
    %0 = arith.cmpi eq, %arg2, %c0_i32 : i32
    %1 = arith.extui %0 : i1 to i32
    %c0_i32_0 = arith.constant 0 : i32
    %2 = arith.cmpi ne, %1, %c0_i32_0 : i32
    scf.if %2 {
      %cst_10 = arith.constant 0.000000e+00 : f32
      %12 = vector.broadcast %cst_10 : f32 to vector<256x128xf32>
      %c0_11 = arith.constant 0 : index
      %c0_12 = arith.constant 0 : index
      %13 = vector.load %arg7[%c0_11, %c0_12] : memref<256x128xf32, #tpu.memory_space<vmem>>, vector<256x128xf32>
      tpu.vector_store %arg7[%c0_11, %c0_12], %12 {strides = array<i32>} : memref<256x128xf32, #tpu.memory_space<vmem>>, vector<256x128xf32>,
    } else {
    }
    %c0 = arith.constant 0 : index
    %c0_1 = arith.constant 0 : index
    %3 = vector.load %arg7[%c0, %c0_1] : memref<256x128xf32, #tpu.memory_space<vmem>>, vector<256x128xf32>
    %c0_2 = arith.constant 0 : index
    %c0_3 = arith.constant 0 : index
    %4 = vector.load %arg3[%c0_2, %c0_3] : memref<256x128xbf16, #tpu.memory_space<vmem>>, vector<256x128xbf16>
    %c0_4 = arith.constant 0 : index
    %c0_5 = arith.constant 0 : index
    %5 = vector.load %arg4[%c0_4, %c0_5] : memref<128x128xbf16, #tpu.memory_space<vmem>>, vector<128x128xbf16>
    %cst = arith.constant dense<0.000000e+00> : vector<256x128xf32>
    %6 = tpu.matmul %4, %5, %cst {dimension_numbers = #tpu.dot_dimension_numbers<[1], [0], [0], [1], [0, 0, 1, 1], [], []>} : vector<256x128xbf16>, vector<128x128xbf16>, vector<256x128xf32> -> vector<256x128xf32>
    %7 = arith.addf %3, %6 : vector<256x128xf32>
    %c0_6 = arith.constant 0 : index
    %c0_7 = arith.constant 0 : index
    %8 = vector.load %arg7[%c0_6, %c0_7] : memref<256x128xf32, #tpu.memory_space<vmem>>, vector<256x128xf32>
    tpu.vector_store %arg7[%c0_6, %c0_7], %7 {strides = array<i32>} : memref<256x128xf32, #tpu.memory_space<vmem>>, vector<256x128xf32>,
    %c0_i32_8 = arith.constant 0 : i32
    %9 = arith.cmpi eq, %arg2, %c0_i32_8 : i32
    %10 = arith.extui %9 : i1 to i32
    %c0_i32_9 = arith.constant 0 : i32
    %11 = arith.cmpi ne, %10, %c0_i32_9 : i32
    scf.if %11 {
      %c0_10 = arith.constant 0 : index
      %c0_11 = arith.constant 0 : index
      %12 = vector.load %arg7[%c0_10, %c0_11] : memref<256x128xf32, #tpu.memory_space<vmem>>, vector<256x128xf32>
      %c0_12 = arith.constant 0 : index
      %c0_13 = arith.constant 0 : index
      %13 = vector.load %arg5[%c0_12, %c0_13] : memref<1x128xf32, #tpu.memory_space<vmem>>, vector<1x128xf32>
      %14 = vector.broadcast %13 : vector<1x128xf32> to vector<256x128xf32>
      %15 = arith.addf %12, %14 : vector<256x128xf32>
      %cst_14 = arith.constant 0.000000e+00 : f32
      %16 = vector.broadcast %cst_14 : f32 to vector<256x128xf32>
      %17 = arith.maximumf %15, %16 : vector<256x128xf32>
      %18 = arith.truncf %17 : vector<256x128xf32> to vector<256x128xbf16>
      %c0_15 = arith.constant 0 : index
      %c0_16 = arith.constant 0 : index
      %19 = vector.load %arg6[%c0_15, %c0_16] : memref<256x128xbf16, #tpu.memory_space<vmem>>, vector<256x128xbf16>
      tpu.vector_store %arg6[%c0_15, %c0_16], %18 {strides = array<i32>} : memref<256x128xbf16, #tpu.memory_space<vmem>>, vector<256x128xbf16>,
    } else {
    }
    return
  }
  func.func @transform_0(%arg0: i32, %arg1: i32, %arg2: i32) -> (i32, i32) {
    %c0_i32 = arith.constant 0 : i32
    return %arg0, %arg2 : i32, i32
  }
  func.func @transform_1(%arg0: i32, %arg1: i32, %arg2: i32) -> (i32, i32) {
    %c0_i32 = arith.constant 0 : i32
    return %arg2, %arg1 : i32, i32
  }
  func.func @transform_2(%arg0: i32, %arg1: i32, %arg2: i32) -> (i32, i32) {
    %c0_i32 = arith.constant 0 : i32
    %c0_i32_0 = arith.constant 0 : i32
    return %c0_i32, %arg1 : i32, i32
  }
  func.func @transform_3(%arg0: i32, %arg1: i32, %arg2: i32) -> (i32, i32) {
    %c0_i32 = arith.constant 0 : i32
    return %arg0, %arg1 : i32, i32
  }
}

module attributes {stable_mosaic.version = 11 : i64} {
  func.func @_maxpool_kernel(%arg0: memref<2x9x9x128xbf16, #tpu.memory_space<vmem>>, %arg1: memref<2x9x9x128xbf16, #tpu.memory_space<vmem>>, %arg2: memref<2x9x9x128xbf16, #tpu.memory_space<vmem>>, %arg3: memref<2x9x9x128xbf16, #tpu.memory_space<vmem>>, %arg4: memref<2x8x8x128xbf16, #tpu.memory_space<vmem>>) attributes {dimension_semantics = [], scalar_prefetch = 0 : i64, scratch_operands = 0 : i64, tpu.core_type = #tpu.core_type<tc>} {
    %c0 = arith.constant 0 : index
    %c0_0 = arith.constant 0 : index
    %c0_1 = arith.constant 0 : index
    %c0_2 = arith.constant 0 : index
    %0 = vector.load %arg0[%c0, %c0_0, %c0_1, %c0_2] : memref<2x9x9x128xbf16, #tpu.memory_space<vmem>>, vector<2x8x8x128xbf16>
    %c0_3 = arith.constant 0 : index
    %c0_4 = arith.constant 0 : index
    %c0_5 = arith.constant 0 : index
    %c0_6 = arith.constant 0 : index
    %1 = vector.load %arg1[%c0_3, %c0_4, %c0_5, %c0_6] : memref<2x9x9x128xbf16, #tpu.memory_space<vmem>>, vector<2x8x8x128xbf16>
    %2 = arith.maximumf %0, %1 : vector<2x8x8x128xbf16>
    %c0_7 = arith.constant 0 : index
    %c0_8 = arith.constant 0 : index
    %c1 = arith.constant 1 : index
    %c0_9 = arith.constant 0 : index
    %3 = vector.load %arg0[%c0_7, %c0_8, %c1, %c0_9] : memref<2x9x9x128xbf16, #tpu.memory_space<vmem>>, vector<2x8x8x128xbf16>
    %4 = arith.maximumf %2, %3 : vector<2x8x8x128xbf16>
    %c0_10 = arith.constant 0 : index
    %c0_11 = arith.constant 0 : index
    %c0_12 = arith.constant 0 : index
    %c0_13 = arith.constant 0 : index
    %5 = vector.load %arg2[%c0_10, %c0_11, %c0_12, %c0_13] : memref<2x9x9x128xbf16, #tpu.memory_space<vmem>>, vector<2x8x8x128xbf16>
    %6 = arith.maximumf %4, %5 : vector<2x8x8x128xbf16>
    %c0_14 = arith.constant 0 : index
    %c0_15 = arith.constant 0 : index
    %c0_16 = arith.constant 0 : index
    %c0_17 = arith.constant 0 : index
    %7 = vector.load %arg3[%c0_14, %c0_15, %c0_16, %c0_17] : memref<2x9x9x128xbf16, #tpu.memory_space<vmem>>, vector<2x8x8x128xbf16>
    %8 = arith.maximumf %6, %7 : vector<2x8x8x128xbf16>
    %c0_18 = arith.constant 0 : index
    %c0_19 = arith.constant 0 : index
    %c1_20 = arith.constant 1 : index
    %c0_21 = arith.constant 0 : index
    %9 = vector.load %arg2[%c0_18, %c0_19, %c1_20, %c0_21] : memref<2x9x9x128xbf16, #tpu.memory_space<vmem>>, vector<2x8x8x128xbf16>
    %10 = arith.maximumf %8, %9 : vector<2x8x8x128xbf16>
    %c0_22 = arith.constant 0 : index
    %c1_23 = arith.constant 1 : index
    %c0_24 = arith.constant 0 : index
    %c0_25 = arith.constant 0 : index
    %11 = vector.load %arg0[%c0_22, %c1_23, %c0_24, %c0_25] : memref<2x9x9x128xbf16, #tpu.memory_space<vmem>>, vector<2x8x8x128xbf16>
    %12 = arith.maximumf %10, %11 : vector<2x8x8x128xbf16>
    %c0_26 = arith.constant 0 : index
    %c1_27 = arith.constant 1 : index
    %c0_28 = arith.constant 0 : index
    %c0_29 = arith.constant 0 : index
    %13 = vector.load %arg1[%c0_26, %c1_27, %c0_28, %c0_29] : memref<2x9x9x128xbf16, #tpu.memory_space<vmem>>, vector<2x8x8x128xbf16>
    %14 = arith.maximumf %12, %13 : vector<2x8x8x128xbf16>
    %c0_30 = arith.constant 0 : index
    %c1_31 = arith.constant 1 : index
    %c1_32 = arith.constant 1 : index
    %c0_33 = arith.constant 0 : index
    %15 = vector.load %arg0[%c0_30, %c1_31, %c1_32, %c0_33] : memref<2x9x9x128xbf16, #tpu.memory_space<vmem>>, vector<2x8x8x128xbf16>
    %16 = arith.maximumf %14, %15 : vector<2x8x8x128xbf16>
    %c0_34 = arith.constant 0 : index
    %c0_35 = arith.constant 0 : index
    %c0_36 = arith.constant 0 : index
    %c0_37 = arith.constant 0 : index
    %17 = vector.load %arg4[%c0_34, %c0_35, %c0_36, %c0_37] : memref<2x8x8x128xbf16, #tpu.memory_space<vmem>>, vector<2x8x8x128xbf16>
    tpu.vector_store %arg4[%c0_34, %c0_35, %c0_36, %c0_37], %16 {strides = array<i32>} : memref<2x8x8x128xbf16, #tpu.memory_space<vmem>>, vector<2x8x8x128xbf16>,
    return
  }
}

module attributes {stable_mosaic.version = 11 : i64} {
  func.func @_conv_bn_kernel(%arg0: i32, %arg1: i32, %arg2: i32, %arg3: memref<128x384xbf16, #tpu.memory_space<vmem>>, %arg4: memref<384x128xbf16, #tpu.memory_space<vmem>>, %arg5: memref<1x128xf32, #tpu.memory_space<vmem>>, %arg6: memref<128x128xbf16, #tpu.memory_space<vmem>>, %arg7: memref<128x128xf32, #tpu.memory_space<vmem>>) attributes {dimension_semantics = [#tpu.dimension_semantics<parallel>, #tpu.dimension_semantics<parallel>, #tpu.dimension_semantics<arbitrary>], iteration_bounds = array<i64: 1, 1, 3>, scalar_prefetch = 0 : i64, scratch_operands = 1 : i64, tpu.core_type = #tpu.core_type<tc>, window_params = [{transform_indices = @transform_0, window_bounds = array<i64: 128, 384>}, {transform_indices = @transform_1, window_bounds = array<i64: 384, 128>}, {transform_indices = @transform_2, window_bounds = array<i64: 1, 128>}, {transform_indices = @transform_3, window_bounds = array<i64: 128, 128>}]} {
    %c0_i32 = arith.constant 0 : i32
    %0 = arith.cmpi eq, %arg2, %c0_i32 : i32
    %1 = arith.extui %0 : i1 to i32
    %c0_i32_0 = arith.constant 0 : i32
    %2 = arith.cmpi ne, %1, %c0_i32_0 : i32
    scf.if %2 {
      %cst_9 = arith.constant 0.000000e+00 : f32
      %12 = vector.broadcast %cst_9 : f32 to vector<128x128xf32>
      %c0_10 = arith.constant 0 : index
      %c0_11 = arith.constant 0 : index
      %13 = vector.load %arg7[%c0_10, %c0_11] : memref<128x128xf32, #tpu.memory_space<vmem>>, vector<128x128xf32>
      tpu.vector_store %arg7[%c0_10, %c0_11], %12 {strides = array<i32>} : memref<128x128xf32, #tpu.memory_space<vmem>>, vector<128x128xf32>,
    } else {
    }
    %c0 = arith.constant 0 : index
    %c0_1 = arith.constant 0 : index
    %3 = vector.load %arg7[%c0, %c0_1] : memref<128x128xf32, #tpu.memory_space<vmem>>, vector<128x128xf32>
    %c0_2 = arith.constant 0 : index
    %c0_3 = arith.constant 0 : index
    %4 = vector.load %arg3[%c0_2, %c0_3] : memref<128x384xbf16, #tpu.memory_space<vmem>>, vector<128x384xbf16>
    %c0_4 = arith.constant 0 : index
    %c0_5 = arith.constant 0 : index
    %5 = vector.load %arg4[%c0_4, %c0_5] : memref<384x128xbf16, #tpu.memory_space<vmem>>, vector<384x128xbf16>
    %cst = arith.constant dense<0.000000e+00> : vector<128x128xf32>
    %6 = tpu.matmul %4, %5, %cst {dimension_numbers = #tpu.dot_dimension_numbers<[1], [0], [0], [1], [0, 0, 1, 1], [], []>} : vector<128x384xbf16>, vector<384x128xbf16>, vector<128x128xf32> -> vector<128x128xf32>
    %7 = arith.addf %3, %6 : vector<128x128xf32>
    %c0_6 = arith.constant 0 : index
    %c0_7 = arith.constant 0 : index
    %8 = vector.load %arg7[%c0_6, %c0_7] : memref<128x128xf32, #tpu.memory_space<vmem>>, vector<128x128xf32>
    tpu.vector_store %arg7[%c0_6, %c0_7], %7 {strides = array<i32>} : memref<128x128xf32, #tpu.memory_space<vmem>>, vector<128x128xf32>,
    %c2_i32 = arith.constant 2 : i32
    %9 = arith.cmpi eq, %arg2, %c2_i32 : i32
    %10 = arith.extui %9 : i1 to i32
    %c0_i32_8 = arith.constant 0 : i32
    %11 = arith.cmpi ne, %10, %c0_i32_8 : i32
    scf.if %11 {
      %c0_9 = arith.constant 0 : index
      %c0_10 = arith.constant 0 : index
      %12 = vector.load %arg7[%c0_9, %c0_10] : memref<128x128xf32, #tpu.memory_space<vmem>>, vector<128x128xf32>
      %c0_11 = arith.constant 0 : index
      %c0_12 = arith.constant 0 : index
      %13 = vector.load %arg5[%c0_11, %c0_12] : memref<1x128xf32, #tpu.memory_space<vmem>>, vector<1x128xf32>
      %14 = vector.broadcast %13 : vector<1x128xf32> to vector<128x128xf32>
      %15 = arith.addf %12, %14 : vector<128x128xf32>
      %cst_13 = arith.constant 0.000000e+00 : f32
      %16 = vector.broadcast %cst_13 : f32 to vector<128x128xf32>
      %17 = arith.maximumf %15, %16 : vector<128x128xf32>
      %18 = arith.truncf %17 : vector<128x128xf32> to vector<128x128xbf16>
      %c0_14 = arith.constant 0 : index
      %c0_15 = arith.constant 0 : index
      %19 = vector.load %arg6[%c0_14, %c0_15] : memref<128x128xbf16, #tpu.memory_space<vmem>>, vector<128x128xbf16>
      tpu.vector_store %arg6[%c0_14, %c0_15], %18 {strides = array<i32>} : memref<128x128xbf16, #tpu.memory_space<vmem>>, vector<128x128xbf16>,
    } else {
    }
    return
  }
  func.func @transform_0(%arg0: i32, %arg1: i32, %arg2: i32) -> (i32, i32) {
    %c0_i32 = arith.constant 0 : i32
    return %arg0, %arg2 : i32, i32
  }
  func.func @transform_1(%arg0: i32, %arg1: i32, %arg2: i32) -> (i32, i32) {
    %c0_i32 = arith.constant 0 : i32
    return %arg2, %arg1 : i32, i32
  }
  func.func @transform_2(%arg0: i32, %arg1: i32, %arg2: i32) -> (i32, i32) {
    %c0_i32 = arith.constant 0 : i32
    %c0_i32_0 = arith.constant 0 : i32
    return %c0_i32, %arg1 : i32, i32
  }
  func.func @transform_3(%arg0: i32, %arg1: i32, %arg2: i32) -> (i32, i32) {
    %c0_i32 = arith.constant 0 : i32
    return %arg0, %arg1 : i32, i32
  }
}

module attributes {stable_mosaic.version = 11 : i64} {
  func.func @_conv_bn_kernel(%arg0: i32, %arg1: i32, %arg2: i32, %arg3: memref<128x384xbf16, #tpu.memory_space<vmem>>, %arg4: memref<384x128xbf16, #tpu.memory_space<vmem>>, %arg5: memref<1x128xf32, #tpu.memory_space<vmem>>, %arg6: memref<128x128xbf16, #tpu.memory_space<vmem>>, %arg7: memref<128x128xbf16, #tpu.memory_space<vmem>>, %arg8: memref<128x128xf32, #tpu.memory_space<vmem>>) attributes {dimension_semantics = [#tpu.dimension_semantics<parallel>, #tpu.dimension_semantics<parallel>, #tpu.dimension_semantics<arbitrary>], iteration_bounds = array<i64: 1, 1, 3>, scalar_prefetch = 0 : i64, scratch_operands = 1 : i64, tpu.core_type = #tpu.core_type<tc>, window_params = [{transform_indices = @transform_0, window_bounds = array<i64: 128, 384>}, {transform_indices = @transform_1, window_bounds = array<i64: 384, 128>}, {transform_indices = @transform_2, window_bounds = array<i64: 1, 128>}, {transform_indices = @transform_3, window_bounds = array<i64: 128, 128>}, {transform_indices = @transform_4, window_bounds = array<i64: 128, 128>}]} {
    %c0_i32 = arith.constant 0 : i32
    %0 = arith.cmpi eq, %arg2, %c0_i32 : i32
    %1 = arith.extui %0 : i1 to i32
    %c0_i32_0 = arith.constant 0 : i32
    %2 = arith.cmpi ne, %1, %c0_i32_0 : i32
    scf.if %2 {
      %cst_9 = arith.constant 0.000000e+00 : f32
      %12 = vector.broadcast %cst_9 : f32 to vector<128x128xf32>
      %c0_10 = arith.constant 0 : index
      %c0_11 = arith.constant 0 : index
      %13 = vector.load %arg8[%c0_10, %c0_11] : memref<128x128xf32, #tpu.memory_space<vmem>>, vector<128x128xf32>
      tpu.vector_store %arg8[%c0_10, %c0_11], %12 {strides = array<i32>} : memref<128x128xf32, #tpu.memory_space<vmem>>, vector<128x128xf32>,
    } else {
    }
    %c0 = arith.constant 0 : index
    %c0_1 = arith.constant 0 : index
    %3 = vector.load %arg8[%c0, %c0_1] : memref<128x128xf32, #tpu.memory_space<vmem>>, vector<128x128xf32>
    %c0_2 = arith.constant 0 : index
    %c0_3 = arith.constant 0 : index
    %4 = vector.load %arg3[%c0_2, %c0_3] : memref<128x384xbf16, #tpu.memory_space<vmem>>, vector<128x384xbf16>
    %c0_4 = arith.constant 0 : index
    %c0_5 = arith.constant 0 : index
    %5 = vector.load %arg4[%c0_4, %c0_5] : memref<384x128xbf16, #tpu.memory_space<vmem>>, vector<384x128xbf16>
    %cst = arith.constant dense<0.000000e+00> : vector<128x128xf32>
    %6 = tpu.matmul %4, %5, %cst {dimension_numbers = #tpu.dot_dimension_numbers<[1], [0], [0], [1], [0, 0, 1, 1], [], []>} : vector<128x384xbf16>, vector<384x128xbf16>, vector<128x128xf32> -> vector<128x128xf32>
    %7 = arith.addf %3, %6 : vector<128x128xf32>
    %c0_6 = arith.constant 0 : index
    %c0_7 = arith.constant 0 : index
    %8 = vector.load %arg8[%c0_6, %c0_7] : memref<128x128xf32, #tpu.memory_space<vmem>>, vector<128x128xf32>
    tpu.vector_store %arg8[%c0_6, %c0_7], %7 {strides = array<i32>} : memref<128x128xf32, #tpu.memory_space<vmem>>, vector<128x128xf32>,
    %c2_i32 = arith.constant 2 : i32
    %9 = arith.cmpi eq, %arg2, %c2_i32 : i32
    %10 = arith.extui %9 : i1 to i32
    %c0_i32_8 = arith.constant 0 : i32
    %11 = arith.cmpi ne, %10, %c0_i32_8 : i32
    scf.if %11 {
      %c0_9 = arith.constant 0 : index
      %c0_10 = arith.constant 0 : index
      %12 = vector.load %arg8[%c0_9, %c0_10] : memref<128x128xf32, #tpu.memory_space<vmem>>, vector<128x128xf32>
      %c0_11 = arith.constant 0 : index
      %c0_12 = arith.constant 0 : index
      %13 = vector.load %arg5[%c0_11, %c0_12] : memref<1x128xf32, #tpu.memory_space<vmem>>, vector<1x128xf32>
      %14 = vector.broadcast %13 : vector<1x128xf32> to vector<128x128xf32>
      %15 = arith.addf %12, %14 : vector<128x128xf32>
      %c0_13 = arith.constant 0 : index
      %c0_14 = arith.constant 0 : index
      %16 = vector.load %arg6[%c0_13, %c0_14] : memref<128x128xbf16, #tpu.memory_space<vmem>>, vector<128x128xbf16>
      %17 = arith.extf %16 : vector<128x128xbf16> to vector<128x128xf32>
      %18 = arith.addf %15, %17 : vector<128x128xf32>
      %cst_15 = arith.constant 0.000000e+00 : f32
      %19 = vector.broadcast %cst_15 : f32 to vector<128x128xf32>
      %20 = arith.maximumf %18, %19 : vector<128x128xf32>
      %21 = arith.truncf %20 : vector<128x128xf32> to vector<128x128xbf16>
      %c0_16 = arith.constant 0 : index
      %c0_17 = arith.constant 0 : index
      %22 = vector.load %arg7[%c0_16, %c0_17] : memref<128x128xbf16, #tpu.memory_space<vmem>>, vector<128x128xbf16>
      tpu.vector_store %arg7[%c0_16, %c0_17], %21 {strides = array<i32>} : memref<128x128xbf16, #tpu.memory_space<vmem>>, vector<128x128xbf16>,
    } else {
    }
    return
  }
  func.func @transform_0(%arg0: i32, %arg1: i32, %arg2: i32) -> (i32, i32) {
    %c0_i32 = arith.constant 0 : i32
    return %arg0, %arg2 : i32, i32
  }
  func.func @transform_1(%arg0: i32, %arg1: i32, %arg2: i32) -> (i32, i32) {
    %c0_i32 = arith.constant 0 : i32
    return %arg2, %arg1 : i32, i32
  }
  func.func @transform_2(%arg0: i32, %arg1: i32, %arg2: i32) -> (i32, i32) {
    %c0_i32 = arith.constant 0 : i32
    %c0_i32_0 = arith.constant 0 : i32
    return %c0_i32, %arg1 : i32, i32
  }
  func.func @transform_3(%arg0: i32, %arg1: i32, %arg2: i32) -> (i32, i32) {
    %c0_i32 = arith.constant 0 : i32
    return %arg0, %arg1 : i32, i32
  }
  func.func @transform_4(%arg0: i32, %arg1: i32, %arg2: i32) -> (i32, i32) {
    %c0_i32 = arith.constant 0 : i32
    return %arg0, %arg1 : i32, i32
  }
}

module attributes {stable_mosaic.version = 11 : i64} {
  func.func @_conv_bn_kernel(%arg0: i32, %arg1: i32, %arg2: i32, %arg3: memref<32x384xbf16, #tpu.memory_space<vmem>>, %arg4: memref<384x128xbf16, #tpu.memory_space<vmem>>, %arg5: memref<1x128xf32, #tpu.memory_space<vmem>>, %arg6: memref<32x128xbf16, #tpu.memory_space<vmem>>, %arg7: memref<32x128xf32, #tpu.memory_space<vmem>>) attributes {dimension_semantics = [#tpu.dimension_semantics<parallel>, #tpu.dimension_semantics<parallel>, #tpu.dimension_semantics<arbitrary>], iteration_bounds = array<i64: 1, 1, 3>, scalar_prefetch = 0 : i64, scratch_operands = 1 : i64, tpu.core_type = #tpu.core_type<tc>, window_params = [{transform_indices = @transform_0, window_bounds = array<i64: 32, 384>}, {transform_indices = @transform_1, window_bounds = array<i64: 384, 128>}, {transform_indices = @transform_2, window_bounds = array<i64: 1, 128>}, {transform_indices = @transform_3, window_bounds = array<i64: 32, 128>}]} {
    %c0_i32 = arith.constant 0 : i32
    %0 = arith.cmpi eq, %arg2, %c0_i32 : i32
    %1 = arith.extui %0 : i1 to i32
    %c0_i32_0 = arith.constant 0 : i32
    %2 = arith.cmpi ne, %1, %c0_i32_0 : i32
    scf.if %2 {
      %cst_9 = arith.constant 0.000000e+00 : f32
      %12 = vector.broadcast %cst_9 : f32 to vector<32x128xf32>
      %c0_10 = arith.constant 0 : index
      %c0_11 = arith.constant 0 : index
      %13 = vector.load %arg7[%c0_10, %c0_11] : memref<32x128xf32, #tpu.memory_space<vmem>>, vector<32x128xf32>
      tpu.vector_store %arg7[%c0_10, %c0_11], %12 {strides = array<i32>} : memref<32x128xf32, #tpu.memory_space<vmem>>, vector<32x128xf32>,
    } else {
    }
    %c0 = arith.constant 0 : index
    %c0_1 = arith.constant 0 : index
    %3 = vector.load %arg7[%c0, %c0_1] : memref<32x128xf32, #tpu.memory_space<vmem>>, vector<32x128xf32>
    %c0_2 = arith.constant 0 : index
    %c0_3 = arith.constant 0 : index
    %4 = vector.load %arg3[%c0_2, %c0_3] : memref<32x384xbf16, #tpu.memory_space<vmem>>, vector<32x384xbf16>
    %c0_4 = arith.constant 0 : index
    %c0_5 = arith.constant 0 : index
    %5 = vector.load %arg4[%c0_4, %c0_5] : memref<384x128xbf16, #tpu.memory_space<vmem>>, vector<384x128xbf16>
    %cst = arith.constant dense<0.000000e+00> : vector<32x128xf32>
    %6 = tpu.matmul %4, %5, %cst {dimension_numbers = #tpu.dot_dimension_numbers<[1], [0], [0], [1], [0, 0, 1, 1], [], []>} : vector<32x384xbf16>, vector<384x128xbf16>, vector<32x128xf32> -> vector<32x128xf32>
    %7 = arith.addf %3, %6 : vector<32x128xf32>
    %c0_6 = arith.constant 0 : index
    %c0_7 = arith.constant 0 : index
    %8 = vector.load %arg7[%c0_6, %c0_7] : memref<32x128xf32, #tpu.memory_space<vmem>>, vector<32x128xf32>
    tpu.vector_store %arg7[%c0_6, %c0_7], %7 {strides = array<i32>} : memref<32x128xf32, #tpu.memory_space<vmem>>, vector<32x128xf32>,
    %c2_i32 = arith.constant 2 : i32
    %9 = arith.cmpi eq, %arg2, %c2_i32 : i32
    %10 = arith.extui %9 : i1 to i32
    %c0_i32_8 = arith.constant 0 : i32
    %11 = arith.cmpi ne, %10, %c0_i32_8 : i32
    scf.if %11 {
      %c0_9 = arith.constant 0 : index
      %c0_10 = arith.constant 0 : index
      %12 = vector.load %arg7[%c0_9, %c0_10] : memref<32x128xf32, #tpu.memory_space<vmem>>, vector<32x128xf32>
      %c0_11 = arith.constant 0 : index
      %c0_12 = arith.constant 0 : index
      %13 = vector.load %arg5[%c0_11, %c0_12] : memref<1x128xf32, #tpu.memory_space<vmem>>, vector<1x128xf32>
      %14 = vector.broadcast %13 : vector<1x128xf32> to vector<32x128xf32>
      %15 = arith.addf %12, %14 : vector<32x128xf32>
      %cst_13 = arith.constant 0.000000e+00 : f32
      %16 = vector.broadcast %cst_13 : f32 to vector<32x128xf32>
      %17 = arith.maximumf %15, %16 : vector<32x128xf32>
      %18 = arith.truncf %17 : vector<32x128xf32> to vector<32x128xbf16>
      %c0_14 = arith.constant 0 : index
      %c0_15 = arith.constant 0 : index
      %19 = vector.load %arg6[%c0_14, %c0_15] : memref<32x128xbf16, #tpu.memory_space<vmem>>, vector<32x128xbf16>
      tpu.vector_store %arg6[%c0_14, %c0_15], %18 {strides = array<i32>} : memref<32x128xbf16, #tpu.memory_space<vmem>>, vector<32x128xbf16>,
    } else {
    }
    return
  }
  func.func @transform_0(%arg0: i32, %arg1: i32, %arg2: i32) -> (i32, i32) {
    %c0_i32 = arith.constant 0 : i32
    return %arg0, %arg2 : i32, i32
  }
  func.func @transform_1(%arg0: i32, %arg1: i32, %arg2: i32) -> (i32, i32) {
    %c0_i32 = arith.constant 0 : i32
    return %arg2, %arg1 : i32, i32
  }
  func.func @transform_2(%arg0: i32, %arg1: i32, %arg2: i32) -> (i32, i32) {
    %c0_i32 = arith.constant 0 : i32
    %c0_i32_0 = arith.constant 0 : i32
    return %c0_i32, %arg1 : i32, i32
  }
  func.func @transform_3(%arg0: i32, %arg1: i32, %arg2: i32) -> (i32, i32) {
    %c0_i32 = arith.constant 0 : i32
    return %arg0, %arg1 : i32, i32
  }
}

module attributes {stable_mosaic.version = 11 : i64} {
  func.func @_conv_bn_kernel(%arg0: i32, %arg1: i32, %arg2: i32, %arg3: memref<32x384xbf16, #tpu.memory_space<vmem>>, %arg4: memref<384x128xbf16, #tpu.memory_space<vmem>>, %arg5: memref<1x128xf32, #tpu.memory_space<vmem>>, %arg6: memref<32x128xbf16, #tpu.memory_space<vmem>>, %arg7: memref<32x128xbf16, #tpu.memory_space<vmem>>, %arg8: memref<32x128xf32, #tpu.memory_space<vmem>>) attributes {dimension_semantics = [#tpu.dimension_semantics<parallel>, #tpu.dimension_semantics<parallel>, #tpu.dimension_semantics<arbitrary>], iteration_bounds = array<i64: 1, 1, 3>, scalar_prefetch = 0 : i64, scratch_operands = 1 : i64, tpu.core_type = #tpu.core_type<tc>, window_params = [{transform_indices = @transform_0, window_bounds = array<i64: 32, 384>}, {transform_indices = @transform_1, window_bounds = array<i64: 384, 128>}, {transform_indices = @transform_2, window_bounds = array<i64: 1, 128>}, {transform_indices = @transform_3, window_bounds = array<i64: 32, 128>}, {transform_indices = @transform_4, window_bounds = array<i64: 32, 128>}]} {
    %c0_i32 = arith.constant 0 : i32
    %0 = arith.cmpi eq, %arg2, %c0_i32 : i32
    %1 = arith.extui %0 : i1 to i32
    %c0_i32_0 = arith.constant 0 : i32
    %2 = arith.cmpi ne, %1, %c0_i32_0 : i32
    scf.if %2 {
      %cst_9 = arith.constant 0.000000e+00 : f32
      %12 = vector.broadcast %cst_9 : f32 to vector<32x128xf32>
      %c0_10 = arith.constant 0 : index
      %c0_11 = arith.constant 0 : index
      %13 = vector.load %arg8[%c0_10, %c0_11] : memref<32x128xf32, #tpu.memory_space<vmem>>, vector<32x128xf32>
      tpu.vector_store %arg8[%c0_10, %c0_11], %12 {strides = array<i32>} : memref<32x128xf32, #tpu.memory_space<vmem>>, vector<32x128xf32>,
    } else {
    }
    %c0 = arith.constant 0 : index
    %c0_1 = arith.constant 0 : index
    %3 = vector.load %arg8[%c0, %c0_1] : memref<32x128xf32, #tpu.memory_space<vmem>>, vector<32x128xf32>
    %c0_2 = arith.constant 0 : index
    %c0_3 = arith.constant 0 : index
    %4 = vector.load %arg3[%c0_2, %c0_3] : memref<32x384xbf16, #tpu.memory_space<vmem>>, vector<32x384xbf16>
    %c0_4 = arith.constant 0 : index
    %c0_5 = arith.constant 0 : index
    %5 = vector.load %arg4[%c0_4, %c0_5] : memref<384x128xbf16, #tpu.memory_space<vmem>>, vector<384x128xbf16>
    %cst = arith.constant dense<0.000000e+00> : vector<32x128xf32>
    %6 = tpu.matmul %4, %5, %cst {dimension_numbers = #tpu.dot_dimension_numbers<[1], [0], [0], [1], [0, 0, 1, 1], [], []>} : vector<32x384xbf16>, vector<384x128xbf16>, vector<32x128xf32> -> vector<32x128xf32>
    %7 = arith.addf %3, %6 : vector<32x128xf32>
    %c0_6 = arith.constant 0 : index
    %c0_7 = arith.constant 0 : index
    %8 = vector.load %arg8[%c0_6, %c0_7] : memref<32x128xf32, #tpu.memory_space<vmem>>, vector<32x128xf32>
    tpu.vector_store %arg8[%c0_6, %c0_7], %7 {strides = array<i32>} : memref<32x128xf32, #tpu.memory_space<vmem>>, vector<32x128xf32>,
    %c2_i32 = arith.constant 2 : i32
    %9 = arith.cmpi eq, %arg2, %c2_i32 : i32
    %10 = arith.extui %9 : i1 to i32
    %c0_i32_8 = arith.constant 0 : i32
    %11 = arith.cmpi ne, %10, %c0_i32_8 : i32
    scf.if %11 {
      %c0_9 = arith.constant 0 : index
      %c0_10 = arith.constant 0 : index
      %12 = vector.load %arg8[%c0_9, %c0_10] : memref<32x128xf32, #tpu.memory_space<vmem>>, vector<32x128xf32>
      %c0_11 = arith.constant 0 : index
      %c0_12 = arith.constant 0 : index
      %13 = vector.load %arg5[%c0_11, %c0_12] : memref<1x128xf32, #tpu.memory_space<vmem>>, vector<1x128xf32>
      %14 = vector.broadcast %13 : vector<1x128xf32> to vector<32x128xf32>
      %15 = arith.addf %12, %14 : vector<32x128xf32>
      %c0_13 = arith.constant 0 : index
      %c0_14 = arith.constant 0 : index
      %16 = vector.load %arg6[%c0_13, %c0_14] : memref<32x128xbf16, #tpu.memory_space<vmem>>, vector<32x128xbf16>
      %17 = arith.extf %16 : vector<32x128xbf16> to vector<32x128xf32>
      %18 = arith.addf %15, %17 : vector<32x128xf32>
      %cst_15 = arith.constant 0.000000e+00 : f32
      %19 = vector.broadcast %cst_15 : f32 to vector<32x128xf32>
      %20 = arith.maximumf %18, %19 : vector<32x128xf32>
      %21 = arith.truncf %20 : vector<32x128xf32> to vector<32x128xbf16>
      %c0_16 = arith.constant 0 : index
      %c0_17 = arith.constant 0 : index
      %22 = vector.load %arg7[%c0_16, %c0_17] : memref<32x128xbf16, #tpu.memory_space<vmem>>, vector<32x128xbf16>
      tpu.vector_store %arg7[%c0_16, %c0_17], %21 {strides = array<i32>} : memref<32x128xbf16, #tpu.memory_space<vmem>>, vector<32x128xbf16>,
    } else {
    }
    return
  }
  func.func @transform_0(%arg0: i32, %arg1: i32, %arg2: i32) -> (i32, i32) {
    %c0_i32 = arith.constant 0 : i32
    return %arg0, %arg2 : i32, i32
  }
  func.func @transform_1(%arg0: i32, %arg1: i32, %arg2: i32) -> (i32, i32) {
    %c0_i32 = arith.constant 0 : i32
    return %arg2, %arg1 : i32, i32
  }
  func.func @transform_2(%arg0: i32, %arg1: i32, %arg2: i32) -> (i32, i32) {
    %c0_i32 = arith.constant 0 : i32
    %c0_i32_0 = arith.constant 0 : i32
    return %c0_i32, %arg1 : i32, i32
  }
  func.func @transform_3(%arg0: i32, %arg1: i32, %arg2: i32) -> (i32, i32) {
    %c0_i32 = arith.constant 0 : i32
    return %arg0, %arg1 : i32, i32
  }
  func.func @transform_4(%arg0: i32, %arg1: i32, %arg2: i32) -> (i32, i32) {
    %c0_i32 = arith.constant 0 : i32
    return %arg0, %arg1 : i32, i32
  }
}

module attributes {stable_mosaic.version = 11 : i64} {
  func.func @_conv_bn_kernel(%arg0: i32, %arg1: i32, %arg2: i32, %arg3: memref<32x128xbf16, #tpu.memory_space<vmem>>, %arg4: memref<128x128xbf16, #tpu.memory_space<vmem>>, %arg5: memref<1x128xf32, #tpu.memory_space<vmem>>, %arg6: memref<32x128xbf16, #tpu.memory_space<vmem>>, %arg7: memref<32x128xf32, #tpu.memory_space<vmem>>) attributes {dimension_semantics = [#tpu.dimension_semantics<parallel>, #tpu.dimension_semantics<parallel>, #tpu.dimension_semantics<arbitrary>], iteration_bounds = array<i64: 1, 1, 1>, scalar_prefetch = 0 : i64, scratch_operands = 1 : i64, tpu.core_type = #tpu.core_type<tc>, window_params = [{transform_indices = @transform_0, window_bounds = array<i64: 32, 128>}, {transform_indices = @transform_1, window_bounds = array<i64: 128, 128>}, {transform_indices = @transform_2, window_bounds = array<i64: 1, 128>}, {transform_indices = @transform_3, window_bounds = array<i64: 32, 128>}]} {
    %c0_i32 = arith.constant 0 : i32
    %0 = arith.cmpi eq, %arg2, %c0_i32 : i32
    %1 = arith.extui %0 : i1 to i32
    %c0_i32_0 = arith.constant 0 : i32
    %2 = arith.cmpi ne, %1, %c0_i32_0 : i32
    scf.if %2 {
      %cst_10 = arith.constant 0.000000e+00 : f32
      %12 = vector.broadcast %cst_10 : f32 to vector<32x128xf32>
      %c0_11 = arith.constant 0 : index
      %c0_12 = arith.constant 0 : index
      %13 = vector.load %arg7[%c0_11, %c0_12] : memref<32x128xf32, #tpu.memory_space<vmem>>, vector<32x128xf32>
      tpu.vector_store %arg7[%c0_11, %c0_12], %12 {strides = array<i32>} : memref<32x128xf32, #tpu.memory_space<vmem>>, vector<32x128xf32>,
    } else {
    }
    %c0 = arith.constant 0 : index
    %c0_1 = arith.constant 0 : index
    %3 = vector.load %arg7[%c0, %c0_1] : memref<32x128xf32, #tpu.memory_space<vmem>>, vector<32x128xf32>
    %c0_2 = arith.constant 0 : index
    %c0_3 = arith.constant 0 : index
    %4 = vector.load %arg3[%c0_2, %c0_3] : memref<32x128xbf16, #tpu.memory_space<vmem>>, vector<32x128xbf16>
    %c0_4 = arith.constant 0 : index
    %c0_5 = arith.constant 0 : index
    %5 = vector.load %arg4[%c0_4, %c0_5] : memref<128x128xbf16, #tpu.memory_space<vmem>>, vector<128x128xbf16>
    %cst = arith.constant dense<0.000000e+00> : vector<32x128xf32>
    %6 = tpu.matmul %4, %5, %cst {dimension_numbers = #tpu.dot_dimension_numbers<[1], [0], [0], [1], [0, 0, 1, 1], [], []>} : vector<32x128xbf16>, vector<128x128xbf16>, vector<32x128xf32> -> vector<32x128xf32>
    %7 = arith.addf %3, %6 : vector<32x128xf32>
    %c0_6 = arith.constant 0 : index
    %c0_7 = arith.constant 0 : index
    %8 = vector.load %arg7[%c0_6, %c0_7] : memref<32x128xf32, #tpu.memory_space<vmem>>, vector<32x128xf32>
    tpu.vector_store %arg7[%c0_6, %c0_7], %7 {strides = array<i32>} : memref<32x128xf32, #tpu.memory_space<vmem>>, vector<32x128xf32>,
    %c0_i32_8 = arith.constant 0 : i32
    %9 = arith.cmpi eq, %arg2, %c0_i32_8 : i32
    %10 = arith.extui %9 : i1 to i32
    %c0_i32_9 = arith.constant 0 : i32
    %11 = arith.cmpi ne, %10, %c0_i32_9 : i32
    scf.if %11 {
      %c0_10 = arith.constant 0 : index
      %c0_11 = arith.constant 0 : index
      %12 = vector.load %arg7[%c0_10, %c0_11] : memref<32x128xf32, #tpu.memory_space<vmem>>, vector<32x128xf32>
      %c0_12 = arith.constant 0 : index
      %c0_13 = arith.constant 0 : index
      %13 = vector.load %arg5[%c0_12, %c0_13] : memref<1x128xf32, #tpu.memory_space<vmem>>, vector<1x128xf32>
      %14 = vector.broadcast %13 : vector<1x128xf32> to vector<32x128xf32>
      %15 = arith.addf %12, %14 : vector<32x128xf32>
      %16 = arith.truncf %15 : vector<32x128xf32> to vector<32x128xbf16>
      %c0_14 = arith.constant 0 : index
      %c0_15 = arith.constant 0 : index
      %17 = vector.load %arg6[%c0_14, %c0_15] : memref<32x128xbf16, #tpu.memory_space<vmem>>, vector<32x128xbf16>
      tpu.vector_store %arg6[%c0_14, %c0_15], %16 {strides = array<i32>} : memref<32x128xbf16, #tpu.memory_space<vmem>>, vector<32x128xbf16>,
    } else {
    }
    return
  }
  func.func @transform_0(%arg0: i32, %arg1: i32, %arg2: i32) -> (i32, i32) {
    %c0_i32 = arith.constant 0 : i32
    return %arg0, %arg2 : i32, i32
  }
  func.func @transform_1(%arg0: i32, %arg1: i32, %arg2: i32) -> (i32, i32) {
    %c0_i32 = arith.constant 0 : i32
    return %arg2, %arg1 : i32, i32
  }
  func.func @transform_2(%arg0: i32, %arg1: i32, %arg2: i32) -> (i32, i32) {
    %c0_i32 = arith.constant 0 : i32
    %c0_i32_0 = arith.constant 0 : i32
    return %c0_i32, %arg1 : i32, i32
  }
  func.func @transform_3(%arg0: i32, %arg1: i32, %arg2: i32) -> (i32, i32) {
    %c0_i32 = arith.constant 0 : i32
    return %arg0, %arg1 : i32, i32
  }
}

module attributes {stable_mosaic.version = 11 : i64} {
  func.func @_conv_bn_kernel(%arg0: i32, %arg1: i32, %arg2: i32, %arg3: memref<8x384xbf16, #tpu.memory_space<vmem>>, %arg4: memref<384x128xbf16, #tpu.memory_space<vmem>>, %arg5: memref<1x128xf32, #tpu.memory_space<vmem>>, %arg6: memref<8x128xbf16, #tpu.memory_space<vmem>>, %arg7: memref<8x128xf32, #tpu.memory_space<vmem>>) attributes {dimension_semantics = [#tpu.dimension_semantics<parallel>, #tpu.dimension_semantics<parallel>, #tpu.dimension_semantics<arbitrary>], iteration_bounds = array<i64: 1, 1, 3>, scalar_prefetch = 0 : i64, scratch_operands = 1 : i64, tpu.core_type = #tpu.core_type<tc>, window_params = [{transform_indices = @transform_0, window_bounds = array<i64: 8, 384>}, {transform_indices = @transform_1, window_bounds = array<i64: 384, 128>}, {transform_indices = @transform_2, window_bounds = array<i64: 1, 128>}, {transform_indices = @transform_3, window_bounds = array<i64: 8, 128>}]} {
    %c0_i32 = arith.constant 0 : i32
    %0 = arith.cmpi eq, %arg2, %c0_i32 : i32
    %1 = arith.extui %0 : i1 to i32
    %c0_i32_0 = arith.constant 0 : i32
    %2 = arith.cmpi ne, %1, %c0_i32_0 : i32
    scf.if %2 {
      %cst_9 = arith.constant 0.000000e+00 : f32
      %12 = vector.broadcast %cst_9 : f32 to vector<8x128xf32>
      %c0_10 = arith.constant 0 : index
      %c0_11 = arith.constant 0 : index
      %13 = vector.load %arg7[%c0_10, %c0_11] : memref<8x128xf32, #tpu.memory_space<vmem>>, vector<8x128xf32>
      tpu.vector_store %arg7[%c0_10, %c0_11], %12 {strides = array<i32>} : memref<8x128xf32, #tpu.memory_space<vmem>>, vector<8x128xf32>,
    } else {
    }
    %c0 = arith.constant 0 : index
    %c0_1 = arith.constant 0 : index
    %3 = vector.load %arg7[%c0, %c0_1] : memref<8x128xf32, #tpu.memory_space<vmem>>, vector<8x128xf32>
    %c0_2 = arith.constant 0 : index
    %c0_3 = arith.constant 0 : index
    %4 = vector.load %arg3[%c0_2, %c0_3] : memref<8x384xbf16, #tpu.memory_space<vmem>>, vector<8x384xbf16>
    %c0_4 = arith.constant 0 : index
    %c0_5 = arith.constant 0 : index
    %5 = vector.load %arg4[%c0_4, %c0_5] : memref<384x128xbf16, #tpu.memory_space<vmem>>, vector<384x128xbf16>
    %cst = arith.constant dense<0.000000e+00> : vector<8x128xf32>
    %6 = tpu.matmul %4, %5, %cst {dimension_numbers = #tpu.dot_dimension_numbers<[1], [0], [0], [1], [0, 0, 1, 1], [], []>} : vector<8x384xbf16>, vector<384x128xbf16>, vector<8x128xf32> -> vector<8x128xf32>
    %7 = arith.addf %3, %6 : vector<8x128xf32>
    %c0_6 = arith.constant 0 : index
    %c0_7 = arith.constant 0 : index
    %8 = vector.load %arg7[%c0_6, %c0_7] : memref<8x128xf32, #tpu.memory_space<vmem>>, vector<8x128xf32>
    tpu.vector_store %arg7[%c0_6, %c0_7], %7 {strides = array<i32>} : memref<8x128xf32, #tpu.memory_space<vmem>>, vector<8x128xf32>,
    %c2_i32 = arith.constant 2 : i32
    %9 = arith.cmpi eq, %arg2, %c2_i32 : i32
    %10 = arith.extui %9 : i1 to i32
    %c0_i32_8 = arith.constant 0 : i32
    %11 = arith.cmpi ne, %10, %c0_i32_8 : i32
    scf.if %11 {
      %c0_9 = arith.constant 0 : index
      %c0_10 = arith.constant 0 : index
      %12 = vector.load %arg7[%c0_9, %c0_10] : memref<8x128xf32, #tpu.memory_space<vmem>>, vector<8x128xf32>
      %c0_11 = arith.constant 0 : index
      %c0_12 = arith.constant 0 : index
      %13 = vector.load %arg5[%c0_11, %c0_12] : memref<1x128xf32, #tpu.memory_space<vmem>>, vector<1x128xf32>
      %14 = vector.broadcast %13 : vector<1x128xf32> to vector<8x128xf32>
      %15 = arith.addf %12, %14 : vector<8x128xf32>
      %cst_13 = arith.constant 0.000000e+00 : f32
      %16 = vector.broadcast %cst_13 : f32 to vector<8x128xf32>
      %17 = arith.maximumf %15, %16 : vector<8x128xf32>
      %18 = arith.truncf %17 : vector<8x128xf32> to vector<8x128xbf16>
      %c0_14 = arith.constant 0 : index
      %c0_15 = arith.constant 0 : index
      %19 = vector.load %arg6[%c0_14, %c0_15] : memref<8x128xbf16, #tpu.memory_space<vmem>>, vector<8x128xbf16>
      tpu.vector_store %arg6[%c0_14, %c0_15], %18 {strides = array<i32>} : memref<8x128xbf16, #tpu.memory_space<vmem>>, vector<8x128xbf16>,
    } else {
    }
    return
  }
  func.func @transform_0(%arg0: i32, %arg1: i32, %arg2: i32) -> (i32, i32) {
    %c0_i32 = arith.constant 0 : i32
    return %arg0, %arg2 : i32, i32
  }
  func.func @transform_1(%arg0: i32, %arg1: i32, %arg2: i32) -> (i32, i32) {
    %c0_i32 = arith.constant 0 : i32
    return %arg2, %arg1 : i32, i32
  }
  func.func @transform_2(%arg0: i32, %arg1: i32, %arg2: i32) -> (i32, i32) {
    %c0_i32 = arith.constant 0 : i32
    %c0_i32_0 = arith.constant 0 : i32
    return %c0_i32, %arg1 : i32, i32
  }
  func.func @transform_3(%arg0: i32, %arg1: i32, %arg2: i32) -> (i32, i32) {
    %c0_i32 = arith.constant 0 : i32
    return %arg0, %arg1 : i32, i32
  }
}

module attributes {stable_mosaic.version = 11 : i64} {
  func.func @_conv_bn_kernel(%arg0: i32, %arg1: i32, %arg2: i32, %arg3: memref<8x128xbf16, #tpu.memory_space<vmem>>, %arg4: memref<128x128xbf16, #tpu.memory_space<vmem>>, %arg5: memref<1x128xf32, #tpu.memory_space<vmem>>, %arg6: memref<8x128xbf16, #tpu.memory_space<vmem>>, %arg7: memref<8x128xf32, #tpu.memory_space<vmem>>) attributes {dimension_semantics = [#tpu.dimension_semantics<parallel>, #tpu.dimension_semantics<parallel>, #tpu.dimension_semantics<arbitrary>], iteration_bounds = array<i64: 1, 1, 1>, scalar_prefetch = 0 : i64, scratch_operands = 1 : i64, tpu.core_type = #tpu.core_type<tc>, window_params = [{transform_indices = @transform_0, window_bounds = array<i64: 8, 128>}, {transform_indices = @transform_1, window_bounds = array<i64: 128, 128>}, {transform_indices = @transform_2, window_bounds = array<i64: 1, 128>}, {transform_indices = @transform_3, window_bounds = array<i64: 8, 128>}]} {
    %c0_i32 = arith.constant 0 : i32
    %0 = arith.cmpi eq, %arg2, %c0_i32 : i32
    %1 = arith.extui %0 : i1 to i32
    %c0_i32_0 = arith.constant 0 : i32
    %2 = arith.cmpi ne, %1, %c0_i32_0 : i32
    scf.if %2 {
      %cst_10 = arith.constant 0.000000e+00 : f32
      %12 = vector.broadcast %cst_10 : f32 to vector<8x128xf32>
      %c0_11 = arith.constant 0 : index
      %c0_12 = arith.constant 0 : index
      %13 = vector.load %arg7[%c0_11, %c0_12] : memref<8x128xf32, #tpu.memory_space<vmem>>, vector<8x128xf32>
      tpu.vector_store %arg7[%c0_11, %c0_12], %12 {strides = array<i32>} : memref<8x128xf32, #tpu.memory_space<vmem>>, vector<8x128xf32>,
    } else {
    }
    %c0 = arith.constant 0 : index
    %c0_1 = arith.constant 0 : index
    %3 = vector.load %arg7[%c0, %c0_1] : memref<8x128xf32, #tpu.memory_space<vmem>>, vector<8x128xf32>
    %c0_2 = arith.constant 0 : index
    %c0_3 = arith.constant 0 : index
    %4 = vector.load %arg3[%c0_2, %c0_3] : memref<8x128xbf16, #tpu.memory_space<vmem>>, vector<8x128xbf16>
    %c0_4 = arith.constant 0 : index
    %c0_5 = arith.constant 0 : index
    %5 = vector.load %arg4[%c0_4, %c0_5] : memref<128x128xbf16, #tpu.memory_space<vmem>>, vector<128x128xbf16>
    %cst = arith.constant dense<0.000000e+00> : vector<8x128xf32>
    %6 = tpu.matmul %4, %5, %cst {dimension_numbers = #tpu.dot_dimension_numbers<[1], [0], [0], [1], [0, 0, 1, 1], [], []>} : vector<8x128xbf16>, vector<128x128xbf16>, vector<8x128xf32> -> vector<8x128xf32>
    %7 = arith.addf %3, %6 : vector<8x128xf32>
    %c0_6 = arith.constant 0 : index
    %c0_7 = arith.constant 0 : index
    %8 = vector.load %arg7[%c0_6, %c0_7] : memref<8x128xf32, #tpu.memory_space<vmem>>, vector<8x128xf32>
    tpu.vector_store %arg7[%c0_6, %c0_7], %7 {strides = array<i32>} : memref<8x128xf32, #tpu.memory_space<vmem>>, vector<8x128xf32>,
    %c0_i32_8 = arith.constant 0 : i32
    %9 = arith.cmpi eq, %arg2, %c0_i32_8 : i32
    %10 = arith.extui %9 : i1 to i32
    %c0_i32_9 = arith.constant 0 : i32
    %11 = arith.cmpi ne, %10, %c0_i32_9 : i32
    scf.if %11 {
      %c0_10 = arith.constant 0 : index
      %c0_11 = arith.constant 0 : index
      %12 = vector.load %arg7[%c0_10, %c0_11] : memref<8x128xf32, #tpu.memory_space<vmem>>, vector<8x128xf32>
      %c0_12 = arith.constant 0 : index
      %c0_13 = arith.constant 0 : index
      %13 = vector.load %arg5[%c0_12, %c0_13] : memref<1x128xf32, #tpu.memory_space<vmem>>, vector<1x128xf32>
      %14 = vector.broadcast %13 : vector<1x128xf32> to vector<8x128xf32>
      %15 = arith.addf %12, %14 : vector<8x128xf32>
      %16 = arith.truncf %15 : vector<8x128xf32> to vector<8x128xbf16>
      %c0_14 = arith.constant 0 : index
      %c0_15 = arith.constant 0 : index
      %17 = vector.load %arg6[%c0_14, %c0_15] : memref<8x128xbf16, #tpu.memory_space<vmem>>, vector<8x128xbf16>
      tpu.vector_store %arg6[%c0_14, %c0_15], %16 {strides = array<i32>} : memref<8x128xbf16, #tpu.memory_space<vmem>>, vector<8x128xbf16>,
    } else {
    }
    return
  }
  func.func @transform_0(%arg0: i32, %arg1: i32, %arg2: i32) -> (i32, i32) {
    %c0_i32 = arith.constant 0 : i32
    return %arg0, %arg2 : i32, i32
  }
  func.func @transform_1(%arg0: i32, %arg1: i32, %arg2: i32) -> (i32, i32) {
    %c0_i32 = arith.constant 0 : i32
    return %arg2, %arg1 : i32, i32
  }
  func.func @transform_2(%arg0: i32, %arg1: i32, %arg2: i32) -> (i32, i32) {
    %c0_i32 = arith.constant 0 : i32
    %c0_i32_0 = arith.constant 0 : i32
    return %c0_i32, %arg1 : i32, i32
  }
  func.func @transform_3(%arg0: i32, %arg1: i32, %arg2: i32) -> (i32, i32) {
    %c0_i32 = arith.constant 0 : i32
    return %arg0, %arg1 : i32, i32
  }
}

module attributes {stable_mosaic.version = 11 : i64} {
  func.func @_conv_bn_kernel(%arg0: i32, %arg1: i32, %arg2: i32, %arg3: memref<8x384xbf16, #tpu.memory_space<vmem>>, %arg4: memref<384x128xbf16, #tpu.memory_space<vmem>>, %arg5: memref<1x128xf32, #tpu.memory_space<vmem>>, %arg6: memref<8x128xbf16, #tpu.memory_space<vmem>>, %arg7: memref<8x128xbf16, #tpu.memory_space<vmem>>, %arg8: memref<8x128xf32, #tpu.memory_space<vmem>>) attributes {dimension_semantics = [#tpu.dimension_semantics<parallel>, #tpu.dimension_semantics<parallel>, #tpu.dimension_semantics<arbitrary>], iteration_bounds = array<i64: 1, 1, 3>, scalar_prefetch = 0 : i64, scratch_operands = 1 : i64, tpu.core_type = #tpu.core_type<tc>, window_params = [{transform_indices = @transform_0, window_bounds = array<i64: 8, 384>}, {transform_indices = @transform_1, window_bounds = array<i64: 384, 128>}, {transform_indices = @transform_2, window_bounds = array<i64: 1, 128>}, {transform_indices = @transform_3, window_bounds = array<i64: 8, 128>}, {transform_indices = @transform_4, window_bounds = array<i64: 8, 128>}]} {
    %c0_i32 = arith.constant 0 : i32
    %0 = arith.cmpi eq, %arg2, %c0_i32 : i32
    %1 = arith.extui %0 : i1 to i32
    %c0_i32_0 = arith.constant 0 : i32
    %2 = arith.cmpi ne, %1, %c0_i32_0 : i32
    scf.if %2 {
      %cst_9 = arith.constant 0.000000e+00 : f32
      %12 = vector.broadcast %cst_9 : f32 to vector<8x128xf32>
      %c0_10 = arith.constant 0 : index
      %c0_11 = arith.constant 0 : index
      %13 = vector.load %arg8[%c0_10, %c0_11] : memref<8x128xf32, #tpu.memory_space<vmem>>, vector<8x128xf32>
      tpu.vector_store %arg8[%c0_10, %c0_11], %12 {strides = array<i32>} : memref<8x128xf32, #tpu.memory_space<vmem>>, vector<8x128xf32>,
    } else {
    }
    %c0 = arith.constant 0 : index
    %c0_1 = arith.constant 0 : index
    %3 = vector.load %arg8[%c0, %c0_1] : memref<8x128xf32, #tpu.memory_space<vmem>>, vector<8x128xf32>
    %c0_2 = arith.constant 0 : index
    %c0_3 = arith.constant 0 : index
    %4 = vector.load %arg3[%c0_2, %c0_3] : memref<8x384xbf16, #tpu.memory_space<vmem>>, vector<8x384xbf16>
    %c0_4 = arith.constant 0 : index
    %c0_5 = arith.constant 0 : index
    %5 = vector.load %arg4[%c0_4, %c0_5] : memref<384x128xbf16, #tpu.memory_space<vmem>>, vector<384x128xbf16>
    %cst = arith.constant dense<0.000000e+00> : vector<8x128xf32>
    %6 = tpu.matmul %4, %5, %cst {dimension_numbers = #tpu.dot_dimension_numbers<[1], [0], [0], [1], [0, 0, 1, 1], [], []>} : vector<8x384xbf16>, vector<384x128xbf16>, vector<8x128xf32> -> vector<8x128xf32>
    %7 = arith.addf %3, %6 : vector<8x128xf32>
    %c0_6 = arith.constant 0 : index
    %c0_7 = arith.constant 0 : index
    %8 = vector.load %arg8[%c0_6, %c0_7] : memref<8x128xf32, #tpu.memory_space<vmem>>, vector<8x128xf32>
    tpu.vector_store %arg8[%c0_6, %c0_7], %7 {strides = array<i32>} : memref<8x128xf32, #tpu.memory_space<vmem>>, vector<8x128xf32>,
    %c2_i32 = arith.constant 2 : i32
    %9 = arith.cmpi eq, %arg2, %c2_i32 : i32
    %10 = arith.extui %9 : i1 to i32
    %c0_i32_8 = arith.constant 0 : i32
    %11 = arith.cmpi ne, %10, %c0_i32_8 : i32
    scf.if %11 {
      %c0_9 = arith.constant 0 : index
      %c0_10 = arith.constant 0 : index
      %12 = vector.load %arg8[%c0_9, %c0_10] : memref<8x128xf32, #tpu.memory_space<vmem>>, vector<8x128xf32>
      %c0_11 = arith.constant 0 : index
      %c0_12 = arith.constant 0 : index
      %13 = vector.load %arg5[%c0_11, %c0_12] : memref<1x128xf32, #tpu.memory_space<vmem>>, vector<1x128xf32>
      %14 = vector.broadcast %13 : vector<1x128xf32> to vector<8x128xf32>
      %15 = arith.addf %12, %14 : vector<8x128xf32>
      %c0_13 = arith.constant 0 : index
      %c0_14 = arith.constant 0 : index
      %16 = vector.load %arg6[%c0_13, %c0_14] : memref<8x128xbf16, #tpu.memory_space<vmem>>, vector<8x128xbf16>
      %17 = arith.extf %16 : vector<8x128xbf16> to vector<8x128xf32>
      %18 = arith.addf %15, %17 : vector<8x128xf32>
      %cst_15 = arith.constant 0.000000e+00 : f32
      %19 = vector.broadcast %cst_15 : f32 to vector<8x128xf32>
      %20 = arith.maximumf %18, %19 : vector<8x128xf32>
      %21 = arith.truncf %20 : vector<8x128xf32> to vector<8x128xbf16>
      %c0_16 = arith.constant 0 : index
      %c0_17 = arith.constant 0 : index
      %22 = vector.load %arg7[%c0_16, %c0_17] : memref<8x128xbf16, #tpu.memory_space<vmem>>, vector<8x128xbf16>
      tpu.vector_store %arg7[%c0_16, %c0_17], %21 {strides = array<i32>} : memref<8x128xbf16, #tpu.memory_space<vmem>>, vector<8x128xbf16>,
    } else {
    }
    return
  }
  func.func @transform_0(%arg0: i32, %arg1: i32, %arg2: i32) -> (i32, i32) {
    %c0_i32 = arith.constant 0 : i32
    return %arg0, %arg2 : i32, i32
  }
  func.func @transform_1(%arg0: i32, %arg1: i32, %arg2: i32) -> (i32, i32) {
    %c0_i32 = arith.constant 0 : i32
    return %arg2, %arg1 : i32, i32
  }
  func.func @transform_2(%arg0: i32, %arg1: i32, %arg2: i32) -> (i32, i32) {
    %c0_i32 = arith.constant 0 : i32
    %c0_i32_0 = arith.constant 0 : i32
    return %c0_i32, %arg1 : i32, i32
  }
  func.func @transform_3(%arg0: i32, %arg1: i32, %arg2: i32) -> (i32, i32) {
    %c0_i32 = arith.constant 0 : i32
    return %arg0, %arg1 : i32, i32
  }
  func.func @transform_4(%arg0: i32, %arg1: i32, %arg2: i32) -> (i32, i32) {
    %c0_i32 = arith.constant 0 : i32
    return %arg0, %arg1 : i32, i32
  }
}

module attributes {stable_mosaic.version = 11 : i64} {
  func.func @_conv_bn_kernel(%arg0: i32, %arg1: i32, %arg2: i32, %arg3: memref<8x384xbf16, #tpu.memory_space<vmem>>, %arg4: memref<384x256xbf16, #tpu.memory_space<vmem>>, %arg5: memref<1x256xf32, #tpu.memory_space<vmem>>, %arg6: memref<8x256xbf16, #tpu.memory_space<vmem>>, %arg7: memref<8x256xf32, #tpu.memory_space<vmem>>) attributes {dimension_semantics = [#tpu.dimension_semantics<parallel>, #tpu.dimension_semantics<parallel>, #tpu.dimension_semantics<arbitrary>], iteration_bounds = array<i64: 1, 1, 3>, scalar_prefetch = 0 : i64, scratch_operands = 1 : i64, tpu.core_type = #tpu.core_type<tc>, window_params = [{transform_indices = @transform_0, window_bounds = array<i64: 8, 384>}, {transform_indices = @transform_1, window_bounds = array<i64: 384, 256>}, {transform_indices = @transform_2, window_bounds = array<i64: 1, 256>}, {transform_indices = @transform_3, window_bounds = array<i64: 8, 256>}]} {
    %c0_i32 = arith.constant 0 : i32
    %0 = arith.cmpi eq, %arg2, %c0_i32 : i32
    %1 = arith.extui %0 : i1 to i32
    %c0_i32_0 = arith.constant 0 : i32
    %2 = arith.cmpi ne, %1, %c0_i32_0 : i32
    scf.if %2 {
      %cst_9 = arith.constant 0.000000e+00 : f32
      %12 = vector.broadcast %cst_9 : f32 to vector<8x256xf32>
      %c0_10 = arith.constant 0 : index
      %c0_11 = arith.constant 0 : index
      %13 = vector.load %arg7[%c0_10, %c0_11] : memref<8x256xf32, #tpu.memory_space<vmem>>, vector<8x256xf32>
      tpu.vector_store %arg7[%c0_10, %c0_11], %12 {strides = array<i32>} : memref<8x256xf32, #tpu.memory_space<vmem>>, vector<8x256xf32>,
    } else {
    }
    %c0 = arith.constant 0 : index
    %c0_1 = arith.constant 0 : index
    %3 = vector.load %arg7[%c0, %c0_1] : memref<8x256xf32, #tpu.memory_space<vmem>>, vector<8x256xf32>
    %c0_2 = arith.constant 0 : index
    %c0_3 = arith.constant 0 : index
    %4 = vector.load %arg3[%c0_2, %c0_3] : memref<8x384xbf16, #tpu.memory_space<vmem>>, vector<8x384xbf16>
    %c0_4 = arith.constant 0 : index
    %c0_5 = arith.constant 0 : index
    %5 = vector.load %arg4[%c0_4, %c0_5] : memref<384x256xbf16, #tpu.memory_space<vmem>>, vector<384x256xbf16>
    %cst = arith.constant dense<0.000000e+00> : vector<8x256xf32>
    %6 = tpu.matmul %4, %5, %cst {dimension_numbers = #tpu.dot_dimension_numbers<[1], [0], [0], [1], [0, 0, 1, 1], [], []>} : vector<8x384xbf16>, vector<384x256xbf16>, vector<8x256xf32> -> vector<8x256xf32>
    %7 = arith.addf %3, %6 : vector<8x256xf32>
    %c0_6 = arith.constant 0 : index
    %c0_7 = arith.constant 0 : index
    %8 = vector.load %arg7[%c0_6, %c0_7] : memref<8x256xf32, #tpu.memory_space<vmem>>, vector<8x256xf32>
    tpu.vector_store %arg7[%c0_6, %c0_7], %7 {strides = array<i32>} : memref<8x256xf32, #tpu.memory_space<vmem>>, vector<8x256xf32>,
    %c2_i32 = arith.constant 2 : i32
    %9 = arith.cmpi eq, %arg2, %c2_i32 : i32
    %10 = arith.extui %9 : i1 to i32
    %c0_i32_8 = arith.constant 0 : i32
    %11 = arith.cmpi ne, %10, %c0_i32_8 : i32
    scf.if %11 {
      %c0_9 = arith.constant 0 : index
      %c0_10 = arith.constant 0 : index
      %12 = vector.load %arg7[%c0_9, %c0_10] : memref<8x256xf32, #tpu.memory_space<vmem>>, vector<8x256xf32>
      %c0_11 = arith.constant 0 : index
      %c0_12 = arith.constant 0 : index
      %13 = vector.load %arg5[%c0_11, %c0_12] : memref<1x256xf32, #tpu.memory_space<vmem>>, vector<1x256xf32>
      %14 = vector.broadcast %13 : vector<1x256xf32> to vector<8x256xf32>
      %15 = arith.addf %12, %14 : vector<8x256xf32>
      %cst_13 = arith.constant 0.000000e+00 : f32
      %16 = vector.broadcast %cst_13 : f32 to vector<8x256xf32>
      %17 = arith.maximumf %15, %16 : vector<8x256xf32>
      %18 = arith.truncf %17 : vector<8x256xf32> to vector<8x256xbf16>
      %c0_14 = arith.constant 0 : index
      %c0_15 = arith.constant 0 : index
      %19 = vector.load %arg6[%c0_14, %c0_15] : memref<8x256xbf16, #tpu.memory_space<vmem>>, vector<8x256xbf16>
      tpu.vector_store %arg6[%c0_14, %c0_15], %18 {strides = array<i32>} : memref<8x256xbf16, #tpu.memory_space<vmem>>, vector<8x256xbf16>,
    } else {
    }
    return
  }
  func.func @transform_0(%arg0: i32, %arg1: i32, %arg2: i32) -> (i32, i32) {
    %c0_i32 = arith.constant 0 : i32
    return %arg0, %arg2 : i32, i32
  }
  func.func @transform_1(%arg0: i32, %arg1: i32, %arg2: i32) -> (i32, i32) {
    %c0_i32 = arith.constant 0 : i32
    return %arg2, %arg1 : i32, i32
  }
  func.func @transform_2(%arg0: i32, %arg1: i32, %arg2: i32) -> (i32, i32) {
    %c0_i32 = arith.constant 0 : i32
    %c0_i32_0 = arith.constant 0 : i32
    return %c0_i32, %arg1 : i32, i32
  }
  func.func @transform_3(%arg0: i32, %arg1: i32, %arg2: i32) -> (i32, i32) {
    %c0_i32 = arith.constant 0 : i32
    return %arg0, %arg1 : i32, i32
  }
}

module attributes {stable_mosaic.version = 11 : i64} {
  func.func @_conv_bn_kernel(%arg0: i32, %arg1: i32, %arg2: i32, %arg3: memref<8x128xbf16, #tpu.memory_space<vmem>>, %arg4: memref<128x256xbf16, #tpu.memory_space<vmem>>, %arg5: memref<1x256xf32, #tpu.memory_space<vmem>>, %arg6: memref<8x256xbf16, #tpu.memory_space<vmem>>, %arg7: memref<8x256xf32, #tpu.memory_space<vmem>>) attributes {dimension_semantics = [#tpu.dimension_semantics<parallel>, #tpu.dimension_semantics<parallel>, #tpu.dimension_semantics<arbitrary>], iteration_bounds = array<i64: 1, 1, 1>, scalar_prefetch = 0 : i64, scratch_operands = 1 : i64, tpu.core_type = #tpu.core_type<tc>, window_params = [{transform_indices = @transform_0, window_bounds = array<i64: 8, 128>}, {transform_indices = @transform_1, window_bounds = array<i64: 128, 256>}, {transform_indices = @transform_2, window_bounds = array<i64: 1, 256>}, {transform_indices = @transform_3, window_bounds = array<i64: 8, 256>}]} {
    %c0_i32 = arith.constant 0 : i32
    %0 = arith.cmpi eq, %arg2, %c0_i32 : i32
    %1 = arith.extui %0 : i1 to i32
    %c0_i32_0 = arith.constant 0 : i32
    %2 = arith.cmpi ne, %1, %c0_i32_0 : i32
    scf.if %2 {
      %cst_10 = arith.constant 0.000000e+00 : f32
      %12 = vector.broadcast %cst_10 : f32 to vector<8x256xf32>
      %c0_11 = arith.constant 0 : index
      %c0_12 = arith.constant 0 : index
      %13 = vector.load %arg7[%c0_11, %c0_12] : memref<8x256xf32, #tpu.memory_space<vmem>>, vector<8x256xf32>
      tpu.vector_store %arg7[%c0_11, %c0_12], %12 {strides = array<i32>} : memref<8x256xf32, #tpu.memory_space<vmem>>, vector<8x256xf32>,
    } else {
    }
    %c0 = arith.constant 0 : index
    %c0_1 = arith.constant 0 : index
    %3 = vector.load %arg7[%c0, %c0_1] : memref<8x256xf32, #tpu.memory_space<vmem>>, vector<8x256xf32>
    %c0_2 = arith.constant 0 : index
    %c0_3 = arith.constant 0 : index
    %4 = vector.load %arg3[%c0_2, %c0_3] : memref<8x128xbf16, #tpu.memory_space<vmem>>, vector<8x128xbf16>
    %c0_4 = arith.constant 0 : index
    %c0_5 = arith.constant 0 : index
    %5 = vector.load %arg4[%c0_4, %c0_5] : memref<128x256xbf16, #tpu.memory_space<vmem>>, vector<128x256xbf16>
    %cst = arith.constant dense<0.000000e+00> : vector<8x256xf32>
    %6 = tpu.matmul %4, %5, %cst {dimension_numbers = #tpu.dot_dimension_numbers<[1], [0], [0], [1], [0, 0, 1, 1], [], []>} : vector<8x128xbf16>, vector<128x256xbf16>, vector<8x256xf32> -> vector<8x256xf32>
    %7 = arith.addf %3, %6 : vector<8x256xf32>
    %c0_6 = arith.constant 0 : index
    %c0_7 = arith.constant 0 : index
    %8 = vector.load %arg7[%c0_6, %c0_7] : memref<8x256xf32, #tpu.memory_space<vmem>>, vector<8x256xf32>
    tpu.vector_store %arg7[%c0_6, %c0_7], %7 {strides = array<i32>} : memref<8x256xf32, #tpu.memory_space<vmem>>, vector<8x256xf32>,
    %c0_i32_8 = arith.constant 0 : i32
    %9 = arith.cmpi eq, %arg2, %c0_i32_8 : i32
    %10 = arith.extui %9 : i1 to i32
    %c0_i32_9 = arith.constant 0 : i32
    %11 = arith.cmpi ne, %10, %c0_i32_9 : i32
    scf.if %11 {
      %c0_10 = arith.constant 0 : index
      %c0_11 = arith.constant 0 : index
      %12 = vector.load %arg7[%c0_10, %c0_11] : memref<8x256xf32, #tpu.memory_space<vmem>>, vector<8x256xf32>
      %c0_12 = arith.constant 0 : index
      %c0_13 = arith.constant 0 : index
      %13 = vector.load %arg5[%c0_12, %c0_13] : memref<1x256xf32, #tpu.memory_space<vmem>>, vector<1x256xf32>
      %14 = vector.broadcast %13 : vector<1x256xf32> to vector<8x256xf32>
      %15 = arith.addf %12, %14 : vector<8x256xf32>
      %16 = arith.truncf %15 : vector<8x256xf32> to vector<8x256xbf16>
      %c0_14 = arith.constant 0 : index
      %c0_15 = arith.constant 0 : index
      %17 = vector.load %arg6[%c0_14, %c0_15] : memref<8x256xbf16, #tpu.memory_space<vmem>>, vector<8x256xbf16>
      tpu.vector_store %arg6[%c0_14, %c0_15], %16 {strides = array<i32>} : memref<8x256xbf16, #tpu.memory_space<vmem>>, vector<8x256xbf16>,
    } else {
    }
    return
  }
  func.func @transform_0(%arg0: i32, %arg1: i32, %arg2: i32) -> (i32, i32) {
    %c0_i32 = arith.constant 0 : i32
    return %arg0, %arg2 : i32, i32
  }
  func.func @transform_1(%arg0: i32, %arg1: i32, %arg2: i32) -> (i32, i32) {
    %c0_i32 = arith.constant 0 : i32
    return %arg2, %arg1 : i32, i32
  }
  func.func @transform_2(%arg0: i32, %arg1: i32, %arg2: i32) -> (i32, i32) {
    %c0_i32 = arith.constant 0 : i32
    %c0_i32_0 = arith.constant 0 : i32
    return %c0_i32, %arg1 : i32, i32
  }
  func.func @transform_3(%arg0: i32, %arg1: i32, %arg2: i32) -> (i32, i32) {
    %c0_i32 = arith.constant 0 : i32
    return %arg0, %arg1 : i32, i32
  }
}

module attributes {stable_mosaic.version = 11 : i64} {
  func.func @_conv_bn_kernel(%arg0: i32, %arg1: i32, %arg2: i32, %arg3: memref<8x384xbf16, #tpu.memory_space<vmem>>, %arg4: memref<384x256xbf16, #tpu.memory_space<vmem>>, %arg5: memref<1x256xf32, #tpu.memory_space<vmem>>, %arg6: memref<8x256xbf16, #tpu.memory_space<vmem>>, %arg7: memref<8x256xbf16, #tpu.memory_space<vmem>>, %arg8: memref<8x256xf32, #tpu.memory_space<vmem>>) attributes {dimension_semantics = [#tpu.dimension_semantics<parallel>, #tpu.dimension_semantics<parallel>, #tpu.dimension_semantics<arbitrary>], iteration_bounds = array<i64: 1, 1, 6>, scalar_prefetch = 0 : i64, scratch_operands = 1 : i64, tpu.core_type = #tpu.core_type<tc>, window_params = [{transform_indices = @transform_0, window_bounds = array<i64: 8, 384>}, {transform_indices = @transform_1, window_bounds = array<i64: 384, 256>}, {transform_indices = @transform_2, window_bounds = array<i64: 1, 256>}, {transform_indices = @transform_3, window_bounds = array<i64: 8, 256>}, {transform_indices = @transform_4, window_bounds = array<i64: 8, 256>}]} {
    %c0_i32 = arith.constant 0 : i32
    %0 = arith.cmpi eq, %arg2, %c0_i32 : i32
    %1 = arith.extui %0 : i1 to i32
    %c0_i32_0 = arith.constant 0 : i32
    %2 = arith.cmpi ne, %1, %c0_i32_0 : i32
    scf.if %2 {
      %cst_9 = arith.constant 0.000000e+00 : f32
      %12 = vector.broadcast %cst_9 : f32 to vector<8x256xf32>
      %c0_10 = arith.constant 0 : index
      %c0_11 = arith.constant 0 : index
      %13 = vector.load %arg8[%c0_10, %c0_11] : memref<8x256xf32, #tpu.memory_space<vmem>>, vector<8x256xf32>
      tpu.vector_store %arg8[%c0_10, %c0_11], %12 {strides = array<i32>} : memref<8x256xf32, #tpu.memory_space<vmem>>, vector<8x256xf32>,
    } else {
    }
    %c0 = arith.constant 0 : index
    %c0_1 = arith.constant 0 : index
    %3 = vector.load %arg8[%c0, %c0_1] : memref<8x256xf32, #tpu.memory_space<vmem>>, vector<8x256xf32>
    %c0_2 = arith.constant 0 : index
    %c0_3 = arith.constant 0 : index
    %4 = vector.load %arg3[%c0_2, %c0_3] : memref<8x384xbf16, #tpu.memory_space<vmem>>, vector<8x384xbf16>
    %c0_4 = arith.constant 0 : index
    %c0_5 = arith.constant 0 : index
    %5 = vector.load %arg4[%c0_4, %c0_5] : memref<384x256xbf16, #tpu.memory_space<vmem>>, vector<384x256xbf16>
    %cst = arith.constant dense<0.000000e+00> : vector<8x256xf32>
    %6 = tpu.matmul %4, %5, %cst {dimension_numbers = #tpu.dot_dimension_numbers<[1], [0], [0], [1], [0, 0, 1, 1], [], []>} : vector<8x384xbf16>, vector<384x256xbf16>, vector<8x256xf32> -> vector<8x256xf32>
    %7 = arith.addf %3, %6 : vector<8x256xf32>
    %c0_6 = arith.constant 0 : index
    %c0_7 = arith.constant 0 : index
    %8 = vector.load %arg8[%c0_6, %c0_7] : memref<8x256xf32, #tpu.memory_space<vmem>>, vector<8x256xf32>
    tpu.vector_store %arg8[%c0_6, %c0_7], %7 {strides = array<i32>} : memref<8x256xf32, #tpu.memory_space<vmem>>, vector<8x256xf32>,
    %c5_i32 = arith.constant 5 : i32
    %9 = arith.cmpi eq, %arg2, %c5_i32 : i32
    %10 = arith.extui %9 : i1 to i32
    %c0_i32_8 = arith.constant 0 : i32
    %11 = arith.cmpi ne, %10, %c0_i32_8 : i32
    scf.if %11 {
      %c0_9 = arith.constant 0 : index
      %c0_10 = arith.constant 0 : index
      %12 = vector.load %arg8[%c0_9, %c0_10] : memref<8x256xf32, #tpu.memory_space<vmem>>, vector<8x256xf32>
      %c0_11 = arith.constant 0 : index
      %c0_12 = arith.constant 0 : index
      %13 = vector.load %arg5[%c0_11, %c0_12] : memref<1x256xf32, #tpu.memory_space<vmem>>, vector<1x256xf32>
      %14 = vector.broadcast %13 : vector<1x256xf32> to vector<8x256xf32>
      %15 = arith.addf %12, %14 : vector<8x256xf32>
      %c0_13 = arith.constant 0 : index
      %c0_14 = arith.constant 0 : index
      %16 = vector.load %arg6[%c0_13, %c0_14] : memref<8x256xbf16, #tpu.memory_space<vmem>>, vector<8x256xbf16>
      %17 = arith.extf %16 : vector<8x256xbf16> to vector<8x256xf32>
      %18 = arith.addf %15, %17 : vector<8x256xf32>
      %cst_15 = arith.constant 0.000000e+00 : f32
      %19 = vector.broadcast %cst_15 : f32 to vector<8x256xf32>
      %20 = arith.maximumf %18, %19 : vector<8x256xf32>
      %21 = arith.truncf %20 : vector<8x256xf32> to vector<8x256xbf16>
      %c0_16 = arith.constant 0 : index
      %c0_17 = arith.constant 0 : index
      %22 = vector.load %arg7[%c0_16, %c0_17] : memref<8x256xbf16, #tpu.memory_space<vmem>>, vector<8x256xbf16>
      tpu.vector_store %arg7[%c0_16, %c0_17], %21 {strides = array<i32>} : memref<8x256xbf16, #tpu.memory_space<vmem>>, vector<8x256xbf16>,
    } else {
    }
    return
  }
  func.func @transform_0(%arg0: i32, %arg1: i32, %arg2: i32) -> (i32, i32) {
    %c0_i32 = arith.constant 0 : i32
    return %arg0, %arg2 : i32, i32
  }
  func.func @transform_1(%arg0: i32, %arg1: i32, %arg2: i32) -> (i32, i32) {
    %c0_i32 = arith.constant 0 : i32
    return %arg2, %arg1 : i32, i32
  }
  func.func @transform_2(%arg0: i32, %arg1: i32, %arg2: i32) -> (i32, i32) {
    %c0_i32 = arith.constant 0 : i32
    %c0_i32_0 = arith.constant 0 : i32
    return %c0_i32, %arg1 : i32, i32
  }
  func.func @transform_3(%arg0: i32, %arg1: i32, %arg2: i32) -> (i32, i32) {
    %c0_i32 = arith.constant 0 : i32
    return %arg0, %arg1 : i32, i32
  }
  func.func @transform_4(%arg0: i32, %arg1: i32, %arg2: i32) -> (i32, i32) {
    %c0_i32 = arith.constant 0 : i32
    return %arg0, %arg1 : i32, i32
  }
}

module attributes {stable_mosaic.version = 11 : i64} {
  func.func @_conv_bn_kernel(%arg0: i32, %arg1: i32, %arg2: i32, %arg3: memref<8x384xbf16, #tpu.memory_space<vmem>>, %arg4: memref<384x256xbf16, #tpu.memory_space<vmem>>, %arg5: memref<1x256xf32, #tpu.memory_space<vmem>>, %arg6: memref<8x256xbf16, #tpu.memory_space<vmem>>, %arg7: memref<8x256xf32, #tpu.memory_space<vmem>>) attributes {dimension_semantics = [#tpu.dimension_semantics<parallel>, #tpu.dimension_semantics<parallel>, #tpu.dimension_semantics<arbitrary>], iteration_bounds = array<i64: 1, 1, 6>, scalar_prefetch = 0 : i64, scratch_operands = 1 : i64, tpu.core_type = #tpu.core_type<tc>, window_params = [{transform_indices = @transform_0, window_bounds = array<i64: 8, 384>}, {transform_indices = @transform_1, window_bounds = array<i64: 384, 256>}, {transform_indices = @transform_2, window_bounds = array<i64: 1, 256>}, {transform_indices = @transform_3, window_bounds = array<i64: 8, 256>}]} {
    %c0_i32 = arith.constant 0 : i32
    %0 = arith.cmpi eq, %arg2, %c0_i32 : i32
    %1 = arith.extui %0 : i1 to i32
    %c0_i32_0 = arith.constant 0 : i32
    %2 = arith.cmpi ne, %1, %c0_i32_0 : i32
    scf.if %2 {
      %cst_9 = arith.constant 0.000000e+00 : f32
      %12 = vector.broadcast %cst_9 : f32 to vector<8x256xf32>
      %c0_10 = arith.constant 0 : index
      %c0_11 = arith.constant 0 : index
      %13 = vector.load %arg7[%c0_10, %c0_11] : memref<8x256xf32, #tpu.memory_space<vmem>>, vector<8x256xf32>
      tpu.vector_store %arg7[%c0_10, %c0_11], %12 {strides = array<i32>} : memref<8x256xf32, #tpu.memory_space<vmem>>, vector<8x256xf32>,
    } else {
    }
    %c0 = arith.constant 0 : index
    %c0_1 = arith.constant 0 : index
    %3 = vector.load %arg7[%c0, %c0_1] : memref<8x256xf32, #tpu.memory_space<vmem>>, vector<8x256xf32>
    %c0_2 = arith.constant 0 : index
    %c0_3 = arith.constant 0 : index
    %4 = vector.load %arg3[%c0_2, %c0_3] : memref<8x384xbf16, #tpu.memory_space<vmem>>, vector<8x384xbf16>
    %c0_4 = arith.constant 0 : index
    %c0_5 = arith.constant 0 : index
    %5 = vector.load %arg4[%c0_4, %c0_5] : memref<384x256xbf16, #tpu.memory_space<vmem>>, vector<384x256xbf16>
    %cst = arith.constant dense<0.000000e+00> : vector<8x256xf32>
    %6 = tpu.matmul %4, %5, %cst {dimension_numbers = #tpu.dot_dimension_numbers<[1], [0], [0], [1], [0, 0, 1, 1], [], []>} : vector<8x384xbf16>, vector<384x256xbf16>, vector<8x256xf32> -> vector<8x256xf32>
    %7 = arith.addf %3, %6 : vector<8x256xf32>
    %c0_6 = arith.constant 0 : index
    %c0_7 = arith.constant 0 : index
    %8 = vector.load %arg7[%c0_6, %c0_7] : memref<8x256xf32, #tpu.memory_space<vmem>>, vector<8x256xf32>
    tpu.vector_store %arg7[%c0_6, %c0_7], %7 {strides = array<i32>} : memref<8x256xf32, #tpu.memory_space<vmem>>, vector<8x256xf32>,
    %c5_i32 = arith.constant 5 : i32
    %9 = arith.cmpi eq, %arg2, %c5_i32 : i32
    %10 = arith.extui %9 : i1 to i32
    %c0_i32_8 = arith.constant 0 : i32
    %11 = arith.cmpi ne, %10, %c0_i32_8 : i32
    scf.if %11 {
      %c0_9 = arith.constant 0 : index
      %c0_10 = arith.constant 0 : index
      %12 = vector.load %arg7[%c0_9, %c0_10] : memref<8x256xf32, #tpu.memory_space<vmem>>, vector<8x256xf32>
      %c0_11 = arith.constant 0 : index
      %c0_12 = arith.constant 0 : index
      %13 = vector.load %arg5[%c0_11, %c0_12] : memref<1x256xf32, #tpu.memory_space<vmem>>, vector<1x256xf32>
      %14 = vector.broadcast %13 : vector<1x256xf32> to vector<8x256xf32>
      %15 = arith.addf %12, %14 : vector<8x256xf32>
      %cst_13 = arith.constant 0.000000e+00 : f32
      %16 = vector.broadcast %cst_13 : f32 to vector<8x256xf32>
      %17 = arith.maximumf %15, %16 : vector<8x256xf32>
      %18 = arith.truncf %17 : vector<8x256xf32> to vector<8x256xbf16>
      %c0_14 = arith.constant 0 : index
      %c0_15 = arith.constant 0 : index
      %19 = vector.load %arg6[%c0_14, %c0_15] : memref<8x256xbf16, #tpu.memory_space<vmem>>, vector<8x256xbf16>
      tpu.vector_store %arg6[%c0_14, %c0_15], %18 {strides = array<i32>} : memref<8x256xbf16, #tpu.memory_space<vmem>>, vector<8x256xbf16>,
    } else {
    }
    return
  }
  func.func @transform_0(%arg0: i32, %arg1: i32, %arg2: i32) -> (i32, i32) {
    %c0_i32 = arith.constant 0 : i32
    return %arg0, %arg2 : i32, i32
  }
  func.func @transform_1(%arg0: i32, %arg1: i32, %arg2: i32) -> (i32, i32) {
    %c0_i32 = arith.constant 0 : i32
    return %arg2, %arg1 : i32, i32
  }
  func.func @transform_2(%arg0: i32, %arg1: i32, %arg2: i32) -> (i32, i32) {
    %c0_i32 = arith.constant 0 : i32
    %c0_i32_0 = arith.constant 0 : i32
    return %c0_i32, %arg1 : i32, i32
  }
  func.func @transform_3(%arg0: i32, %arg1: i32, %arg2: i32) -> (i32, i32) {
    %c0_i32 = arith.constant 0 : i32
    return %arg0, %arg1 : i32, i32
  }
}

</mosaic_0001>

<bundles_post_ra>
// kernel: resnet18_forward.21
= control target key start
LH: loop header
LB: loop body
LE: loop exit
PB: predicated region body
PF: predicated region fallthrough
CT: control target
= control target key end

     0   :  { %s1499_s12 = smov 0   ;;  %s1501_s13 = smov 0   ;;  %s1636_s0 = inlined_call_operand.vmem [shape: bf16[512,128], index: 0, kind: input, shape index: {}]   ;;  %s1637_s1 = inlined_call_operand.vmem [shape: bf16[128,128], index: 1, kind: input, shape index: {}]   ;;  %s1638_s2 = inlined_call_operand.vmem [shape: f32[1,128], index: 2, kind: input, shape index: {}]   ;;  %s1639_s3 = inlined_call_operand.vmem [shape: bf16[512,128], index: 3, kind: output, shape index: {}]  }
   0x1   :  { %s1503_s14 = smov 0  }
   0x2 LB: > { %s32_s15 = sadd.s32 1, %s1473_s13  ;;  %p1128_p0 = scmp.ge.s32.totalorder %s1477_s14, 1  ;;  %s1477_s14 = sphi %s1503_s14, %s13_s14   ;;  %s1473_s13 = sphi %s1501_s13, %s1641_s13   ;;  %s1469_s12 = sphi %s1499_s12, %s1640_s12  }
   0x3   : > { %p34_p1 = scmp.ge.s32.totalorder %s32_s15, 2  ;;  %p188_p2 = scmp.lt.s32.totalorder %s1477_s14, 3 }
   0x5   : > { %s1643_s15 = smov (%p34_p1, %s32_s15), 0  ;;  %p189_p3 = pnand %p1128_p0, %p188_p2 }
   0x6   : > { %v1431_v0 = vld [vmem:[%s1637_s1] sm:$0xff] (!%p189_p3)   ;;  %s1129_s18 = sshll.u32 (!%p189_p3), %s1469_s12, 5  ;;  %v1432_v1 = vld [vmem:[%s1637_s1 + $0x8] sm:$0xff] (!%p189_p3)   ;;  %v1433_v2 = vld [vmem:[%s1637_s1 + $0x10] sm:$0xff] (!%p189_p3)  }
   0x7   : > { %192 = sbr.rel (%p189_p3) target bundleno = 285 (0x11d), region = 32  ;;  %p230_p4 = scmp.lt.s32.totalorder (!%p189_p3), %s1129_s18, 63  ;;  %1343 = vmatprep.subr.bf16.mxu0 (!%p189_p3), %v1431_v0  ;;  %1391 = vmatprep.subr.bf16.mxu1 (!%p189_p3), %v1431_v0  ;;  %v1434_v3 = vld [vmem:[%s1637_s1 + $0x18] sm:$0xff] (!%p189_p3)   ;;  %v1435_v6 = vld [vmem:[%s1637_s1 + $0x20] sm:$0xff] (!%p189_p3)   ;;  %v1436_v7 = vld [vmem:[%s1637_s1 + $0x28] sm:$0xff] (!%p189_p3)  }
   0x8   : > { %1344 = vmatpush3.bf16.msra.mxu0 (!%p189_p3), %v1431_v0  ;;  %1399 = vmatpush3.bf16.msra.mxu1 (!%p189_p3), %v1431_v0  ;;  %v1437_v8 = vld [vmem:[%s1637_s1 + $0x30] sm:$0xff] (!%p189_p3)   ;;  %v1438_v9 = vld [vmem:[%s1637_s1 + $0x38] sm:$0xff] (!%p189_p3)   ;;  %v1570_v24 = vld [vmem:[%s1638_s2] ss:$0 sm:$0xff] (!%p189_p3) }
   0x9   : > { %1345 = vmatprep.subr.bf16.mxu0 (!%p189_p3), %v1432_v1  ;;  %1392 = vmatprep.subr.bf16.mxu1 (!%p189_p3), %v1432_v1 }
   0xc   : > { %1346 = vmatpush3.bf16.msra.mxu0 (!%p189_p3), %v1432_v1  ;;  %1400 = vmatpush3.bf16.msra.mxu1 (!%p189_p3), %v1432_v1 }
   0xd   : > { %1347 = vmatprep.subr.bf16.mxu0 (!%p189_p3), %v1433_v2  ;;  %1393 = vmatprep.subr.bf16.mxu1 (!%p189_p3), %v1433_v2 }
   0xe   : > { %s1645_s18 = smov (!%p230_p4, %s1129_s18), 63 }
   0xf   : > { %s1130_s23 = sshll.u32 %s1645_s18, 2 }
  0x10   : > { %s1534_s26 = scalar_lea.vmem %s1636_s0, %s1130_s23  ;;  %1348 = vmatpush3.bf16.msra.mxu0 %v1433_v2  ;;  %1401 = vmatpush3.bf16.msra.mxu1 %v1433_v2  ;;  %s1585_s17 = scalar_lea.vmem %s1639_s3, %s1130_s23 }
  0x11   : > { %v1439_v4 = vld [vmem:[%s1534_s26] sm:$0xff]   ;;  %1349 = vmatprep.subr.bf16.mxu0 %v1434_v3  ;;  %1394 = vmatprep.subr.bf16.mxu1 %v1434_v3  ;;  %v1441_v10 = vld [vmem:[%s1534_s26 + $0x8] sm:$0xff]   ;;  %v1443_v12 = vld [vmem:[%s1534_s26 + $0x10] sm:$0xff]  }
  0x12   : > { %v1440_v5 = vld [vmem:[%s1534_s26 + $0x40] sm:$0xff]   ;;  %1359 = vmatprep.mubr.bf16.mxu0 %v1439_v4  ;;  %v1442_v11 = vld [vmem:[%s1534_s26 + $0x48] sm:$0xff]   ;;  %v1444_v13 = vld [vmem:[%s1534_s26 + $0x50] sm:$0xff]  }
  0x13   : > { %1375 = vmatprep.mubr.bf16.mxu1 %v1440_v5  ;;  %v1445_v14 = vld [vmem:[%s1534_s26 + $0x18] sm:$0xff]   ;;  %v1447_v16 = vld [vmem:[%s1534_s26 + $0x20] sm:$0xff]   ;;  %v1449_v18 = vld [vmem:[%s1534_s26 + $0x28] sm:$0xff]  }
  0x14   : > { %1350 = vmatpush3.bf16.msra.mxu0 %v1434_v3  ;;  %1402 = vmatpush3.bf16.msra.mxu1 %v1434_v3  ;;  %v1446_v15 = vld [vmem:[%s1534_s26 + $0x58] sm:$0xff]   ;;  %v1448_v17 = vld [vmem:[%s1534_s26 + $0x60] sm:$0xff]   ;;  %v1450_v19 = vld [vmem:[%s1534_s26 + $0x68] sm:$0xff]  }
  0x15   : > { %1351 = vmatprep.subr.bf16.mxu0 %v1435_v6  ;;  %1395 = vmatprep.subr.bf16.mxu1 %v1435_v6  ;;  %v1451_v20 = vld [vmem:[%s1534_s26 + $0x30] sm:$0xff]   ;;  %v1453_v22 = vld [vmem:[%s1534_s26 + $0x38] sm:$0xff]  }
  0x16   : > { %v1452_v21 = vld [vmem:[%s1534_s26 + $0x70] sm:$0xff]   ;;  %v1454_v23 = vld [vmem:[%s1534_s26 + $0x78] sm:$0xff]  }
  0x18   : > { %1352 = vmatpush3.bf16.msra.mxu0 %v1435_v6  ;;  %1403 = vmatpush3.bf16.msra.mxu1 %v1435_v6 }
  0x19   : > { %1353 = vmatprep.subr.bf16.mxu0 %v1436_v7  ;;  %1396 = vmatprep.subr.bf16.mxu1 %v1436_v7 }
  0x1c   : > { %1354 = vmatpush3.bf16.msra.mxu0 %v1436_v7  ;;  %1404 = vmatpush3.bf16.msra.mxu1 %v1436_v7 }
  0x1d   : > { %1355 = vmatprep.subr.bf16.mxu0 %v1437_v8  ;;  %1397 = vmatprep.subr.bf16.mxu1 %v1437_v8 }
  0x20   : > { %1356 = vmatpush3.bf16.msra.mxu0 %v1437_v8  ;;  %1405 = vmatpush3.bf16.msra.mxu1 %v1437_v8 }
  0x21   : > { %1357 = vmatprep.subr.bf16.mxu0 %v1438_v9  ;;  %1398 = vmatprep.subr.bf16.mxu1 %v1438_v9 }
  0x24   : > { %1358 = vmatpush3.bf16.msra.mxu0 %v1438_v9  ;;  %1406 = vmatpush3.bf16.msra.mxu1 %v1438_v9 }
  0x27   : > { %1360 = vmatmul.mubr.bf16.vlgmr.msra.gmra.mrb[0].mxu0 %v1441_v10  ;;  %1376 = vmatmul.mubr.bf16.vlgmr.msra.gmra.mrb[0].mxu1 %v1442_v11 }
  0x28   : > { %1363 = vmatprep.mubr.bf16.mxu0 %v1443_v12  ;;  %1379 = vmatprep.mubr.bf16.mxu1 %v1444_v13 }
  0x2f   : > { %1364 = vmatmul.mubr.bf16.gmra.mrb[4].mxu0 %v1445_v14  ;;  %1380 = vmatmul.mubr.bf16.gmra.mrb[4].mxu1 %v1446_v15 }
  0x30   : > { %1367 = vmatprep.mubr.bf16.mxu0 %v1447_v16  ;;  %1383 = vmatprep.mubr.bf16.mxu1 %v1448_v17 }
  0x37   : > { %1368 = vmatmul.mubr.bf16.gmra.mrb[8].mxu0 %v1449_v18  ;;  %1384 = vmatmul.mubr.bf16.gmra.mrb[8].mxu1 %v1450_v19 }
  0x38   : > { %1371 = vmatprep.mubr.bf16.mxu0 %v1451_v20  ;;  %1387 = vmatprep.mubr.bf16.mxu1 %v1452_v21 }
  0x3f   : > { %1372 = vmatmul.mubr.bf16.gmra.mrb[12].mxu0 %v1453_v22  ;;  %1388 = vmatmul.mubr.bf16.gmra.mrb[12].mxu1 %v1454_v23 }
  0xfa   : > { %v1361_v25 = vpop.f32.mrb[0].mxu0  ;;  %v1377_v26 = vpop.f32.mrb[0].mxu1 }
  0xfb   : > { %v789_v27 = vadd.f32 %v1361_v25, %v1570_v24  ;;  %v805_v28 = vadd.f32 %v1377_v26, %v1570_v24  ;;  %v554_v29 = vpop.f32.mrb[1].mxu0  ;;  %v618_v30 = vpop.f32.mrb[1].mxu1 }
  0xfc   : > { %v787_v31 = vadd.f32 %v1570_v24, %v554_v29  ;;  %v803_v32 = vadd.f32 %v1570_v24, %v618_v30  ;;  %v1362_v33 = vpop.f32.mrb[2].mxu0  ;;  %v1378_v34 = vpop.f32.mrb[2].mxu1 }
  0xfd   : > { %v790_v35 = vadd.f32 %v1362_v33, %v1570_v24  ;;  %v806_v36 = vadd.f32 %v1378_v34, %v1570_v24  ;;  %v557_v37 = vpop.f32.mrb[3].mxu0  ;;  %v621_v38 = vpop.f32.mrb[3].mxu1  ;;  %v821_v41 = vmax.f32 %v789_v27, 0.0  ;;  %v837_v42 = vmax.f32 %v805_v28, 0.0 }
  0xfe   : > { %v788_v39 = vadd.f32 %v1570_v24, %v557_v37  ;;  %v804_v40 = vadd.f32 %v1570_v24, %v621_v38  ;;  %v819_v45 = vmax.f32 %v787_v31, 0.0  ;;  %v835_v46 = vmax.f32 %v803_v32, 0.0 }
  0xff   : > { %v822_v43 = vmax.f32 %v790_v35, 0.0  ;;  %v838_v44 = vmax.f32 %v806_v36, 0.0 }
 0x100   : > { %v820_v47 = vmax.f32 %v788_v39, 0.0  ;;  %v836_v48 = vmax.f32 %v804_v40, 0.0 }
 0x101   : > { %v1232_v49 = vpack.c.bf16 %v822_v43, %v821_v41  ;;  %v1272_v50 = vpack.c.bf16 %v838_v44, %v837_v42 }
 0x102   : > { %v1227_v51 = vpack.c.bf16 %v820_v47, %v819_v45  ;;  %v1267_v52 = vpack.c.bf16 %v836_v48, %v835_v46  ;;  %v1365_v53 = vpop.f32.mrb[4].mxu0  ;;  %v1381_v54 = vpop.f32.mrb[4].mxu1 }
 0x103   : > { %1304 = vst [vmem:[%s1585_s17 + $0x8] sm:$0xff] %v1232_v49   ;;  %1312 = vst [vmem:[%s1585_s17 + $0x48] sm:$0xff] %v1272_v50   ;;  %v793_v55 = vadd.f32 %v1365_v53, %v1570_v24  ;;  %v809_v56 = vadd.f32 %v1381_v54, %v1570_v24  ;;  %v570_v57 = vpop.f32.mrb[5].mxu0  ;;  %v634_v58 = vpop.f32.mrb[5].mxu1 }
 0x104   : > { %1228 = vst [vmem:[%s1585_s17] sm:$0xff] %v1227_v51   ;;  %1311 = vst [vmem:[%s1585_s17 + $0x40] sm:$0xff] %v1267_v52   ;;  %v791_v59 = vadd.f32 %v1570_v24, %v570_v57  ;;  %v807_v60 = vadd.f32 %v1570_v24, %v634_v58  ;;  %v1366_v61 = vpop.f32.mrb[6].mxu0  ;;  %v1382_v62 = vpop.f32.mrb[6].mxu1 }
 0x105   : > { %v794_v63 = vadd.f32 %v1366_v61, %v1570_v24  ;;  %v810_v0 = vadd.f32 %v1382_v62, %v1570_v24  ;;  %v573_v1 = vpop.f32.mrb[7].mxu0  ;;  %v637_v2 = vpop.f32.mrb[7].mxu1  ;;  %v825_v5 = vmax.f32 %v793_v55, 0.0  ;;  %v841_v6 = vmax.f32 %v809_v56, 0.0 }
 0x106   : > { %v792_v3 = vadd.f32 %v1570_v24, %v573_v1  ;;  %v808_v4 = vadd.f32 %v1570_v24, %v637_v2  ;;  %v823_v9 = vmax.f32 %v791_v59, 0.0  ;;  %v839_v10 = vmax.f32 %v807_v60, 0.0 }
 0x107   : > { %v826_v7 = vmax.f32 %v794_v63, 0.0  ;;  %v842_v8 = vmax.f32 %v810_v0, 0.0 }
 0x108   : > { %v824_v11 = vmax.f32 %v792_v3, 0.0  ;;  %v840_v12 = vmax.f32 %v808_v4, 0.0 }
 0x109   : > { %v1242_v13 = vpack.c.bf16 %v826_v7, %v825_v5  ;;  %v1282_v14 = vpack.c.bf16 %v842_v8, %v841_v6 }
 0x10a   : > { %v1237_v15 = vpack.c.bf16 %v824_v11, %v823_v9  ;;  %v1277_v16 = vpack.c.bf16 %v840_v12, %v839_v10  ;;  %v1369_v17 = vpop.f32.mrb[8].mxu0  ;;  %v1385_v18 = vpop.f32.mrb[8].mxu1 }
 0x10b   : > { %1306 = vst [vmem:[%s1585_s17 + $0x18] sm:$0xff] %v1242_v13   ;;  %1314 = vst [vmem:[%s1585_s17 + $0x58] sm:$0xff] %v1282_v14   ;;  %v797_v19 = vadd.f32 %v1369_v17, %v1570_v24  ;;  %v813_v20 = vadd.f32 %v1385_v18, %v1570_v24  ;;  %v586_v21 = vpop.f32.mrb[9].mxu0  ;;  %v650_v22 = vpop.f32.mrb[9].mxu1 }
 0x10c   : > { %1305 = vst [vmem:[%s1585_s17 + $0x10] sm:$0xff] %v1237_v15   ;;  %1313 = vst [vmem:[%s1585_s17 + $0x50] sm:$0xff] %v1277_v16   ;;  %v795_v23 = vadd.f32 %v1570_v24, %v586_v21  ;;  %v811_v25 = vadd.f32 %v1570_v24, %v650_v22  ;;  %v1370_v26 = vpop.f32.mrb[10].mxu0  ;;  %v1386_v27 = vpop.f32.mrb[10].mxu1 }
 0x10d   : > { %v798_v28 = vadd.f32 %v1370_v26, %v1570_v24  ;;  %v814_v29 = vadd.f32 %v1386_v27, %v1570_v24  ;;  %v589_v30 = vpop.f32.mrb[11].mxu0  ;;  %v653_v31 = vpop.f32.mrb[11].mxu1  ;;  %v829_v34 = vmax.f32 %v797_v19, 0.0  ;;  %v845_v35 = vmax.f32 %v813_v20, 0.0 }
 0x10e   : > { %v796_v32 = vadd.f32 %v1570_v24, %v589_v30  ;;  %v812_v33 = vadd.f32 %v1570_v24, %v653_v31  ;;  %v827_v38 = vmax.f32 %v795_v23, 0.0  ;;  %v843_v39 = vmax.f32 %v811_v25, 0.0 }
 0x10f   : > { %v830_v36 = vmax.f32 %v798_v28, 0.0  ;;  %v846_v37 = vmax.f32 %v814_v29, 0.0 }
 0x110   : > { %v828_v40 = vmax.f32 %v796_v32, 0.0  ;;  %v844_v41 = vmax.f32 %v812_v33, 0.0 }
 0x111   : > { %v1252_v42 = vpack.c.bf16 %v830_v36, %v829_v34  ;;  %v1292_v43 = vpack.c.bf16 %v846_v37, %v845_v35 }
 0x112   : > { %v1247_v44 = vpack.c.bf16 %v828_v40, %v827_v38  ;;  %v1287_v45 = vpack.c.bf16 %v844_v41, %v843_v39  ;;  %v1373_v46 = vpop.f32.mrb[12].mxu0  ;;  %v1389_v47 = vpop.f32.mrb[12].mxu1 }
 0x113   : > { %1308 = vst [vmem:[%s1585_s17 + $0x28] sm:$0xff] %v1252_v42   ;;  %1316 = vst [vmem:[%s1585_s17 + $0x68] sm:$0xff] %v1292_v43   ;;  %v801_v48 = vadd.f32 %v1373_v46, %v1570_v24  ;;  %v817_v49 = vadd.f32 %v1389_v47, %v1570_v24  ;;  %v602_v50 = vpop.f32.mrb[13].mxu0  ;;  %v666_v51 = vpop.f32.mrb[13].mxu1 }
 0x114   : > { %1307 = vst [vmem:[%s1585_s17 + $0x20] sm:$0xff] %v1247_v44   ;;  %1315 = vst [vmem:[%s1585_s17 + $0x60] sm:$0xff] %v1287_v45   ;;  %v799_v52 = vadd.f32 %v1570_v24, %v602_v50  ;;  %v815_v53 = vadd.f32 %v1570_v24, %v666_v51  ;;  %v1374_v54 = vpop.f32.mrb[14].mxu0  ;;  %v1390_v55 = vpop.f32.mrb[14].mxu1 }
 0x115   : > { %v802_v56 = vadd.f32 %v1374_v54, %v1570_v24  ;;  %v818_v57 = vadd.f32 %v1390_v55, %v1570_v24  ;;  %v605_v58 = vpop.f32.mrb[15].mxu0  ;;  %v669_v59 = vpop.f32.mrb[15].mxu1  ;;  %v833_v62 = vmax.f32 %v801_v48, 0.0  ;;  %v849_v63 = vmax.f32 %v817_v49, 0.0 }
 0x116   : > { %v800_v60 = vadd.f32 %v1570_v24, %v605_v58  ;;  %v816_v61 = vadd.f32 %v1570_v24, %v669_v59  ;;  %v831_v2 = vmax.f32 %v799_v52, 0.0  ;;  %v847_v3 = vmax.f32 %v815_v53, 0.0 }
 0x117   : > { %v834_v0 = vmax.f32 %v802_v56, 0.0  ;;  %v850_v1 = vmax.f32 %v818_v57, 0.0 }
 0x118   : > { %v832_v4 = vmax.f32 %v800_v60, 0.0  ;;  %v848_v5 = vmax.f32 %v816_v61, 0.0 }
 0x119   : > { %v1262_v6 = vpack.c.bf16 %v834_v0, %v833_v62  ;;  %v1302_v7 = vpack.c.bf16 %v850_v1, %v849_v63 }
 0x11a   : > { %v1257_v8 = vpack.c.bf16 %v832_v4, %v831_v2  ;;  %v1297_v9 = vpack.c.bf16 %v848_v5, %v847_v3 }
 0x11b   : > { %1310 = vst [vmem:[%s1585_s17 + $0x38] sm:$0xff] %v1262_v6   ;;  %1318 = vst [vmem:[%s1585_s17 + $0x78] sm:$0xff] %v1302_v7  }
 0x11c   : > { %1309 = vst [vmem:[%s1585_s17 + $0x30] sm:$0xff] %v1257_v8   ;;  %1317 = vst [vmem:[%s1585_s17 + $0x70] sm:$0xff] %v1297_v9  }
 0x11d PF: > { %s13_s14 = sadd.s32 1, %s1477_s14   ;;  %s1640_s12 = smov %s1473_s13 }
 0x11e   : > { %p10_p5 = scmp.ge.s32.totalorder %s13_s14, 4   ;;  %s1641_s13 = smov %s1643_s15 }
 0x120   :  { %12 = sbr.rel (!%p10_p5) target bundleno = 2 (0x2), region = 76 }

// kernel: resnet18_forward.22
= control target key start
LH: loop header
LB: loop body
LE: loop exit
PB: predicated region body
PF: predicated region fallthrough
CT: control target
= control target key end

     0   :  { %vm81_vm0 = vsmask.f32 3328  ;;  %vm82_vm1 = vsmask.f32 7440  ;;  %s2521_s1 = inlined_call_operand.vmem [shape: bf16[2,9,9,128], index: 1, kind: input, shape index: {}]   ;;  %s2522_s0 = inlined_call_operand.vmem [shape: bf16[2,9,9,128], index: 0, kind: input, shape index: {}]   ;;  %s2523_s2 = inlined_call_operand.vmem [shape: bf16[2,9,9,128], index: 2, kind: input, shape index: {}]   ;;  %s2524_s3 = inlined_call_operand.vmem [shape: bf16[2,9,9,128], index: 3, kind: input, shape index: {}]   ;;  %s2525_s4 = inlined_call_operand.vmem [shape: bf16[2,8,8,128], index: 4, kind: output, shape index: {}]  }
   0x1   :  { %v1165_v0 = vld [vmem:[%s2521_s1] sm:$0xf]  ;;  %v1170_v1 = vld [vmem:[%s2521_s1 + $0x8] sm:$0xf]  ;;  %v1175_v2 = vld [vmem:[%s2521_s1 + $0x10] sm:$0xf] }
   0x2   :  { %v1180_v3 = vld [vmem:[%s2521_s1 + $0x18] sm:$0xf]  ;;  %v1185_v4 = vld [vmem:[%s2522_s0] sm:$0xf]  ;;  %v1190_v5 = vld [vmem:[%s2522_s0 + $0x8] sm:$0xf] }
   0x3   :  { %v1195_v6 = vld [vmem:[%s2522_s0 + $0x10] sm:$0xf]  ;;  %v1200_v7 = vld [vmem:[%s2522_s0 + $0x18] sm:$0xf]  ;;  %v1205_v8 = vld [vmem:[%s2521_s1 + $0x20] sm:$0xf] }
   0x4   :  { %v1210_v9 = vld [vmem:[%s2521_s1 + $0x28] sm:$0xf]  ;;  %v1215_v10 = vld [vmem:[%s2521_s1 + $0x30] sm:$0xf]  ;;  %v1220_v11 = vld [vmem:[%s2522_s0 + $0x20] sm:$0xf] }
   0x5   :  { %v1225_v12 = vld [vmem:[%s2522_s0 + $0x28] sm:$0xf]  ;;  %v1230_v13 = vld [vmem:[%s2522_s0 + $0x30] sm:$0xf]  ;;  %v1235_v14 = vld [vmem:[%s2522_s0 + $0x38] sm:$0xf] }
   0x6   :  { %v1240_v15 = vld [vmem:[%s2521_s1 + $0x38] sm:$0xf]  ;;  %v1245_v16 = vld [vmem:[%s2521_s1 + $0x48] sm:$0xf]  ;;  %v1250_v17 = vld [vmem:[%s2521_s1 + $0x50] sm:$0xf] }
   0x7   :  { %2541 = vst [vmem:[#allocation2_spill] sm:$0xff] %v1245_v16  ;;  %2542 = vst [vmem:[#allocation3_spill] sm:$0xff] %v1250_v17  ;;  %v1255_v18 = vld [vmem:[%s2522_s0 + $0x48] sm:$0xf]  ;;  %v1260_v19 = vld [vmem:[%s2522_s0 + $0x50] sm:$0xf] }
   0x8   :  { %2543 = vst [vmem:[#allocation4_spill] sm:$0xff] %v1255_v18  ;;  %2544 = vst [vmem:[#allocation5_spill] sm:$0xff] %v1260_v19  ;;  %v1265_v20 = vld [vmem:[%s2522_s0 + $0x58] sm:$0xf]  ;;  %v1270_v21 = vld [vmem:[%s2522_s0 + $0x60] sm:$0xf] }
   0x9   :  { %2545 = vst [vmem:[#allocation6_spill] sm:$0xff] %v1265_v20  ;;  %2546 = vst [vmem:[#allocation7_spill] sm:$0xff] %v1270_v21  ;;  %v1275_v22 = vld [vmem:[%s2521_s1 + $0x58] sm:$0xf]  ;;  %v1280_v23 = vld [vmem:[%s2521_s1 + $0x60] sm:$0xf] }
   0xa   :  { %2547 = vst [vmem:[#allocation8_spill] sm:$0xff] %v1275_v22  ;;  %2548 = vst [vmem:[#allocation9_spill] sm:$0xff] %v1280_v23  ;;  %v1285_v24 = vld [vmem:[%s2521_s1 + $0x68] sm:$0xf]  ;;  %v1290_v25 = vld [vmem:[%s2521_s1 + $0x70] sm:$0xf] }
   0xb   :  { %2549 = vst [vmem:[#allocation10_spill] sm:$0xff] %v1285_v24  ;;  %2550 = vst [vmem:[#allocation11_spill] sm:$0xff] %v1290_v25  ;;  %v1295_v26 = vld [vmem:[%s2521_s1 + $0x78] sm:$0xf]  ;;  %v1300_v27 = vld [vmem:[%s2521_s1 + $0x80] sm:$0xf] }
   0xc   :  { %2551 = vst [vmem:[#allocation12_spill] sm:$0xff] %v1295_v26  ;;  %2552 = vst [vmem:[#allocation13_spill] sm:$0xff] %v1300_v27  ;;  %v1313_v32 = vld [vmem:[%s2522_s0 + $0x68] sm:$0xf]  ;;  %v1318_v33 = vld [vmem:[%s2522_s0 + $0x70] sm:$0xf] }
   0xd   :  { %2553 = vst [vmem:[#allocation14_spill] sm:$0xff] %v1313_v32  ;;  %2554 = vst [vmem:[#allocation15_spill] sm:$0xff] %v1318_v33  ;;  %v65_v38 = vld [vmem:[%s2522_s0 + $0x4] sm:$0x1]  ;;  %v1334_v39 = vld [vmem:[%s2522_s0 + $0x78] sm:$0xf] }
   0xe   :  { %v1339_v40 = vld [vmem:[%s2522_s0 + $0x80] sm:$0xf]  ;;  %v66_v45 = vld [vmem:[%s2522_s0 + $0xc] sm:$0x1]  ;;  %v85_v50 = vshrl.u32 %v1185_v4, 16  ;;  %v88_v51 = vshll.u32 %v1185_v4, 16  ;;  %vm1383_vm2 = vmor %vm81_vm0, %vm82_vm1 }
   0xf   :  { %v94_v52 = vshll.u32 %v65_v38, 16  ;;  %v99_v53 = vshrl.u32 %v1190_v5, 16  ;;  %v67_v54 = vld [vmem:[%s2522_s0 + $0x14] sm:$0x1]  ;;  %v102_v55 = vshll.u32 %v1190_v5, 16  ;;  %v108_v56 = vshll.u32 %v66_v45, 16 }
  0x10   :  { %v113_v57 = vshrl.u32 %v1195_v6, 16  ;;  %v116_v58 = vshll.u32 %v1195_v6, 16  ;;  %v68_v59 = vld [vmem:[%s2522_s0 + $0x1c] sm:$0x1]  ;;  %v87_v60 = vrot.slane %v85_v50, 4  ;;  %v90_v61 = vrot.slane %v88_v51, 5 }
  0x11   :  { %v1372_v62 = vrot.slane %v94_v52, 5  ;;  %v101_v63 = vrot.slane %v99_v53, 4  ;;  %v104_v38 = vrot.slane %v102_v55, 5  ;;  %v1374_v49 = vrot.slane %v108_v56, 5  ;;  %v69_v42 = vld [vmem:[%s2522_s0 + $0x24] sm:$0x1] }
  0x12   :  { %v115_v48 = vrot.slane %v113_v57, 4  ;;  %v118_v47 = vrot.slane %v116_v58, 5  ;;  %v91_v46 = vor.u32 %v90_v61, %v87_v60  ;;  %v122_v45 = vshll.u32 %v67_v54, 16  ;;  %v70_v60 = vld [vmem:[%s2522_s0 + $0x2c] sm:$0x1] }
  0x13   :  { %v127_v44 = vshrl.u32 %v1200_v7, 16  ;;  %v130_v43 = vshll.u32 %v1200_v7, 16  ;;  %v105_v51 = vor.u32 %v104_v38, %v101_v63  ;;  %v136_v53 = vshll.u32 %v68_v59, 16  ;;  %v71_v59 = vld [vmem:[%s2522_s0 + $0x34] sm:$0x1] }
  0x14   :  { %v119_v52 = vor.u32 %v118_v47, %v115_v48  ;;  %v141_v55 = vshrl.u32 %v1220_v11, 16  ;;  %v1388_v54 = vrot.slane %v91_v46, 4  ;;  %v1390_v56 = vrot.slane %v122_v45, 5 }
  0x15   :  { %v129_v57 = vrot.slane %v127_v44, 4  ;;  %v132_v58 = vrot.slane %v130_v43, 5  ;;  %v1395_v61 = vrot.slane %v105_v51, 4  ;;  %v1399_v37 = vrot.slane %v136_v53, 5 }
  0x16   :  { %v1397_v41 = vrot.slane %v119_v52, 4  ;;  %v143_v47 = vrot.slane %v141_v55, 4  ;;  %v144_v44 = vshll.u32 %v1220_v11, 16  ;;  %v150_v43 = vshll.u32 %v69_v42, 16 }
  0x17   :  { %v133_v48 = vor.u32 %v132_v58, %v129_v57  ;;  %v155_v45 = vshrl.u32 %v1225_v12, 16  ;;  %v158_v51 = vshll.u32 %v1225_v12, 16  ;;  %v164_v55 = vshll.u32 %v70_v60, 16  ;;  %v72_v57 = vld [vmem:[%s2522_s0 + $0x3c] sm:$0x1] }
  0x18   :  { %v146_v42 = vrot.slane %v144_v44, 5  ;;  %v1421_v53 = vrot.slane %v150_v43, 5  ;;  %v169_v35 = vshrl.u32 %v1230_v13, 16  ;;  %v172_v34 = vshll.u32 %v1230_v13, 16 }
  0x19   :  { %v1419_v52 = vrot.slane %v133_v48, 4  ;;  %v157_v58 = vrot.slane %v155_v45, 4  ;;  %v160_v36 = vrot.slane %v158_v51, 5  ;;  %v1432_v44 = vrot.slane %v164_v55, 5  ;;  %v73_v45 = vld [vmem:[%s2522_s0 + $0x4c] sm:$0x1] }
  0x1a   :  { %v147_v31 = vor.u32 %v146_v42, %v143_v47  ;;  %v178_v43 = vshll.u32 %v71_v59, 16  ;;  %v171_v38 = vrot.slane %v169_v35, 4  ;;  %v174_v30 = vrot.slane %v172_v34, 5  ;;  %v74_v34 = vld [vmem:[%s2522_s0 + $0x54] sm:$0x1] }
  0x1b   :  { %v161_v60 = vor.u32 %v160_v36, %v157_v58  ;;  %v183_v63 = vshrl.u32 %v1235_v14, 16  ;;  %v186_v46 = vshll.u32 %v1235_v14, 16  ;;  %v192_v48 = vshll.u32 %v72_v57, 16 }
  0x1c   :  { %v1438_v51 = vrot.slane %v147_v31, 4  ;;  %v1440_v29 = vrot.slane %v178_v43, 5  ;;  %v175_v42 = vor.u32 %v174_v30, %v171_v38  ;;  %v197_v35 = vshrl.u32 %v1255_v18, 16  ;;  %v75_v43 = vld [vmem:[%s2522_s0 + $0x5c] sm:$0x1] }
  0x1d   :  { %v1443_v47 = vrot.slane %v161_v60, 4  ;;  %v185_v59 = vrot.slane %v183_v63, 4  ;;  %v188_v36 = vrot.slane %v186_v46, 5  ;;  %v1453_v55 = vrot.slane %v192_v48, 5 }
  0x1e   :  { %v200_v57 = vshll.u32 %v1255_v18, 16  ;;  %v1460_v63 = vrot.slane %v175_v42, 4  ;;  %v199_v38 = vrot.slane %v197_v35, 4  ;;  %v206_v58 = vshll.u32 %v73_v45, 16  ;;  %v76_v35 = vld [vmem:[%s2522_s0 + $0x64] sm:$0x1] }
  0x1f   :  { %2557 = vst [vmem:[#allocation16_spill] sm:$0xff] %v1453_v55  ;;  %v189_v60 = vor.u32 %v188_v36, %v185_v59  ;;  %v211_v46 = vshrl.u32 %v1260_v19, 16  ;;  %v214_v48 = vshll.u32 %v1260_v19, 16  ;;  %v220_v42 = vshll.u32 %v74_v34, 16 }
  0x20   :  { %v202_v31 = vrot.slane %v200_v57, 5  ;;  %v1471_v30 = vrot.slane %v206_v58, 5  ;;  %v225_v45 = vshrl.u32 %v1265_v20, 16  ;;  %v228_v24 = vshll.u32 %v1265_v20, 16 }
  0x21   :  { %v1477_v59 = vrot.slane %v189_v60, 4  ;;  %v213_v57 = vrot.slane %v211_v46, 4  ;;  %v216_v27 = vrot.slane %v214_v48, 5  ;;  %v1479_v26 = vrot.slane %v220_v42, 5 }
  0x22   :  { %v203_v36 = vor.u32 %v202_v31, %v199_v38  ;;  %v227_v25 = vrot.slane %v225_v45, 4  ;;  %v234_v28 = vshll.u32 %v75_v43, 16  ;;  %v239_v60 = vshrl.u32 %v1270_v21, 16  ;;  %v77_v31 = vld [vmem:[%s2522_s0 + $0x6c] sm:$0x1] }
  0x23   :  { %v217_v23 = vor.u32 %v216_v27, %v213_v57  ;;  %v230_v38 = vrot.slane %v228_v24, 5  ;;  %v242_v48 = vshll.u32 %v1270_v21, 16  ;;  %v248_v43 = vshll.u32 %v76_v35, 16  ;;  %v78_v57 = vld [vmem:[%s2522_s0 + $0x74] sm:$0x1] }
  0x24   :  { %v1486_v58 = vrot.slane %v203_v36, 4  ;;  %v1492_v46 = vrot.slane %v234_v28, 5  ;;  %v241_v36 = vrot.slane %v239_v60, 4  ;;  %v253_v27 = vshrl.u32 %v1313_v32, 16 }
  0x25   :  { %v218_v45 = vrot.slane %v217_v23, 4  ;;  %v231_v34 = vor.u32 %v230_v38, %v227_v25  ;;  %v244_v24 = vrot.slane %v242_v48, 5  ;;  %v250_v28 = vrot.slane %v248_v43, 5 }
  0x26   :  { %v209_v42 = vsel %vm1383_vm2, %v1486_v58, %v1471_v30  ;;  %v256_v20 = vshll.u32 %v1313_v32, 16  ;;  %v255_v21 = vrot.slane %v253_v27, 4  ;;  %v262_v22 = vshll.u32 %v77_v31, 16  ;;  %v79_v30 = vld [vmem:[%s2522_s0 + $0x7c] sm:$0x1] }
  0x27   :  { %v223_v35 = vsel %vm1383_vm2, %v218_v45, %v1479_v26  ;;  %v267_v23 = vshrl.u32 %v1318_v33, 16  ;;  %v232_v58 = vrot.slane %v231_v34, 4  ;;  %v245_v60 = vor.u32 %v244_v24, %v241_v36  ;;  %v80_v26 = vld [vmem:[%s2522_s0 + $0x84] sm:$0x1] }
  0x28   :  { %v258_v19 = vrot.slane %v256_v20, 5  ;;  %v270_v25 = vshll.u32 %v1318_v33, 16  ;;  %v264_v38 = vrot.slane %v262_v22, 5  ;;  %v276_v43 = vshll.u32 %v78_v57, 16 }
  0x29   :  { %v269_v48 = vrot.slane %v267_v23, 4  ;;  %v281_v32 = vshrl.u32 %v1334_v39, 16  ;;  %v237_v31 = vsel %vm1383_vm2, %v232_v58, %v1492_v46  ;;  %v246_v45 = vrot.slane %v245_v60, 4 }
  0x2a   :  { %v259_v27 = vor.u32 %v258_v19, %v255_v21  ;;  %v272_v34 = vrot.slane %v270_v25, 5  ;;  %v278_v36 = vrot.slane %v276_v43, 5  ;;  %v284_v24 = vshll.u32 %v1334_v39, 16 }
  0x2b   :  { %v283_v20 = vrot.slane %v281_v32, 4  ;;  %v290_v22 = vshll.u32 %v79_v30, 16  ;;  %v251_v57 = vsel %vm1383_vm2, %v246_v45, %v250_v28  ;;  %v295_v17 = vshrl.u32 %v1339_v40, 16  ;;  %v2581_v45 = vld [vmem:[#allocation8_spill] sm:$0xff] }
  0x2c   :  { %v260_v23 = vrot.slane %v259_v27, 4  ;;  %v273_v33 = vor.u32 %v272_v34, %v269_v48  ;;  %v286_v18 = vrot.slane %v284_v24, 5  ;;  %v298_v55 = vshll.u32 %v1339_v40, 16  ;;  %v2582_v27 = vld [vmem:[#allocation6_spill] sm:$0xff] }
  0x2d   :  { %v292_v16 = vrot.slane %v290_v22, 5  ;;  %v304_v46 = vshll.u32 %v80_v26, 16  ;;  %v297_v32 = vrot.slane %v295_v17, 4  ;;  %v2558_v30 = vmax.bf16 %v1165_v0, %v1185_v4 }
  0x2e   :  { %v265_v19 = vsel %vm1383_vm2, %v260_v23, %v264_v38  ;;  %v274_v21 = vrot.slane %v273_v33, 4  ;;  %v2559_v28 = vsel %vm1383_vm2, %v1388_v54, %v1372_v62  ;;  %v287_v60 = vor.u32 %v286_v18, %v283_v20  ;;  %v2585_v20 = vld [vmem:[#allocation7_spill] sm:$0xff]  ;;  %v2587_v23 = vld [vmem:[#allocation10_spill] sm:$0xff] }
  0x2f   :  { %v1534_v58 = vmax.bf16 %v2559_v28, %v2558_v30  ;;  %v300_v25 = vrot.slane %v298_v55, 5  ;;  %v306_v48 = vrot.slane %v304_v46, 5  ;;  %v2560_v43 = vmax.bf16 %v1170_v1, %v1190_v5  ;;  %v2578_v55 = vld [vmem:[#allocation3_spill] sm:$0xff]  ;;  %v2588_v46 = vld [vmem:[#allocation14_spill] sm:$0xff]  ;;  %v1666_v28 = vld [vmem:[%s2523_s2 + $0x30] sm:$0xf] }
  0x30   :  { %v2561_v17 = vsel %vm1383_vm2, %v1395_v61, %v1374_v49  ;;  %v279_v0 = vsel %vm1383_vm2, %v274_v21, %v278_v36  ;;  %v2562_v4 = vmax.bf16 %v1175_v2, %v1195_v6  ;;  %v2563_v18 = vsel %vm1383_vm2, %v1397_v41, %v1390_v56  ;;  %v2584_v36 = vld [vmem:[#allocation9_spill] sm:$0xff]  ;;  %v1661_v30 = vld [vmem:[%s2523_s2 + $0x28] sm:$0xf] }
  0x31   :  { %v1544_v33 = vmax.bf16 %v2561_v17, %v2560_v43  ;;  %v2564_v1 = vmax.bf16 %v1180_v3, %v1200_v7  ;;  %v2565_v5 = vsel %vm1383_vm2, %v1419_v52, %v1399_v37  ;;  %v2566_v2 = vmax.bf16 %v1205_v8, %v1220_v11  ;;  %v2593_v43 = vld [vmem:[#allocation12_spill] sm:$0xff] }
  0x32   :  { %v1556_v62 = vmax.bf16 %v2563_v18, %v2562_v4  ;;  %v2567_v6 = vsel %vm1383_vm2, %v1438_v51, %v1421_v53  ;;  %v288_v54 = vrot.slane %v287_v60, 4  ;;  %v301_v56 = vor.u32 %v300_v25, %v297_v32  ;;  %v2575_v53 = vld [vmem:[#allocation2_spill] sm:$0xff]  ;;  %v2591_v60 = vld [vmem:[#allocation15_spill] sm:$0xff] }
  0x33   :  { %v1566_v49 = vmax.bf16 %v2565_v5, %v2564_v1  ;;  %v1576_v41 = vmax.bf16 %v2567_v6, %v2566_v2  ;;  %v2568_v3 = vmax.bf16 %v1210_v9, %v1225_v12  ;;  %v2569_v7 = vsel %vm1383_vm2, %v1443_v47, %v1432_v44  ;;  %v1601_v9 = vld [vmem:[%s2523_s2] sm:$0xf]  ;;  %v1606_v12 = vld [vmem:[%s2523_s2 + $0x8] sm:$0xf]  ;;  %v2576_v44 = vld [vmem:[#allocation4_spill] sm:$0xff] }
  0x34   :  { %v2570_v8 = vmax.bf16 %v1215_v10, %v1230_v13  ;;  %v2571_v11 = vsel %vm1383_vm2, %v1460_v63, %v1440_v29  ;;  %v2572_v10 = vmax.bf16 %v1240_v15, %v1235_v14  ;;  %v2573_v13 = vld [vmem:[#allocation16_spill] sm:$0xff]  ;;  %v2577_v51 = vmax.bf16 %v2575_v53, %v2576_v44  ;;  %v2579_v63 = vld [vmem:[#allocation5_spill] sm:$0xff]  ;;  %v1682_v18 = vld [vmem:[%s2523_s2 + $0x48] sm:$0xf] }
  0x35   :  { %v1586_v37 = vmax.bf16 %v2569_v7, %v2568_v3  ;;  %v2574_v29 = vsel %vm1383_vm2, %v1477_v59, %v2573_v13  ;;  %v2580_v38 = vmax.bf16 %v2578_v55, %v2579_v63  ;;  %v2583_v14 = vmax.bf16 %v2581_v45, %v2582_v27  ;;  %v1636_v59 = vld [vmem:[%s2523_s2 + $0x10] sm:$0xf]  ;;  %v1692_v5 = vld [vmem:[%s2523_s2 + $0x58] sm:$0xf]  ;;  %v372_v6 = vld [vmem:[%s2524_s3] sm:$0xf] }
  0x36   :  { %v1596_v61 = vmax.bf16 %v2571_v11, %v2570_v8  ;;  %v1616_v52 = vmax.bf16 %v2574_v29, %v2572_v10  ;;  %v1621_v47 = vmax.bf16 %v209_v42, %v2577_v51  ;;  %v1641_v42 = vld [vmem:[%s2523_s2 + $0x18] sm:$0xf]  ;;  %v293_v34 = vsel %vm1383_vm2, %v288_v54, %v292_v16  ;;  %v1687_v1 = vld [vmem:[%s2523_s2 + $0x50] sm:$0xf]  ;;  %v373_v11 = vld [vmem:[%s2524_s3 + $0x8] sm:$0xf] }
  0x37   :  { %v1626_v26 = vmax.bf16 %v223_v35, %v2580_v38  ;;  %v1631_v15 = vmax.bf16 %v237_v31, %v2583_v14  ;;  %v1646_v35 = vld [vmem:[%s2523_s2 + $0x20] sm:$0xf]  ;;  %v302_v31 = vrot.slane %v301_v56, 4  ;;  %v2586_v24 = vmax.bf16 %v2584_v36, %v2585_v20  ;;  %v1671_v16 = vld [vmem:[%s2523_s2 + $0x38] sm:$0xf] }
  0x38   :  { %v2589_v21 = vmax.bf16 %v2587_v23, %v2588_v46  ;;  %v2594_v17 = vmax.bf16 %v2593_v43, %v1334_v39  ;;  %v1697_v39 = vld [vmem:[%s2523_s2 + $0x60] sm:$0xf]  ;;  %v357_v2 = vmax.bf16 %v1606_v12, %v1544_v33  ;;  %v1711_v56 = vld [vmem:[%s2523_s2 + $0x68] sm:$0xf]  ;;  %v1716_v3 = vld [vmem:[%s2523_s2 + $0x70] sm:$0xf]  ;;  %v359_v7 = vmax.bf16 %v1641_v42, %v1566_v49 }
  0x39   :  { %v335_v22 = vmax.bf16 %v251_v57, %v2586_v24  ;;  %v2590_v57 = vld [vmem:[#allocation11_spill] sm:$0xff]  ;;  %v307_v54 = vsel %vm1383_vm2, %v302_v31, %v306_v48  ;;  %v1726_v33 = vld [vmem:[%s2523_s2 + $0x80] sm:$0xf]  ;;  %v358_v48 = vmax.bf16 %v1636_v59, %v1556_v62  ;;  %v360_v8 = vmax.bf16 %v1646_v35, %v1576_v41  ;;  %v374_v10 = vld [vmem:[%s2524_s3 + $0x10] sm:$0xf] }
  0x3a   :  { %v1656_v32 = vmax.bf16 %v265_v19, %v2589_v21  ;;  %v2592_v25 = vmax.bf16 %v2590_v57, %v2591_v60  ;;  %v338_v4 = vmax.bf16 %v293_v34, %v2594_v17  ;;  %v375_v13 = vld [vmem:[%s2524_s3 + $0x18] sm:$0xf]  ;;  %v361_v49 = vmax.bf16 %v1661_v30, %v1586_v37  ;;  %v376_v51 = vld [vmem:[%s2524_s3 + $0x20] sm:$0xf]  ;;  %v377_v55 = vld [vmem:[%s2524_s3 + $0x28] sm:$0xf] }
  0x3b   :  { %v2595_v29 = vld [vmem:[#allocation13_spill] sm:$0xff]  ;;  %v362_v41 = vmax.bf16 %v1666_v28, %v1596_v61  ;;  %v363_v44 = vmax.bf16 %v1671_v16, %v1616_v52  ;;  %v364_v37 = vmax.bf16 %v1682_v18, %v1621_v47  ;;  %v365_v61 = vmax.bf16 %v1687_v1, %v1626_v26  ;;  %v380_v45 = vld [vmem:[%s2524_s3 + $0x48] sm:$0xf]  ;;  %v381_v47 = vld [vmem:[%s2524_s3 + $0x50] sm:$0xf] }
  0x3c   :  { %v337_v19 = vmax.bf16 %v279_v0, %v2592_v25  ;;  %v356_v0 = vmax.bf16 %v1601_v9, %v1534_v58  ;;  %v1721_v58 = vld [vmem:[%s2523_s2 + $0x78] sm:$0xf]  ;;  %v2596_v62 = vmax.bf16 %v2595_v29, %v1339_v40  ;;  %v378_v40 = vld [vmem:[%s2524_s3 + $0x30] sm:$0xf]  ;;  %v366_v52 = vmax.bf16 %v1692_v5, %v1631_v15  ;;  %v383_v31 = vld [vmem:[%s2524_s3 + $0x60] sm:$0xf] }
  0x3d   :  { %v367_v63 = vmax.bf16 %v1697_v39, %v335_v22  ;;  %v379_v38 = vld [vmem:[%s2524_s3 + $0x38] sm:$0xf]  ;;  %v368_v26 = vmax.bf16 %v1711_v56, %v1656_v32  ;;  %v370_v14 = vmax.bf16 %v1721_v58, %v338_v4  ;;  %v384_v36 = vld [vmem:[%s2524_s3 + $0x68] sm:$0xf]  ;;  %v385_v20 = vld [vmem:[%s2524_s3 + $0x70] sm:$0xf]  ;;  %v1802_v46 = vmax.bf16 %v373_v11, %v357_v2 }
  0x3e   :  { %v339_v53 = vmax.bf16 %v307_v54, %v2596_v62  ;;  %v369_v27 = vmax.bf16 %v1716_v3, %v337_v19  ;;  %v382_v34 = vld [vmem:[%s2524_s3 + $0x58] sm:$0xf]  ;;  %v387_v22 = vld [vmem:[%s2524_s3 + $0x80] sm:$0xf]  ;;  %v1800_v23 = vmax.bf16 %v372_v6, %v356_v0  ;;  %v1804_v21 = vmax.bf16 %v374_v10, %v358_v48  ;;  %v404_v43 = vld [vmem:[%s2523_s2 + $0x4] sm:$0x1] }
  0x3f   :  { %v386_v24 = vld [vmem:[%s2524_s3 + $0x78] sm:$0xf]  ;;  %v1806_v32 = vmax.bf16 %v375_v13, %v359_v7  ;;  %v1808_v57 = vmax.bf16 %v376_v51, %v360_v8  ;;  %v1810_v60 = vmax.bf16 %v377_v55, %v361_v49  ;;  %v1812_v25 = vmax.bf16 %v378_v40, %v362_v41  ;;  %v405_v6 = vld [vmem:[%s2523_s2 + $0xc] sm:$0x1]  ;;  %v406_v62 = vld [vmem:[%s2523_s2 + $0x14] sm:$0x1] }
  0x40   :  { %v371_v15 = vmax.bf16 %v1726_v33, %v339_v53  ;;  %v1814_v19 = vmax.bf16 %v379_v38, %v363_v44  ;;  %v1819_v17 = vmax.bf16 %v380_v45, %v364_v37  ;;  %v1821_v4 = vmax.bf16 %v381_v47, %v365_v61  ;;  %v407_v51 = vld [vmem:[%s2523_s2 + $0x1c] sm:$0x1] }
  0x41   :  { %v1823_v0 = vmax.bf16 %v382_v34, %v366_v52  ;;  %v1825_v2 = vmax.bf16 %v383_v31, %v367_v63  ;;  %v1830_v54 = vmax.bf16 %v384_v36, %v368_v26  ;;  %v1832_v48 = vmax.bf16 %v385_v20, %v369_v27  ;;  %v408_v26 = vld [vmem:[%s2523_s2 + $0x24] sm:$0x1] }
  0x42   :  { %v1834_v7 = vmax.bf16 %v386_v24, %v370_v14  ;;  %v1836_v8 = vmax.bf16 %v387_v22, %v371_v15  ;;  %v421_v11 = vshrl.u32 %v1601_v9, 16  ;;  %v424_v10 = vshll.u32 %v1601_v9, 16  ;;  %v409_v22 = vld [vmem:[%s2523_s2 + $0x2c] sm:$0x1] }
  0x43   :  { %v430_v13 = vshll.u32 %v404_v43, 16  ;;  %v435_v29 = vshrl.u32 %v1606_v12, 16  ;;  %v438_v53 = vshll.u32 %v1606_v12, 16  ;;  %v444_v49 = vshll.u32 %v405_v6, 16 }
  0x44   :  { %2597 = vst [vmem:[#allocation16_spill] sm:$0xff] %v1836_v8  ;;  %v449_v41 = vshrl.u32 %v1636_v59, 16  ;;  %v452_v44 = vshll.u32 %v1636_v59, 16  ;;  %v423_v55 = vrot.slane %v421_v11, 4  ;;  %v426_v9 = vrot.slane %v424_v10, 5 }
  0x45   :  { %v1850_v40 = vrot.slane %v430_v13, 5  ;;  %v437_v37 = vrot.slane %v435_v29, 4  ;;  %v440_v61 = vrot.slane %v438_v53, 5  ;;  %v1852_v52 = vrot.slane %v444_v49, 5  ;;  %v410_v53 = vld [vmem:[%s2523_s2 + $0x34] sm:$0x1] }
  0x46   :  { %v451_v63 = vrot.slane %v449_v41, 4  ;;  %v454_v38 = vrot.slane %v452_v44, 5  ;;  %v427_v12 = vor.u32 %v426_v9, %v423_v55  ;;  %v458_v45 = vshll.u32 %v406_v62, 16 }
  0x47   :  { %v463_v47 = vshrl.u32 %v1641_v42, 16  ;;  %v466_v59 = vshll.u32 %v1641_v42, 16  ;;  %v441_v27 = vor.u32 %v440_v61, %v437_v37  ;;  %v472_v15 = vshll.u32 %v407_v51, 16  ;;  %v411_v61 = vld [vmem:[%s2523_s2 + $0x3c] sm:$0x1] }
  0x48   :  { %v455_v14 = vor.u32 %v454_v38, %v451_v63  ;;  %v477_v34 = vshrl.u32 %v1646_v35, 16  ;;  %v1860_v31 = vrot.slane %v427_v12, 4  ;;  %v1862_v36 = vrot.slane %v458_v45, 5 }
  0x49   :  { %v465_v20 = vrot.slane %v463_v47, 4  ;;  %v468_v24 = vrot.slane %v466_v59, 5  ;;  %v1867_v42 = vrot.slane %v441_v27, 4  ;;  %v1871_v6 = vrot.slane %v472_v15, 5 }
  0x4a   :  { %v1869_v43 = vrot.slane %v455_v14, 4  ;;  %v479_v11 = vrot.slane %v477_v34, 4  ;;  %v480_v29 = vshll.u32 %v1646_v35, 16  ;;  %v486_v62 = vshll.u32 %v408_v26, 16 }
  0x4b   :  { %v469_v13 = vor.u32 %v468_v24, %v465_v20  ;;  %v491_v44 = vshrl.u32 %v1661_v30, 16  ;;  %v494_v51 = vshll.u32 %v1661_v30, 16  ;;  %v500_v37 = vshll.u32 %v409_v22, 16  ;;  %v412_v20 = vld [vmem:[%s2523_s2 + $0x4c] sm:$0x1] }
  0x4c   :  { %v482_v55 = vrot.slane %v480_v29, 5  ;;  %v1893_v9 = vrot.slane %v486_v62, 5  ;;  %v505_v12 = vshrl.u32 %v1666_v28, 16  ;;  %v508_v45 = vshll.u32 %v1666_v28, 16 }
  0x4d   :  { %v1891_v35 = vrot.slane %v469_v13, 4  ;;  %v493_v63 = vrot.slane %v491_v44, 4  ;;  %v496_v38 = vrot.slane %v494_v51, 5  ;;  %v1904_v59 = vrot.slane %v500_v37, 5  ;;  %v413_v44 = vld [vmem:[%s2523_s2 + $0x54] sm:$0x1] }
  0x4e   :  { %v483_v47 = vor.u32 %v482_v55, %v479_v11  ;;  %v514_v26 = vshll.u32 %v410_v53, 16  ;;  %v507_v14 = vrot.slane %v505_v12, 4  ;;  %v510_v15 = vrot.slane %v508_v45, 5  ;;  %v414_v45 = vld [vmem:[%s2523_s2 + $0x5c] sm:$0x1] }
  0x4f   :  { %v497_v27 = vor.u32 %v496_v38, %v493_v63  ;;  %v519_v34 = vshrl.u32 %v1671_v16, 16  ;;  %v522_v22 = vshll.u32 %v1671_v16, 16  ;;  %v528_v13 = vshll.u32 %v411_v61, 16 }
  0x50   :  { %v1910_v24 = vrot.slane %v483_v47, 4  ;;  %v1912_v28 = vrot.slane %v514_v26, 5  ;;  %v511_v29 = vor.u32 %v510_v15, %v507_v14  ;;  %v533_v53 = vshrl.u32 %v1682_v18, 16 }
  0x51   :  { %v1915_v11 = vrot.slane %v497_v27, 4  ;;  %v521_v62 = vrot.slane %v519_v34, 4  ;;  %v524_v55 = vrot.slane %v522_v22, 5  ;;  %v1925_v37 = vrot.slane %v528_v13, 5  ;;  %v415_v22 = vld [vmem:[%s2523_s2 + $0x64] sm:$0x1] }
  0x52   :  { %v536_v16 = vshll.u32 %v1682_v18, 16  ;;  %v1932_v63 = vrot.slane %v511_v29, 4  ;;  %v535_v38 = vrot.slane %v533_v53, 4  ;;  %v542_v12 = vshll.u32 %v412_v20, 16 }
  0x53   :  { %v525_v47 = vor.u32 %v524_v55, %v521_v62  ;;  %v547_v27 = vshrl.u32 %v1687_v1, 16  ;;  %v550_v14 = vshll.u32 %v1687_v1, 16  ;;  %v556_v34 = vshll.u32 %v413_v44, 16 }
  0x54   :  { %v538_v26 = vrot.slane %v536_v16, 5  ;;  %v1943_v15 = vrot.slane %v542_v12, 5  ;;  %v561_v20 = vshrl.u32 %v1692_v5, 16  ;;  %v564_v16 = vshll.u32 %v1692_v5, 16 }
  0x55   :  { %v1949_v13 = vrot.slane %v525_v47, 4  ;;  %v549_v62 = vrot.slane %v547_v27, 4  ;;  %v552_v53 = vrot.slane %v550_v14, 5  ;;  %v1951_v1 = vrot.slane %v556_v34, 5 }
  0x56   :  { %v539_v29 = vor.u32 %v538_v26, %v535_v38  ;;  %v563_v55 = vrot.slane %v561_v20, 4  ;;  %v570_v18 = vshll.u32 %v414_v45, 16  ;;  %v575_v47 = vshrl.u32 %v1697_v39, 16  ;;  %v416_v38 = vld [vmem:[%s2523_s2 + $0x6c] sm:$0x1] }
  0x57   :  { %v553_v61 = vor.u32 %v552_v53, %v549_v62  ;;  %v566_v26 = vrot.slane %v564_v16, 5  ;;  %v578_v5 = vshll.u32 %v1697_v39, 16  ;;  %v584_v45 = vshll.u32 %v415_v22, 16  ;;  %v417_v62 = vld [vmem:[%s2523_s2 + $0x74] sm:$0x1] }
  0x58   :  { %v1958_v12 = vrot.slane %v539_v29, 4  ;;  %v1964_v27 = vrot.slane %v570_v18, 5  ;;  %v577_v20 = vrot.slane %v575_v47, 4  ;;  %v589_v29 = vshrl.u32 %v1711_v56, 16 }
  0x59   :  { %v554_v34 = vrot.slane %v553_v61, 4  ;;  %v567_v53 = vor.u32 %v566_v26, %v563_v55  ;;  %v580_v16 = vrot.slane %v578_v5, 5  ;;  %v586_v18 = vrot.slane %v584_v45, 5 }
  0x5a   :  { %v545_v14 = vsel %vm1383_vm2, %v1958_v12, %v1943_v15  ;;  %v592_v44 = vshll.u32 %v1711_v56, 16  ;;  %v591_v22 = vrot.slane %v589_v29, 4  ;;  %v598_v51 = vshll.u32 %v416_v38, 16  ;;  %v418_v15 = vld [vmem:[%s2523_s2 + $0x7c] sm:$0x1] }
  0x5b   :  { %v559_v39 = vsel %vm1383_vm2, %v554_v34, %v1951_v1  ;;  %v603_v61 = vshrl.u32 %v1716_v3, 16  ;;  %v568_v12 = vrot.slane %v567_v53, 4  ;;  %v581_v47 = vor.u32 %v580_v16, %v577_v20  ;;  %v419_v1 = vld [vmem:[%s2523_s2 + $0x84] sm:$0x1] }
  0x5c   :  { %v594_v30 = vrot.slane %v592_v44, 5  ;;  %v606_v55 = vshll.u32 %v1716_v3, 16  ;;  %v600_v26 = vrot.slane %v598_v51, 5  ;;  %v612_v56 = vshll.u32 %v417_v62, 16 }
  0x5d   :  { %v605_v5 = vrot.slane %v603_v61, 4  ;;  %v617_v45 = vshrl.u32 %v1721_v58, 16  ;;  %v573_v38 = vsel %vm1383_vm2, %v568_v12, %v1964_v27  ;;  %v582_v34 = vrot.slane %v581_v47, 4 }
  0x5e   :  { %v595_v29 = vor.u32 %v594_v30, %v591_v22  ;;  %v608_v53 = vrot.slane %v606_v55, 5  ;;  %v614_v20 = vrot.slane %v612_v56, 5  ;;  %v620_v3 = vshll.u32 %v1721_v58, 16  ;;  %v1050_v56 = vld [vmem:[%s2521_s1 + $0x8] sm:$0xf] }
  0x5f   :  { %v619_v44 = vrot.slane %v617_v45, 4  ;;  %v626_v51 = vshll.u32 %v418_v15, 16  ;;  %v587_v62 = vsel %vm1383_vm2, %v582_v34, %v586_v18  ;;  %v631_v41 = vshrl.u32 %v1726_v33, 16  ;;  %v2163_v34 = vld [vmem:[%s2522_s0 + $0x80] sm:$0xf] }
  0x60   :  { %v596_v16 = vrot.slane %v595_v29, 4  ;;  %v609_v61 = vor.u32 %v608_v53, %v605_v5  ;;  %v622_v49 = vrot.slane %v620_v3, 5  ;;  %v634_v8 = vshll.u32 %v1726_v33, 16  ;;  %v2168_v29 = vld [vmem:[%s2522_s0 + $0x88] sm:$0xf] }
  0x61   :  { %v628_v10 = vrot.slane %v626_v51, 5  ;;  %v640_v27 = vshll.u32 %v419_v1, 16  ;;  %v633_v12 = vrot.slane %v631_v41, 4  ;;  %v2598_v58 = vsel %vm1383_vm2, %v1860_v31, %v1850_v40  ;;  %v2153_v1 = vld [vmem:[%s2522_s0 + $0x70] sm:$0xf] }
  0x62   :  { %v601_v30 = vsel %vm1383_vm2, %v596_v16, %v600_v26  ;;  %v610_v22 = vrot.slane %v609_v61, 4  ;;  %v2004_v18 = vmax.bf16 %v2598_v58, %v1800_v23  ;;  %v623_v15 = vor.u32 %v622_v49, %v619_v44  ;;  %v2064_v49 = vld [vmem:[%s2522_s0 + $0x10] sm:$0xf]  ;;  %v1052_v51 = vld [vmem:[%s2521_s1 + $0x18] sm:$0xf] }
  0x63   :  { %v636_v47 = vrot.slane %v634_v8, 5  ;;  %v642_v55 = vrot.slane %v640_v27, 5  ;;  %v2599_v33 = vsel %vm1383_vm2, %v1867_v42, %v1852_v52  ;;  %v2600_v23 = vsel %vm1383_vm2, %v1869_v43, %v1862_v36  ;;  %v1051_v3 = vld [vmem:[%s2521_s1 + $0x10] sm:$0xf] }
  0x64   :  { %v2012_v26 = vmax.bf16 %v2599_v33, %v1802_v46  ;;  %v615_v41 = vsel %vm1383_vm2, %v610_v22, %v614_v20  ;;  %v2022_v40 = vmax.bf16 %v2600_v23, %v1804_v21  ;;  %v2601_v8 = vsel %vm1383_vm2, %v1891_v35, %v1871_v6  ;;  %v2606_v16 = vld [vmem:[#allocation16_spill] sm:$0xff]  ;;  %v1059_v23 = vld [vmem:[%s2521_s1 + $0x58] sm:$0xf] }
  0x65   :  { %v2030_v52 = vmax.bf16 %v2601_v8, %v1806_v32  ;;  %v2602_v46 = vsel %vm1383_vm2, %v1910_v24, %v1893_v9  ;;  %v624_v42 = vrot.slane %v623_v15, 4  ;;  %v637_v36 = vor.u32 %v636_v47, %v633_v12  ;;  %v2086_v24 = vld [vmem:[%s2522_s0 + $0x18] sm:$0xf]  ;;  %v1054_v12 = vld [vmem:[%s2521_s1 + $0x28] sm:$0xf] }
  0x66   :  { %v2038_v31 = vmax.bf16 %v2602_v46, %v1808_v57  ;;  %v2603_v21 = vsel %vm1383_vm2, %v1915_v11, %v1904_v59  ;;  %v2604_v32 = vsel %vm1383_vm2, %v1932_v63, %v1912_v28  ;;  %v2059_v57 = vld [vmem:[%s2522_s0 + $0x8] sm:$0xf]  ;;  %v2078_v9 = vmax.bf16 %v559_v39, %v1821_v4  ;;  %v2091_v28 = vld [vmem:[%s2522_s0 + $0x20] sm:$0xf]  ;;  %v2112_v63 = vld [vmem:[%s2522_s0 + $0x38] sm:$0xf] }
  0x67   :  { %v2046_v43 = vmax.bf16 %v2603_v21, %v1810_v60  ;;  %v2054_v6 = vmax.bf16 %v2604_v32, %v1812_v25  ;;  %v2605_v60 = vsel %vm1383_vm2, %v1949_v13, %v1925_v37  ;;  %v2075_v25 = vmax.bf16 %v545_v14, %v1819_v17  ;;  %v2107_v37 = vld [vmem:[%s2522_s0 + $0x30] sm:$0xf]  ;;  %v2129_v14 = vld [vmem:[%s2522_s0 + $0x58] sm:$0xf]  ;;  %v2134_v39 = vld [vmem:[%s2522_s0 + $0x60] sm:$0xf] }
  0x68   :  { %v2072_v35 = vmax.bf16 %v2605_v60, %v1814_v19  ;;  %v2081_v59 = vmax.bf16 %v573_v38, %v1823_v0  ;;  %v2096_v19 = vld [vmem:[%s2522_s0 + $0x28] sm:$0xf]  ;;  %v629_v17 = vsel %vm1383_vm2, %v624_v42, %v628_v10  ;;  %v638_v4 = vrot.slane %v637_v36, 4  ;;  %v2117_v10 = vld [vmem:[%s2522_s0 + $0x40] sm:$0xf] }
  0x69   :  { %v671_v0 = vmax.bf16 %v587_v62, %v1825_v2  ;;  %v2102_v11 = vmax.bf16 %v601_v30, %v1830_v54  ;;  %v673_v2 = vmax.bf16 %v615_v41, %v1832_v48  ;;  %v674_v54 = vmax.bf16 %v629_v17, %v1834_v7  ;;  %v2124_v13 = vld [vmem:[%s2522_s0 + $0x50] sm:$0xf]  ;;  %v2139_v48 = vld [vmem:[%s2522_s0 + $0x68] sm:$0xf]  ;;  %v2158_v38 = vld [vmem:[%s2522_s0 + $0x78] sm:$0xf] }
  0x6a   :  { %v693_v7 = vmax.bf16 %v2059_v57, %v2004_v18  ;;  %v694_v5 = vmax.bf16 %v2064_v49, %v2012_v26  ;;  %v643_v45 = vsel %vm1383_vm2, %v638_v4, %v642_v55  ;;  %v695_v53 = vmax.bf16 %v2086_v24, %v2022_v40  ;;  %v1053_v62 = vld [vmem:[%s2521_s1 + $0x20] sm:$0xf]  ;;  %v1055_v58 = vld [vmem:[%s2521_s1 + $0x30] sm:$0xf]  ;;  %v1056_v18 = vld [vmem:[%s2521_s1 + $0x38] sm:$0xf] }
  0x6b   :  { %v696_v20 = vmax.bf16 %v2091_v28, %v2030_v52  ;;  %v697_v44 = vmax.bf16 %v2096_v19, %v2038_v31  ;;  %v675_v61 = vmax.bf16 %v643_v45, %v2606_v16  ;;  %v698_v27 = vmax.bf16 %v2107_v37, %v2046_v43  ;;  %v1057_v26 = vld [vmem:[%s2521_s1 + $0x40] sm:$0xf]  ;;  %v1058_v41 = vld [vmem:[%s2521_s1 + $0x50] sm:$0xf]  ;;  %v1061_v42 = vld [vmem:[%s2521_s1 + $0x68] sm:$0xf] }
  0x6c   :  { %v699_v30 = vmax.bf16 %v2112_v63, %v2054_v6  ;;  %v700_v22 = vmax.bf16 %v2117_v10, %v2072_v35  ;;  %v701_v15 = vmax.bf16 %v2124_v13, %v2075_v25  ;;  %v702_v47 = vmax.bf16 %v2129_v14, %v2078_v9  ;;  %v1060_v31 = vld [vmem:[%s2521_s1 + $0x60] sm:$0xf]  ;;  %v1062_v36 = vld [vmem:[%s2521_s1 + $0x70] sm:$0xf]  ;;  %v1063_v21 = vld [vmem:[%s2521_s1 + $0x78] sm:$0xf] }
  0x6d   :  { %v703_v55 = vmax.bf16 %v2134_v39, %v2081_v59  ;;  %v704_v33 = vmax.bf16 %v2139_v48, %v671_v0  ;;  %v705_v40 = vmax.bf16 %v2153_v1, %v2102_v11  ;;  %v706_v8 = vmax.bf16 %v2158_v38, %v673_v2  ;;  %v1064_v43 = vld [vmem:[%s2521_s1 + $0x80] sm:$0xf]  ;;  %v1065_v32 = vld [vmem:[%s2521_s1 + $0x88] sm:$0xf]  ;;  %v1066_v0 = vld [vmem:[%s2522_s0 + $0xc] sm:$0x1] }
  0x6e   :  { %v707_v52 = vmax.bf16 %v2163_v34, %v674_v54  ;;  %v708_v46 = vmax.bf16 %v2168_v29, %v675_v61  ;;  %v2240_v6 = vmax.bf16 %v1050_v56, %v693_v7  ;;  %v2242_v60 = vmax.bf16 %v1051_v3, %v694_v5  ;;  %v1067_v5 = vld [vmem:[%s2522_s0 + $0x14] sm:$0x1]  ;;  %v1068_v16 = vld [vmem:[%s2522_s0 + $0x1c] sm:$0x1] }
  0x6f   :  { %v2244_v35 = vmax.bf16 %v1052_v51, %v695_v53  ;;  %v2246_v25 = vmax.bf16 %v1053_v62, %v696_v20  ;;  %v2248_v9 = vmax.bf16 %v1054_v12, %v697_v44  ;;  %v2250_v59 = vmax.bf16 %v1055_v58, %v698_v27  ;;  %v1069_v12 = vld [vmem:[%s2522_s0 + $0x24] sm:$0x1] }
  0x70   :  { %v2252_v17 = vmax.bf16 %v1056_v18, %v699_v30  ;;  %v2254_v4 = vmax.bf16 %v1057_v26, %v700_v22  ;;  %v2259_v11 = vmax.bf16 %v1058_v41, %v701_v15  ;;  %v2261_v2 = vmax.bf16 %v1059_v23, %v702_v47 }
  0x71   :  { %v2263_v54 = vmax.bf16 %v1060_v31, %v703_v55  ;;  %v2265_v7 = vmax.bf16 %v1061_v42, %v704_v33  ;;  %v2270_v56 = vmax.bf16 %v1062_v36, %v705_v40  ;;  %v2272_v45 = vmax.bf16 %v1063_v21, %v706_v8  ;;  %v1070_v40 = vld [vmem:[%s2522_s0 + $0x2c] sm:$0x1] }
  0x72   :  { %v2274_v53 = vmax.bf16 %v1064_v43, %v707_v52  ;;  %v2276_v20 = vmax.bf16 %v1065_v32, %v708_v46  ;;  %v759_v44 = vshrl.u32 %v2059_v57, 16  ;;  %v762_v3 = vshll.u32 %v2059_v57, 16  ;;  %v1071_v32 = vld [vmem:[%s2522_s0 + $0x34] sm:$0x1] }
  0x73   :  { %v768_v51 = vshll.u32 %v1066_v0, 16  ;;  %v773_v62 = vshrl.u32 %v2064_v49, 16  ;;  %v776_v61 = vshll.u32 %v2064_v49, 16  ;;  %v782_v27 = vshll.u32 %v1067_v5, 16 }
  0x74   :  { %2607 = vst [vmem:[#allocation2_spill] sm:$0xff] %v2276_v20  ;;  %v787_v30 = vshrl.u32 %v2086_v24, 16  ;;  %v790_v22 = vshll.u32 %v2086_v24, 16  ;;  %v761_v58 = vrot.slane %v759_v44, 4  ;;  %v764_v57 = vrot.slane %v762_v3, 5 }
  0x75   :  { %v2290_v18 = vrot.slane %v768_v51, 5  ;;  %v775_v15 = vrot.slane %v773_v62, 4  ;;  %v778_v47 = vrot.slane %v776_v61, 5  ;;  %v2292_v55 = vrot.slane %v782_v27, 5  ;;  %v1072_v61 = vld [vmem:[%s2522_s0 + $0x3c] sm:$0x1] }
  0x76   :  { %v789_v33 = vrot.slane %v787_v30, 4  ;;  %v792_v26 = vrot.slane %v790_v22, 5  ;;  %v765_v49 = vor.u32 %v764_v57, %v761_v58  ;;  %v796_v41 = vshll.u32 %v1068_v16, 16 }
  0x77   :  { %v801_v23 = vshrl.u32 %v2091_v28, 16  ;;  %v804_v24 = vshll.u32 %v2091_v28, 16  ;;  %v779_v8 = vor.u32 %v778_v47, %v775_v15  ;;  %v810_v46 = vshll.u32 %v1069_v12, 16  ;;  %v1073_v47 = vld [vmem:[%s2522_s0 + $0x44] sm:$0x1] }
  0x78   :  { %v793_v52 = vor.u32 %v792_v26, %v789_v33  ;;  %v815_v31 = vshrl.u32 %v2096_v19, 16  ;;  %v2300_v42 = vrot.slane %v765_v49, 4  ;;  %v2302_v36 = vrot.slane %v796_v41, 5 }
  0x79   :  { %v803_v21 = vrot.slane %v801_v23, 4  ;;  %v806_v43 = vrot.slane %v804_v24, 5  ;;  %v2307_v28 = vrot.slane %v779_v8, 4  ;;  %v2311_v5 = vrot.slane %v810_v46, 5 }
  0x7a   :  { %v2309_v0 = vrot.slane %v793_v52, 4  ;;  %v817_v44 = vrot.slane %v815_v31, 4  ;;  %v818_v62 = vshll.u32 %v2096_v19, 16  ;;  %v824_v16 = vshll.u32 %v1070_v40, 16 }
  0x7b   :  { %v807_v51 = vor.u32 %v806_v43, %v803_v21  ;;  %v829_v22 = vshrl.u32 %v2107_v37, 16  ;;  %v832_v12 = vshll.u32 %v2107_v37, 16  ;;  %v838_v15 = vshll.u32 %v1071_v32, 16  ;;  %v1074_v21 = vld [vmem:[%s2522_s0 + $0x54] sm:$0x1] }
  0x7c   :  { %v820_v58 = vrot.slane %v818_v62, 5  ;;  %v2333_v57 = vrot.slane %v824_v16, 5  ;;  %v843_v49 = vshrl.u32 %v2112_v63, 16  ;;  %v846_v41 = vshll.u32 %v2112_v63, 16 }
  0x7d   :  { %v2331_v19 = vrot.slane %v807_v51, 4  ;;  %v831_v33 = vrot.slane %v829_v22, 4  ;;  %v834_v26 = vrot.slane %v832_v12, 5  ;;  %v2344_v24 = vrot.slane %v838_v15, 5  ;;  %v1075_v22 = vld [vmem:[%s2522_s0 + $0x5c] sm:$0x1] }
  0x7e   :  { %v821_v23 = vor.u32 %v820_v58, %v817_v44  ;;  %v852_v40 = vshll.u32 %v1072_v61, 16  ;;  %v845_v52 = vrot.slane %v843_v49, 4  ;;  %v848_v46 = vrot.slane %v846_v41, 5  ;;  %v1076_v41 = vld [vmem:[%s2522_s0 + $0x64] sm:$0x1] }
  0x7f   :  { %v835_v8 = vor.u32 %v834_v26, %v831_v33  ;;  %v857_v31 = vshrl.u32 %v2117_v10, 16  ;;  %v860_v32 = vshll.u32 %v2117_v10, 16  ;;  %v866_v51 = vshll.u32 %v1073_v47, 16 }
  0x80   :  { %v2350_v43 = vrot.slane %v821_v23, 4  ;;  %v2352_v63 = vrot.slane %v852_v40, 5  ;;  %v849_v62 = vor.u32 %v848_v46, %v845_v52  ;;  %v871_v61 = vshrl.u32 %v2124_v13, 16 }
  0x81   :  { %v2355_v44 = vrot.slane %v835_v8, 4  ;;  %v859_v16 = vrot.slane %v857_v31, 4  ;;  %v862_v58 = vrot.slane %v860_v32, 5  ;;  %v2365_v15 = vrot.slane %v866_v51, 5  ;;  %v1077_v32 = vld [vmem:[%s2522_s0 + $0x6c] sm:$0x1] }
  0x82   :  { %v874_v10 = vshll.u32 %v2124_v13, 16  ;;  %v2372_v33 = vrot.slane %v849_v62, 4  ;;  %v873_v26 = vrot.slane %v871_v61, 4  ;;  %v880_v49 = vshll.u32 %v1074_v21, 16 }
  0x83   :  { %v863_v23 = vor.u32 %v862_v58, %v859_v16  ;;  %v885_v8 = vshrl.u32 %v2129_v14, 16  ;;  %v888_v52 = vshll.u32 %v2129_v14, 16  ;;  %v894_v31 = vshll.u32 %v1075_v22, 16 }
  0x84   :  { %v876_v40 = vrot.slane %v874_v10, 5  ;;  %v2383_v46 = vrot.slane %v880_v49, 5  ;;  %v899_v21 = vshrl.u32 %v2134_v39, 16  ;;  %v902_v10 = vshll.u32 %v2134_v39, 16 }
  0x85   :  { %v2389_v51 = vrot.slane %v863_v23, 4  ;;  %v887_v16 = vrot.slane %v885_v8, 4  ;;  %v890_v61 = vrot.slane %v888_v52, 5  ;;  %v2391_v14 = vrot.slane %v894_v31, 5 }
  0x86   :  { %v877_v62 = vor.u32 %v876_v40, %v873_v26  ;;  %v901_v58 = vrot.slane %v899_v21, 4  ;;  %v908_v13 = vshll.u32 %v1076_v41, 16  ;;  %v913_v23 = vshrl.u32 %v2139_v48, 16  ;;  %v1078_v26 = vld [vmem:[%s2522_s0 + $0x74] sm:$0x1] }
  0x87   :  { %v891_v47 = vor.u32 %v890_v61, %v887_v16  ;;  %v904_v40 = vrot.slane %v902_v10, 5  ;;  %v916_v52 = vshll.u32 %v2139_v48, 16  ;;  %v922_v39 = vshll.u32 %v1077_v32, 16  ;;  %v1079_v16 = vld [vmem:[%s2522_s0 + $0x7c] sm:$0x1] }
  0x88   :  { %v2398_v49 = vrot.slane %v877_v62, 4  ;;  %v910_v8 = vrot.slane %v908_v13, 5  ;;  %v915_v21 = vrot.slane %v913_v23, 4  ;;  %v927_v62 = vshrl.u32 %v2153_v1, 16 }
  0x89   :  { %v892_v31 = vrot.slane %v891_v47, 4  ;;  %v905_v61 = vor.u32 %v904_v40, %v901_v58  ;;  %v918_v22 = vrot.slane %v916_v52, 5  ;;  %v924_v10 = vrot.slane %v922_v39, 5 }
  0x8a   :  { %v883_v41 = vsel %vm1383_vm2, %v2398_v49, %v2383_v46  ;;  %v930_v13 = vshll.u32 %v2153_v1, 16  ;;  %v929_v32 = vrot.slane %v927_v62, 4  ;;  %v936_v12 = vshll.u32 %v1078_v26, 16  ;;  %v1080_v46 = vld [vmem:[%s2522_s0 + $0x84] sm:$0x1] }
  0x8b   :  { %v897_v48 = vsel %vm1383_vm2, %v892_v31, %v2391_v14  ;;  %v941_v47 = vshrl.u32 %v2158_v38, 16  ;;  %v906_v49 = vrot.slane %v905_v61, 4  ;;  %v919_v23 = vor.u32 %v918_v22, %v915_v21  ;;  %v1081_v14 = vld [vmem:[%s2522_s0 + $0x8c] sm:$0x1] }
  0x8c   :  { %v932_v37 = vrot.slane %v930_v13, 5  ;;  %v944_v58 = vshll.u32 %v2158_v38, 16  ;;  %v938_v40 = vrot.slane %v936_v12, 5  ;;  %v950_v1 = vshll.u32 %v1079_v16, 16 }
  0x8d   :  { %v943_v52 = vrot.slane %v941_v47, 4  ;;  %v955_v39 = vshrl.u32 %v2163_v34, 16  ;;  %v911_v26 = vsel %vm1383_vm2, %v906_v49, %v910_v8  ;;  %v920_v31 = vrot.slane %v919_v23, 4 }
  0x8e   :  { %v933_v62 = vor.u32 %v932_v37, %v929_v32  ;;  %v946_v30 = vrot.slane %v944_v58, 5  ;;  %v952_v61 = vrot.slane %v950_v1, 5  ;;  %v958_v21 = vshll.u32 %v2163_v34, 16 }
  0x8f   :  { %v957_v22 = vrot.slane %v955_v39, 4  ;;  %v964_v38 = vshll.u32 %v1080_v46, 16  ;;  %v925_v12 = vsel %vm1383_vm2, %v920_v31, %v924_v10  ;;  %v969_v47 = vshrl.u32 %v2168_v29, 16 }
  0x90   :  { %v934_v16 = vrot.slane %v933_v62, 4  ;;  %v947_v13 = vor.u32 %v946_v30, %v943_v52  ;;  %v960_v27 = vrot.slane %v958_v21, 5  ;;  %v972_v20 = vshll.u32 %v2168_v29, 16 }
  0x91   :  { %v966_v3 = vrot.slane %v964_v38, 5  ;;  %v978_v8 = vshll.u32 %v1081_v14, 16  ;;  %v971_v49 = vrot.slane %v969_v47, 4  ;;  %v2608_v34 = vsel %vm1383_vm2, %v2300_v42, %v2290_v18 }
  0x92   :  { %v939_v37 = vsel %vm1383_vm2, %v934_v16, %v938_v40  ;;  %v948_v32 = vrot.slane %v947_v13, 4  ;;  %v998_v10 = vmax.bf16 %v2608_v34, %v2240_v6  ;;  %v961_v30 = vor.u32 %v960_v27, %v957_v22 }
  0x93   :  { %v974_v46 = vrot.slane %v972_v20, 5  ;;  %v980_v23 = vrot.slane %v978_v8, 5  ;;  %v2609_v29 = vsel %vm1383_vm2, %v2307_v28, %v2292_v55  ;;  %v2610_v18 = vsel %vm1383_vm2, %v2309_v0, %v2302_v36 }
  0x94   :  { %v999_v58 = vmax.bf16 %v2609_v29, %v2242_v60  ;;  %v953_v40 = vsel %vm1383_vm2, %v948_v32, %v952_v61  ;;  %v1000_v6 = vmax.bf16 %v2610_v18, %v2244_v35  ;;  %v2611_v20 = vsel %vm1383_vm2, %v2331_v19, %v2311_v5 }
  0x95   :  { %v1001_v42 = vmax.bf16 %v2611_v20, %v2246_v25  ;;  %v2612_v60 = vsel %vm1383_vm2, %v2350_v43, %v2333_v57  ;;  %v962_v28 = vrot.slane %v961_v30, 4  ;;  %v975_v27 = vor.u32 %v974_v46, %v971_v49 }
  0x96   :  { %v1002_v55 = vmax.bf16 %v2612_v60, %v2248_v9  ;;  %v2613_v35 = vsel %vm1383_vm2, %v2355_v44, %v2344_v24  ;;  %v2614_v25 = vsel %vm1383_vm2, %v2372_v33, %v2352_v63  ;;  %v2615_v9 = vsel %vm1383_vm2, %v2389_v51, %v2365_v15 }
  0x97   :  { %v1003_v36 = vmax.bf16 %v2613_v35, %v2250_v59  ;;  %v1004_v0 = vmax.bf16 %v2614_v25, %v2252_v17  ;;  %v1005_v5 = vmax.bf16 %v2615_v9, %v2254_v4  ;;  %v1006_v19 = vmax.bf16 %v883_v41, %v2259_v11  ;;  %v2616_v41 = vld [vmem:[#allocation2_spill] sm:$0xff] }
  0x98   :  { %v1007_v57 = vmax.bf16 %v897_v48, %v2261_v2  ;;  %v1008_v59 = vmax.bf16 %v911_v26, %v2263_v54  ;;  %v967_v24 = vsel %vm1383_vm2, %v962_v28, %v966_v3  ;;  %v976_v43 = vrot.slane %v975_v27, 4 }
  0x99   :  { %v1009_v63 = vmax.bf16 %v925_v12, %v2265_v7  ;;  %v1010_v17 = vmax.bf16 %v939_v37, %v2270_v56  ;;  %v1011_v44 = vmax.bf16 %v953_v40, %v2272_v45  ;;  %v1012_v33 = vmax.bf16 %v967_v24, %v2274_v53 }
  0x9a   :  { %v1122_v15 = vcombine.low %v998_v10, %v999_v58  ;;  %v1123_v4 = vcombine.low %v1000_v6, %v1001_v42  ;;  %v981_v11 = vsel %vm1383_vm2, %v976_v43, %v980_v23  ;;  %v1125_v2 = vcombine.low %v1002_v55, %v1003_v36 }
  0x9b   :  { %v1127_v51 = vcombine.low %v1004_v0, %v1005_v5  ;;  %v1129_v54 = vcombine.low %v1006_v19, %v1007_v57  ;;  %v1013_v48 = vmax.bf16 %v981_v11, %v2616_v41  ;;  %v1131_v7 = vcombine.low %v1008_v59, %v1009_v63 }
  0x9c   :  { %1086 = vst [vmem:[%s2525_s4] sm:$0xff] %v1122_v15   ;;  %1124 = vst [vmem:[%s2525_s4 + $0x8] sm:$0xff] %v1123_v4   ;;  %v1133_v56 = vcombine.low %v1010_v17, %v1011_v44 }
  0x9d   :  { %1126 = vst [vmem:[%s2525_s4 + $0x10] sm:$0xff] %v1125_v2   ;;  %1128 = vst [vmem:[%s2525_s4 + $0x18] sm:$0xff] %v1127_v51   ;;  %v1135_v50 = vcombine.low %v1012_v33, %v1013_v48 }
  0x9e   :  { %1130 = vst [vmem:[%s2525_s4 + $0x20] sm:$0xff] %v1129_v54   ;;  %1132 = vst [vmem:[%s2525_s4 + $0x28] sm:$0xff] %v1131_v7  }
  0x9f   :  { %1134 = vst [vmem:[%s2525_s4 + $0x30] sm:$0xff] %v1133_v56   ;;  %1136 = vst [vmem:[%s2525_s4 + $0x38] sm:$0xff] %v1135_v50  }

// kernel: resnet18_forward.23
= control target key start
LH: loop header
LB: loop body
LE: loop exit
PB: predicated region body
PF: predicated region fallthrough
CT: control target
= control target key end

     0   :  { %s1659_s12 = smov 0   ;;  %s1661_s13 = smov 0   ;;  %s1873_s0 = inlined_call_operand.vmem [shape: bf16[128,1152], index: 0, kind: input, shape index: {}]   ;;  %s1874_s1 = inlined_call_operand.vmem [shape: bf16[1152,128], index: 1, kind: input, shape index: {}]   ;;  %s1875_s2 = inlined_call_operand.vmem [shape: f32[1,128], index: 2, kind: input, shape index: {}]   ;;  %s1876_s3 = inlined_call_operand.vmem [shape: bf16[128,128], index: 3, kind: output, shape index: {}]  }
   0x1   :  { %s1663_s14 = smov 0   ;;  %s1665_s15 = smov 0  }
   0x2   :  { %s1667_s16 = smov 0  }
   0x3 LB: > { %s25_s17 = sadd.s32 1, %s1632_s15  ;;  %p48_p1 = scmp.ne.s32.totalorder %s1624_s13, %s1620_s12  ;;  %s1636_s16 = sphi %s1667_s16, %s13_s16   ;;  %s1632_s15 = sphi %s1665_s15, %s1880_s15   ;;  %s1628_s14 = sphi %s1663_s14, %s1879_s14   ;;  %s1624_s13 = sphi %s1661_s13, %s1878_s13   ;;  %s1620_s12 = sphi %s1659_s12, %s1877_s12  }
   0x4   : > { %p26_p0 = scmp.ge.s32.totalorder %s25_s17, 3  ;;  %p49_p2 = scmp.eq.s32.totalorder %s1636_s16, 0 }
   0x5   : > { %s41_s19 = sadd.s32 1, %s1624_s13  ;;  %p1216_p5 = scmp.ge.s32.totalorder %s1636_s16, 3 }
   0x6   : > { %s1882_s17 = smov (%p26_p0, %s25_s17), 0  ;;  %p50_p3 = por %p49_p2, %p48_p1 }
   0x7   : > { %s37_s18 = ssub.s32 %s1632_s15, %s1882_s17  ;;  %162 = sbr.rel (%p1216_p5) target bundleno = 37 (0x25), region = 20 }
   0x8   : > { %p39_p4 = scmp.eq.s32.totalorder %s37_s18, 0 }
   0xa   : > { %s1694_s20 = scalar_select %p39_p4, %s1624_s13, %s41_s19  }
   0xe   : > { %165 = sbr.rel (!%p50_p3) target bundleno = 37 (0x25), region = 24  ;;  %s167_s21 = sand.u32 (%p50_p3), 1, %s1624_s13  }
   0xf   : > { %s1323_s22 = smul.u32 (%p50_p3), 12, %s1632_s15 }
  0x10   : > { %s1499_s23 = smul.u32 (%p50_p3), 192, %s167_s21 }
  0x11   : > { %s1702_s26 = scalar_lea.vmem (%p50_p3), %s1873_s0, %s1323_s22 }
  0x12   : > { %v190_v0 = vld [vmem:[%s1702_s26] sm:$0xff] (%p50_p3)  ;;  %v194_v2 = vld [vmem:[%s1702_s26 + $0x48] sm:$0xff] (%p50_p3)  ;;  %s1707_s27 = scalar_lea.vmem (%p50_p3), [#allocation3], %s1499_s23  ;;  %v198_v4 = vld [vmem:[%s1702_s26 + $0x90] sm:$0xff] (%p50_p3) }
  0x13   : > { %v192_v1 = vld [vmem:[%s1702_s26 + $0x24] sm:$0xff] (%p50_p3)  ;;  %191 = vst [vmem:[%s1707_s27] sm:$0xff] (%p50_p3), %v190_v0  ;;  %195 = vst [vmem:[%s1707_s27 + $0x18] sm:$0xff] (%p50_p3), %v194_v2  ;;  %v196_v3 = vld [vmem:[%s1702_s26 + $0x6c] sm:$0xff] (%p50_p3) }
  0x14   : > { %193 = vst [vmem:[%s1707_s27 + $0xc] sm:$0xff] (%p50_p3), %v192_v1  ;;  %v200_v5 = vld [vmem:[%s1702_s26 + $0xb4] sm:$0xff] (%p50_p3)  ;;  %197 = vst [vmem:[%s1707_s27 + $0x24] sm:$0xff] (%p50_p3), %v196_v3  ;;  %v204_v7 = vld [vmem:[%s1702_s26 + $0xfc] sm:$0xff] (%p50_p3) }
  0x15   : > { %199 = vst [vmem:[%s1707_s27 + $0x30] sm:$0xff] %v198_v4  ;;  %201 = vst [vmem:[%s1707_s27 + $0x3c] sm:$0xff] %v200_v5  ;;  %v202_v6 = vld [vmem:[%s1702_s26 + $0xd8] sm:$0xff]  ;;  %v206_v8 = vld [vmem:[%s1702_s26 + $0x120] sm:$0xff] }
  0x16   : > { %203 = vst [vmem:[%s1707_s27 + $0x48] sm:$0xff] %v202_v6  ;;  %205 = vst [vmem:[%s1707_s27 + $0x54] sm:$0xff] %v204_v7  ;;  %v208_v9 = vld [vmem:[%s1702_s26 + $0x144] sm:$0xff]  ;;  %v212_v11 = vld [vmem:[%s1702_s26 + $0x18c] sm:$0xff] }
  0x17   : > { %207 = vst [vmem:[%s1707_s27 + $0x60] sm:$0xff] %v206_v8  ;;  %v210_v10 = vld [vmem:[%s1702_s26 + $0x168] sm:$0xff]  ;;  %209 = vst [vmem:[%s1707_s27 + $0x6c] sm:$0xff] %v208_v9  ;;  %v214_v12 = vld [vmem:[%s1702_s26 + $0x1b0] sm:$0xff] }
  0x18   : > { %211 = vst [vmem:[%s1707_s27 + $0x78] sm:$0xff] %v210_v10  ;;  %213 = vst [vmem:[%s1707_s27 + $0x84] sm:$0xff] %v212_v11  ;;  %v216_v13 = vld [vmem:[%s1702_s26 + $0x1d4] sm:$0xff]  ;;  %v220_v15 = vld [vmem:[%s1702_s26 + $0x21c] sm:$0xff] }
  0x19   : > { %v218_v14 = vld [vmem:[%s1702_s26 + $0x1f8] sm:$0xff]  ;;  %215 = vst [vmem:[%s1707_s27 + $0x90] sm:$0xff] %v214_v12  ;;  %217 = vst [vmem:[%s1707_s27 + $0x9c] sm:$0xff] %v216_v13  ;;  %v1218_v16 = vld [vmem:[%s1702_s26 + $0x8] sm:$0xf] }
  0x1a   : > { %219 = vst [vmem:[%s1707_s27 + $0xa8] sm:$0xff] %v218_v14  ;;  %v1220_v17 = vld [vmem:[%s1702_s26 + $0x2c] sm:$0xf]  ;;  %221 = vst [vmem:[%s1707_s27 + $0xb4] sm:$0xff] %v220_v15  ;;  %v1222_v18 = vld [vmem:[%s1702_s26 + $0x50] sm:$0xf] }
  0x1b   : > { %1219 = vst [vmem:[%s1707_s27 + $0x8] sm:$0xf] %v1218_v16  ;;  %1221 = vst [vmem:[%s1707_s27 + $0x14] sm:$0xf] %v1220_v17  ;;  %v1224_v19 = vld [vmem:[%s1702_s26 + $0x74] sm:$0xf] }
  0x1c   : > { %v1226_v20 = vld [vmem:[%s1702_s26 + $0x98] sm:$0xf]  ;;  %1223 = vst [vmem:[%s1707_s27 + $0x20] sm:$0xf] %v1222_v18  ;;  %1225 = vst [vmem:[%s1707_s27 + $0x2c] sm:$0xf] %v1224_v19 }
  0x1d   : > { %1227 = vst [vmem:[%s1707_s27 + $0x38] sm:$0xf] %v1226_v20  ;;  %v1228_v21 = vld [vmem:[%s1702_s26 + $0xbc] sm:$0xf]  ;;  %v1230_v22 = vld [vmem:[%s1702_s26 + $0xe0] sm:$0xf] }
  0x1e   : > { %v1232_v23 = vld [vmem:[%s1702_s26 + $0x104] sm:$0xf]  ;;  %1229 = vst [vmem:[%s1707_s27 + $0x44] sm:$0xf] %v1228_v21  ;;  %1231 = vst [vmem:[%s1707_s27 + $0x50] sm:$0xf] %v1230_v22 }
  0x1f   : > { %1233 = vst [vmem:[%s1707_s27 + $0x5c] sm:$0xf] %v1232_v23  ;;  %v1234_v24 = vld [vmem:[%s1702_s26 + $0x128] sm:$0xf]  ;;  %v1236_v25 = vld [vmem:[%s1702_s26 + $0x14c] sm:$0xf] }
  0x20   : > { %v1238_v26 = vld [vmem:[%s1702_s26 + $0x170] sm:$0xf]  ;;  %1235 = vst [vmem:[%s1707_s27 + $0x68] sm:$0xf] %v1234_v24  ;;  %1237 = vst [vmem:[%s1707_s27 + $0x74] sm:$0xf] %v1236_v25 }
  0x21   : > { %1239 = vst [vmem:[%s1707_s27 + $0x80] sm:$0xf] %v1238_v26  ;;  %v1240_v27 = vld [vmem:[%s1702_s26 + $0x194] sm:$0xf]  ;;  %v1242_v28 = vld [vmem:[%s1702_s26 + $0x1b8] sm:$0xf] }
  0x22   : > { %v1244_v29 = vld [vmem:[%s1702_s26 + $0x1dc] sm:$0xf]  ;;  %1241 = vst [vmem:[%s1707_s27 + $0x8c] sm:$0xf] %v1240_v27  ;;  %1243 = vst [vmem:[%s1707_s27 + $0x98] sm:$0xf] %v1242_v28 }
  0x23   : > { %1245 = vst [vmem:[%s1707_s27 + $0xa4] sm:$0xf] %v1244_v29  ;;  %v1246_v30 = vld [vmem:[%s1702_s26 + $0x200] sm:$0xf]  ;;  %v1248_v31 = vld [vmem:[%s1702_s26 + $0x224] sm:$0xf] }
  0x24   : > { %1247 = vst [vmem:[%s1707_s27 + $0xb0] sm:$0xf] %v1246_v30  ;;  %1249 = vst [vmem:[%s1707_s27 + $0xbc] sm:$0xf] %v1248_v31 }
  0x25 PF: > { %p1250_p6 = scmp.ge.s32.totalorder %s1636_s16, 1  ;;  %p277_p7 = scmp.lt.s32.totalorder %s1636_s16, 4 }
  0x27   : > { %p278_p8 = pnand %p1250_p6, %p277_p7 }
  0x28   : > { %s284_s28 = sand.u32 (!%p278_p8), 1, %s1620_s12   ;;  %s323_s29 = smul.u32 (!%p278_p8), 48, %s1628_s14 }
  0x29   : > { %281 = sbr.rel (%p278_p8) target bundleno = 383 (0x17f), region = 54  ;;  %p1252_p10 = scmp.ne.s32.totalorder (!%p278_p8), %s1628_s14, 0 }
  0x2a   : > { %s1500_s30 = smul.u32 (!%p278_p8), 192, %s284_s28  ;;  %p324_p9 = scmp.lt.s32.totalorder (!%p278_p8), %s323_s29, 143 }
  0x2c   : > { %s1779_s8 = scalar_lea.vmem (!%p278_p8), [#allocation3], %s1500_s30 }
  0x30   : > { %s1884_s29 = smov (!%p324_p9, %s323_s29), 143  ;;  %348 = sbr.rel (%p1252_p10) target bundleno = 58 (0x3a), region = 62 }
  0x31   : > { %s1251_s4 = sshll.u32 %s1884_s29, 2  ;;  %v1638_v32 = vmov (!%p1252_p10), 0.0  }
  0x32   : > { %s1777_s7 = scalar_lea.vmem %s1874_s1, %s1251_s4  ;;  %349 = vst [vmem:[#allocation2] sm:$0xff] (!%p1252_p10), %v1638_v32  ;;  %350 = vst [vmem:[#allocation2 + $0x8] sm:$0xff] (!%p1252_p10), %v1638_v32 }
  0x33   : > { %351 = vst [vmem:[#allocation2 + $0x10] sm:$0xff] (!%p1252_p10), %v1638_v32  ;;  %352 = vst [vmem:[#allocation2 + $0x18] sm:$0xff] (!%p1252_p10), %v1638_v32 }
  0x34   : > { %353 = vst [vmem:[#allocation2 + $0x20] sm:$0xff] (!%p1252_p10), %v1638_v32  ;;  %354 = vst [vmem:[#allocation2 + $0x28] sm:$0xff] (!%p1252_p10), %v1638_v32 }
  0x35   : > { %355 = vst [vmem:[#allocation2 + $0x30] sm:$0xff] (!%p1252_p10), %v1638_v32  ;;  %356 = vst [vmem:[#allocation2 + $0x38] sm:$0xff] (!%p1252_p10), %v1638_v32 }
  0x36   : > { %357 = vst [vmem:[#allocation2 + $0x40] sm:$0xff] (!%p1252_p10), %v1638_v32  ;;  %358 = vst [vmem:[#allocation2 + $0x48] sm:$0xff] (!%p1252_p10), %v1638_v32 }
  0x37   : > { %359 = vst [vmem:[#allocation2 + $0x50] sm:$0xff] %v1638_v32  ;;  %360 = vst [vmem:[#allocation2 + $0x58] sm:$0xff] %v1638_v32 }
  0x38   : > { %361 = vst [vmem:[#allocation2 + $0x60] sm:$0xff] %v1638_v32  ;;  %362 = vst [vmem:[#allocation2 + $0x68] sm:$0xff] %v1638_v32 }
  0x39   : > { %363 = vst [vmem:[#allocation2 + $0x70] sm:$0xff] %v1638_v32  ;;  %364 = vst [vmem:[#allocation2 + $0x78] sm:$0xff] %v1638_v32 }
  0x3a PF: > { %v1542_v33 = vld [vmem:[%s1777_s7 + $0x40] sm:$0xff]   ;;  %v1545_v36 = vld [vmem:[%s1777_s7 + $0x48] sm:$0xff]   ;;  %v1548_v39 = vld [vmem:[%s1777_s7 + $0x50] sm:$0xff]   ;;  %p1301_p11 = scmp.ne.s32.totalorder %s1628_s14, 2 }
  0x3b   : > { %v1543_v34 = vld [vmem:[%s1777_s7] sm:$0xff]   ;;  %1387 = vmatprep.subr.bf16.mxu0 %v1542_v33  ;;  %v1546_v37 = vld [vmem:[%s1777_s7 + $0x8] sm:$0xff]   ;;  %v1549_v40 = vld [vmem:[%s1777_s7 + $0x10] sm:$0xff]  }
  0x3c   : > { %v1544_v35 = vld [vmem:[%s1777_s7 + $0x80] sm:$0xff]   ;;  %1388 = vmatpush3.bf16.msra.mxu0 %v1543_v34  ;;  %v1547_v38 = vld [vmem:[%s1777_s7 + $0x88] sm:$0xff]   ;;  %v1550_v41 = vld [vmem:[%s1777_s7 + $0x90] sm:$0xff]  }
  0x3d   : > { %1467 = vmatprep.subr.bf16.mxu1 %v1544_v35  ;;  %1389 = vmatprep.subr.bf16.mxu0 %v1545_v36  ;;  %v1551_v42 = vld [vmem:[%s1777_s7 + $0x58] sm:$0xff]   ;;  %v1554_v45 = vld [vmem:[%s1777_s7 + $0x60] sm:$0xff]   ;;  %v1557_v48 = vld [vmem:[%s1777_s7 + $0x68] sm:$0xff]  }
  0x3e   : > { %1468 = vmatpush3.bf16.msra.mxu1 %v1544_v35  ;;  %v1552_v43 = vld [vmem:[%s1777_s7 + $0x18] sm:$0xff]   ;;  %v1556_v46 = vld [vmem:[%s1777_s7 + $0xa0] sm:$0xff]   ;;  %v1559_v49 = vld [vmem:[%s1777_s7 + $0xa8] sm:$0xff]  }
  0x3f   : > { %1469 = vmatprep.subr.bf16.mxu1 %v1547_v38  ;;  %v1553_v44 = vld [vmem:[%s1777_s7 + $0x98] sm:$0xff]   ;;  %v1555_v47 = vld [vmem:[%s1777_s7 + $0x20] sm:$0xff]   ;;  %v1558_v50 = vld [vmem:[%s1777_s7 + $0x28] sm:$0xff]  }
  0x40   : > { %1390 = vmatpush3.bf16.msra.mxu0 %v1546_v37  ;;  %v1560_v51 = vld [vmem:[%s1777_s7 + $0x70] sm:$0xff]   ;;  %v1563_v54 = vld [vmem:[%s1777_s7 + $0x78] sm:$0xff]   ;;  %v1566_v59 = vld [vmem:[%s1779_s8] ss:$12 sps:$4 sm:$0xff]  }
  0x41   : > { %1391 = vmatprep.subr.bf16.mxu0 %v1548_v39  ;;  %v1561_v52 = vld [vmem:[%s1777_s7 + $0x30] sm:$0xff]   ;;  %v1565_v55 = vld [vmem:[%s1777_s7 + $0xb8] sm:$0xff]   ;;  %v1570_v61 = vld [vmem:[%s1779_s8 + $0x20] ss:$12 sps:$4 sm:$0xff]  }
  0x42   : > { %1470 = vmatpush3.bf16.msra.mxu1 %v1547_v38  ;;  %v1562_v53 = vld [vmem:[%s1777_s7 + $0xb0] sm:$0xff]   ;;  %v1564_v58 = vld [vmem:[%s1777_s7 + $0x38] sm:$0xff]   ;;  %v1586_v5 = vld [vmem:[%s1779_s8 + $0x80] ss:$12 sps:$4 sm:$0xff]  }
  0x43   : > { %1471 = vmatprep.subr.bf16.mxu1 %v1550_v41  ;;  %v1568_v56 = vld [vmem:[%s1779_s8 + $0x4] ss:$12 sps:$4 sm:$0xff]   ;;  %v1569_v57 = vld [vmem:[%s1779_s8 + $0x8] ss:$12 sps:$4 sm:$0xff]   ;;  %v1579_v4 = vld [vmem:[%s1779_s8 + $0x4c] ss:$12 sps:$4 sm:$0xff]  }
  0x44   : > { %1392 = vmatpush3.bf16.msra.mxu0 %v1549_v40  ;;  %765 = vmatprep.mubr.bf16.mxu0 %v1568_v56  ;;  %v1571_v60 = vld [vmem:[%s1779_s8 + $0x1c] ss:$12 sps:$4 sm:$0xff]   ;;  %v1577_v62 = vld [vmem:[%s1779_s8 + $0x38] ss:$12 sps:$4 sm:$0xff]   ;;  %v1574_v0 = vld [vmem:[%s1779_s8 + $0x34] ss:$12 sps:$4 sm:$0xff]  }
  0x45   : > { %1393 = vmatprep.subr.bf16.mxu0 %v1551_v42  ;;  %1483 = vmatprep.mubr.bf16.mxu1 %v1569_v57  ;;  %v1573_v63 = vld [vmem:[%s1779_s8 + $0x18] ss:$12 sps:$4 sm:$0xff]   ;;  %v1578_v1 = vld [vmem:[%s1779_s8 + $0x50] ss:$12 sps:$4 sm:$0xff]   ;;  %v1585_v2 = vld [vmem:[%s1779_s8 + $0x68] ss:$12 sps:$4 sm:$0xff]  }
  0x46   : > { %1472 = vmatpush3.bf16.msra.mxu1 %v1550_v41  ;;  %v1576_v3 = vld [vmem:[%s1779_s8 + $0x30] ss:$12 sps:$4 sm:$0xff]   ;;  %v1593_v6 = vld [vmem:[%s1779_s8 + $0x98] ss:$12 sps:$4 sm:$0xff]   ;;  %v1581_v7 = vld [vmem:[%s1779_s8 + $0x48] ss:$12 sps:$4 sm:$0xff]  }
  0x47   : > { %1473 = vmatprep.subr.bf16.mxu1 %v1553_v44  ;;  %v1582_v8 = vld [vmem:[%s1779_s8 + $0x64] ss:$12 sps:$4 sm:$0xff]   ;;  %v1584_v10 = vld [vmem:[%s1779_s8 + $0x60] ss:$12 sps:$4 sm:$0xff]   ;;  %v1587_v11 = vld [vmem:[%s1779_s8 + $0x7c] ss:$12 sps:$4 sm:$0xff]  }
  0x48   : > { %1394 = vmatpush3.bf16.msra.mxu0 %v1552_v43  ;;  %v1594_v9 = vld [vmem:[%s1779_s8 + $0xb0] ss:$12 sps:$4 sm:$0xff]   ;;  %v1589_v12 = vld [vmem:[%s1779_s8 + $0x78] ss:$12 sps:$4 sm:$0xff]   ;;  %v1590_v13 = vld [vmem:[%s1779_s8 + $0x94] ss:$12 sps:$4 sm:$0xff]  }
  0x49   : > { %1395 = vmatprep.subr.bf16.mxu0 %v1554_v45  ;;  %v1592_v14 = vld [vmem:[%s1779_s8 + $0x90] ss:$12 sps:$4 sm:$0xff]   ;;  %v1595_v15 = vld [vmem:[%s1779_s8 + $0xac] ss:$12 sps:$4 sm:$0xff]   ;;  %v1597_v16 = vld [vmem:[%s1779_s8 + $0xa8] ss:$12 sps:$4 sm:$0xff]  }
  0x4a   : > { %1474 = vmatpush3.bf16.msra.mxu1 %v1553_v44  ;;  %v365_v23 = vld [vmem:[#allocation2] sm:$0xff]  ;;  %v366_v28 = vld [vmem:[#allocation2 + $0x8] sm:$0xff]  ;;  %v367_v38 = vld [vmem:[#allocation2 + $0x10] sm:$0xff] }
  0x4b   : > { %1475 = vmatprep.subr.bf16.mxu1 %v1556_v46  ;;  %v368_v44 = vld [vmem:[#allocation2 + $0x18] sm:$0xff] }
  0x4c   : > { %1396 = vmatpush3.bf16.msra.mxu0 %v1555_v47 }
  0x4d   : > { %1397 = vmatprep.subr.bf16.mxu0 %v1557_v48 }
  0x4e   : > { %1476 = vmatpush3.bf16.msra.mxu1 %v1556_v46 }
  0x4f   : > { %1477 = vmatprep.subr.bf16.mxu1 %v1559_v49 }
  0x50   : > { %1398 = vmatpush3.bf16.msra.mxu0 %v1558_v50 }
  0x51   : > { %1399 = vmatprep.subr.bf16.mxu0 %v1560_v51 }
  0x52   : > { %1478 = vmatpush3.bf16.msra.mxu1 %v1559_v49 }
  0x53   : > { %1479 = vmatprep.subr.bf16.mxu1 %v1562_v53 }
  0x54   : > { %1400 = vmatpush3.bf16.msra.mxu0 %v1561_v52 }
  0x55   : > { %1401 = vmatprep.subr.bf16.mxu0 %v1563_v54 }
  0x56   : > { %1480 = vmatpush3.bf16.msra.mxu1 %v1562_v53 }
  0x57   : > { %1481 = vmatprep.subr.bf16.mxu1 %v1565_v55 }
  0x58   : > { %1402 = vmatpush3.bf16.msra.mxu0 %v1564_v58 }
  0x5a   : > { %1482 = vmatpush3.bf16.msra.mxu1 %v1565_v55  ;;  %v369_v55 = vld [vmem:[#allocation2 + $0x20] sm:$0xff] }
  0x5b   : > { %766 = vmatmul.mubr.bf16.vlgmr.msra.gmra.mrb[0].mxu0 %v1566_v59 }
  0x5c   : > { %773 = vmatprep.mubr.bf16.mxu0 %v1571_v60  ;;  %v370_v60 = vld [vmem:[#allocation2 + $0x28] sm:$0xff] }
  0x5d   : > { %1484 = vmatmul.mubr.bf16.vlgmr.msra.gmra.mrb[0].mxu1 %v1570_v61 }
  0x5e   : > { %1487 = vmatprep.mubr.bf16.mxu1 %v1577_v62 }
  0x63   : > { %774 = vmatmul.mubr.bf16.gmra.mrb[4].mxu0 %v1573_v63 }
  0x64   : > { %781 = vmatprep.mubr.bf16.mxu0 %v1574_v0 }
  0x65   : > { %1488 = vmatmul.mubr.bf16.gmra.mrb[4].mxu1 %v1578_v1 }
  0x66   : > { %1491 = vmatprep.mubr.bf16.mxu1 %v1585_v2 }
  0x6b   : > { %782 = vmatmul.mubr.bf16.gmra.mrb[8].mxu0 %v1576_v3 }
  0x6c   : > { %789 = vmatprep.mubr.bf16.mxu0 %v1579_v4 }
  0x6d   : > { %1492 = vmatmul.mubr.bf16.gmra.mrb[8].mxu1 %v1586_v5 }
  0x6e   : > { %1495 = vmatprep.mubr.bf16.mxu1 %v1593_v6  ;;  %v371_v6 = vld [vmem:[#allocation2 + $0x30] sm:$0xff] }
  0x73   : > { %790 = vmatmul.mubr.bf16.gmra.mrb[12].mxu0 %v1581_v7 }
  0x74   : > { %797 = vmatprep.mubr.bf16.mxu0 %v1582_v8 }
  0x75   : > { %1496 = vmatmul.mubr.bf16.gmra.mrb[12].mxu1 %v1594_v9 }
  0x7b   : > { %798 = vmatmul.mubr.bf16.gmra.mrb[16].mxu0 %v1584_v10 }
  0x7c   : > { %805 = vmatprep.mubr.bf16.mxu0 %v1587_v11 }
  0x83   : > { %806 = vmatmul.mubr.bf16.gmra.mrb[20].mxu0 %v1589_v12  ;;  %v372_v12 = vld [vmem:[#allocation2 + $0x38] sm:$0xff] }
  0x84   : > { %813 = vmatprep.mubr.bf16.mxu0 %v1590_v13 }
  0x8b   : > { %814 = vmatmul.mubr.bf16.gmra.mrb[24].mxu0 %v1592_v14 }
  0x8c   : > { %821 = vmatprep.mubr.bf16.mxu0 %v1595_v15 }
  0x93   : > { %822 = vmatmul.mubr.bf16.gmra.mrb[28].mxu0 %v1597_v16 }
 0x12e   : > { %v1403_v17 = vpop.f32.mrb[0].mxu0 }
 0x12f   : > { %v1404_v18 = vpop.f32.mrb[1].mxu0 }
 0x130   : > { %v1405_v19 = vadd.f32 %v1404_v18, %v1403_v17  ;;  %v1406_v20 = vpop.f32.mrb[2].mxu0  ;;  %v1485_v21 = vpop.f32.mrb[0].mxu1 }
 0x131   : > { %v1407_v22 = vpop.f32.mrb[3].mxu0  ;;  %v864_v24 = vpop.f32.mrb[1].mxu1 }
 0x132   : > { %v1408_v25 = vadd.f32 %v1407_v22, %v1406_v20  ;;  %v865_v26 = vadd.f32 %v1405_v19, %v864_v24  ;;  %v1486_v27 = vpop.f32.mrb[2].mxu1  ;;  %v373_v22 = vld [vmem:[#allocation2 + $0x40] sm:$0xff] }
 0x133   : > { %v867_v29 = vpop.f32.mrb[3].mxu1 }
 0x134   : > { %v927_v30 = vadd.f32 %v865_v26, %v365_v23  ;;  %v868_v31 = vadd.f32 %v1408_v25, %v867_v29  ;;  %v374_v25 = vld [vmem:[#allocation2 + $0x48] sm:$0xff] }
 0x136   : > { %943 = vst [vmem:[#allocation2] sm:$0xff] %v927_v30  ;;  %v928_v32 = vadd.f32 %v868_v31, %v366_v28  ;;  %v1409_v33 = vpop.f32.mrb[4].mxu0 }
 0x137   : > { %v1410_v34 = vpop.f32.mrb[5].mxu0 }
 0x138   : > { %944 = vst [vmem:[#allocation2 + $0x8] sm:$0xff] %v928_v32  ;;  %v1411_v35 = vadd.f32 %v1410_v34, %v1409_v33  ;;  %v1412_v36 = vpop.f32.mrb[6].mxu0  ;;  %v1489_v37 = vpop.f32.mrb[4].mxu1  ;;  %v375_v33 = vld [vmem:[#allocation2 + $0x50] sm:$0xff] }
 0x139   : > { %v1413_v39 = vpop.f32.mrb[7].mxu0  ;;  %v880_v40 = vpop.f32.mrb[5].mxu1 }
 0x13a   : > { %v873_v41 = vadd.f32 %v1485_v21, %v1411_v35  ;;  %v1414_v42 = vadd.f32 %v1413_v39, %v1412_v36  ;;  %v1490_v43 = vpop.f32.mrb[6].mxu1 }
 0x13b   : > { %v883_v45 = vpop.f32.mrb[7].mxu1 }
 0x13c   : > { %v929_v46 = vadd.f32 %v873_v41, %v367_v38  ;;  %v876_v47 = vadd.f32 %v1486_v27, %v1414_v42 }
 0x13e   : > { %945 = vst [vmem:[#allocation2 + $0x10] sm:$0xff] %v929_v46  ;;  %v930_v48 = vadd.f32 %v876_v47, %v368_v44  ;;  %v1415_v49 = vpop.f32.mrb[8].mxu0  ;;  %v377_v46 = vld [vmem:[#allocation2 + $0x60] sm:$0xff] }
 0x13f   : > { %v1416_v50 = vpop.f32.mrb[9].mxu0 }
 0x140   : > { %946 = vst [vmem:[#allocation2 + $0x18] sm:$0xff] %v930_v48  ;;  %v1417_v51 = vadd.f32 %v1416_v50, %v1415_v49  ;;  %v1418_v52 = vpop.f32.mrb[10].mxu0  ;;  %v1493_v53 = vpop.f32.mrb[8].mxu1  ;;  %v378_v49 = vld [vmem:[#allocation2 + $0x68] sm:$0xff] }
 0x141   : > { %v1419_v54 = vpop.f32.mrb[11].mxu0  ;;  %v896_v56 = vpop.f32.mrb[9].mxu1 }
 0x142   : > { %v1420_v57 = vadd.f32 %v1419_v54, %v1418_v52  ;;  %v881_v58 = vadd.f32 %v1417_v51, %v880_v40  ;;  %v1494_v59 = vpop.f32.mrb[10].mxu1 }
 0x143   : > { %v899_v61 = vpop.f32.mrb[11].mxu1 }
 0x144   : > { %v931_v62 = vadd.f32 %v881_v58, %v369_v55  ;;  %v884_v63 = vadd.f32 %v1420_v57, %v883_v45  ;;  %v379_v57 = vld [vmem:[#allocation2 + $0x70] sm:$0xff] }
 0x146   : > { %947 = vst [vmem:[#allocation2 + $0x20] sm:$0xff] %v931_v62  ;;  %v932_v0 = vadd.f32 %v884_v63, %v370_v60  ;;  %v1421_v1 = vpop.f32.mrb[12].mxu0 }
 0x147   : > { %v1422_v2 = vpop.f32.mrb[13].mxu0 }
 0x148   : > { %948 = vst [vmem:[#allocation2 + $0x28] sm:$0xff] %v932_v0  ;;  %v1423_v3 = vadd.f32 %v1422_v2, %v1421_v1  ;;  %v1424_v4 = vpop.f32.mrb[14].mxu0  ;;  %v1497_v5 = vpop.f32.mrb[12].mxu1  ;;  %v963_v1 = vld [vmem:[#allocation2] sm:$0xff] (!%p1301_p11)  ;;  %v964_v2 = vld [vmem:[#allocation2 + $0x8] sm:$0xff] (!%p1301_p11) }
 0x149   : > { %v1425_v7 = vpop.f32.mrb[15].mxu0  ;;  %v912_v8 = vpop.f32.mrb[13].mxu1 }
 0x14a   : > { %v889_v9 = vadd.f32 %v1489_v37, %v1423_v3  ;;  %v1426_v10 = vadd.f32 %v1425_v7, %v1424_v4  ;;  %v1498_v11 = vpop.f32.mrb[14].mxu1  ;;  %v376_v37 = vld [vmem:[#allocation2 + $0x58] sm:$0xff]  ;;  %v1302_v3 = vld [vmem:[%s1875_s2] ss:$0 sm:$0xff] (!%p1301_p11)  ;;  %v965_v7 = vld [vmem:[#allocation2 + $0x10] sm:$0xff] (!%p1301_p11) }
 0x14b   : > { %v915_v13 = vpop.f32.mrb[15].mxu1  ;;  %v986_v4 = vadd.f32 (!%p1301_p11), %v1302_v3, %v963_v1 }
 0x14c   : > { %v933_v14 = vadd.f32 %v889_v9, %v371_v6  ;;  %v892_v15 = vadd.f32 %v1490_v43, %v1426_v10  ;;  %v987_v6 = vadd.f32 (!%p1301_p11), %v1302_v3, %v964_v2  ;;  %v988_v9 = vadd.f32 (!%p1301_p11), %v1302_v3, %v965_v7 }
 0x14e   : > { %949 = vst [vmem:[#allocation2 + $0x30] sm:$0xff] %v933_v14  ;;  %v934_v16 = vadd.f32 %v892_v15, %v372_v12  ;;  %v1427_v17 = vpop.f32.mrb[16].mxu0  ;;  %v1002_v15 = vmax.f32 (!%p1301_p11), %v986_v4, 0.0 }
 0x14f   : > { %v1428_v18 = vpop.f32.mrb[17].mxu0 }
 0x150   : > { %950 = vst [vmem:[#allocation2 + $0x38] sm:$0xff] %v934_v16  ;;  %v1429_v19 = vadd.f32 %v1428_v18, %v1427_v17  ;;  %v1430_v20 = vpop.f32.mrb[18].mxu0  ;;  %v1003_v16 = vmax.f32 (!%p1301_p11), %v987_v6, 0.0 }
 0x151   : > { %v1431_v21 = vpop.f32.mrb[19].mxu0 }
 0x152   : > { %v1432_v23 = vadd.f32 %v1431_v21, %v1430_v20  ;;  %v897_v24 = vadd.f32 %v1429_v19, %v896_v56 }
 0x154   : > { %v935_v26 = vadd.f32 %v897_v24, %v373_v22  ;;  %v900_v27 = vadd.f32 %v1432_v23, %v899_v61  ;;  %v380_v61 = vld [vmem:[#allocation2 + $0x78] sm:$0xff]  ;;  %v1004_v22 = vmax.f32 (!%p1301_p11), %v988_v9, 0.0 }
 0x156   : > { %951 = vst [vmem:[#allocation2 + $0x40] sm:$0xff] %v935_v26  ;;  %v936_v28 = vadd.f32 %v900_v27, %v374_v25  ;;  %v1433_v29 = vpop.f32.mrb[20].mxu0 }
 0x157   : > { %v1434_v30 = vpop.f32.mrb[21].mxu0  ;;  %v970_v14 = vld [vmem:[#allocation2 + $0x38] sm:$0xff] (!%p1301_p11) }
 0x158   : > { %952 = vst [vmem:[#allocation2 + $0x48] sm:$0xff] %v936_v28  ;;  %v1435_v31 = vadd.f32 %v1434_v30, %v1433_v29  ;;  %v1436_v32 = vpop.f32.mrb[22].mxu0  ;;  %v993_v25 = vadd.f32 (!%p1301_p11), %v1302_v3, %v970_v14  ;;  %v1343_v28 = vpack.c.bf16 (!%p1301_p11), %v1003_v16, %v1002_v15 }
 0x159   : > { %v1437_v34 = vpop.f32.mrb[23].mxu0 }
 0x15a   : > { %v905_v35 = vadd.f32 %v1493_v53, %v1435_v31  ;;  %v1438_v36 = vadd.f32 %v1437_v34, %v1436_v32  ;;  %v1009_v34 = vmax.f32 (!%p1301_p11), %v993_v25, 0.0  ;;  %1344 = vst [vmem:[%s1876_s3] sm:$0xff] (!%p1301_p11), %v1343_v28  }
 0x15c   : > { %v937_v38 = vadd.f32 %v905_v35, %v375_v33  ;;  %v908_v39 = vadd.f32 %v1494_v59, %v1438_v36 }
 0x15d   : > { %v971_v19 = vld [vmem:[#allocation2 + $0x40] sm:$0xff] (!%p1301_p11) }
 0x15e   : > { %953 = vst [vmem:[#allocation2 + $0x50] sm:$0xff] %v937_v38  ;;  %v938_v40 = vadd.f32 %v908_v39, %v376_v37  ;;  %v1439_v41 = vpop.f32.mrb[24].mxu0  ;;  %v994_v31 = vadd.f32 (!%p1301_p11), %v1302_v3, %v971_v19 }
 0x15f   : > { %v1440_v42 = vpop.f32.mrb[25].mxu0  ;;  %v972_v20 = vld [vmem:[#allocation2 + $0x48] sm:$0xff] (!%p1301_p11) }
 0x160   : > { %954 = vst [vmem:[#allocation2 + $0x58] sm:$0xff] %v938_v40  ;;  %v1441_v43 = vadd.f32 %v1440_v42, %v1439_v41  ;;  %v1442_v44 = vpop.f32.mrb[26].mxu0  ;;  %v995_v35 = vadd.f32 (!%p1301_p11), %v1302_v3, %v972_v20  ;;  %v1010_v40 = vmax.f32 (!%p1301_p11), %v994_v31, 0.0 }
 0x161   : > { %v1443_v45 = vpop.f32.mrb[27].mxu0 }
 0x162   : > { %v1444_v47 = vadd.f32 %v1443_v45, %v1442_v44  ;;  %v913_v48 = vadd.f32 %v1441_v43, %v912_v8  ;;  %v967_v8 = vld [vmem:[#allocation2 + $0x20] sm:$0xff] (!%p1301_p11)  ;;  %v1011_v44 = vmax.f32 (!%p1301_p11), %v995_v35, 0.0 }
 0x163   : > { %v990_v12 = vadd.f32 (!%p1301_p11), %v1302_v3, %v967_v8 }
 0x164   : > { %v939_v50 = vadd.f32 %v913_v48, %v377_v46  ;;  %v916_v51 = vadd.f32 %v1444_v47, %v915_v13  ;;  %v969_v13 = vld [vmem:[#allocation2 + $0x30] sm:$0xff] (!%p1301_p11) }
 0x165   : > { %v992_v18 = vadd.f32 (!%p1301_p11), %v1302_v3, %v969_v13  ;;  %v973_v21 = vld [vmem:[#allocation2 + $0x50] sm:$0xff] (!%p1301_p11)  ;;  %v1006_v24 = vmax.f32 (!%p1301_p11), %v990_v12, 0.0 }
 0x166   : > { %955 = vst [vmem:[#allocation2 + $0x60] sm:$0xff] %v939_v50  ;;  %v940_v52 = vadd.f32 %v916_v51, %v378_v49  ;;  %v1445_v53 = vpop.f32.mrb[28].mxu0  ;;  %v996_v36 = vadd.f32 (!%p1301_p11), %v1302_v3, %v973_v21  ;;  %v1363_v51 = vpack.c.bf16 (!%p1301_p11), %v1011_v44, %v1010_v40 }
 0x167   : > { %v1446_v54 = vpop.f32.mrb[29].mxu0  ;;  %v974_v26 = vld [vmem:[#allocation2 + $0x58] sm:$0xff] (!%p1301_p11)  ;;  %v1008_v30 = vmax.f32 (!%p1301_p11), %v992_v18, 0.0 }
 0x168   : > { %956 = vst [vmem:[#allocation2 + $0x68] sm:$0xff] %v940_v52  ;;  %v1447_v55 = vadd.f32 %v1446_v54, %v1445_v53  ;;  %v1448_v56 = vpop.f32.mrb[30].mxu0  ;;  %v997_v41 = vadd.f32 (!%p1301_p11), %v1302_v3, %v974_v26  ;;  %v1012_v45 = vmax.f32 (!%p1301_p11), %v996_v36, 0.0  ;;  %1383 = vst [vmem:[%s1876_s3 + $0x20] sm:$0xff] (!%p1301_p11), %v1363_v51  }
 0x169   : > { %v1449_v58 = vpop.f32.mrb[31].mxu0  ;;  %v1358_v43 = vpack.c.bf16 (!%p1301_p11), %v1009_v34, %v1008_v30 }
 0x16a   : > { %v921_v59 = vadd.f32 %v1497_v5, %v1447_v55  ;;  %v1450_v60 = vadd.f32 %v1449_v58, %v1448_v56  ;;  %962 = sbr.rel (%p1301_p11) target bundleno = 383 (0x17f), region = 66  ;;  %v966_v5 = vld [vmem:[#allocation2 + $0x18] sm:$0xff] (!%p1301_p11)  ;;  %v1013_v47 = vmax.f32 (!%p1301_p11), %v997_v41, 0.0 }
 0x16b   : > { %v989_v10 = vadd.f32 (!%p1301_p11), %v1302_v3, %v966_v5  ;;  %1382 = vst [vmem:[%s1876_s3 + $0x18] sm:$0xff] (!%p1301_p11), %v1358_v43  }
 0x16c   : > { %v941_v62 = vadd.f32 %v921_v59, %v379_v57  ;;  %v924_v63 = vadd.f32 %v1498_v11, %v1450_v60  ;;  %v968_v11 = vld [vmem:[#allocation2 + $0x28] sm:$0xff] (!%p1301_p11)  ;;  %v1368_v53 = vpack.c.bf16 (!%p1301_p11), %v1013_v47, %v1012_v45 }
 0x16d   : > { %v991_v17 = vadd.f32 (!%p1301_p11), %v1302_v3, %v968_v11  ;;  %v1005_v23 = vmax.f32 (!%p1301_p11), %v989_v10, 0.0  ;;  %v975_v27 = vld [vmem:[#allocation2 + $0x60] sm:$0xff] (!%p1301_p11) }
 0x16e   : > { %957 = vst [vmem:[#allocation2 + $0x70] sm:$0xff] %v941_v62  ;;  %v942_v0 = vadd.f32 %v924_v63, %v380_v61  ;;  %v998_v42 = vadd.f32 (!%p1301_p11), %v1302_v3, %v975_v27  ;;  %1384 = vst [vmem:[%s1876_s3 + $0x28] sm:$0xff] (!%p1301_p11), %v1368_v53  }
 0x16f   : > { %v1007_v29 = vmax.f32 (!%p1301_p11), %v991_v17, 0.0  ;;  %v976_v32 = vld [vmem:[#allocation2 + $0x68] sm:$0xff] (!%p1301_p11)  ;;  %v1348_v33 = vpack.c.bf16 (!%p1301_p11), %v1005_v23, %v1004_v22 }
 0x170   : > { %958 = vst [vmem:[#allocation2 + $0x78] sm:$0xff] %v942_v0  ;;  %v999_v46 = vadd.f32 (!%p1301_p11), %v1302_v3, %v976_v32  ;;  %v1014_v48 = vmax.f32 (!%p1301_p11), %v998_v42, 0.0 }
 0x171   : > { %v1353_v39 = vpack.c.bf16 %v1007_v29, %v1006_v24  ;;  %1380 = vst [vmem:[%s1876_s3 + $0x8] sm:$0xff] %v1348_v33  }
 0x172   : > { %v1015_v52 = vmax.f32 %v999_v46, 0.0 }
 0x173   : > { %1381 = vst [vmem:[%s1876_s3 + $0x10] sm:$0xff] %v1353_v39  }
 0x174   : > { %v1373_v56 = vpack.c.bf16 %v1015_v52, %v1014_v48 }
 0x175   : > { %v977_v37 = vld [vmem:[#allocation2 + $0x70] sm:$0xff] }
 0x176   : > { %v1000_v49 = vadd.f32 %v1302_v3, %v977_v37  ;;  %1385 = vst [vmem:[%s1876_s3 + $0x30] sm:$0xff] %v1373_v56  }
 0x177   : > { %v978_v38 = vld [vmem:[#allocation2 + $0x78] sm:$0xff] }
 0x178   : > { %v1001_v50 = vadd.f32 %v1302_v3, %v978_v38  ;;  %v1016_v54 = vmax.f32 %v1000_v49, 0.0 }
 0x17a   : > { %v1017_v55 = vmax.f32 %v1001_v50, 0.0 }
 0x17c   : > { %v1378_v57 = vpack.c.bf16 %v1017_v55, %v1016_v54 }
 0x17e   : > { %1386 = vst [vmem:[%s1876_s3 + $0x38] sm:$0xff] %v1378_v57  }
 0x17f PF: > { %s13_s16 = sadd.s32 1, %s1636_s16   ;;  %s1877_s12 = smov %s1624_s13 }
 0x180   : > { %p10_p12 = scmp.ge.s32.totalorder %s13_s16, 5   ;;  %s1878_s13 = smov %s1694_s20 }
 0x181   : > { %s1879_s14 = smov %s1632_s15  ;;  %s1880_s15 = smov %s1882_s17 }
 0x182   :  { %12 = sbr.rel (!%p10_p12) target bundleno = 3 (0x3), region = 113 }

// kernel: resnet18_forward.24
= control target key start
LH: loop header
LB: loop body
LE: loop exit
PB: predicated region body
PF: predicated region fallthrough
CT: control target
= control target key end

     0   :  { %s1830_s15 = smov 0   ;;  %s1832_s16 = smov 0   ;;  %s2086_s0 = inlined_call_operand.vmem [shape: bf16[128,1152], index: 0, kind: input, shape index: {}]   ;;  %s2087_s1 = inlined_call_operand.vmem [shape: bf16[1152,128], index: 1, kind: input, shape index: {}]   ;;  %s2088_s2 = inlined_call_operand.vmem [shape: f32[1,128], index: 2, kind: input, shape index: {}]   ;;  %s2089_s3 = inlined_call_operand.vmem [shape: bf16[128,128], index: 3, kind: input, shape index: {}]   ;;  %s2090_s4 = inlined_call_operand.vmem [shape: bf16[128,128], index: 4, kind: output, shape index: {}]  }
   0x1   :  { %s1834_s17 = smov 0   ;;  %s1836_s18 = smov 0  }
   0x2   :  { %s1838_s19 = smov 0  }
   0x3 LB: > { %s26_s20 = sadd.s32 1, %s1798_s18  ;;  %p49_p1 = scmp.ne.s32.totalorder %s1790_s16, %s1786_s15  ;;  %s1802_s19 = sphi %s1838_s19, %s14_s19   ;;  %s1798_s18 = sphi %s1836_s18, %s2094_s18   ;;  %s1794_s17 = sphi %s1834_s17, %s2093_s17   ;;  %s1790_s16 = sphi %s1832_s16, %s2092_s16   ;;  %s1786_s15 = sphi %s1830_s15, %s2091_s15  }
   0x4   : > { %p27_p0 = scmp.ge.s32.totalorder %s26_s20, 3  ;;  %p50_p2 = scmp.eq.s32.totalorder %s1802_s19, 0 }
   0x5   : > { %s42_s22 = sadd.s32 1, %s1790_s16  ;;  %p1343_p5 = scmp.ge.s32.totalorder %s1802_s19, 3 }
   0x6   : > { %s2096_s20 = smov (%p27_p0, %s26_s20), 0  ;;  %p51_p3 = por %p50_p2, %p49_p1 }
   0x7   : > { %s38_s21 = ssub.s32 %s1798_s18, %s2096_s20  ;;  %203 = sbr.rel (%p1343_p5) target bundleno = 37 (0x25), region = 24 }
   0x8   : > { %p40_p4 = scmp.eq.s32.totalorder %s38_s21, 0 }
   0xa   : > { %s1865_s23 = scalar_select %p40_p4, %s1790_s16, %s42_s22  }
   0xe   : > { %206 = sbr.rel (!%p51_p3) target bundleno = 37 (0x25), region = 28  ;;  %s208_s24 = sand.u32 (%p51_p3), 1, %s1790_s16  }
   0xf   : > { %s1450_s25 = smul.u32 (%p51_p3), 12, %s1798_s18 }
  0x10   : > { %s1665_s26 = smul.u32 (%p51_p3), 192, %s208_s24 }
  0x11   : > { %s1873_s29 = scalar_lea.vmem (%p51_p3), %s2086_s0, %s1450_s25 }
  0x12   : > { %v231_v0 = vld [vmem:[%s1873_s29] sm:$0xff] (%p51_p3)  ;;  %v235_v2 = vld [vmem:[%s1873_s29 + $0x48] sm:$0xff] (%p51_p3)  ;;  %s1878_s30 = scalar_lea.vmem (%p51_p3), [#allocation3], %s1665_s26  ;;  %v239_v4 = vld [vmem:[%s1873_s29 + $0x90] sm:$0xff] (%p51_p3) }
  0x13   : > { %v233_v1 = vld [vmem:[%s1873_s29 + $0x24] sm:$0xff] (%p51_p3)  ;;  %232 = vst [vmem:[%s1878_s30] sm:$0xff] (%p51_p3), %v231_v0  ;;  %236 = vst [vmem:[%s1878_s30 + $0x18] sm:$0xff] (%p51_p3), %v235_v2  ;;  %v237_v3 = vld [vmem:[%s1873_s29 + $0x6c] sm:$0xff] (%p51_p3) }
  0x14   : > { %234 = vst [vmem:[%s1878_s30 + $0xc] sm:$0xff] (%p51_p3), %v233_v1  ;;  %v241_v5 = vld [vmem:[%s1873_s29 + $0xb4] sm:$0xff] (%p51_p3)  ;;  %238 = vst [vmem:[%s1878_s30 + $0x24] sm:$0xff] (%p51_p3), %v237_v3  ;;  %v245_v7 = vld [vmem:[%s1873_s29 + $0xfc] sm:$0xff] (%p51_p3) }
  0x15   : > { %240 = vst [vmem:[%s1878_s30 + $0x30] sm:$0xff] %v239_v4  ;;  %242 = vst [vmem:[%s1878_s30 + $0x3c] sm:$0xff] %v241_v5  ;;  %v243_v6 = vld [vmem:[%s1873_s29 + $0xd8] sm:$0xff]  ;;  %v247_v8 = vld [vmem:[%s1873_s29 + $0x120] sm:$0xff] }
  0x16   : > { %244 = vst [vmem:[%s1878_s30 + $0x48] sm:$0xff] %v243_v6  ;;  %246 = vst [vmem:[%s1878_s30 + $0x54] sm:$0xff] %v245_v7  ;;  %v249_v9 = vld [vmem:[%s1873_s29 + $0x144] sm:$0xff]  ;;  %v253_v11 = vld [vmem:[%s1873_s29 + $0x18c] sm:$0xff] }
  0x17   : > { %248 = vst [vmem:[%s1878_s30 + $0x60] sm:$0xff] %v247_v8  ;;  %v251_v10 = vld [vmem:[%s1873_s29 + $0x168] sm:$0xff]  ;;  %250 = vst [vmem:[%s1878_s30 + $0x6c] sm:$0xff] %v249_v9  ;;  %v255_v12 = vld [vmem:[%s1873_s29 + $0x1b0] sm:$0xff] }
  0x18   : > { %252 = vst [vmem:[%s1878_s30 + $0x78] sm:$0xff] %v251_v10  ;;  %254 = vst [vmem:[%s1878_s30 + $0x84] sm:$0xff] %v253_v11  ;;  %v257_v13 = vld [vmem:[%s1873_s29 + $0x1d4] sm:$0xff]  ;;  %v261_v15 = vld [vmem:[%s1873_s29 + $0x21c] sm:$0xff] }
  0x19   : > { %v259_v14 = vld [vmem:[%s1873_s29 + $0x1f8] sm:$0xff]  ;;  %256 = vst [vmem:[%s1878_s30 + $0x90] sm:$0xff] %v255_v12  ;;  %258 = vst [vmem:[%s1878_s30 + $0x9c] sm:$0xff] %v257_v13  ;;  %v1345_v16 = vld [vmem:[%s1873_s29 + $0x8] sm:$0xf] }
  0x1a   : > { %260 = vst [vmem:[%s1878_s30 + $0xa8] sm:$0xff] %v259_v14  ;;  %v1347_v17 = vld [vmem:[%s1873_s29 + $0x2c] sm:$0xf]  ;;  %262 = vst [vmem:[%s1878_s30 + $0xb4] sm:$0xff] %v261_v15  ;;  %v1349_v18 = vld [vmem:[%s1873_s29 + $0x50] sm:$0xf] }
  0x1b   : > { %1346 = vst [vmem:[%s1878_s30 + $0x8] sm:$0xf] %v1345_v16  ;;  %1348 = vst [vmem:[%s1878_s30 + $0x14] sm:$0xf] %v1347_v17  ;;  %v1351_v19 = vld [vmem:[%s1873_s29 + $0x74] sm:$0xf] }
  0x1c   : > { %v1353_v20 = vld [vmem:[%s1873_s29 + $0x98] sm:$0xf]  ;;  %1350 = vst [vmem:[%s1878_s30 + $0x20] sm:$0xf] %v1349_v18  ;;  %1352 = vst [vmem:[%s1878_s30 + $0x2c] sm:$0xf] %v1351_v19 }
  0x1d   : > { %1354 = vst [vmem:[%s1878_s30 + $0x38] sm:$0xf] %v1353_v20  ;;  %v1355_v21 = vld [vmem:[%s1873_s29 + $0xbc] sm:$0xf]  ;;  %v1357_v22 = vld [vmem:[%s1873_s29 + $0xe0] sm:$0xf] }
  0x1e   : > { %v1359_v23 = vld [vmem:[%s1873_s29 + $0x104] sm:$0xf]  ;;  %1356 = vst [vmem:[%s1878_s30 + $0x44] sm:$0xf] %v1355_v21  ;;  %1358 = vst [vmem:[%s1878_s30 + $0x50] sm:$0xf] %v1357_v22 }
  0x1f   : > { %1360 = vst [vmem:[%s1878_s30 + $0x5c] sm:$0xf] %v1359_v23  ;;  %v1361_v24 = vld [vmem:[%s1873_s29 + $0x128] sm:$0xf]  ;;  %v1363_v25 = vld [vmem:[%s1873_s29 + $0x14c] sm:$0xf] }
  0x20   : > { %v1365_v26 = vld [vmem:[%s1873_s29 + $0x170] sm:$0xf]  ;;  %1362 = vst [vmem:[%s1878_s30 + $0x68] sm:$0xf] %v1361_v24  ;;  %1364 = vst [vmem:[%s1878_s30 + $0x74] sm:$0xf] %v1363_v25 }
  0x21   : > { %1366 = vst [vmem:[%s1878_s30 + $0x80] sm:$0xf] %v1365_v26  ;;  %v1367_v27 = vld [vmem:[%s1873_s29 + $0x194] sm:$0xf]  ;;  %v1369_v28 = vld [vmem:[%s1873_s29 + $0x1b8] sm:$0xf] }
  0x22   : > { %v1371_v29 = vld [vmem:[%s1873_s29 + $0x1dc] sm:$0xf]  ;;  %1368 = vst [vmem:[%s1878_s30 + $0x8c] sm:$0xf] %v1367_v27  ;;  %1370 = vst [vmem:[%s1878_s30 + $0x98] sm:$0xf] %v1369_v28 }
  0x23   : > { %1372 = vst [vmem:[%s1878_s30 + $0xa4] sm:$0xf] %v1371_v29  ;;  %v1373_v30 = vld [vmem:[%s1873_s29 + $0x200] sm:$0xf]  ;;  %v1375_v31 = vld [vmem:[%s1873_s29 + $0x224] sm:$0xf] }
  0x24   : > { %1374 = vst [vmem:[%s1878_s30 + $0xb0] sm:$0xf] %v1373_v30  ;;  %1376 = vst [vmem:[%s1878_s30 + $0xbc] sm:$0xf] %v1375_v31 }
  0x25 PF: > { %p1377_p6 = scmp.ge.s32.totalorder %s1802_s19, 1  ;;  %p318_p7 = scmp.lt.s32.totalorder %s1802_s19, 4 }
  0x27   : > { %p319_p8 = pnand %p1377_p6, %p318_p7 }
  0x28   : > { %s325_s5 = sand.u32 (!%p319_p8), 1, %s1786_s15   ;;  %s374_s6 = smul.u32 (!%p319_p8), 48, %s1794_s17 }
  0x29   : > { %322 = sbr.rel (%p319_p8) target bundleno = 385 (0x181), region = 58  ;;  %p1379_p10 = scmp.ne.s32.totalorder (!%p319_p8), %s1794_s17, 0 }
  0x2a   : > { %s1666_s7 = smul.u32 (!%p319_p8), 192, %s325_s5  ;;  %p375_p9 = scmp.lt.s32.totalorder (!%p319_p8), %s374_s6, 143 }
  0x2c   : > { %s1950_s12 = scalar_lea.vmem (!%p319_p8), [#allocation3], %s1666_s7 }
  0x30   : > { %s2098_s6 = smov (!%p375_p9, %s374_s6), 143  ;;  %408 = sbr.rel (%p1379_p10) target bundleno = 58 (0x3a), region = 66 }
  0x31   : > { %s1378_s8 = sshll.u32 %s2098_s6, 2  ;;  %v1804_v32 = vmov (!%p1379_p10), 0.0  }
  0x32   : > { %s1948_s11 = scalar_lea.vmem %s2087_s1, %s1378_s8  ;;  %409 = vst [vmem:[#allocation2] sm:$0xff] (!%p1379_p10), %v1804_v32  ;;  %410 = vst [vmem:[#allocation2 + $0x8] sm:$0xff] (!%p1379_p10), %v1804_v32 }
  0x33   : > { %411 = vst [vmem:[#allocation2 + $0x10] sm:$0xff] (!%p1379_p10), %v1804_v32  ;;  %412 = vst [vmem:[#allocation2 + $0x18] sm:$0xff] (!%p1379_p10), %v1804_v32 }
  0x34   : > { %413 = vst [vmem:[#allocation2 + $0x20] sm:$0xff] (!%p1379_p10), %v1804_v32  ;;  %414 = vst [vmem:[#allocation2 + $0x28] sm:$0xff] (!%p1379_p10), %v1804_v32 }
  0x35   : > { %415 = vst [vmem:[#allocation2 + $0x30] sm:$0xff] (!%p1379_p10), %v1804_v32  ;;  %416 = vst [vmem:[#allocation2 + $0x38] sm:$0xff] (!%p1379_p10), %v1804_v32 }
  0x36   : > { %417 = vst [vmem:[#allocation2 + $0x40] sm:$0xff] (!%p1379_p10), %v1804_v32  ;;  %418 = vst [vmem:[#allocation2 + $0x48] sm:$0xff] (!%p1379_p10), %v1804_v32 }
  0x37   : > { %419 = vst [vmem:[#allocation2 + $0x50] sm:$0xff] %v1804_v32  ;;  %420 = vst [vmem:[#allocation2 + $0x58] sm:$0xff] %v1804_v32 }
  0x38   : > { %421 = vst [vmem:[#allocation2 + $0x60] sm:$0xff] %v1804_v32  ;;  %422 = vst [vmem:[#allocation2 + $0x68] sm:$0xff] %v1804_v32 }
  0x39   : > { %423 = vst [vmem:[#allocation2 + $0x70] sm:$0xff] %v1804_v32  ;;  %424 = vst [vmem:[#allocation2 + $0x78] sm:$0xff] %v1804_v32 }
  0x3a PF: > { %v1708_v33 = vld [vmem:[%s1948_s11 + $0x40] sm:$0xff]   ;;  %v1711_v36 = vld [vmem:[%s1948_s11 + $0x48] sm:$0xff]   ;;  %v1714_v39 = vld [vmem:[%s1948_s11 + $0x50] sm:$0xff]   ;;  %p1428_p11 = scmp.ne.s32.totalorder %s1794_s17, 2 }
  0x3b   : > { %v1709_v34 = vld [vmem:[%s1948_s11] sm:$0xff]   ;;  %1553 = vmatprep.subr.bf16.mxu0 %v1708_v33  ;;  %v1712_v37 = vld [vmem:[%s1948_s11 + $0x8] sm:$0xff]   ;;  %v1715_v40 = vld [vmem:[%s1948_s11 + $0x10] sm:$0xff]  }
  0x3c   : > { %v1710_v35 = vld [vmem:[%s1948_s11 + $0x80] sm:$0xff]   ;;  %1554 = vmatpush3.bf16.msra.mxu0 %v1709_v34  ;;  %v1713_v38 = vld [vmem:[%s1948_s11 + $0x88] sm:$0xff]   ;;  %v1716_v41 = vld [vmem:[%s1948_s11 + $0x90] sm:$0xff]  }
  0x3d   : > { %1633 = vmatprep.subr.bf16.mxu1 %v1710_v35  ;;  %1555 = vmatprep.subr.bf16.mxu0 %v1711_v36  ;;  %v1717_v42 = vld [vmem:[%s1948_s11 + $0x58] sm:$0xff]   ;;  %v1720_v45 = vld [vmem:[%s1948_s11 + $0x60] sm:$0xff]   ;;  %v1723_v48 = vld [vmem:[%s1948_s11 + $0x68] sm:$0xff]  }
  0x3e   : > { %1634 = vmatpush3.bf16.msra.mxu1 %v1710_v35  ;;  %v1718_v43 = vld [vmem:[%s1948_s11 + $0x18] sm:$0xff]   ;;  %v1722_v46 = vld [vmem:[%s1948_s11 + $0xa0] sm:$0xff]   ;;  %v1725_v49 = vld [vmem:[%s1948_s11 + $0xa8] sm:$0xff]  }
  0x3f   : > { %1635 = vmatprep.subr.bf16.mxu1 %v1713_v38  ;;  %v1719_v44 = vld [vmem:[%s1948_s11 + $0x98] sm:$0xff]   ;;  %v1721_v47 = vld [vmem:[%s1948_s11 + $0x20] sm:$0xff]   ;;  %v1724_v50 = vld [vmem:[%s1948_s11 + $0x28] sm:$0xff]  }
  0x40   : > { %1556 = vmatpush3.bf16.msra.mxu0 %v1712_v37  ;;  %v1726_v51 = vld [vmem:[%s1948_s11 + $0x70] sm:$0xff]   ;;  %v1729_v54 = vld [vmem:[%s1948_s11 + $0x78] sm:$0xff]   ;;  %v1732_v59 = vld [vmem:[%s1950_s12] ss:$12 sps:$4 sm:$0xff]  }
  0x41   : > { %1557 = vmatprep.subr.bf16.mxu0 %v1714_v39  ;;  %v1727_v52 = vld [vmem:[%s1948_s11 + $0x30] sm:$0xff]   ;;  %v1731_v55 = vld [vmem:[%s1948_s11 + $0xb8] sm:$0xff]   ;;  %v1736_v61 = vld [vmem:[%s1950_s12 + $0x20] ss:$12 sps:$4 sm:$0xff]  }
  0x42   : > { %1636 = vmatpush3.bf16.msra.mxu1 %v1713_v38  ;;  %v1728_v53 = vld [vmem:[%s1948_s11 + $0xb0] sm:$0xff]   ;;  %v1730_v58 = vld [vmem:[%s1948_s11 + $0x38] sm:$0xff]   ;;  %v1752_v5 = vld [vmem:[%s1950_s12 + $0x80] ss:$12 sps:$4 sm:$0xff]  }
  0x43   : > { %1637 = vmatprep.subr.bf16.mxu1 %v1716_v41  ;;  %v1734_v56 = vld [vmem:[%s1950_s12 + $0x4] ss:$12 sps:$4 sm:$0xff]   ;;  %v1735_v57 = vld [vmem:[%s1950_s12 + $0x8] ss:$12 sps:$4 sm:$0xff]   ;;  %v1745_v4 = vld [vmem:[%s1950_s12 + $0x4c] ss:$12 sps:$4 sm:$0xff]  }
  0x44   : > { %1558 = vmatpush3.bf16.msra.mxu0 %v1715_v40  ;;  %825 = vmatprep.mubr.bf16.mxu0 %v1734_v56  ;;  %v1737_v60 = vld [vmem:[%s1950_s12 + $0x1c] ss:$12 sps:$4 sm:$0xff]   ;;  %v1743_v62 = vld [vmem:[%s1950_s12 + $0x38] ss:$12 sps:$4 sm:$0xff]   ;;  %v1740_v0 = vld [vmem:[%s1950_s12 + $0x34] ss:$12 sps:$4 sm:$0xff]  }
  0x45   : > { %1559 = vmatprep.subr.bf16.mxu0 %v1717_v42  ;;  %1649 = vmatprep.mubr.bf16.mxu1 %v1735_v57  ;;  %v1739_v63 = vld [vmem:[%s1950_s12 + $0x18] ss:$12 sps:$4 sm:$0xff]   ;;  %v1744_v1 = vld [vmem:[%s1950_s12 + $0x50] ss:$12 sps:$4 sm:$0xff]   ;;  %v1751_v2 = vld [vmem:[%s1950_s12 + $0x68] ss:$12 sps:$4 sm:$0xff]  }
  0x46   : > { %1638 = vmatpush3.bf16.msra.mxu1 %v1716_v41  ;;  %v1742_v3 = vld [vmem:[%s1950_s12 + $0x30] ss:$12 sps:$4 sm:$0xff]   ;;  %v1759_v6 = vld [vmem:[%s1950_s12 + $0x98] ss:$12 sps:$4 sm:$0xff]   ;;  %v1747_v7 = vld [vmem:[%s1950_s12 + $0x48] ss:$12 sps:$4 sm:$0xff]  }
  0x47   : > { %1639 = vmatprep.subr.bf16.mxu1 %v1719_v44  ;;  %v1748_v8 = vld [vmem:[%s1950_s12 + $0x64] ss:$12 sps:$4 sm:$0xff]   ;;  %v1750_v10 = vld [vmem:[%s1950_s12 + $0x60] ss:$12 sps:$4 sm:$0xff]   ;;  %v1753_v11 = vld [vmem:[%s1950_s12 + $0x7c] ss:$12 sps:$4 sm:$0xff]  }
  0x48   : > { %1560 = vmatpush3.bf16.msra.mxu0 %v1718_v43  ;;  %v1760_v9 = vld [vmem:[%s1950_s12 + $0xb0] ss:$12 sps:$4 sm:$0xff]   ;;  %v1755_v12 = vld [vmem:[%s1950_s12 + $0x78] ss:$12 sps:$4 sm:$0xff]   ;;  %v1756_v13 = vld [vmem:[%s1950_s12 + $0x94] ss:$12 sps:$4 sm:$0xff]  }
  0x49   : > { %1561 = vmatprep.subr.bf16.mxu0 %v1720_v45  ;;  %v1758_v14 = vld [vmem:[%s1950_s12 + $0x90] ss:$12 sps:$4 sm:$0xff]   ;;  %v1761_v15 = vld [vmem:[%s1950_s12 + $0xac] ss:$12 sps:$4 sm:$0xff]   ;;  %v1763_v16 = vld [vmem:[%s1950_s12 + $0xa8] ss:$12 sps:$4 sm:$0xff]  }
  0x4a   : > { %1640 = vmatpush3.bf16.msra.mxu1 %v1719_v44  ;;  %v425_v23 = vld [vmem:[#allocation2] sm:$0xff]  ;;  %v426_v28 = vld [vmem:[#allocation2 + $0x8] sm:$0xff]  ;;  %v427_v38 = vld [vmem:[#allocation2 + $0x10] sm:$0xff] }
  0x4b   : > { %1641 = vmatprep.subr.bf16.mxu1 %v1722_v46  ;;  %v428_v44 = vld [vmem:[#allocation2 + $0x18] sm:$0xff] }
  0x4c   : > { %1562 = vmatpush3.bf16.msra.mxu0 %v1721_v47 }
  0x4d   : > { %1563 = vmatprep.subr.bf16.mxu0 %v1723_v48 }
  0x4e   : > { %1642 = vmatpush3.bf16.msra.mxu1 %v1722_v46 }
  0x4f   : > { %1643 = vmatprep.subr.bf16.mxu1 %v1725_v49 }
  0x50   : > { %1564 = vmatpush3.bf16.msra.mxu0 %v1724_v50 }
  0x51   : > { %1565 = vmatprep.subr.bf16.mxu0 %v1726_v51 }
  0x52   : > { %1644 = vmatpush3.bf16.msra.mxu1 %v1725_v49 }
  0x53   : > { %1645 = vmatprep.subr.bf16.mxu1 %v1728_v53 }
  0x54   : > { %1566 = vmatpush3.bf16.msra.mxu0 %v1727_v52 }
  0x55   : > { %1567 = vmatprep.subr.bf16.mxu0 %v1729_v54 }
  0x56   : > { %1646 = vmatpush3.bf16.msra.mxu1 %v1728_v53 }
  0x57   : > { %1647 = vmatprep.subr.bf16.mxu1 %v1731_v55 }
  0x58   : > { %1568 = vmatpush3.bf16.msra.mxu0 %v1730_v58 }
  0x5a   : > { %1648 = vmatpush3.bf16.msra.mxu1 %v1731_v55  ;;  %v429_v55 = vld [vmem:[#allocation2 + $0x20] sm:$0xff] }
  0x5b   : > { %826 = vmatmul.mubr.bf16.vlgmr.msra.gmra.mrb[0].mxu0 %v1732_v59 }
  0x5c   : > { %833 = vmatprep.mubr.bf16.mxu0 %v1737_v60  ;;  %v430_v60 = vld [vmem:[#allocation2 + $0x28] sm:$0xff] }
  0x5d   : > { %1650 = vmatmul.mubr.bf16.vlgmr.msra.gmra.mrb[0].mxu1 %v1736_v61 }
  0x5e   : > { %1653 = vmatprep.mubr.bf16.mxu1 %v1743_v62 }
  0x63   : > { %834 = vmatmul.mubr.bf16.gmra.mrb[4].mxu0 %v1739_v63 }
  0x64   : > { %841 = vmatprep.mubr.bf16.mxu0 %v1740_v0 }
  0x65   : > { %1654 = vmatmul.mubr.bf16.gmra.mrb[4].mxu1 %v1744_v1 }
  0x66   : > { %1657 = vmatprep.mubr.bf16.mxu1 %v1751_v2 }
  0x6b   : > { %842 = vmatmul.mubr.bf16.gmra.mrb[8].mxu0 %v1742_v3 }
  0x6c   : > { %849 = vmatprep.mubr.bf16.mxu0 %v1745_v4 }
  0x6d   : > { %1658 = vmatmul.mubr.bf16.gmra.mrb[8].mxu1 %v1752_v5 }
  0x6e   : > { %1661 = vmatprep.mubr.bf16.mxu1 %v1759_v6  ;;  %v431_v6 = vld [vmem:[#allocation2 + $0x30] sm:$0xff] }
  0x73   : > { %850 = vmatmul.mubr.bf16.gmra.mrb[12].mxu0 %v1747_v7 }
  0x74   : > { %857 = vmatprep.mubr.bf16.mxu0 %v1748_v8 }
  0x75   : > { %1662 = vmatmul.mubr.bf16.gmra.mrb[12].mxu1 %v1760_v9 }
  0x7b   : > { %858 = vmatmul.mubr.bf16.gmra.mrb[16].mxu0 %v1750_v10 }
  0x7c   : > { %865 = vmatprep.mubr.bf16.mxu0 %v1753_v11 }
  0x83   : > { %866 = vmatmul.mubr.bf16.gmra.mrb[20].mxu0 %v1755_v12  ;;  %v432_v12 = vld [vmem:[#allocation2 + $0x38] sm:$0xff] }
  0x84   : > { %873 = vmatprep.mubr.bf16.mxu0 %v1756_v13 }
  0x8b   : > { %874 = vmatmul.mubr.bf16.gmra.mrb[24].mxu0 %v1758_v14 }
  0x8c   : > { %881 = vmatprep.mubr.bf16.mxu0 %v1761_v15 }
  0x93   : > { %882 = vmatmul.mubr.bf16.gmra.mrb[28].mxu0 %v1763_v16 }
 0x12e   : > { %v1569_v17 = vpop.f32.mrb[0].mxu0 }
 0x12f   : > { %v1570_v18 = vpop.f32.mrb[1].mxu0 }
 0x130   : > { %v1571_v19 = vadd.f32 %v1570_v18, %v1569_v17  ;;  %v1572_v20 = vpop.f32.mrb[2].mxu0  ;;  %v1651_v21 = vpop.f32.mrb[0].mxu1 }
 0x131   : > { %v1573_v22 = vpop.f32.mrb[3].mxu0  ;;  %v924_v24 = vpop.f32.mrb[1].mxu1 }
 0x132   : > { %v1574_v25 = vadd.f32 %v1573_v22, %v1572_v20  ;;  %v925_v26 = vadd.f32 %v1571_v19, %v924_v24  ;;  %v1652_v27 = vpop.f32.mrb[2].mxu1  ;;  %v433_v22 = vld [vmem:[#allocation2 + $0x40] sm:$0xff] }
 0x133   : > { %v927_v29 = vpop.f32.mrb[3].mxu1 }
 0x134   : > { %v987_v30 = vadd.f32 %v925_v26, %v425_v23  ;;  %v928_v31 = vadd.f32 %v1574_v25, %v927_v29  ;;  %v434_v25 = vld [vmem:[#allocation2 + $0x48] sm:$0xff] }
 0x136   : > { %1003 = vst [vmem:[#allocation2] sm:$0xff] %v987_v30  ;;  %v988_v32 = vadd.f32 %v928_v31, %v426_v28  ;;  %v1575_v33 = vpop.f32.mrb[4].mxu0 }
 0x137   : > { %v1576_v34 = vpop.f32.mrb[5].mxu0 }
 0x138   : > { %1004 = vst [vmem:[#allocation2 + $0x8] sm:$0xff] %v988_v32  ;;  %v1577_v35 = vadd.f32 %v1576_v34, %v1575_v33  ;;  %v1578_v36 = vpop.f32.mrb[6].mxu0  ;;  %v1655_v37 = vpop.f32.mrb[4].mxu1  ;;  %v435_v33 = vld [vmem:[#allocation2 + $0x50] sm:$0xff] }
 0x139   : > { %v1579_v39 = vpop.f32.mrb[7].mxu0  ;;  %v940_v40 = vpop.f32.mrb[5].mxu1 }
 0x13a   : > { %v933_v41 = vadd.f32 %v1651_v21, %v1577_v35  ;;  %v1580_v42 = vadd.f32 %v1579_v39, %v1578_v36  ;;  %v1656_v43 = vpop.f32.mrb[6].mxu1 }
 0x13b   : > { %v943_v45 = vpop.f32.mrb[7].mxu1 }
 0x13c   : > { %v989_v46 = vadd.f32 %v933_v41, %v427_v38  ;;  %v936_v47 = vadd.f32 %v1652_v27, %v1580_v42 }
 0x13e   : > { %1005 = vst [vmem:[#allocation2 + $0x10] sm:$0xff] %v989_v46  ;;  %v990_v48 = vadd.f32 %v936_v47, %v428_v44  ;;  %v1581_v49 = vpop.f32.mrb[8].mxu0  ;;  %v437_v46 = vld [vmem:[#allocation2 + $0x60] sm:$0xff] }
 0x13f   : > { %v1582_v50 = vpop.f32.mrb[9].mxu0 }
 0x140   : > { %1006 = vst [vmem:[#allocation2 + $0x18] sm:$0xff] %v990_v48  ;;  %v1583_v51 = vadd.f32 %v1582_v50, %v1581_v49  ;;  %v1584_v52 = vpop.f32.mrb[10].mxu0  ;;  %v1659_v53 = vpop.f32.mrb[8].mxu1  ;;  %v438_v49 = vld [vmem:[#allocation2 + $0x68] sm:$0xff] }
 0x141   : > { %v1585_v54 = vpop.f32.mrb[11].mxu0  ;;  %v956_v56 = vpop.f32.mrb[9].mxu1 }
 0x142   : > { %v1586_v57 = vadd.f32 %v1585_v54, %v1584_v52  ;;  %v941_v58 = vadd.f32 %v1583_v51, %v940_v40  ;;  %v1660_v59 = vpop.f32.mrb[10].mxu1 }
 0x143   : > { %v959_v61 = vpop.f32.mrb[11].mxu1 }
 0x144   : > { %v991_v62 = vadd.f32 %v941_v58, %v429_v55  ;;  %v944_v63 = vadd.f32 %v1586_v57, %v943_v45  ;;  %v439_v57 = vld [vmem:[#allocation2 + $0x70] sm:$0xff] }
 0x146   : > { %1007 = vst [vmem:[#allocation2 + $0x20] sm:$0xff] %v991_v62  ;;  %v992_v0 = vadd.f32 %v944_v63, %v430_v60  ;;  %v1587_v1 = vpop.f32.mrb[12].mxu0 }
 0x147   : > { %v1588_v2 = vpop.f32.mrb[13].mxu0 }
 0x148   : > { %1008 = vst [vmem:[#allocation2 + $0x28] sm:$0xff] %v992_v0  ;;  %v1589_v3 = vadd.f32 %v1588_v2, %v1587_v1  ;;  %v1590_v4 = vpop.f32.mrb[14].mxu0  ;;  %v1663_v5 = vpop.f32.mrb[12].mxu1  ;;  %v1023_v1 = vld [vmem:[#allocation2] sm:$0xff] (!%p1428_p11)  ;;  %v1024_v2 = vld [vmem:[#allocation2 + $0x8] sm:$0xff] (!%p1428_p11) }
 0x149   : > { %v1591_v7 = vpop.f32.mrb[15].mxu0  ;;  %v972_v8 = vpop.f32.mrb[13].mxu1 }
 0x14a   : > { %v949_v9 = vadd.f32 %v1655_v37, %v1589_v3  ;;  %v1592_v10 = vadd.f32 %v1591_v7, %v1590_v4  ;;  %v1664_v11 = vpop.f32.mrb[14].mxu1  ;;  %v436_v37 = vld [vmem:[#allocation2 + $0x58] sm:$0xff]  ;;  %v2005_v3 = vld [vmem:[%s2088_s2] ss:$0 sm:$0xff] (!%p1428_p11)  ;;  %v1025_v7 = vld [vmem:[#allocation2 + $0x10] sm:$0xff] (!%p1428_p11) }
 0x14b   : > { %v975_v13 = vpop.f32.mrb[15].mxu1  ;;  %v1046_v4 = vadd.f32 (!%p1428_p11), %v2005_v3, %v1023_v1 }
 0x14c   : > { %v993_v14 = vadd.f32 %v949_v9, %v431_v6  ;;  %v952_v15 = vadd.f32 %v1656_v43, %v1592_v10  ;;  %v1468_v6 = vld [vmem:[%s2089_s3] sm:$0xff] (!%p1428_p11)  }
 0x14d   : > { %v1469_v9 = vunpack.c.l.bf16 (!%p1428_p11), %v1468_v6  ;;  %v1470_v10 = vunpack.c.h.bf16 (!%p1428_p11), %v1468_v6 }
 0x14e   : > { %1009 = vst [vmem:[#allocation2 + $0x30] sm:$0xff] %v993_v14  ;;  %v994_v16 = vadd.f32 %v952_v15, %v432_v12  ;;  %v1593_v17 = vpop.f32.mrb[16].mxu0  ;;  %v1027_v14 = vld [vmem:[#allocation2 + $0x20] sm:$0xff] (!%p1428_p11) }
 0x14f   : > { %v1594_v18 = vpop.f32.mrb[17].mxu0  ;;  %v1028_v15 = vld [vmem:[#allocation2 + $0x28] sm:$0xff] (!%p1428_p11) }
 0x150   : > { %1010 = vst [vmem:[#allocation2 + $0x38] sm:$0xff] %v994_v16  ;;  %v1595_v19 = vadd.f32 %v1594_v18, %v1593_v17  ;;  %v1596_v20 = vpop.f32.mrb[18].mxu0  ;;  %v1050_v18 = vadd.f32 (!%p1428_p11), %v2005_v3, %v1027_v14 }
 0x151   : > { %v1597_v21 = vpop.f32.mrb[19].mxu0 }
 0x152   : > { %v1598_v23 = vadd.f32 %v1597_v21, %v1596_v20  ;;  %v957_v24 = vadd.f32 %v1595_v19, %v956_v56  ;;  %v1051_v19 = vadd.f32 (!%p1428_p11), %v2005_v3, %v1028_v15  ;;  %v1540_v20 = vld [vmem:[%s2089_s3 + $0x10] sm:$0xff] (!%p1428_p11)  }
 0x154   : > { %v995_v26 = vadd.f32 %v957_v24, %v433_v22  ;;  %v960_v27 = vadd.f32 %v1598_v23, %v959_v61  ;;  %v440_v61 = vld [vmem:[#allocation2 + $0x78] sm:$0xff]  ;;  %v1094_v23 = vadd.f32 (!%p1428_p11), %v1469_v9, %v1046_v4 }
 0x155   : > { %v1029_v21 = vld [vmem:[#allocation2 + $0x30] sm:$0xff] (!%p1428_p11) }
 0x156   : > { %1011 = vst [vmem:[#allocation2 + $0x40] sm:$0xff] %v995_v26  ;;  %v996_v28 = vadd.f32 %v960_v27, %v434_v25  ;;  %v1599_v29 = vpop.f32.mrb[20].mxu0  ;;  %v1477_v25 = vunpack.c.l.bf16 (!%p1428_p11), %v1540_v20  ;;  %v1478_v26 = vunpack.c.h.bf16 (!%p1428_p11), %v1540_v20  ;;  %v1541_v27 = vld [vmem:[%s2089_s3 + $0x18] sm:$0xff] (!%p1428_p11)  }
 0x157   : > { %v1600_v30 = vpop.f32.mrb[21].mxu0  ;;  %v1030_v22 = vld [vmem:[#allocation2 + $0x38] sm:$0xff] (!%p1428_p11) }
 0x158   : > { %1012 = vst [vmem:[#allocation2 + $0x48] sm:$0xff] %v996_v28  ;;  %v1601_v31 = vadd.f32 %v1600_v30, %v1599_v29  ;;  %v1602_v32 = vpop.f32.mrb[22].mxu0  ;;  %v1052_v30 = vadd.f32 (!%p1428_p11), %v2005_v3, %v1029_v21 }
 0x159   : > { %v1603_v34 = vpop.f32.mrb[23].mxu0 }
 0x15a   : > { %v965_v35 = vadd.f32 %v1659_v53, %v1601_v31  ;;  %v1604_v36 = vadd.f32 %v1603_v34, %v1602_v32  ;;  %v1053_v31 = vadd.f32 (!%p1428_p11), %v2005_v3, %v1030_v22 }
 0x15c   : > { %v997_v38 = vadd.f32 %v965_v35, %v435_v33  ;;  %v968_v39 = vadd.f32 %v1660_v59, %v1604_v36  ;;  %v1110_v33 = vmax.f32 (!%p1428_p11), %v1094_v23, 0.0  ;;  %v1098_v35 = vadd.f32 (!%p1428_p11), %v1477_v25, %v1050_v18 }
 0x15d   : > { %v1031_v32 = vld [vmem:[#allocation2 + $0x40] sm:$0xff] (!%p1428_p11)  ;;  %v1099_v36 = vadd.f32 (!%p1428_p11), %v1478_v26, %v1051_v19 }
 0x15e   : > { %1013 = vst [vmem:[#allocation2 + $0x50] sm:$0xff] %v997_v38  ;;  %v998_v40 = vadd.f32 %v968_v39, %v436_v37  ;;  %v1605_v41 = vpop.f32.mrb[24].mxu0 }
 0x15f   : > { %v1606_v42 = vpop.f32.mrb[25].mxu0  ;;  %v1032_v37 = vld [vmem:[#allocation2 + $0x48] sm:$0xff] (!%p1428_p11) }
 0x160   : > { %1014 = vst [vmem:[#allocation2 + $0x58] sm:$0xff] %v998_v40  ;;  %v1607_v43 = vadd.f32 %v1606_v42, %v1605_v41  ;;  %v1608_v44 = vpop.f32.mrb[26].mxu0  ;;  %v1481_v40 = vunpack.c.l.bf16 (!%p1428_p11), %v1541_v27  ;;  %v1482_v41 = vunpack.c.h.bf16 (!%p1428_p11), %v1541_v27  ;;  %v1542_v42 = vld [vmem:[%s2089_s3 + $0x20] sm:$0xff] (!%p1428_p11)  }
 0x161   : > { %v1609_v45 = vpop.f32.mrb[27].mxu0 }
 0x162   : > { %v1610_v47 = vadd.f32 %v1609_v45, %v1608_v44  ;;  %v973_v48 = vadd.f32 %v1607_v43, %v972_v8  ;;  %v1026_v8 = vld [vmem:[#allocation2 + $0x18] sm:$0xff] (!%p1428_p11)  ;;  %v1114_v45 = vmax.f32 (!%p1428_p11), %v1098_v35, 0.0 }
 0x163   : > { %v1049_v12 = vadd.f32 (!%p1428_p11), %v2005_v3, %v1026_v8 }
 0x164   : > { %v999_v50 = vadd.f32 %v973_v48, %v437_v46  ;;  %v976_v51 = vadd.f32 %v1610_v47, %v975_v13  ;;  %v1539_v13 = vld [vmem:[%s2089_s3 + $0x8] sm:$0xff] (!%p1428_p11)   ;;  %v1115_v46 = vmax.f32 (!%p1428_p11), %v1099_v36, 0.0  ;;  %v1054_v47 = vadd.f32 (!%p1428_p11), %v2005_v3, %v1031_v32 }
 0x165   : > { %v1473_v16 = vunpack.c.l.bf16 (!%p1428_p11), %v1539_v13  ;;  %v1474_v17 = vunpack.c.h.bf16 (!%p1428_p11), %v1539_v13  ;;  %v1033_v43 = vld [vmem:[#allocation2 + $0x50] sm:$0xff] (!%p1428_p11) }
 0x166   : > { %1015 = vst [vmem:[#allocation2 + $0x60] sm:$0xff] %v999_v50  ;;  %v1000_v52 = vadd.f32 %v976_v51, %v438_v49  ;;  %v1611_v53 = vpop.f32.mrb[28].mxu0  ;;  %v1543_v49 = vld [vmem:[%s2089_s3 + $0x28] sm:$0xff] (!%p1428_p11)   ;;  %v1100_v51 = vadd.f32 (!%p1428_p11), %v1481_v40, %v1052_v30 }
 0x167   : > { %v1612_v54 = vpop.f32.mrb[29].mxu0  ;;  %v1097_v29 = vadd.f32 (!%p1428_p11), %v1474_v17, %v1049_v12  ;;  %v1034_v48 = vld [vmem:[#allocation2 + $0x58] sm:$0xff] (!%p1428_p11)  ;;  %v1490_v4 = vunpack.c.h.bf16 (!%p1428_p11), %v1543_v49 }
 0x168   : > { %1016 = vst [vmem:[#allocation2 + $0x68] sm:$0xff] %v1000_v52  ;;  %v1613_v55 = vadd.f32 %v1612_v54, %v1611_v53  ;;  %v1614_v56 = vpop.f32.mrb[30].mxu0  ;;  %v1101_v52 = vadd.f32 (!%p1428_p11), %v1482_v41, %v1053_v31  ;;  %v1055_v53 = vadd.f32 (!%p1428_p11), %v2005_v3, %v1032_v37  ;;  %v1545_v12 = vld [vmem:[%s2089_s3 + $0x38] sm:$0xff] (!%p1428_p11)  }
 0x169   : > { %v1615_v58 = vpop.f32.mrb[31].mxu0  ;;  %v1113_v39 = vmax.f32 (!%p1428_p11), %v1097_v29, 0.0  ;;  %v1498_v26 = vunpack.c.h.bf16 (!%p1428_p11), %v1545_v12 }
 0x16a   : > { %v981_v59 = vadd.f32 %v1663_v5, %v1613_v55  ;;  %v1616_v60 = vadd.f32 %v1615_v58, %v1614_v56  ;;  %1022 = sbr.rel (%p1428_p11) target bundleno = 385 (0x181), region = 70  ;;  %v1047_v5 = vadd.f32 (!%p1428_p11), %v2005_v3, %v1024_v2  ;;  %v1512_v55 = vpack.c.bf16 (!%p1428_p11), %v1115_v46, %v1114_v45 }
 0x16b   : > { %v1485_v56 = vunpack.c.l.bf16 (!%p1428_p11), %v1542_v42  ;;  %v1056_v58 = vadd.f32 (!%p1428_p11), %v2005_v3, %v1033_v43 }
 0x16c   : > { %v1001_v62 = vadd.f32 %v981_v59, %v439_v57  ;;  %v984_v63 = vadd.f32 %v1664_v11, %v1616_v60  ;;  %v1048_v11 = vadd.f32 (!%p1428_p11), %v2005_v3, %v1025_v7  ;;  %v1095_v24 = vadd.f32 (!%p1428_p11), %v1470_v10, %v1047_v5  ;;  %v1544_v60 = vld [vmem:[%s2089_s3 + $0x30] sm:$0xff] (!%p1428_p11)   ;;  %1547 = vst [vmem:[%s2090_s4 + $0x10] sm:$0xff] (!%p1428_p11), %v1512_v55  }
 0x16d   : > { %v1035_v54 = vld [vmem:[#allocation2 + $0x60] sm:$0xff] (!%p1428_p11)  ;;  %v1486_v57 = vunpack.c.h.bf16 (!%p1428_p11), %v1542_v42  ;;  %v1102_v1 = vadd.f32 (!%p1428_p11), %v1485_v56, %v1054_v47 }
 0x16e   : > { %1017 = vst [vmem:[#allocation2 + $0x70] sm:$0xff] %v1001_v62  ;;  %v1002_v0 = vadd.f32 %v984_v63, %v440_v61  ;;  %v1096_v28 = vadd.f32 (!%p1428_p11), %v1473_v16, %v1048_v11  ;;  %v1111_v34 = vmax.f32 (!%p1428_p11), %v1095_v24, 0.0  ;;  %v1116_v61 = vmax.f32 (!%p1428_p11), %v1100_v51, 0.0 }
 0x16f   : > { %v1036_v59 = vld [vmem:[#allocation2 + $0x68] sm:$0xff] (!%p1428_p11)  ;;  %v1117_v62 = vmax.f32 (!%p1428_p11), %v1101_v52, 0.0  ;;  %v1057_v63 = vadd.f32 (!%p1428_p11), %v2005_v3, %v1034_v48  ;;  %v1103_v2 = vadd.f32 (!%p1428_p11), %v1486_v57, %v1055_v53  ;;  %v1058_v5 = vadd.f32 (!%p1428_p11), %v2005_v3, %v1035_v54 }
 0x170   : > { %1018 = vst [vmem:[#allocation2 + $0x78] sm:$0xff] %v1002_v0  ;;  %v1112_v38 = vmax.f32 (!%p1428_p11), %v1096_v28, 0.0  ;;  %v1502_v44 = vpack.c.bf16 (!%p1428_p11), %v1111_v34, %v1110_v33  ;;  %v1489_v0 = vunpack.c.l.bf16 (!%p1428_p11), %v1543_v49  ;;  %v1059_v10 = vadd.f32 (!%p1428_p11), %v2005_v3, %v1036_v59 }
 0x171   : > { %v1517_v8 = vpack.c.bf16 %v1117_v62, %v1116_v61  ;;  %v1493_v11 = vunpack.c.l.bf16 %v1544_v60  ;;  %v1118_v13 = vmax.f32 %v1102_v1, 0.0  ;;  %v1119_v14 = vmax.f32 %v1103_v2, 0.0 }
 0x172   : > { %v1507_v50 = vpack.c.bf16 %v1113_v39, %v1112_v38  ;;  %1503 = vst [vmem:[%s2090_s4] sm:$0xff] %v1502_v44   ;;  %v1104_v9 = vadd.f32 %v1489_v0, %v1056_v58  ;;  %v1105_v15 = vadd.f32 %v1490_v4, %v1057_v63  ;;  %v1494_v16 = vunpack.c.h.bf16 %v1544_v60 }
 0x173   : > { %1548 = vst [vmem:[%s2090_s4 + $0x18] sm:$0xff] %v1517_v8   ;;  %v1106_v18 = vadd.f32 %v1493_v11, %v1058_v5  ;;  %v1522_v21 = vpack.c.bf16 %v1119_v14, %v1118_v13  ;;  %v1497_v24 = vunpack.c.l.bf16 %v1545_v12 }
 0x174   : > { %1546 = vst [vmem:[%s2090_s4 + $0x8] sm:$0xff] %v1507_v50   ;;  %v1120_v17 = vmax.f32 %v1104_v9, 0.0  ;;  %v1121_v22 = vmax.f32 %v1105_v15, 0.0  ;;  %v1107_v23 = vadd.f32 %v1494_v16, %v1059_v10 }
 0x175   : > { %v1037_v6 = vld [vmem:[#allocation2 + $0x70] sm:$0xff]  ;;  %v1122_v25 = vmax.f32 %v1106_v18, 0.0  ;;  %1549 = vst [vmem:[%s2090_s4 + $0x20] sm:$0xff] %v1522_v21  }
 0x176   : > { %v1060_v19 = vadd.f32 %v2005_v3, %v1037_v6  ;;  %v1527_v27 = vpack.c.bf16 %v1121_v22, %v1120_v17  ;;  %v1123_v28 = vmax.f32 %v1107_v23, 0.0 }
 0x177   : > { %v1038_v7 = vld [vmem:[#allocation2 + $0x78] sm:$0xff] }
 0x178   : > { %v1061_v20 = vadd.f32 %v2005_v3, %v1038_v7  ;;  %v1108_v29 = vadd.f32 %v1497_v24, %v1060_v19  ;;  %1550 = vst [vmem:[%s2090_s4 + $0x28] sm:$0xff] %v1527_v27   ;;  %v1532_v31 = vpack.c.bf16 %v1123_v28, %v1122_v25 }
 0x17a   : > { %v1109_v30 = vadd.f32 %v1498_v26, %v1061_v20  ;;  %v1124_v3 = vmax.f32 %v1108_v29, 0.0  ;;  %1551 = vst [vmem:[%s2090_s4 + $0x30] sm:$0xff] %v1532_v31  }
 0x17c   : > { %v1125_v32 = vmax.f32 %v1109_v30, 0.0 }
 0x17e   : > { %v1537_v33 = vpack.c.bf16 %v1125_v32, %v1124_v3 }
 0x180   : > { %1552 = vst [vmem:[%s2090_s4 + $0x38] sm:$0xff] %v1537_v33  }
 0x181 PF: > { %s14_s19 = sadd.s32 1, %s1802_s19   ;;  %s2091_s15 = smov %s1790_s16 }
 0x182   : > { %p11_p12 = scmp.ge.s32.totalorder %s14_s19, 5   ;;  %s2092_s16 = smov %s1865_s23 }
 0x183   : > { %s2093_s17 = smov %s1798_s18  ;;  %s2094_s18 = smov %s2096_s20 }
 0x184   :  { %13 = sbr.rel (!%p11_p12) target bundleno = 3 (0x3), region = 120 }

// kernel: resnet18_forward.27
= control target key start
LH: loop header
LB: loop body
LE: loop exit
PB: predicated region body
PF: predicated region fallthrough
CT: control target
= control target key end

     0   :  { %s1071_s12 = smov 0   ;;  %s1073_s13 = smov 0   ;;  %s1181_s0 = inlined_call_operand.vmem [shape: bf16[32,1152], index: 0, kind: input, shape index: {}]   ;;  %s1182_s1 = inlined_call_operand.vmem [shape: bf16[1152,128], index: 1, kind: input, shape index: {}]   ;;  %s1183_s2 = inlined_call_operand.vmem [shape: f32[1,128], index: 2, kind: input, shape index: {}]   ;;  %s1184_s3 = inlined_call_operand.vmem [shape: bf16[32,128], index: 3, kind: output, shape index: {}]  }
   0x1   :  { %s1075_s14 = smov 0   ;;  %s1077_s15 = smov 0  }
   0x2   :  { %s1079_s16 = smov 0  }
   0x3 LB: > { %s25_s17 = sadd.s32 1, %s1044_s15  ;;  %p48_p1 = scmp.ne.s32.totalorder %s1036_s13, %s1032_s12  ;;  %s1048_s16 = sphi %s1079_s16, %s13_s16   ;;  %s1044_s15 = sphi %s1077_s15, %s1188_s15   ;;  %s1040_s14 = sphi %s1075_s14, %s1187_s14   ;;  %s1036_s13 = sphi %s1073_s13, %s1186_s13   ;;  %s1032_s12 = sphi %s1071_s12, %s1185_s12  }
   0x4   : > { %p26_p0 = scmp.ge.s32.totalorder %s25_s17, 3  ;;  %p49_p2 = scmp.eq.s32.totalorder %s1048_s16, 0 }
   0x5   : > { %s41_s19 = sadd.s32 1, %s1036_s13  ;;  %p808_p5 = scmp.ge.s32.totalorder %s1048_s16, 3 }
   0x6   : > { %s1190_s17 = smov (%p26_p0, %s25_s17), 0  ;;  %p50_p3 = por %p49_p2, %p48_p1 }
   0x7   : > { %s37_s18 = ssub.s32 %s1044_s15, %s1190_s17  ;;  %162 = sbr.rel (%p808_p5) target bundleno = 23 (0x17), region = 20 }
   0x8   : > { %p39_p4 = scmp.eq.s32.totalorder %s37_s18, 0 }
   0xa   : > { %s1106_s20 = scalar_select %p39_p4, %s1036_s13, %s41_s19  }
   0xe   : > { %165 = sbr.rel (!%p50_p3) target bundleno = 23 (0x17), region = 24  ;;  %s167_s21 = sand.u32 (%p50_p3), 1, %s1036_s13  }
   0xf   : > { %s861_s22 = smul.u32 (%p50_p3), 12, %s1044_s15 }
  0x10   : > { %s935_s23 = smul.u32 (%p50_p3), 48, %s167_s21 }
  0x11   : > { %s175_s26 = scalar_lea.vmem (%p50_p3), %s1181_s0, %s861_s22 }
  0x12   : > { %v190_v0 = vld [vmem:[%s175_s26] sm:$0xff] (%p50_p3)  ;;  %v194_v2 = vld [vmem:[%s175_s26 + $0x48] sm:$0xff] (%p50_p3)  ;;  %s169_s27 = scalar_lea.vmem (%p50_p3), [#allocation3], %s935_s23  ;;  %v814_v6 = vld [vmem:[%s175_s26 + $0x50] sm:$0xf] (%p50_p3) }
  0x13   : > { %v192_v1 = vld [vmem:[%s175_s26 + $0x24] sm:$0xff] (%p50_p3)  ;;  %191 = vst [vmem:[%s169_s27] sm:$0xff] (%p50_p3), %v190_v0  ;;  %195 = vst [vmem:[%s169_s27 + $0x18] sm:$0xff] (%p50_p3), %v194_v2  ;;  %v196_v3 = vld [vmem:[%s175_s26 + $0x6c] sm:$0xff] (%p50_p3) }
  0x14   : > { %193 = vst [vmem:[%s169_s27 + $0xc] sm:$0xff] (%p50_p3), %v192_v1  ;;  %v810_v4 = vld [vmem:[%s175_s26 + $0x8] sm:$0xf] (%p50_p3)  ;;  %v812_v5 = vld [vmem:[%s175_s26 + $0x2c] sm:$0xf] (%p50_p3)  ;;  %197 = vst [vmem:[%s169_s27 + $0x24] sm:$0xff] (%p50_p3), %v196_v3 }
  0x15   : > { %811 = vst [vmem:[%s169_s27 + $0x8] sm:$0xf] %v810_v4  ;;  %813 = vst [vmem:[%s169_s27 + $0x14] sm:$0xf] %v812_v5  ;;  %v816_v7 = vld [vmem:[%s175_s26 + $0x74] sm:$0xf] }
  0x16   : > { %815 = vst [vmem:[%s169_s27 + $0x20] sm:$0xf] %v814_v6  ;;  %817 = vst [vmem:[%s169_s27 + $0x2c] sm:$0xf] %v816_v7 }
  0x17 PF: > { %p818_p6 = scmp.ge.s32.totalorder %s1048_s16, 1  ;;  %p229_p7 = scmp.lt.s32.totalorder %s1048_s16, 4 }
  0x19   : > { %p230_p8 = pnand %p818_p6, %p229_p7 }
  0x1a   : > { %s236_s28 = sand.u32 (!%p230_p8), 1, %s1032_s12   ;;  %s275_s29 = smul.u32 (!%p230_p8), 48, %s1040_s14 }
  0x1b   : > { %233 = sbr.rel (%p230_p8) target bundleno = 318 (0x13e), region = 54  ;;  %p820_p10 = scmp.ne.s32.totalorder (!%p230_p8), %s1040_s14, 0 }
  0x1c   : > { %s936_s30 = smul.u32 (!%p230_p8), 48, %s236_s28  ;;  %p276_p9 = scmp.lt.s32.totalorder (!%p230_p8), %s275_s29, 143 }
  0x1e   : > { %s1123_s8 = scalar_lea.vmem (!%p230_p8), [#allocation3], %s936_s30 }
  0x22   : > { %s1192_s29 = smov (!%p276_p9, %s275_s29), 143  ;;  %300 = sbr.rel (%p820_p10) target bundleno = 41 (0x29), region = 62 }
  0x23   : > { %s819_s4 = sshll.u32 %s1192_s29, 2  ;;  %v1050_v8 = vmov (!%p820_p10), 0.0  }
  0x24   : > { %s1121_s7 = scalar_lea.vmem %s1182_s1, %s819_s4  ;;  %301 = vst [vmem:[#allocation2] sm:$0xff] (!%p820_p10), %v1050_v8  ;;  %302 = vst [vmem:[#allocation2 + $0x8] sm:$0xff] (!%p820_p10), %v1050_v8 }
  0x25   : > { %303 = vst [vmem:[#allocation2 + $0x10] sm:$0xff] (!%p820_p10), %v1050_v8  ;;  %304 = vst [vmem:[#allocation2 + $0x18] sm:$0xff] (!%p820_p10), %v1050_v8 }
  0x29 PF: > { %v978_v9 = vld [vmem:[%s1121_s7 + $0x40] sm:$0xff]   ;;  %v981_v12 = vld [vmem:[%s1121_s7 + $0x48] sm:$0xff]   ;;  %v984_v15 = vld [vmem:[%s1121_s7 + $0x50] sm:$0xff]   ;;  %p851_p11 = scmp.ne.s32.totalorder %s1040_s14, 2 }
  0x2a   : > { %v979_v10 = vld [vmem:[%s1121_s7] sm:$0xff]   ;;  %877 = vmatprep.subr.bf16.mxu0 %v978_v9  ;;  %v982_v13 = vld [vmem:[%s1121_s7 + $0x8] sm:$0xff]   ;;  %v985_v16 = vld [vmem:[%s1121_s7 + $0x10] sm:$0xff]  }
  0x2b   : > { %v980_v11 = vld [vmem:[%s1121_s7 + $0x80] sm:$0xff]   ;;  %878 = vmatpush3.bf16.msra.mxu0 %v979_v10  ;;  %v983_v14 = vld [vmem:[%s1121_s7 + $0x88] sm:$0xff]   ;;  %v986_v17 = vld [vmem:[%s1121_s7 + $0x90] sm:$0xff]  }
  0x2c   : > { %915 = vmatprep.subr.bf16.mxu1 %v980_v11  ;;  %879 = vmatprep.subr.bf16.mxu0 %v981_v12  ;;  %v987_v18 = vld [vmem:[%s1121_s7 + $0x58] sm:$0xff]   ;;  %v990_v21 = vld [vmem:[%s1121_s7 + $0x60] sm:$0xff]   ;;  %v993_v24 = vld [vmem:[%s1121_s7 + $0x68] sm:$0xff]  }
  0x2d   : > { %916 = vmatpush3.bf16.msra.mxu1 %v980_v11  ;;  %v988_v19 = vld [vmem:[%s1121_s7 + $0x18] sm:$0xff]   ;;  %v992_v22 = vld [vmem:[%s1121_s7 + $0xa0] sm:$0xff]   ;;  %v995_v25 = vld [vmem:[%s1121_s7 + $0xa8] sm:$0xff]  }
  0x2e   : > { %917 = vmatprep.subr.bf16.mxu1 %v983_v14  ;;  %v989_v20 = vld [vmem:[%s1121_s7 + $0x98] sm:$0xff]   ;;  %v991_v23 = vld [vmem:[%s1121_s7 + $0x20] sm:$0xff]   ;;  %v994_v26 = vld [vmem:[%s1121_s7 + $0x28] sm:$0xff]  }
  0x2f   : > { %880 = vmatpush3.bf16.msra.mxu0 %v982_v13  ;;  %v996_v27 = vld [vmem:[%s1121_s7 + $0x70] sm:$0xff]   ;;  %v999_v30 = vld [vmem:[%s1121_s7 + $0x78] sm:$0xff]   ;;  %v305_v45 = vld [vmem:[#allocation2] sm:$0xff] }
  0x30   : > { %881 = vmatprep.subr.bf16.mxu0 %v984_v15  ;;  %v997_v28 = vld [vmem:[%s1121_s7 + $0x30] sm:$0xff]   ;;  %v1001_v31 = vld [vmem:[%s1121_s7 + $0xb8] sm:$0xff]   ;;  %v306_v50 = vld [vmem:[#allocation2 + $0x8] sm:$0xff] }
  0x31   : > { %918 = vmatpush3.bf16.msra.mxu1 %v983_v14  ;;  %v998_v29 = vld [vmem:[%s1121_s7 + $0xb0] sm:$0xff]   ;;  %v1000_v34 = vld [vmem:[%s1121_s7 + $0x38] sm:$0xff]   ;;  %v852_v5 = vld [vmem:[%s1183_s2] ss:$0 sm:$0xff] (!%p851_p11) }
  0x32   : > { %919 = vmatprep.subr.bf16.mxu1 %v986_v17  ;;  %v1004_v32 = vld [vmem:[%s1123_s8 + $0x4] ss:$12 sps:$4 sm:$0xff]   ;;  %v1005_v33 = vld [vmem:[%s1123_s8 + $0x8] ss:$12 sps:$4 sm:$0xff]   ;;  %v1002_v35 = vld [vmem:[%s1123_s8] ss:$12 sps:$4 sm:$0xff]  }
  0x33   : > { %882 = vmatpush3.bf16.msra.mxu0 %v985_v16  ;;  %573 = vmatprep.mubr.bf16.mxu0 %v1004_v32  ;;  %v1007_v36 = vld [vmem:[%s1123_s8 + $0x1c] ss:$12 sps:$4 sm:$0xff]   ;;  %v1006_v37 = vld [vmem:[%s1123_s8 + $0x20] ss:$12 sps:$4 sm:$0xff]   ;;  %v1009_v38 = vld [vmem:[%s1123_s8 + $0x18] ss:$12 sps:$4 sm:$0xff]  }
  0x34   : > { %883 = vmatprep.subr.bf16.mxu0 %v987_v18  ;;  %931 = vmatprep.mubr.bf16.mxu1 %v1005_v33  ;;  %v307_v59 = vld [vmem:[#allocation2 + $0x10] sm:$0xff]  ;;  %v308_v63 = vld [vmem:[#allocation2 + $0x18] sm:$0xff] }
  0x35   : > { %920 = vmatpush3.bf16.msra.mxu1 %v986_v17 }
  0x36   : > { %921 = vmatprep.subr.bf16.mxu1 %v989_v20 }
  0x37   : > { %884 = vmatpush3.bf16.msra.mxu0 %v988_v19 }
  0x38   : > { %885 = vmatprep.subr.bf16.mxu0 %v990_v21 }
  0x39   : > { %922 = vmatpush3.bf16.msra.mxu1 %v989_v20 }
  0x3a   : > { %923 = vmatprep.subr.bf16.mxu1 %v992_v22 }
  0x3b   : > { %886 = vmatpush3.bf16.msra.mxu0 %v991_v23 }
  0x3c   : > { %887 = vmatprep.subr.bf16.mxu0 %v993_v24 }
  0x3d   : > { %924 = vmatpush3.bf16.msra.mxu1 %v992_v22 }
  0x3e   : > { %925 = vmatprep.subr.bf16.mxu1 %v995_v25 }
  0x3f   : > { %888 = vmatpush3.bf16.msra.mxu0 %v994_v26 }
  0x40   : > { %889 = vmatprep.subr.bf16.mxu0 %v996_v27 }
  0x41   : > { %926 = vmatpush3.bf16.msra.mxu1 %v995_v25 }
  0x42   : > { %927 = vmatprep.subr.bf16.mxu1 %v998_v29 }
  0x43   : > { %890 = vmatpush3.bf16.msra.mxu0 %v997_v28 }
  0x44   : > { %891 = vmatprep.subr.bf16.mxu0 %v999_v30 }
  0x45   : > { %928 = vmatpush3.bf16.msra.mxu1 %v998_v29 }
  0x46   : > { %929 = vmatprep.subr.bf16.mxu1 %v1001_v31 }
  0x47   : > { %892 = vmatpush3.bf16.msra.mxu0 %v1000_v34 }
  0x49   : > { %930 = vmatpush3.bf16.msra.mxu1 %v1001_v31 }
  0x4a   : > { %574 = vmatmul.mubr.bf16.vlgmr.msra.gmra.mrb[0].mxu0 %v1002_v35 }
  0x4b   : > { %581 = vmatprep.mubr.bf16.mxu0 %v1007_v36 }
  0x4c   : > { %932 = vmatmul.mubr.bf16.vlgmr.msra.gmra.mrb[0].mxu1 %v1006_v37 }
  0x52   : > { %582 = vmatmul.mubr.bf16.gmra.mrb[4].mxu0 %v1009_v38 }
 0x11d   : > { %v893_v39 = vpop.f32.mrb[0].mxu0 }
 0x11e   : > { %v894_v40 = vpop.f32.mrb[1].mxu0 }
 0x11f   : > { %v895_v41 = vadd.f32 %v894_v40, %v893_v39  ;;  %v896_v42 = vpop.f32.mrb[2].mxu0  ;;  %v933_v43 = vpop.f32.mrb[0].mxu1 }
 0x120   : > { %v897_v44 = vpop.f32.mrb[3].mxu0  ;;  %v624_v46 = vpop.f32.mrb[1].mxu1 }
 0x121   : > { %v898_v47 = vadd.f32 %v897_v44, %v896_v42  ;;  %v625_v48 = vadd.f32 %v895_v41, %v624_v46  ;;  %v934_v49 = vpop.f32.mrb[2].mxu1 }
 0x122   : > { %v627_v51 = vpop.f32.mrb[3].mxu1 }
 0x123   : > { %v639_v52 = vadd.f32 %v625_v48, %v305_v45  ;;  %v628_v53 = vadd.f32 %v898_v47, %v627_v51 }
 0x125   : > { %643 = vst [vmem:[#allocation2] sm:$0xff] %v639_v52  ;;  %v640_v54 = vadd.f32 %v628_v53, %v306_v50  ;;  %v899_v55 = vpop.f32.mrb[4].mxu0 }
 0x126   : > { %v900_v56 = vpop.f32.mrb[5].mxu0 }
 0x127   : > { %644 = vst [vmem:[#allocation2 + $0x8] sm:$0xff] %v640_v54  ;;  %v901_v57 = vadd.f32 %v900_v56, %v899_v55  ;;  %v902_v58 = vpop.f32.mrb[6].mxu0 }
 0x128   : > { %v903_v60 = vpop.f32.mrb[7].mxu0 }
 0x129   : > { %v633_v61 = vadd.f32 %v933_v43, %v901_v57  ;;  %v904_v62 = vadd.f32 %v903_v60, %v902_v58  ;;  %650 = sbr.rel (%p851_p11) target bundleno = 318 (0x13e), region = 66 }
 0x12b   : > { %v641_v0 = vadd.f32 %v633_v61, %v307_v59  ;;  %v636_v1 = vadd.f32 %v934_v49, %v904_v62 }
 0x12c   : > { %v651_v3 = vld [vmem:[#allocation2] sm:$0xff] (!%p851_p11) }
 0x12d   : > { %645 = vst [vmem:[#allocation2 + $0x10] sm:$0xff] %v641_v0  ;;  %v642_v2 = vadd.f32 %v636_v1, %v308_v63  ;;  %v662_v6 = vadd.f32 (!%p851_p11), %v852_v5, %v651_v3 }
 0x12e   : > { %v652_v4 = vld [vmem:[#allocation2 + $0x8] sm:$0xff] (!%p851_p11) }
 0x12f   : > { %646 = vst [vmem:[#allocation2 + $0x18] sm:$0xff] %v642_v2  ;;  %v663_v7 = vadd.f32 (!%p851_p11), %v852_v5, %v652_v4  ;;  %v666_v12 = vmax.f32 (!%p851_p11), %v662_v6, 0.0 }
 0x131   : > { %v667_v13 = vmax.f32 %v663_v7, 0.0 }
 0x133   : > { %v869_v16 = vpack.c.bf16 %v667_v13, %v666_v12 }
 0x134   : > { %v653_v8 = vld [vmem:[#allocation2 + $0x10] sm:$0xff] }
 0x135   : > { %v664_v10 = vadd.f32 %v852_v5, %v653_v8  ;;  %870 = vst [vmem:[%s1184_s3] sm:$0xff] %v869_v16  }
 0x136   : > { %v654_v9 = vld [vmem:[#allocation2 + $0x18] sm:$0xff] }
 0x137   : > { %v665_v11 = vadd.f32 %v852_v5, %v654_v9  ;;  %v668_v14 = vmax.f32 %v664_v10, 0.0 }
 0x139   : > { %v669_v15 = vmax.f32 %v665_v11, 0.0 }
 0x13b   : > { %v874_v17 = vpack.c.bf16 %v669_v15, %v668_v14 }
 0x13d   : > { %876 = vst [vmem:[%s1184_s3 + $0x8] sm:$0xff] %v874_v17  }
 0x13e PF: > { %s13_s16 = sadd.s32 1, %s1048_s16   ;;  %s1185_s12 = smov %s1036_s13 }
 0x13f   : > { %p10_p12 = scmp.ge.s32.totalorder %s13_s16, 5   ;;  %s1186_s13 = smov %s1106_s20 }
 0x140   : > { %s1187_s14 = smov %s1044_s15  ;;  %s1188_s15 = smov %s1190_s17 }
 0x141   :  { %12 = sbr.rel (!%p10_p12) target bundleno = 3 (0x3), region = 113 }

// kernel: resnet18_forward.28
= control target key start
LH: loop header
LB: loop body
LE: loop exit
PB: predicated region body
PF: predicated region fallthrough
CT: control target
= control target key end

     0   :  { %s335_s1 = inlined_call_operand.vmem [shape: bf16[128,128], index: 1, kind: input, shape index: {}]   ;;  %s336_s0 = inlined_call_operand.vmem [shape: bf16[32,128], index: 0, kind: input, shape index: {}]   ;;  %s337_s2 = inlined_call_operand.vmem [shape: f32[1,128], index: 2, kind: input, shape index: {}]   ;;  %s338_s3 = inlined_call_operand.vmem [shape: bf16[32,128], index: 3, kind: output, shape index: {}]  }
   0x1   :  { %v266_v0 = vld [vmem:[%s335_s1] sm:$0xff]   ;;  %v267_v1 = vld [vmem:[%s335_s1 + $0x8] sm:$0xff]   ;;  %v268_v2 = vld [vmem:[%s335_s1 + $0x10] sm:$0xff]  }
   0x2   :  { %246 = vmatprep.subr.bf16.mxu0 %v266_v0  ;;  %v269_v3 = vld [vmem:[%s335_s1 + $0x18] sm:$0xff]   ;;  %v274_v4 = vld [vmem:[%s336_s0] sm:$0xff]   ;;  %v271_v6 = vld [vmem:[%s335_s1 + $0x28] sm:$0xff]  }
   0x3   :  { %247 = vmatpush3.bf16.msra.mxu0 %v266_v0  ;;  %262 = vmatprep.mubr.bf16.mxu0 %v274_v4  ;;  %v270_v5 = vld [vmem:[%s335_s1 + $0x20] sm:$0xff]   ;;  %v272_v7 = vld [vmem:[%s335_s1 + $0x30] sm:$0xff]   ;;  %v273_v8 = vld [vmem:[%s335_s1 + $0x38] sm:$0xff]  }
   0x4   :  { %248 = vmatprep.subr.bf16.mxu0 %v267_v1  ;;  %v275_v9 = vld [vmem:[%s336_s0 + $0x8] sm:$0xff]   ;;  %v216_v11 = vld [vmem:[%s337_s2] ss:$0 sm:$0xff] }
   0x7   :  { %249 = vmatpush3.bf16.msra.mxu0 %v267_v1 }
   0x8   :  { %250 = vmatprep.subr.bf16.mxu0 %v268_v2 }
   0xb   :  { %251 = vmatpush3.bf16.msra.mxu0 %v268_v2 }
   0xc   :  { %252 = vmatprep.subr.bf16.mxu0 %v269_v3 }
   0xf   :  { %253 = vmatpush3.bf16.msra.mxu0 %v269_v3 }
  0x10   :  { %254 = vmatprep.subr.bf16.mxu0 %v270_v5 }
  0x13   :  { %255 = vmatpush3.bf16.msra.mxu0 %v270_v5 }
  0x14   :  { %256 = vmatprep.subr.bf16.mxu0 %v271_v6 }
  0x17   :  { %257 = vmatpush3.bf16.msra.mxu0 %v271_v6 }
  0x18   :  { %258 = vmatprep.subr.bf16.mxu0 %v272_v7 }
  0x1b   :  { %259 = vmatpush3.bf16.msra.mxu0 %v272_v7 }
  0x1c   :  { %260 = vmatprep.subr.bf16.mxu0 %v273_v8 }
  0x1f   :  { %261 = vmatpush3.bf16.msra.mxu0 %v273_v8 }
  0x22   :  { %263 = vmatmul.mubr.bf16.vlgmr.msra.gmra.mrb[0].mxu0 %v275_v9 }
  0xf5   :  { %v264_v10 = vpop.f32.mrb[0].mxu0 }
  0xf6   :  { %v141_v12 = vpop.f32.mrb[1].mxu0  ;;  %v180_v14 = vadd.f32 %v264_v10, %v216_v11 }
  0xf7   :  { %v265_v13 = vpop.f32.mrb[2].mxu0  ;;  %v178_v17 = vadd.f32 %v216_v11, %v141_v12 }
  0xf8   :  { %v181_v15 = vadd.f32 %v265_v13, %v216_v11  ;;  %v144_v16 = vpop.f32.mrb[3].mxu0 }
  0xf9   :  { %v179_v18 = vadd.f32 %v216_v11, %v144_v16 }
  0xfa   :  { %v233_v19 = vpack.c.bf16 %v181_v15, %v180_v14 }
  0xfb   :  { %v228_v20 = vpack.c.bf16 %v179_v18, %v178_v17 }
  0xfc   :  { %235 = vst [vmem:[%s338_s3 + $0x8] sm:$0xff] %v233_v19  }
  0xfd   :  { %229 = vst [vmem:[%s338_s3] sm:$0xff] %v228_v20  }

// kernel: resnet18_forward.29
= control target key start
LH: loop header
LB: loop body
LE: loop exit
PB: predicated region body
PF: predicated region fallthrough
CT: control target
= control target key end

     0   :  { %s1176_s15 = smov 0   ;;  %s1178_s16 = smov 0   ;;  %s1292_s0 = inlined_call_operand.vmem [shape: bf16[32,1152], index: 0, kind: input, shape index: {}]   ;;  %s1293_s1 = inlined_call_operand.vmem [shape: bf16[1152,128], index: 1, kind: input, shape index: {}]   ;;  %s1294_s2 = inlined_call_operand.vmem [shape: f32[1,128], index: 2, kind: input, shape index: {}]   ;;  %s1295_s3 = inlined_call_operand.vmem [shape: bf16[32,128], index: 3, kind: input, shape index: {}]   ;;  %s1296_s4 = inlined_call_operand.vmem [shape: bf16[32,128], index: 4, kind: output, shape index: {}]  }
   0x1   :  { %s1180_s17 = smov 0   ;;  %s1182_s18 = smov 0  }
   0x2   :  { %s1184_s19 = smov 0  }
   0x3 LB: > { %s26_s20 = sadd.s32 1, %s1144_s18  ;;  %p49_p1 = scmp.ne.s32.totalorder %s1136_s16, %s1132_s15  ;;  %s1148_s19 = sphi %s1184_s19, %s14_s19   ;;  %s1144_s18 = sphi %s1182_s18, %s1300_s18   ;;  %s1140_s17 = sphi %s1180_s17, %s1299_s17   ;;  %s1136_s16 = sphi %s1178_s16, %s1298_s16   ;;  %s1132_s15 = sphi %s1176_s15, %s1297_s15  }
   0x4   : > { %p27_p0 = scmp.ge.s32.totalorder %s26_s20, 3  ;;  %p50_p2 = scmp.eq.s32.totalorder %s1148_s19, 0 }
   0x5   : > { %s42_s22 = sadd.s32 1, %s1136_s16  ;;  %p899_p5 = scmp.ge.s32.totalorder %s1148_s19, 3 }
   0x6   : > { %s1302_s20 = smov (%p27_p0, %s26_s20), 0  ;;  %p51_p3 = por %p50_p2, %p49_p1 }
   0x7   : > { %s38_s21 = ssub.s32 %s1144_s18, %s1302_s20  ;;  %203 = sbr.rel (%p899_p5) target bundleno = 23 (0x17), region = 24 }
   0x8   : > { %p40_p4 = scmp.eq.s32.totalorder %s38_s21, 0 }
   0xa   : > { %s1211_s23 = scalar_select %p40_p4, %s1136_s16, %s42_s22  }
   0xe   : > { %206 = sbr.rel (!%p51_p3) target bundleno = 23 (0x17), region = 28  ;;  %s208_s24 = sand.u32 (%p51_p3), 1, %s1136_s16  }
   0xf   : > { %s952_s25 = smul.u32 (%p51_p3), 12, %s1144_s18 }
  0x10   : > { %s1035_s26 = smul.u32 (%p51_p3), 48, %s208_s24 }
  0x11   : > { %s216_s29 = scalar_lea.vmem (%p51_p3), %s1292_s0, %s952_s25 }
  0x12   : > { %v231_v0 = vld [vmem:[%s216_s29] sm:$0xff] (%p51_p3)  ;;  %v235_v2 = vld [vmem:[%s216_s29 + $0x48] sm:$0xff] (%p51_p3)  ;;  %s210_s30 = scalar_lea.vmem (%p51_p3), [#allocation3], %s1035_s26  ;;  %v905_v6 = vld [vmem:[%s216_s29 + $0x50] sm:$0xf] (%p51_p3) }
  0x13   : > { %v233_v1 = vld [vmem:[%s216_s29 + $0x24] sm:$0xff] (%p51_p3)  ;;  %232 = vst [vmem:[%s210_s30] sm:$0xff] (%p51_p3), %v231_v0  ;;  %236 = vst [vmem:[%s210_s30 + $0x18] sm:$0xff] (%p51_p3), %v235_v2  ;;  %v237_v3 = vld [vmem:[%s216_s29 + $0x6c] sm:$0xff] (%p51_p3) }
  0x14   : > { %234 = vst [vmem:[%s210_s30 + $0xc] sm:$0xff] (%p51_p3), %v233_v1  ;;  %v901_v4 = vld [vmem:[%s216_s29 + $0x8] sm:$0xf] (%p51_p3)  ;;  %v903_v5 = vld [vmem:[%s216_s29 + $0x2c] sm:$0xf] (%p51_p3)  ;;  %238 = vst [vmem:[%s210_s30 + $0x24] sm:$0xff] (%p51_p3), %v237_v3 }
  0x15   : > { %902 = vst [vmem:[%s210_s30 + $0x8] sm:$0xf] %v901_v4  ;;  %904 = vst [vmem:[%s210_s30 + $0x14] sm:$0xf] %v903_v5  ;;  %v907_v7 = vld [vmem:[%s216_s29 + $0x74] sm:$0xf] }
  0x16   : > { %906 = vst [vmem:[%s210_s30 + $0x20] sm:$0xf] %v905_v6  ;;  %908 = vst [vmem:[%s210_s30 + $0x2c] sm:$0xf] %v907_v7 }
  0x17 PF: > { %p909_p6 = scmp.ge.s32.totalorder %s1148_s19, 1  ;;  %p270_p7 = scmp.lt.s32.totalorder %s1148_s19, 4 }
  0x19   : > { %p271_p8 = pnand %p909_p6, %p270_p7 }
  0x1a   : > { %s277_s5 = sand.u32 (!%p271_p8), 1, %s1132_s15   ;;  %s326_s6 = smul.u32 (!%p271_p8), 48, %s1140_s17 }
  0x1b   : > { %274 = sbr.rel (%p271_p8) target bundleno = 320 (0x140), region = 58  ;;  %p911_p10 = scmp.ne.s32.totalorder (!%p271_p8), %s1140_s17, 0 }
  0x1c   : > { %s1036_s7 = smul.u32 (!%p271_p8), 48, %s277_s5  ;;  %p327_p9 = scmp.lt.s32.totalorder (!%p271_p8), %s326_s6, 143 }
  0x1e   : > { %s1228_s12 = scalar_lea.vmem (!%p271_p8), [#allocation3], %s1036_s7 }
  0x22   : > { %s1304_s6 = smov (!%p327_p9, %s326_s6), 143  ;;  %360 = sbr.rel (%p911_p10) target bundleno = 41 (0x29), region = 66 }
  0x23   : > { %s910_s8 = sshll.u32 %s1304_s6, 2  ;;  %v1150_v8 = vmov (!%p911_p10), 0.0  }
  0x24   : > { %s1226_s11 = scalar_lea.vmem %s1293_s1, %s910_s8  ;;  %361 = vst [vmem:[#allocation2] sm:$0xff] (!%p911_p10), %v1150_v8  ;;  %362 = vst [vmem:[#allocation2 + $0x8] sm:$0xff] (!%p911_p10), %v1150_v8 }
  0x25   : > { %363 = vst [vmem:[#allocation2 + $0x10] sm:$0xff] (!%p911_p10), %v1150_v8  ;;  %364 = vst [vmem:[#allocation2 + $0x18] sm:$0xff] (!%p911_p10), %v1150_v8 }
  0x29 PF: > { %v1078_v9 = vld [vmem:[%s1226_s11 + $0x40] sm:$0xff]   ;;  %v1081_v12 = vld [vmem:[%s1226_s11 + $0x48] sm:$0xff]   ;;  %v1084_v15 = vld [vmem:[%s1226_s11 + $0x50] sm:$0xff]   ;;  %p942_p11 = scmp.ne.s32.totalorder %s1140_s17, 2 }
  0x2a   : > { %v1079_v10 = vld [vmem:[%s1226_s11] sm:$0xff]   ;;  %977 = vmatprep.subr.bf16.mxu0 %v1078_v9  ;;  %v1082_v13 = vld [vmem:[%s1226_s11 + $0x8] sm:$0xff]   ;;  %v1085_v16 = vld [vmem:[%s1226_s11 + $0x10] sm:$0xff]  }
  0x2b   : > { %v1080_v11 = vld [vmem:[%s1226_s11 + $0x80] sm:$0xff]   ;;  %978 = vmatpush3.bf16.msra.mxu0 %v1079_v10  ;;  %v1083_v14 = vld [vmem:[%s1226_s11 + $0x88] sm:$0xff]   ;;  %v1086_v17 = vld [vmem:[%s1226_s11 + $0x90] sm:$0xff]  }
  0x2c   : > { %1015 = vmatprep.subr.bf16.mxu1 %v1080_v11  ;;  %979 = vmatprep.subr.bf16.mxu0 %v1081_v12  ;;  %v1087_v18 = vld [vmem:[%s1226_s11 + $0x58] sm:$0xff]   ;;  %v1090_v21 = vld [vmem:[%s1226_s11 + $0x60] sm:$0xff]   ;;  %v1093_v24 = vld [vmem:[%s1226_s11 + $0x68] sm:$0xff]  }
  0x2d   : > { %1016 = vmatpush3.bf16.msra.mxu1 %v1080_v11  ;;  %v1088_v19 = vld [vmem:[%s1226_s11 + $0x18] sm:$0xff]   ;;  %v1092_v22 = vld [vmem:[%s1226_s11 + $0xa0] sm:$0xff]   ;;  %v1095_v25 = vld [vmem:[%s1226_s11 + $0xa8] sm:$0xff]  }
  0x2e   : > { %1017 = vmatprep.subr.bf16.mxu1 %v1083_v14  ;;  %v1089_v20 = vld [vmem:[%s1226_s11 + $0x98] sm:$0xff]   ;;  %v1091_v23 = vld [vmem:[%s1226_s11 + $0x20] sm:$0xff]   ;;  %v1094_v26 = vld [vmem:[%s1226_s11 + $0x28] sm:$0xff]  }
  0x2f   : > { %980 = vmatpush3.bf16.msra.mxu0 %v1082_v13  ;;  %v1096_v27 = vld [vmem:[%s1226_s11 + $0x70] sm:$0xff]   ;;  %v1099_v30 = vld [vmem:[%s1226_s11 + $0x78] sm:$0xff]   ;;  %v365_v45 = vld [vmem:[#allocation2] sm:$0xff] }
  0x30   : > { %981 = vmatprep.subr.bf16.mxu0 %v1084_v15  ;;  %v1097_v28 = vld [vmem:[%s1226_s11 + $0x30] sm:$0xff]   ;;  %v1101_v31 = vld [vmem:[%s1226_s11 + $0xb8] sm:$0xff]   ;;  %v366_v50 = vld [vmem:[#allocation2 + $0x8] sm:$0xff] }
  0x31   : > { %1018 = vmatpush3.bf16.msra.mxu1 %v1083_v14  ;;  %v1098_v29 = vld [vmem:[%s1226_s11 + $0xb0] sm:$0xff]   ;;  %v1100_v34 = vld [vmem:[%s1226_s11 + $0x38] sm:$0xff]   ;;  %v943_v5 = vld [vmem:[%s1294_s2] ss:$0 sm:$0xff] (!%p942_p11) }
  0x32   : > { %1019 = vmatprep.subr.bf16.mxu1 %v1086_v17  ;;  %v1104_v32 = vld [vmem:[%s1228_s12 + $0x4] ss:$12 sps:$4 sm:$0xff]   ;;  %v1105_v33 = vld [vmem:[%s1228_s12 + $0x8] ss:$12 sps:$4 sm:$0xff]   ;;  %v1102_v35 = vld [vmem:[%s1228_s12] ss:$12 sps:$4 sm:$0xff]  }
  0x33   : > { %982 = vmatpush3.bf16.msra.mxu0 %v1085_v16  ;;  %633 = vmatprep.mubr.bf16.mxu0 %v1104_v32  ;;  %v1107_v36 = vld [vmem:[%s1228_s12 + $0x1c] ss:$12 sps:$4 sm:$0xff]   ;;  %v1106_v37 = vld [vmem:[%s1228_s12 + $0x20] ss:$12 sps:$4 sm:$0xff]   ;;  %v1109_v38 = vld [vmem:[%s1228_s12 + $0x18] ss:$12 sps:$4 sm:$0xff]  }
  0x34   : > { %983 = vmatprep.subr.bf16.mxu0 %v1087_v18  ;;  %1031 = vmatprep.mubr.bf16.mxu1 %v1105_v33  ;;  %v367_v59 = vld [vmem:[#allocation2 + $0x10] sm:$0xff]  ;;  %v368_v63 = vld [vmem:[#allocation2 + $0x18] sm:$0xff]  ;;  %v958_v8 = vld [vmem:[%s1295_s3] sm:$0xff] (!%p942_p11)  }
  0x35   : > { %1020 = vmatpush3.bf16.msra.mxu1 %v1086_v17  ;;  %v959_v11 = vunpack.c.l.bf16 (!%p942_p11), %v958_v8  ;;  %v960_v12 = vunpack.c.h.bf16 (!%p942_p11), %v958_v8  ;;  %v975_v15 = vld [vmem:[%s1295_s3 + $0x8] sm:$0xff] (!%p942_p11)  }
  0x36   : > { %1021 = vmatprep.subr.bf16.mxu1 %v1089_v20  ;;  %v963_v16 = vunpack.c.l.bf16 (!%p942_p11), %v975_v15  ;;  %v964_v17 = vunpack.c.h.bf16 (!%p942_p11), %v975_v15 }
  0x37   : > { %984 = vmatpush3.bf16.msra.mxu0 %v1088_v19 }
  0x38   : > { %985 = vmatprep.subr.bf16.mxu0 %v1090_v21 }
  0x39   : > { %1022 = vmatpush3.bf16.msra.mxu1 %v1089_v20 }
  0x3a   : > { %1023 = vmatprep.subr.bf16.mxu1 %v1092_v22 }
  0x3b   : > { %986 = vmatpush3.bf16.msra.mxu0 %v1091_v23 }
  0x3c   : > { %987 = vmatprep.subr.bf16.mxu0 %v1093_v24 }
  0x3d   : > { %1024 = vmatpush3.bf16.msra.mxu1 %v1092_v22 }
  0x3e   : > { %1025 = vmatprep.subr.bf16.mxu1 %v1095_v25 }
  0x3f   : > { %988 = vmatpush3.bf16.msra.mxu0 %v1094_v26 }
  0x40   : > { %989 = vmatprep.subr.bf16.mxu0 %v1096_v27 }
  0x41   : > { %1026 = vmatpush3.bf16.msra.mxu1 %v1095_v25 }
  0x42   : > { %1027 = vmatprep.subr.bf16.mxu1 %v1098_v29 }
  0x43   : > { %990 = vmatpush3.bf16.msra.mxu0 %v1097_v28 }
  0x44   : > { %991 = vmatprep.subr.bf16.mxu0 %v1099_v30 }
  0x45   : > { %1028 = vmatpush3.bf16.msra.mxu1 %v1098_v29 }
  0x46   : > { %1029 = vmatprep.subr.bf16.mxu1 %v1101_v31 }
  0x47   : > { %992 = vmatpush3.bf16.msra.mxu0 %v1100_v34 }
  0x49   : > { %1030 = vmatpush3.bf16.msra.mxu1 %v1101_v31 }
  0x4a   : > { %634 = vmatmul.mubr.bf16.vlgmr.msra.gmra.mrb[0].mxu0 %v1102_v35 }
  0x4b   : > { %641 = vmatprep.mubr.bf16.mxu0 %v1107_v36 }
  0x4c   : > { %1032 = vmatmul.mubr.bf16.vlgmr.msra.gmra.mrb[0].mxu1 %v1106_v37 }
  0x52   : > { %642 = vmatmul.mubr.bf16.gmra.mrb[4].mxu0 %v1109_v38 }
 0x11d   : > { %v993_v39 = vpop.f32.mrb[0].mxu0 }
 0x11e   : > { %v994_v40 = vpop.f32.mrb[1].mxu0 }
 0x11f   : > { %v995_v41 = vadd.f32 %v994_v40, %v993_v39  ;;  %v996_v42 = vpop.f32.mrb[2].mxu0  ;;  %v1033_v43 = vpop.f32.mrb[0].mxu1 }
 0x120   : > { %v997_v44 = vpop.f32.mrb[3].mxu0  ;;  %v684_v46 = vpop.f32.mrb[1].mxu1 }
 0x121   : > { %v998_v47 = vadd.f32 %v997_v44, %v996_v42  ;;  %v685_v48 = vadd.f32 %v995_v41, %v684_v46  ;;  %v1034_v49 = vpop.f32.mrb[2].mxu1 }
 0x122   : > { %v687_v51 = vpop.f32.mrb[3].mxu1 }
 0x123   : > { %v699_v52 = vadd.f32 %v685_v48, %v365_v45  ;;  %v688_v53 = vadd.f32 %v998_v47, %v687_v51 }
 0x125   : > { %703 = vst [vmem:[#allocation2] sm:$0xff] %v699_v52  ;;  %v700_v54 = vadd.f32 %v688_v53, %v366_v50  ;;  %v999_v55 = vpop.f32.mrb[4].mxu0 }
 0x126   : > { %v1000_v56 = vpop.f32.mrb[5].mxu0 }
 0x127   : > { %704 = vst [vmem:[#allocation2 + $0x8] sm:$0xff] %v700_v54  ;;  %v1001_v57 = vadd.f32 %v1000_v56, %v999_v55  ;;  %v1002_v58 = vpop.f32.mrb[6].mxu0 }
 0x128   : > { %v1003_v60 = vpop.f32.mrb[7].mxu0 }
 0x129   : > { %v693_v61 = vadd.f32 %v1033_v43, %v1001_v57  ;;  %v1004_v62 = vadd.f32 %v1003_v60, %v1002_v58  ;;  %710 = sbr.rel (%p942_p11) target bundleno = 320 (0x140), region = 70 }
 0x12b   : > { %v701_v0 = vadd.f32 %v693_v61, %v367_v59  ;;  %v696_v1 = vadd.f32 %v1034_v49, %v1004_v62 }
 0x12c   : > { %v711_v3 = vld [vmem:[#allocation2] sm:$0xff] (!%p942_p11) }
 0x12d   : > { %705 = vst [vmem:[#allocation2 + $0x10] sm:$0xff] %v701_v0  ;;  %v702_v2 = vadd.f32 %v696_v1, %v368_v63  ;;  %v722_v6 = vadd.f32 (!%p942_p11), %v943_v5, %v711_v3 }
 0x12e   : > { %v712_v4 = vld [vmem:[#allocation2 + $0x8] sm:$0xff] (!%p942_p11) }
 0x12f   : > { %706 = vst [vmem:[#allocation2 + $0x18] sm:$0xff] %v702_v2  ;;  %v723_v7 = vadd.f32 (!%p942_p11), %v943_v5, %v712_v4  ;;  %v734_v18 = vadd.f32 (!%p942_p11), %v959_v11, %v722_v6 }
 0x131   : > { %v735_v19 = vadd.f32 %v960_v12, %v723_v7  ;;  %v738_v22 = vmax.f32 %v734_v18, 0.0 }
 0x133   : > { %v739_v23 = vmax.f32 %v735_v19, 0.0 }
 0x134   : > { %v713_v9 = vld [vmem:[#allocation2 + $0x10] sm:$0xff] }
 0x135   : > { %v724_v13 = vadd.f32 %v943_v5, %v713_v9  ;;  %v968_v26 = vpack.c.bf16 %v739_v23, %v738_v22 }
 0x136   : > { %v714_v10 = vld [vmem:[#allocation2 + $0x18] sm:$0xff] }
 0x137   : > { %v725_v14 = vadd.f32 %v943_v5, %v714_v10  ;;  %v736_v20 = vadd.f32 %v963_v16, %v724_v13  ;;  %969 = vst [vmem:[%s1296_s4] sm:$0xff] %v968_v26  }
 0x139   : > { %v737_v21 = vadd.f32 %v964_v17, %v725_v14  ;;  %v740_v24 = vmax.f32 %v736_v20, 0.0 }
 0x13b   : > { %v741_v25 = vmax.f32 %v737_v21, 0.0 }
 0x13d   : > { %v973_v27 = vpack.c.bf16 %v741_v25, %v740_v24 }
 0x13f   : > { %976 = vst [vmem:[%s1296_s4 + $0x8] sm:$0xff] %v973_v27  }
 0x140 PF: > { %s14_s19 = sadd.s32 1, %s1148_s19   ;;  %s1297_s15 = smov %s1136_s16 }
 0x141   : > { %p11_p12 = scmp.ge.s32.totalorder %s14_s19, 5   ;;  %s1298_s16 = smov %s1211_s23 }
 0x142   : > { %s1299_s17 = smov %s1144_s18  ;;  %s1300_s18 = smov %s1302_s20 }
 0x143   :  { %13 = sbr.rel (!%p11_p12) target bundleno = 3 (0x3), region = 120 }

// kernel: resnet18_forward.32
= control target key start
LH: loop header
LB: loop body
LE: loop exit
PB: predicated region body
PF: predicated region fallthrough
CT: control target
= control target key end

     0   :  { %s866_s12 = smov 0   ;;  %s868_s13 = smov 0   ;;  %s941_s0 = inlined_call_operand.vmem [shape: bf16[8,1152], index: 0, kind: input, shape index: {}]   ;;  %s942_s1 = inlined_call_operand.vmem [shape: bf16[1152,128], index: 1, kind: input, shape index: {}]   ;;  %s943_s2 = inlined_call_operand.vmem [shape: f32[1,128], index: 2, kind: input, shape index: {}]   ;;  %s944_s3 = inlined_call_operand.vmem [shape: bf16[8,128], index: 3, kind: output, shape index: {}]  }
   0x1   :  { %s870_s14 = smov 0  }
   0x2 LB: > { %s25_s15 = sadd.s32 1, %s837_s13  ;;  %p678_p0 = scmp.ge.s32.totalorder %s841_s14, 1  ;;  %s841_s14 = sphi %s870_s14, %s13_s14   ;;  %s837_s13 = sphi %s868_s13, %s946_s13   ;;  %s833_s12 = sphi %s866_s12, %s945_s12  }
   0x3   : > { %p26_p1 = scmp.ge.s32.totalorder %s25_s15, 3  ;;  %p189_p2 = scmp.lt.s32.totalorder %s841_s14, 4 }
   0x5   : > { %s948_s15 = smov (%p26_p1, %s25_s15), 0  ;;  %p190_p3 = pnand %p678_p0, %p189_p2 }
   0x6   : > { %s230_s16 = smul.u32 (!%p190_p3), 3, %s833_s12  ;;  %p681_p6 = scmp.ne.s32.totalorder (!%p190_p3), %s833_s12, 0 }
   0x7   : > { %193 = sbr.rel (%p190_p3) target bundleno = 291 (0x123), region = 32 }
   0x8   : > { %s240_s17 = smul.u32 (!%p190_p3), 48, %s833_s12  ;;  %p233_p4 = scmp.lt.s32.totalorder (!%p190_p3), %s230_s16, 8 }
   0xa   : > { %p241_p5 = scmp.lt.s32.totalorder (!%p190_p3), %s240_s17, 143 }
   0xe   : > { %s950_s16 = smov (!%p233_p4, %s230_s16), 8  ;;  %s952_s17 = smov (!%p241_p5, %s240_s17), 143 }
   0xf   : > { %s679_s18 = sshll.u32 %s950_s16, 2  ;;  %s680_s22 = sshll.u32 %s952_s17, 2  ;;  %v843_v0 = vmov (!%p681_p6), 0.0  }
  0x10   : > { %s891_s21 = scalar_lea.vmem %s941_s0, %s679_s18  ;;  %s896_s25 = scalar_lea.vmem %s942_s1, %s680_s22  ;;  %264 = vst [vmem:[#allocation2] sm:$0xff] (!%p681_p6), %v843_v0 }
  0x11   : > { %263 = sbr.rel (%p681_p6) target bundleno = 24 (0x18), region = 36 }
  0x18 PF: > { %v792_v1 = vld [vmem:[%s896_s25 + $0x40] sm:$0xff]   ;;  %v844_v2 = vmov 0.0   ;;  %vm845_vm0 = vmmov 0   ;;  %v795_v5 = vld [vmem:[%s896_s25 + $0x48] sm:$0xff]   ;;  %v798_v8 = vld [vmem:[%s896_s25 + $0x50] sm:$0xff]   ;;  %p709_p7 = scmp.ne.s32.totalorder %s833_s12, 2 }
  0x19   : > { %745 = vmatprep.subr.bf16.mxu1 %v844_v2  ;;  %v793_v3 = vld [vmem:[%s896_s25] sm:$0xff]   ;;  %714 = vmatprep.subr.bf16.mxu0 %v792_v1  ;;  %v796_v6 = vld [vmem:[%s896_s25 + $0x8] sm:$0xff]   ;;  %v799_v9 = vld [vmem:[%s896_s25 + $0x10] sm:$0xff]  }
  0x1a   : > { %v794_v4 = vld [vmem:[%s896_s25 + $0x80] sm:$0xff]   ;;  %761 = vmatprep.mubr.msk.bf16.mxu1 %vm845_vm0, %v844_v2  ;;  %715 = vmatpush3.bf16.msra.mxu0 %v793_v3  ;;  %v797_v7 = vld [vmem:[%s896_s25 + $0x88] sm:$0xff]   ;;  %v800_v10 = vld [vmem:[%s896_s25 + $0x90] sm:$0xff]  }
  0x1b   : > { %746 = vmatpush3.bf16.msra.mxu1 %v794_v4  ;;  %716 = vmatprep.subr.bf16.mxu0 %v795_v5  ;;  %v801_v11 = vld [vmem:[%s896_s25 + $0x58] sm:$0xff]   ;;  %v804_v14 = vld [vmem:[%s896_s25 + $0x60] sm:$0xff]   ;;  %v807_v17 = vld [vmem:[%s896_s25 + $0x68] sm:$0xff]  }
  0x1c   : > { %747 = vmatprep.subr.bf16.mxu1 %v844_v2  ;;  %v802_v12 = vld [vmem:[%s896_s25 + $0x18] sm:$0xff]   ;;  %v805_v15 = vld [vmem:[%s896_s25 + $0x20] sm:$0xff]   ;;  %v808_v18 = vld [vmem:[%s896_s25 + $0x28] sm:$0xff]  }
  0x1d   : > { %v803_v13 = vld [vmem:[%s896_s25 + $0x98] sm:$0xff]   ;;  %v806_v16 = vld [vmem:[%s896_s25 + $0xa0] sm:$0xff]   ;;  %v809_v19 = vld [vmem:[%s896_s25 + $0xa8] sm:$0xff]  }
  0x1e   : > { %717 = vmatpush3.bf16.msra.mxu0 %v796_v6  ;;  %v810_v20 = vld [vmem:[%s896_s25 + $0x70] sm:$0xff]   ;;  %v813_v23 = vld [vmem:[%s896_s25 + $0x78] sm:$0xff]   ;;  %v266_v24 = vld [vmem:[%s891_s21] sm:$0xff] }
  0x1f   : > { %748 = vmatpush3.bf16.msra.mxu1 %v797_v7  ;;  %718 = vmatprep.subr.bf16.mxu0 %v798_v8  ;;  %v811_v21 = vld [vmem:[%s896_s25 + $0x30] sm:$0xff]   ;;  %v683_v25 = vcombine.high %v266_v24, %v266_v24  ;;  %v814_v26 = vld [vmem:[%s896_s25 + $0x38] sm:$0xff]   ;;  %v682_v28 = vcombine.low %v266_v24, %v266_v24  ;;  %v818_v29 = vld [vmem:[%s891_s21 + $0x8] ss:$0 sps:$4 sm:$0xff]  }
  0x20   : > { %749 = vmatprep.subr.bf16.mxu1 %v844_v2  ;;  %v812_v22 = vld [vmem:[%s896_s25 + $0xb0] sm:$0xff]   ;;  %v815_v27 = vld [vmem:[%s896_s25 + $0xb8] sm:$0xff]   ;;  %v265_v36 = vld [vmem:[#allocation2] sm:$0xff] }
  0x21   : > { %503 = vmatprep.mubr.bf16.mxu0 %v683_v25  ;;  %v710_v43 = vld [vmem:[%s943_s2] ss:$0 sm:$0xff] (!%p709_p7) }
  0x22   : > { %719 = vmatpush3.bf16.msra.mxu0 %v799_v9 }
  0x23   : > { %750 = vmatpush3.bf16.msra.mxu1 %v800_v10  ;;  %720 = vmatprep.subr.bf16.mxu0 %v801_v11 }
  0x24   : > { %751 = vmatprep.subr.bf16.mxu1 %v844_v2 }
  0x26   : > { %721 = vmatpush3.bf16.msra.mxu0 %v802_v12 }
  0x27   : > { %752 = vmatpush3.bf16.msra.mxu1 %v803_v13  ;;  %722 = vmatprep.subr.bf16.mxu0 %v804_v14 }
  0x28   : > { %753 = vmatprep.subr.bf16.mxu1 %v844_v2 }
  0x2a   : > { %723 = vmatpush3.bf16.msra.mxu0 %v805_v15 }
  0x2b   : > { %754 = vmatpush3.bf16.msra.mxu1 %v806_v16  ;;  %724 = vmatprep.subr.bf16.mxu0 %v807_v17 }
  0x2c   : > { %755 = vmatprep.subr.bf16.mxu1 %v844_v2 }
  0x2e   : > { %725 = vmatpush3.bf16.msra.mxu0 %v808_v18 }
  0x2f   : > { %756 = vmatpush3.bf16.msra.mxu1 %v809_v19  ;;  %726 = vmatprep.subr.bf16.mxu0 %v810_v20 }
  0x30   : > { %757 = vmatprep.subr.bf16.mxu1 %v844_v2 }
  0x32   : > { %727 = vmatpush3.bf16.msra.mxu0 %v811_v21 }
  0x33   : > { %758 = vmatpush3.bf16.msra.mxu1 %v812_v22  ;;  %728 = vmatprep.subr.bf16.mxu0 %v813_v23 }
  0x34   : > { %759 = vmatprep.subr.bf16.mxu1 %v844_v2 }
  0x36   : > { %729 = vmatpush3.bf16.msra.mxu0 %v814_v26 }
  0x37   : > { %760 = vmatpush3.bf16.msra.mxu1 %v815_v27 }
  0x39   : > { %504 = vmatmul.mubr.bf16.vlgmr.msra.gmra.mrb[0].mxu0 %v682_v28 }
  0x3a   : > { %762 = vmatmul.mubr.bf16.vlgmr.msra.gmra.mrb[0].mxu1 %v818_v29 }
 0x10c   : > { %v730_v30 = vpop.f32.mrb[0].mxu0 }
 0x10d   : > { %v545_v31 = vpop.f32.mrb[0].mxu1  ;;  %v731_v32 = vpop.f32.mrb[1].mxu0 }
 0x10e   : > { %v732_v33 = vadd.f32 %v731_v32, %v730_v30  ;;  %v763_v34 = vpop.f32.mrb[1].mxu1  ;;  %v733_v35 = vpop.f32.mrb[2].mxu0  ;;  %556 = sbr.rel (%p709_p7) target bundleno = 291 (0x123), region = 40 }
 0x10f   : > { %v548_v37 = vpop.f32.mrb[2].mxu1  ;;  %v734_v38 = vpop.f32.mrb[3].mxu0 }
 0x110   : > { %v546_v39 = vadd.f32 %v732_v33, %v545_v31  ;;  %v764_v40 = vpop.f32.mrb[3].mxu1 }
 0x112   : > { %v551_v41 = vadd.f32 %v546_v39, %v265_v36 }
 0x114   : > { %552 = vst [vmem:[#allocation2] sm:$0xff] %v551_v41 }
 0x11b   : > { %v557_v42 = vld [vmem:[#allocation2] sm:$0xff] }
 0x11c   : > { %v565_v44 = vadd.f32 %v710_v43, %v557_v42 }
 0x11e   : > { %v566_v45 = vmax.f32 %v565_v44, 0.0 }
 0x120   : > { %v567_v46 = vpack.c.bf16 %v566_v45, %v566_v45 }
 0x122   : > { %568 = vst [vmem:[%s944_s3] sm:$0xf] %v567_v46 }
 0x123 PF: > { %s13_s14 = sadd.s32 1, %s841_s14   ;;  %s945_s12 = smov %s837_s13 }
 0x124   : > { %p10_p8 = scmp.ge.s32.totalorder %s13_s14, 5   ;;  %s946_s13 = smov %s948_s15 }
 0x126   :  { %12 = sbr.rel (!%p10_p8) target bundleno = 2 (0x2), region = 76 }

// kernel: resnet18_forward.33
= control target key start
LH: loop header
LB: loop body
LE: loop exit
PB: predicated region body
PF: predicated region fallthrough
CT: control target
= control target key end

     0   :  { %v194_v0 = vmov 0.0   ;;  %vm195_vm0 = vmmov 0   ;;  %s249_s1 = inlined_call_operand.vmem [shape: bf16[128,128], index: 1, kind: input, shape index: {}]   ;;  %s250_s0 = inlined_call_operand.vmem [shape: bf16[8,128], index: 0, kind: input, shape index: {}]   ;;  %s251_s2 = inlined_call_operand.vmem [shape: f32[1,128], index: 2, kind: input, shape index: {}]   ;;  %s252_s3 = inlined_call_operand.vmem [shape: bf16[8,128], index: 3, kind: output, shape index: {}]  }
   0x1   :  { %164 = vmatprep.subr.bf16.mxu0 %v194_v0  ;;  %v186_v1 = vld [vmem:[%s249_s1] sm:$0xff]   ;;  %180 = vmatprep.mubr.msk.bf16.mxu0 %vm195_vm0, %v194_v0  ;;  %v187_v2 = vld [vmem:[%s249_s1 + $0x8] sm:$0xff]   ;;  %v188_v3 = vld [vmem:[%s249_s1 + $0x10] sm:$0xff]  }
   0x2   :  { %165 = vmatpush3.bf16.msra.mxu0 %v186_v1  ;;  %v189_v4 = vld [vmem:[%s249_s1 + $0x18] sm:$0xff]   ;;  %v190_v5 = vld [vmem:[%s249_s1 + $0x20] sm:$0xff]   ;;  %v191_v6 = vld [vmem:[%s249_s1 + $0x28] sm:$0xff]  }
   0x3   :  { %166 = vmatprep.subr.bf16.mxu0 %v194_v0  ;;  %v192_v7 = vld [vmem:[%s249_s1 + $0x30] sm:$0xff]   ;;  %v193_v8 = vld [vmem:[%s249_s1 + $0x38] sm:$0xff]   ;;  %v21_v9 = vld [vmem:[%s250_s0] sm:$0xf] }
   0x4   :  { %v154_v10 = vld [vmem:[%s251_s2] ss:$0 sm:$0xff] }
   0x6   :  { %167 = vmatpush3.bf16.msra.mxu0 %v187_v2 }
   0x7   :  { %168 = vmatprep.subr.bf16.mxu0 %v194_v0 }
   0xa   :  { %169 = vmatpush3.bf16.msra.mxu0 %v188_v3 }
   0xb   :  { %170 = vmatprep.subr.bf16.mxu0 %v194_v0 }
   0xe   :  { %171 = vmatpush3.bf16.msra.mxu0 %v189_v4 }
   0xf   :  { %172 = vmatprep.subr.bf16.mxu0 %v194_v0 }
  0x12   :  { %173 = vmatpush3.bf16.msra.mxu0 %v190_v5 }
  0x13   :  { %174 = vmatprep.subr.bf16.mxu0 %v194_v0 }
  0x16   :  { %175 = vmatpush3.bf16.msra.mxu0 %v191_v6 }
  0x17   :  { %176 = vmatprep.subr.bf16.mxu0 %v194_v0 }
  0x1a   :  { %177 = vmatpush3.bf16.msra.mxu0 %v192_v7 }
  0x1b   :  { %178 = vmatprep.subr.bf16.mxu0 %v194_v0 }
  0x1e   :  { %179 = vmatpush3.bf16.msra.mxu0 %v193_v8 }
  0x21   :  { %181 = vmatmul.mubr.bf16.vlgmr.msra.gmra.mrb[0].mxu0 %v21_v9 }
  0xf4   :  { %v120_v11 = vpop.f32.mrb[0].mxu0 }
  0xf5   :  { %v139_v12 = vadd.f32 %v154_v10, %v120_v11  ;;  %v182_v13 = vpop.f32.mrb[1].mxu0 }
  0xf6   :  { %v123_v14 = vpop.f32.mrb[2].mxu0 }
  0xf7   :  { %v140_v15 = vpack.c.bf16 %v139_v12, %v139_v12  ;;  %v183_v16 = vpop.f32.mrb[3].mxu0 }
  0xf9   :  { %141 = vst [vmem:[%s252_s3] sm:$0xf] %v140_v15 }

// kernel: resnet18_forward.34
= control target key start
LH: loop header
LB: loop body
LE: loop exit
PB: predicated region body
PF: predicated region fallthrough
CT: control target
= control target key end

     0   :  { %s948_s15 = smov 0   ;;  %s950_s16 = smov 0   ;;  %s1026_s0 = inlined_call_operand.vmem [shape: bf16[8,1152], index: 0, kind: input, shape index: {}]   ;;  %s1027_s1 = inlined_call_operand.vmem [shape: bf16[1152,128], index: 1, kind: input, shape index: {}]   ;;  %s1028_s2 = inlined_call_operand.vmem [shape: f32[1,128], index: 2, kind: input, shape index: {}]   ;;  %s1029_s3 = inlined_call_operand.vmem [shape: bf16[8,128], index: 3, kind: input, shape index: {}]   ;;  %s1030_s4 = inlined_call_operand.vmem [shape: bf16[8,128], index: 4, kind: output, shape index: {}]  }
   0x1   :  { %s952_s17 = smov 0  }
   0x2 LB: > { %s26_s18 = sadd.s32 1, %s914_s16  ;;  %p755_p0 = scmp.ge.s32.totalorder %s918_s17, 1  ;;  %s918_s17 = sphi %s952_s17, %s14_s17   ;;  %s914_s16 = sphi %s950_s16, %s1032_s16   ;;  %s910_s15 = sphi %s948_s15, %s1031_s15  }
   0x3   : > { %p27_p1 = scmp.ge.s32.totalorder %s26_s18, 3  ;;  %p228_p2 = scmp.lt.s32.totalorder %s918_s17, 4 }
   0x5   : > { %s1034_s18 = smov (%p27_p1, %s26_s18), 0  ;;  %p229_p3 = pnand %p755_p0, %p228_p2 }
   0x6   : > { %s278_s19 = smul.u32 (!%p229_p3), 3, %s910_s15  ;;  %p758_p6 = scmp.ne.s32.totalorder (!%p229_p3), %s910_s15, 0 }
   0x7   : > { %232 = sbr.rel (%p229_p3) target bundleno = 293 (0x125), region = 36 }
   0x8   : > { %s288_s20 = smul.u32 (!%p229_p3), 48, %s910_s15  ;;  %p281_p4 = scmp.lt.s32.totalorder (!%p229_p3), %s278_s19, 8 }
   0xa   : > { %p289_p5 = scmp.lt.s32.totalorder (!%p229_p3), %s288_s20, 143 }
   0xe   : > { %s1036_s19 = smov (!%p281_p4, %s278_s19), 8  ;;  %s1038_s20 = smov (!%p289_p5, %s288_s20), 143 }
   0xf   : > { %s756_s21 = sshll.u32 %s1036_s19, 2  ;;  %s757_s25 = sshll.u32 %s1038_s20, 2  ;;  %v920_v0 = vmov (!%p758_p6), 0.0  }
  0x10   : > { %s973_s24 = scalar_lea.vmem %s1026_s0, %s756_s21  ;;  %s978_s28 = scalar_lea.vmem %s1027_s1, %s757_s25  ;;  %319 = vst [vmem:[#allocation2] sm:$0xff] (!%p758_p6), %v920_v0 }
  0x11   : > { %318 = sbr.rel (%p758_p6) target bundleno = 24 (0x18), region = 40 }
  0x18 PF: > { %v869_v1 = vld [vmem:[%s978_s28 + $0x40] sm:$0xff]   ;;  %v921_v2 = vmov 0.0   ;;  %vm922_vm0 = vmmov 0   ;;  %v872_v5 = vld [vmem:[%s978_s28 + $0x48] sm:$0xff]   ;;  %v875_v8 = vld [vmem:[%s978_s28 + $0x50] sm:$0xff]   ;;  %p786_p7 = scmp.ne.s32.totalorder %s910_s15, 2 }
  0x19   : > { %822 = vmatprep.subr.bf16.mxu1 %v921_v2  ;;  %v870_v3 = vld [vmem:[%s978_s28] sm:$0xff]   ;;  %791 = vmatprep.subr.bf16.mxu0 %v869_v1  ;;  %v873_v6 = vld [vmem:[%s978_s28 + $0x8] sm:$0xff]   ;;  %v876_v9 = vld [vmem:[%s978_s28 + $0x10] sm:$0xff]  }
  0x1a   : > { %v871_v4 = vld [vmem:[%s978_s28 + $0x80] sm:$0xff]   ;;  %838 = vmatprep.mubr.msk.bf16.mxu1 %vm922_vm0, %v921_v2  ;;  %792 = vmatpush3.bf16.msra.mxu0 %v870_v3  ;;  %v874_v7 = vld [vmem:[%s978_s28 + $0x88] sm:$0xff]   ;;  %v877_v10 = vld [vmem:[%s978_s28 + $0x90] sm:$0xff]  }
  0x1b   : > { %823 = vmatpush3.bf16.msra.mxu1 %v871_v4  ;;  %793 = vmatprep.subr.bf16.mxu0 %v872_v5  ;;  %v878_v11 = vld [vmem:[%s978_s28 + $0x58] sm:$0xff]   ;;  %v881_v14 = vld [vmem:[%s978_s28 + $0x60] sm:$0xff]   ;;  %v884_v17 = vld [vmem:[%s978_s28 + $0x68] sm:$0xff]  }
  0x1c   : > { %824 = vmatprep.subr.bf16.mxu1 %v921_v2  ;;  %v879_v12 = vld [vmem:[%s978_s28 + $0x18] sm:$0xff]   ;;  %v882_v15 = vld [vmem:[%s978_s28 + $0x20] sm:$0xff]   ;;  %v885_v18 = vld [vmem:[%s978_s28 + $0x28] sm:$0xff]  }
  0x1d   : > { %v880_v13 = vld [vmem:[%s978_s28 + $0x98] sm:$0xff]   ;;  %v883_v16 = vld [vmem:[%s978_s28 + $0xa0] sm:$0xff]   ;;  %v886_v19 = vld [vmem:[%s978_s28 + $0xa8] sm:$0xff]  }
  0x1e   : > { %794 = vmatpush3.bf16.msra.mxu0 %v873_v6  ;;  %v887_v20 = vld [vmem:[%s978_s28 + $0x70] sm:$0xff]   ;;  %v890_v23 = vld [vmem:[%s978_s28 + $0x78] sm:$0xff]   ;;  %v321_v24 = vld [vmem:[%s973_s24] sm:$0xff] }
  0x1f   : > { %825 = vmatpush3.bf16.msra.mxu1 %v874_v7  ;;  %795 = vmatprep.subr.bf16.mxu0 %v875_v8  ;;  %v888_v21 = vld [vmem:[%s978_s28 + $0x30] sm:$0xff]   ;;  %v760_v25 = vcombine.high %v321_v24, %v321_v24  ;;  %v891_v26 = vld [vmem:[%s978_s28 + $0x38] sm:$0xff]   ;;  %v759_v28 = vcombine.low %v321_v24, %v321_v24  ;;  %v895_v29 = vld [vmem:[%s973_s24 + $0x8] ss:$0 sps:$4 sm:$0xff]  }
  0x20   : > { %826 = vmatprep.subr.bf16.mxu1 %v921_v2  ;;  %v889_v22 = vld [vmem:[%s978_s28 + $0xb0] sm:$0xff]   ;;  %v892_v27 = vld [vmem:[%s978_s28 + $0xb8] sm:$0xff]   ;;  %v320_v36 = vld [vmem:[#allocation2] sm:$0xff] }
  0x21   : > { %558 = vmatprep.mubr.bf16.mxu0 %v760_v25  ;;  %v787_v43 = vld [vmem:[%s1028_s2] ss:$0 sm:$0xff] (!%p786_p7) }
  0x22   : > { %796 = vmatpush3.bf16.msra.mxu0 %v876_v9  ;;  %v621_v44 = vld [vmem:[%s1029_s3] sm:$0xf] (!%p786_p7) }
  0x23   : > { %827 = vmatpush3.bf16.msra.mxu1 %v877_v10  ;;  %797 = vmatprep.subr.bf16.mxu0 %v878_v11  ;;  %v622_v46 = vunpack.c.l.bf16 (!%p786_p7), %v621_v44 }
  0x24   : > { %828 = vmatprep.subr.bf16.mxu1 %v921_v2 }
  0x26   : > { %798 = vmatpush3.bf16.msra.mxu0 %v879_v12 }
  0x27   : > { %829 = vmatpush3.bf16.msra.mxu1 %v880_v13  ;;  %799 = vmatprep.subr.bf16.mxu0 %v881_v14 }
  0x28   : > { %830 = vmatprep.subr.bf16.mxu1 %v921_v2 }
  0x2a   : > { %800 = vmatpush3.bf16.msra.mxu0 %v882_v15 }
  0x2b   : > { %831 = vmatpush3.bf16.msra.mxu1 %v883_v16  ;;  %801 = vmatprep.subr.bf16.mxu0 %v884_v17 }
  0x2c   : > { %832 = vmatprep.subr.bf16.mxu1 %v921_v2 }
  0x2e   : > { %802 = vmatpush3.bf16.msra.mxu0 %v885_v18 }
  0x2f   : > { %833 = vmatpush3.bf16.msra.mxu1 %v886_v19  ;;  %803 = vmatprep.subr.bf16.mxu0 %v887_v20 }
  0x30   : > { %834 = vmatprep.subr.bf16.mxu1 %v921_v2 }
  0x32   : > { %804 = vmatpush3.bf16.msra.mxu0 %v888_v21 }
  0x33   : > { %835 = vmatpush3.bf16.msra.mxu1 %v889_v22  ;;  %805 = vmatprep.subr.bf16.mxu0 %v890_v23 }
  0x34   : > { %836 = vmatprep.subr.bf16.mxu1 %v921_v2 }
  0x36   : > { %806 = vmatpush3.bf16.msra.mxu0 %v891_v26 }
  0x37   : > { %837 = vmatpush3.bf16.msra.mxu1 %v892_v27 }
  0x39   : > { %559 = vmatmul.mubr.bf16.vlgmr.msra.gmra.mrb[0].mxu0 %v759_v28 }
  0x3a   : > { %839 = vmatmul.mubr.bf16.vlgmr.msra.gmra.mrb[0].mxu1 %v895_v29 }
 0x10c   : > { %v807_v30 = vpop.f32.mrb[0].mxu0 }
 0x10d   : > { %v600_v31 = vpop.f32.mrb[0].mxu1  ;;  %v808_v32 = vpop.f32.mrb[1].mxu0 }
 0x10e   : > { %v809_v33 = vadd.f32 %v808_v32, %v807_v30  ;;  %v840_v34 = vpop.f32.mrb[1].mxu1  ;;  %v810_v35 = vpop.f32.mrb[2].mxu0  ;;  %611 = sbr.rel (%p786_p7) target bundleno = 293 (0x125), region = 44 }
 0x10f   : > { %v603_v37 = vpop.f32.mrb[2].mxu1  ;;  %v811_v38 = vpop.f32.mrb[3].mxu0 }
 0x110   : > { %v601_v39 = vadd.f32 %v809_v33, %v600_v31  ;;  %v841_v40 = vpop.f32.mrb[3].mxu1 }
 0x112   : > { %v606_v41 = vadd.f32 %v601_v39, %v320_v36 }
 0x114   : > { %607 = vst [vmem:[#allocation2] sm:$0xff] %v606_v41 }
 0x11b   : > { %v612_v42 = vld [vmem:[#allocation2] sm:$0xff] }
 0x11c   : > { %v620_v45 = vadd.f32 %v787_v43, %v612_v42 }
 0x11e   : > { %v623_v47 = vadd.f32 %v622_v46, %v620_v45 }
 0x120   : > { %v624_v48 = vmax.f32 %v623_v47, 0.0 }
 0x122   : > { %v625_v49 = vpack.c.bf16 %v624_v48, %v624_v48 }
 0x124   : > { %626 = vst [vmem:[%s1030_s4] sm:$0xf] %v625_v49 }
 0x125 PF: > { %s14_s17 = sadd.s32 1, %s918_s17   ;;  %s1031_s15 = smov %s914_s16 }
 0x126   : > { %p11_p8 = scmp.ge.s32.totalorder %s14_s17, 5   ;;  %s1032_s16 = smov %s1034_s18 }
 0x128   :  { %13 = sbr.rel (!%p11_p8) target bundleno = 2 (0x2), region = 83 }

// kernel: resnet18_forward.37
= control target key start
LH: loop header
LB: loop body
LE: loop exit
PB: predicated region body
PF: predicated region fallthrough
CT: control target
= control target key end

     0   :  { %s1036_s12 = smov 0   ;;  %s1038_s13 = smov 0   ;;  %s1135_s0 = inlined_call_operand.vmem [shape: bf16[8,1152], index: 0, kind: input, shape index: {}]   ;;  %s1136_s1 = inlined_call_operand.vmem [shape: bf16[1152,256], index: 1, kind: input, shape index: {}]   ;;  %s1137_s2 = inlined_call_operand.vmem [shape: f32[1,256], index: 2, kind: input, shape index: {}]   ;;  %s1138_s3 = inlined_call_operand.vmem [shape: bf16[8,256], index: 3, kind: output, shape index: {}]  }
   0x1   :  { %s1040_s14 = smov 0  }
   0x2 LB: > { %s25_s15 = sadd.s32 1, %s1008_s13  ;;  %p825_p0 = scmp.ge.s32.totalorder %s1012_s14, 1  ;;  %s1012_s14 = sphi %s1040_s14, %s13_s14   ;;  %s1008_s13 = sphi %s1038_s13, %s1140_s13   ;;  %s1004_s12 = sphi %s1036_s12, %s1139_s12  }
   0x3   : > { %p26_p1 = scmp.ge.s32.totalorder %s25_s15, 3  ;;  %p194_p2 = scmp.lt.s32.totalorder %s1012_s14, 4 }
   0x5   : > { %s1142_s15 = smov (%p26_p1, %s25_s15), 0  ;;  %p195_p3 = pnand %p825_p0, %p194_p2 }
   0x6   : > { %s240_s16 = smul.u32 (!%p195_p3), 3, %s1004_s12  ;;  %p829_p6 = scmp.ne.s32.totalorder (!%p195_p3), %s1004_s12, 0 }
   0x7   : > { %198 = sbr.rel (%p195_p3) target bundleno = 321 (0x141), region = 32 }
   0x8   : > { %s250_s17 = smul.u32 (!%p195_p3), 48, %s1004_s12  ;;  %p243_p4 = scmp.lt.s32.totalorder (!%p195_p3), %s240_s16, 8 }
   0xa   : > { %p252_p5 = scmp.lt.s32.totalorder (!%p195_p3), %s250_s17, 143 }
   0xe   : > { %s1144_s16 = smov (!%p243_p4, %s240_s16), 8  ;;  %s1146_s17 = smov (!%p252_p5, %s250_s17), 143 }
   0xf   : > { %s826_s18 = sshll.u32 %s1144_s16, 2  ;;  %s887_s22 = sshll.u32 %s1146_s17, 3  ;;  %v1014_v0 = vmov (!%p829_p6), 0.0  }
  0x10   : > { %s1061_s21 = scalar_lea.vmem %s1135_s0, %s826_s18  ;;  %s1066_s25 = scalar_lea.vmem %s1136_s1, %s887_s22  ;;  %282 = vst [vmem:[#allocation2] sm:$0xff] (!%p829_p6), %v1014_v0  ;;  %283 = vst [vmem:[#allocation2 + $0x8] sm:$0xff] (!%p829_p6), %v1014_v0 }
  0x11   : > { %281 = sbr.rel (%p829_p6) target bundleno = 24 (0x18), region = 36 }
  0x18 PF: > { %v915_v1 = vld [vmem:[%s1066_s25 + $0x4] ss:$8 sps:$4 sm:$0xff]   ;;  %v917_v2 = vld [vmem:[%s1066_s25] ss:$8 sps:$4 sm:$0xff]   ;;  %v1015_v3 = vmov 0   ;;  %p881_p7 = scmp.ne.s32.totalorder %s1004_s12, 2 }
  0x19   : > { %660 = vmatprep.mubr.bf16.mxu1 %v1015_v3  ;;  %587 = vmatprep.subr.bf16.mxu0 %v915_v1  ;;  %v918_v4 = vld [vmem:[%s1066_s25 + $0x14] ss:$8 sps:$4 sm:$0xff]   ;;  %v920_v5 = vld [vmem:[%s1066_s25 + $0x10] ss:$8 sps:$4 sm:$0xff]   ;;  %v921_v6 = vld [vmem:[%s1066_s25 + $0x24] ss:$8 sps:$4 sm:$0xff]  }
  0x1a   : > { %588 = vmatpush1.bf16.msra.mxu0 %v917_v2  ;;  %v923_v7 = vld [vmem:[%s1066_s25 + $0x20] ss:$8 sps:$4 sm:$0xff]   ;;  %v924_v8 = vld [vmem:[%s1066_s25 + $0x34] ss:$8 sps:$4 sm:$0xff]   ;;  %v926_v9 = vld [vmem:[%s1066_s25 + $0x30] ss:$8 sps:$4 sm:$0xff]  }
  0x1b   : > { %589 = vmatprep.subr.bf16.mxu0 %v918_v4  ;;  %v939_v10 = vld [vmem:[%s1066_s25 + $0x104] ss:$8 sps:$4 sm:$0xff]   ;;  %v941_v11 = vld [vmem:[%s1066_s25 + $0x100] ss:$8 sps:$4 sm:$0xff]   ;;  %v945_v13 = vld [vmem:[%s1066_s25 + $0x114] ss:$8 sps:$4 sm:$0xff]   ;;  %v681_v4 = vlaneseq (!%p881_p7) }
  0x1c   : > { %v927_v12 = vld [vmem:[%s1066_s25 + $0x44] ss:$8 sps:$4 sm:$0xff]   ;;  %628 = vmatprep.subr.bf16.mxu1 %v939_v10  ;;  %v947_v14 = vld [vmem:[%s1066_s25 + $0x110] ss:$8 sps:$4 sm:$0xff]   ;;  %v929_v15 = vld [vmem:[%s1066_s25 + $0x40] ss:$8 sps:$4 sm:$0xff]  }
  0x1d   : > { %629 = vmatpush1.bf16.msra.mxu1 %v941_v11  ;;  %v930_v16 = vld [vmem:[%s1066_s25 + $0x54] ss:$8 sps:$4 sm:$0xff]   ;;  %v951_v17 = vld [vmem:[%s1066_s25 + $0x124] ss:$8 sps:$4 sm:$0xff]   ;;  %v953_v18 = vld [vmem:[%s1066_s25 + $0x120] ss:$8 sps:$4 sm:$0xff]  }
  0x1e   : > { %590 = vmatpush1.bf16.msra.mxu0 %v920_v5  ;;  %630 = vmatprep.subr.bf16.mxu1 %v945_v13  ;;  %v932_v19 = vld [vmem:[%s1066_s25 + $0x50] ss:$8 sps:$4 sm:$0xff]   ;;  %v957_v20 = vld [vmem:[%s1066_s25 + $0x134] ss:$8 sps:$4 sm:$0xff]   ;;  %v933_v21 = vld [vmem:[%s1066_s25 + $0x64] ss:$8 sps:$4 sm:$0xff]  }
  0x1f   : > { %591 = vmatprep.subr.bf16.mxu0 %v921_v6  ;;  %v959_v22 = vld [vmem:[%s1066_s25 + $0x130] ss:$8 sps:$4 sm:$0xff]   ;;  %v935_v23 = vld [vmem:[%s1066_s25 + $0x60] ss:$8 sps:$4 sm:$0xff]   ;;  %v963_v24 = vld [vmem:[%s1066_s25 + $0x144] ss:$8 sps:$4 sm:$0xff]  }
  0x20   : > { %v936_v25 = vld [vmem:[%s1066_s25 + $0x74] ss:$8 sps:$4 sm:$0xff]   ;;  %v965_v26 = vld [vmem:[%s1066_s25 + $0x140] ss:$8 sps:$4 sm:$0xff]   ;;  %v938_v27 = vld [vmem:[%s1066_s25 + $0x70] ss:$8 sps:$4 sm:$0xff]  }
  0x21   : > { %631 = vmatpush1.bf16.msra.mxu1 %v947_v14  ;;  %v969_v28 = vld [vmem:[%s1066_s25 + $0x154] ss:$8 sps:$4 sm:$0xff]   ;;  %v942_v29 = vld [vmem:[%s1066_s25 + $0x84] ss:$8 sps:$4 sm:$0xff]   ;;  %v971_v30 = vld [vmem:[%s1066_s25 + $0x150] ss:$8 sps:$4 sm:$0xff]  }
  0x22   : > { %592 = vmatpush1.bf16.msra.mxu0 %v923_v7  ;;  %632 = vmatprep.subr.bf16.mxu1 %v951_v17  ;;  %v944_v31 = vld [vmem:[%s1066_s25 + $0x80] ss:$8 sps:$4 sm:$0xff]   ;;  %v975_v32 = vld [vmem:[%s1066_s25 + $0x164] ss:$8 sps:$4 sm:$0xff]   ;;  %v948_v33 = vld [vmem:[%s1066_s25 + $0x94] ss:$8 sps:$4 sm:$0xff]  }
  0x23   : > { %593 = vmatprep.subr.bf16.mxu0 %v924_v8  ;;  %v286_v34 = vld [vmem:[%s1061_s21] sm:$0xff]  ;;  %v950_v37 = vld [vmem:[%s1066_s25 + $0x90] ss:$8 sps:$4 sm:$0xff]   ;;  %v981_v38 = vld [vmem:[%s1066_s25 + $0x174] ss:$8 sps:$4 sm:$0xff]   ;;  %v682_v5 = vshrl.u32 (!%p881_p7), %v681_v4, 7 }
  0x24   : > { %v831_v35 = vcombine.high %v286_v34, %v286_v34  ;;  %v977_v36 = vld [vmem:[%s1066_s25 + $0x160] ss:$8 sps:$4 sm:$0xff]   ;;  %v954_v39 = vld [vmem:[%s1066_s25 + $0xa4] ss:$8 sps:$4 sm:$0xff]   ;;  %v983_v40 = vld [vmem:[%s1066_s25 + $0x170] ss:$8 sps:$4 sm:$0xff]   ;;  %v830_v53 = vcombine.low %v286_v34, %v286_v34 }
  0x25   : > { %633 = vmatpush1.bf16.msra.mxu1 %v953_v18  ;;  %v956_v41 = vld [vmem:[%s1066_s25 + $0xa0] ss:$8 sps:$4 sm:$0xff]   ;;  %v960_v42 = vld [vmem:[%s1066_s25 + $0xb4] ss:$8 sps:$4 sm:$0xff]   ;;  %v962_v44 = vld [vmem:[%s1066_s25 + $0xb0] ss:$8 sps:$4 sm:$0xff]  }
  0x26   : > { %594 = vmatpush1.bf16.msra.mxu0 %v926_v9  ;;  %634 = vmatprep.subr.bf16.mxu1 %v957_v20  ;;  %v987_v43 = vld [vmem:[%s1061_s21 + $0x8] ss:$0 sps:$4 sm:$0xff]   ;;  %v966_v45 = vld [vmem:[%s1066_s25 + $0xc4] ss:$8 sps:$4 sm:$0xff]   ;;  %v972_v47 = vld [vmem:[%s1066_s25 + $0xd4] ss:$8 sps:$4 sm:$0xff]  }
  0x27   : > { %595 = vmatprep.subr.bf16.mxu0 %v927_v12  ;;  %619 = vmatprep.mubr.bf16.mxu0 %v831_v35  ;;  %v968_v46 = vld [vmem:[%s1066_s25 + $0xc0] ss:$8 sps:$4 sm:$0xff]   ;;  %v974_v48 = vld [vmem:[%s1066_s25 + $0xd0] ss:$8 sps:$4 sm:$0xff]   ;;  %v978_v49 = vld [vmem:[%s1066_s25 + $0xe4] ss:$8 sps:$4 sm:$0xff]  }
  0x28   : > { %v980_v50 = vld [vmem:[%s1066_s25 + $0xe0] ss:$8 sps:$4 sm:$0xff]   ;;  %v984_v51 = vld [vmem:[%s1066_s25 + $0xf4] ss:$8 sps:$4 sm:$0xff]   ;;  %v986_v52 = vld [vmem:[%s1066_s25 + $0xf0] ss:$8 sps:$4 sm:$0xff]  }
  0x29   : > { %635 = vmatpush1.bf16.msra.mxu1 %v959_v22  ;;  %v284_v58 = vld [vmem:[#allocation2] sm:$0xff]  ;;  %v285_v61 = vld [vmem:[#allocation2 + $0x8] sm:$0xff]  ;;  %v683_v7 = vsub.s32 (!%p881_p7), 0, %v682_v5  ;;  %v687_v8 = vsub.s32 (!%p881_p7), 1, %v682_v5 }
  0x2a   : > { %596 = vmatpush1.bf16.msra.mxu0 %v929_v15  ;;  %636 = vmatprep.subr.bf16.mxu1 %v963_v24  ;;  %v679_v6 = vld [vmem:[%s1137_s2] sm:$0x3] (!%p881_p7) }
  0x2b   : > { %597 = vmatprep.subr.bf16.mxu0 %v930_v16  ;;  %v684_v11 = vrot.slane (!%p881_p7), %v679_v6, %v683_v7  ;;  %v688_v12 = vrot.slane (!%p881_p7), %v679_v6, %v687_v8 }
  0x2d   : > { %637 = vmatpush1.bf16.msra.mxu1 %v965_v26 }
  0x2e   : > { %598 = vmatpush1.bf16.msra.mxu0 %v932_v19  ;;  %638 = vmatprep.subr.bf16.mxu1 %v969_v28 }
  0x2f   : > { %599 = vmatprep.subr.bf16.mxu0 %v933_v21 }
  0x31   : > { %639 = vmatpush1.bf16.msra.mxu1 %v971_v30 }
  0x32   : > { %600 = vmatpush1.bf16.msra.mxu0 %v935_v23  ;;  %640 = vmatprep.subr.bf16.mxu1 %v975_v32 }
  0x33   : > { %601 = vmatprep.subr.bf16.mxu0 %v936_v25 }
  0x35   : > { %641 = vmatpush1.bf16.msra.mxu1 %v977_v36 }
  0x36   : > { %602 = vmatpush1.bf16.msra.mxu0 %v938_v27  ;;  %642 = vmatprep.subr.bf16.mxu1 %v981_v38 }
  0x37   : > { %603 = vmatprep.subr.bf16.mxu0 %v942_v29 }
  0x39   : > { %643 = vmatpush1.bf16.msra.mxu1 %v983_v40 }
  0x3a   : > { %604 = vmatpush1.bf16.msra.mxu0 %v944_v31 }
  0x3b   : > { %605 = vmatprep.subr.bf16.mxu0 %v948_v33 }
  0x3c   : > { %661 = vmatmul.mubr.bf16.vlgmr.msra.gmra.mrb[0].mxu1 %v987_v43 }
  0x3e   : > { %606 = vmatpush1.bf16.msra.mxu0 %v950_v37 }
  0x3f   : > { %607 = vmatprep.subr.bf16.mxu0 %v954_v39 }
  0x42   : > { %608 = vmatpush1.bf16.msra.mxu0 %v956_v41 }
  0x43   : > { %609 = vmatprep.subr.bf16.mxu0 %v960_v42 }
  0x46   : > { %610 = vmatpush1.bf16.msra.mxu0 %v962_v44 }
  0x47   : > { %611 = vmatprep.subr.bf16.mxu0 %v966_v45 }
  0x4a   : > { %612 = vmatpush1.bf16.msra.mxu0 %v968_v46 }
  0x4b   : > { %613 = vmatprep.subr.bf16.mxu0 %v972_v47 }
  0x4e   : > { %614 = vmatpush1.bf16.msra.mxu0 %v974_v48 }
  0x4f   : > { %615 = vmatprep.subr.bf16.mxu0 %v978_v49 }
  0x52   : > { %616 = vmatpush1.bf16.msra.mxu0 %v980_v50 }
  0x53   : > { %617 = vmatprep.subr.bf16.mxu0 %v984_v51 }
  0x56   : > { %618 = vmatpush1.bf16.msra.mxu0 %v986_v52 }
  0x59   : > { %620 = vmatmul.mubr.bf16.vlgmr.msra.gmra.mrb[0].mxu0 %v830_v53 }
 0x10f   : > { %v662_v54 = vpop.f32.mrb[0].mxu1 }
 0x110   : > { %v664_v55 = vpop.f32.mrb[1].mxu1 }
 0x111   : > { %v666_v56 = vpop.f32.mrb[2].mxu1 }
 0x112   : > { %v667_v57 = vpop.f32.mrb[3].mxu1 }
 0x12c   : > { %v621_v59 = vpop.f32.mrb[0].mxu0  ;;  %676 = sbr.rel (%p881_p7) target bundleno = 321 (0x141), region = 40 }
 0x12d   : > { %v663_v60 = vadd.f32 %v662_v54, %v621_v59  ;;  %v623_v62 = vpop.f32.mrb[1].mxu0 }
 0x12e   : > { %v665_v63 = vadd.f32 %v664_v55, %v623_v62  ;;  %v625_v0 = vpop.f32.mrb[2].mxu0 }
 0x12f   : > { %v669_v1 = vadd.f32 %v663_v60, %v284_v58  ;;  %v626_v2 = vpop.f32.mrb[3].mxu0 }
 0x130   : > { %v670_v3 = vadd.f32 %v665_v63, %v285_v61 }
 0x131   : > { %671 = vst [vmem:[#allocation2] sm:$0xff] %v669_v1 }
 0x132   : > { %672 = vst [vmem:[#allocation2 + $0x8] sm:$0xff] %v670_v3 }
 0x138   : > { %v677_v9 = vld [vmem:[#allocation2] sm:$0xff] }
 0x139   : > { %v678_v10 = vld [vmem:[#allocation2 + $0x8] sm:$0xff]  ;;  %v691_v13 = vadd.f32 %v684_v11, %v677_v9 }
 0x13a   : > { %v692_v14 = vadd.f32 %v688_v12, %v678_v10 }
 0x13b   : > { %v693_v15 = vmax.f32 %v691_v13, 0.0 }
 0x13c   : > { %v694_v16 = vmax.f32 %v692_v14, 0.0 }
 0x13e   : > { %v888_v17 = vpack.c.bf16 %v694_v16, %v693_v15 }
 0x140   : > { %703 = vst [vmem:[%s1138_s3] sm:$0xff] %v888_v17 }
 0x141 PF: > { %s13_s14 = sadd.s32 1, %s1012_s14   ;;  %s1139_s12 = smov %s1008_s13 }
 0x142   : > { %p10_p8 = scmp.ge.s32.totalorder %s13_s14, 5   ;;  %s1140_s13 = smov %s1142_s15 }
 0x144   :  { %12 = sbr.rel (!%p10_p8) target bundleno = 2 (0x2), region = 76 }

// kernel: resnet18_forward.38
= control target key start
LH: loop header
LB: loop body
LE: loop exit
PB: predicated region body
PF: predicated region fallthrough
CT: control target
= control target key end

     0   :  { %v240_v1 = vmov 0   ;;  %v172_v18 = vlaneseq  ;;  %s318_s1 = inlined_call_operand.vmem [shape: bf16[128,256], index: 1, kind: input, shape index: {}]   ;;  %s319_s0 = inlined_call_operand.vmem [shape: bf16[8,128], index: 0, kind: input, shape index: {}]   ;;  %s320_s2 = inlined_call_operand.vmem [shape: f32[1,256], index: 2, kind: input, shape index: {}]   ;;  %s321_s3 = inlined_call_operand.vmem [shape: bf16[8,256], index: 3, kind: output, shape index: {}]  }
   0x1   :  { %v216_v0 = vld [vmem:[%s318_s1 + $0x4] ss:$8 sps:$4 sm:$0xff]   ;;  %152 = vmatprep.mubr.bf16.mxu0 %v240_v1  ;;  %v218_v2 = vld [vmem:[%s318_s1] ss:$8 sps:$4 sm:$0xff]   ;;  %v219_v3 = vld [vmem:[%s318_s1 + $0x14] ss:$8 sps:$4 sm:$0xff]  }
   0x2   :  { %120 = vmatprep.subr.bf16.mxu0 %v216_v0  ;;  %v221_v4 = vld [vmem:[%s318_s1 + $0x10] ss:$8 sps:$4 sm:$0xff]   ;;  %v222_v5 = vld [vmem:[%s318_s1 + $0x24] ss:$8 sps:$4 sm:$0xff]   ;;  %v224_v6 = vld [vmem:[%s318_s1 + $0x20] ss:$8 sps:$4 sm:$0xff]  }
   0x3   :  { %121 = vmatpush1.bf16.msra.mxu0 %v218_v2  ;;  %v225_v7 = vld [vmem:[%s318_s1 + $0x34] ss:$8 sps:$4 sm:$0xff]   ;;  %v227_v8 = vld [vmem:[%s318_s1 + $0x30] ss:$8 sps:$4 sm:$0xff]   ;;  %v228_v9 = vld [vmem:[%s318_s1 + $0x44] ss:$8 sps:$4 sm:$0xff]  }
   0x4   :  { %122 = vmatprep.subr.bf16.mxu0 %v219_v3  ;;  %v230_v10 = vld [vmem:[%s318_s1 + $0x40] ss:$8 sps:$4 sm:$0xff]   ;;  %v231_v11 = vld [vmem:[%s318_s1 + $0x54] ss:$8 sps:$4 sm:$0xff]   ;;  %v233_v12 = vld [vmem:[%s318_s1 + $0x50] ss:$8 sps:$4 sm:$0xff]  }
   0x5   :  { %v234_v13 = vld [vmem:[%s318_s1 + $0x64] ss:$8 sps:$4 sm:$0xff]   ;;  %v236_v14 = vld [vmem:[%s318_s1 + $0x60] ss:$8 sps:$4 sm:$0xff]   ;;  %v237_v15 = vld [vmem:[%s318_s1 + $0x74] ss:$8 sps:$4 sm:$0xff]  }
   0x6   :  { %v239_v16 = vld [vmem:[%s318_s1 + $0x70] ss:$8 sps:$4 sm:$0xff]   ;;  %v23_v17 = vld [vmem:[%s319_s0] sm:$0xf]  ;;  %v173_v19 = vshrl.u32 %v172_v18, 7 }
   0x7   :  { %123 = vmatpush1.bf16.msra.mxu0 %v221_v4  ;;  %v170_v21 = vld [vmem:[%s320_s2] sm:$0x3] }
   0x8   :  { %124 = vmatprep.subr.bf16.mxu0 %v222_v5  ;;  %v174_v20 = vsub.s32 0, %v173_v19  ;;  %v178_v22 = vsub.s32 1, %v173_v19 }
   0xa   :  { %v175_v23 = vrot.slane %v170_v21, %v174_v20  ;;  %v179_v24 = vrot.slane %v170_v21, %v178_v22 }
   0xb   :  { %125 = vmatpush1.bf16.msra.mxu0 %v224_v6 }
   0xc   :  { %126 = vmatprep.subr.bf16.mxu0 %v225_v7 }
   0xf   :  { %127 = vmatpush1.bf16.msra.mxu0 %v227_v8 }
  0x10   :  { %128 = vmatprep.subr.bf16.mxu0 %v228_v9 }
  0x13   :  { %129 = vmatpush1.bf16.msra.mxu0 %v230_v10 }
  0x14   :  { %130 = vmatprep.subr.bf16.mxu0 %v231_v11 }
  0x17   :  { %131 = vmatpush1.bf16.msra.mxu0 %v233_v12 }
  0x18   :  { %132 = vmatprep.subr.bf16.mxu0 %v234_v13 }
  0x1b   :  { %133 = vmatpush1.bf16.msra.mxu0 %v236_v14 }
  0x1c   :  { %134 = vmatprep.subr.bf16.mxu0 %v237_v15 }
  0x1f   :  { %135 = vmatpush1.bf16.msra.mxu0 %v239_v16 }
  0x22   :  { %153 = vmatmul.mubr.bf16.vlgmr.msra.gmra.mrb[0].mxu0 %v23_v17 }
  0xf5   :  { %v154_v25 = vpop.f32.mrb[0].mxu0 }
  0xf6   :  { %v182_v26 = vadd.f32 %v175_v23, %v154_v25  ;;  %v156_v27 = vpop.f32.mrb[1].mxu0 }
  0xf7   :  { %v183_v28 = vadd.f32 %v179_v24, %v156_v27  ;;  %v158_v29 = vpop.f32.mrb[2].mxu0 }
  0xf8   :  { %v159_v30 = vpop.f32.mrb[3].mxu0 }
  0xf9   :  { %v214_v31 = vpack.c.bf16 %v183_v28, %v182_v26 }
  0xfb   :  { %192 = vst [vmem:[%s321_s3] sm:$0xff] %v214_v31 }

// kernel: resnet18_forward.40
= control target key start
LH: loop header
LB: loop body
LE: loop exit
PB: predicated region body
PF: predicated region fallthrough
CT: control target
= control target key end

     0   :  { %s1036_s12 = smov 0   ;;  %s1038_s13 = smov 0   ;;  %s1135_s0 = inlined_call_operand.vmem [shape: bf16[8,2304], index: 0, kind: input, shape index: {}]   ;;  %s1136_s1 = inlined_call_operand.vmem [shape: bf16[2304,256], index: 1, kind: input, shape index: {}]   ;;  %s1137_s2 = inlined_call_operand.vmem [shape: f32[1,256], index: 2, kind: input, shape index: {}]   ;;  %s1138_s3 = inlined_call_operand.vmem [shape: bf16[8,256], index: 3, kind: output, shape index: {}]  }
   0x1   :  { %s1040_s14 = smov 0  }
   0x2 LB: > { %s25_s15 = sadd.s32 1, %s1008_s13  ;;  %p825_p0 = scmp.ge.s32.totalorder %s1012_s14, 1  ;;  %s1012_s14 = sphi %s1040_s14, %s13_s14   ;;  %s1008_s13 = sphi %s1038_s13, %s1140_s13   ;;  %s1004_s12 = sphi %s1036_s12, %s1139_s12  }
   0x3   : > { %p26_p1 = scmp.ge.s32.totalorder %s25_s15, 6  ;;  %p194_p2 = scmp.lt.s32.totalorder %s1012_s14, 7 }
   0x5   : > { %s1142_s15 = smov (%p26_p1, %s25_s15), 0  ;;  %p195_p3 = pnand %p825_p0, %p194_p2 }
   0x6   : > { %s240_s16 = smul.u32 (!%p195_p3), 3, %s1004_s12  ;;  %p829_p6 = scmp.ne.s32.totalorder (!%p195_p3), %s1004_s12, 0 }
   0x7   : > { %198 = sbr.rel (%p195_p3) target bundleno = 321 (0x141), region = 32 }
   0x8   : > { %s250_s17 = smul.u32 (!%p195_p3), 48, %s1004_s12  ;;  %p243_p4 = scmp.lt.s32.totalorder (!%p195_p3), %s240_s16, 17 }
   0xa   : > { %p252_p5 = scmp.lt.s32.totalorder (!%p195_p3), %s250_s17, 287 }
   0xe   : > { %s1144_s16 = smov (!%p243_p4, %s240_s16), 17  ;;  %s1146_s17 = smov (!%p252_p5, %s250_s17), 287 }
   0xf   : > { %s826_s18 = sshll.u32 %s1144_s16, 2  ;;  %s887_s22 = sshll.u32 %s1146_s17, 3  ;;  %v1014_v0 = vmov (!%p829_p6), 0.0  }
  0x10   : > { %s1061_s21 = scalar_lea.vmem %s1135_s0, %s826_s18  ;;  %s1066_s25 = scalar_lea.vmem %s1136_s1, %s887_s22  ;;  %282 = vst [vmem:[#allocation2] sm:$0xff] (!%p829_p6), %v1014_v0  ;;  %283 = vst [vmem:[#allocation2 + $0x8] sm:$0xff] (!%p829_p6), %v1014_v0 }
  0x11   : > { %281 = sbr.rel (%p829_p6) target bundleno = 24 (0x18), region = 36 }
  0x18 PF: > { %v915_v1 = vld [vmem:[%s1066_s25 + $0x4] ss:$8 sps:$4 sm:$0xff]   ;;  %v917_v2 = vld [vmem:[%s1066_s25] ss:$8 sps:$4 sm:$0xff]   ;;  %v1015_v3 = vmov 0   ;;  %p881_p7 = scmp.ne.s32.totalorder %s1004_s12, 5 }
  0x19   : > { %660 = vmatprep.mubr.bf16.mxu1 %v1015_v3  ;;  %587 = vmatprep.subr.bf16.mxu0 %v915_v1  ;;  %v918_v4 = vld [vmem:[%s1066_s25 + $0x14] ss:$8 sps:$4 sm:$0xff]   ;;  %v920_v5 = vld [vmem:[%s1066_s25 + $0x10] ss:$8 sps:$4 sm:$0xff]   ;;  %v921_v6 = vld [vmem:[%s1066_s25 + $0x24] ss:$8 sps:$4 sm:$0xff]  }
  0x1a   : > { %588 = vmatpush1.bf16.msra.mxu0 %v917_v2  ;;  %v923_v7 = vld [vmem:[%s1066_s25 + $0x20] ss:$8 sps:$4 sm:$0xff]   ;;  %v924_v8 = vld [vmem:[%s1066_s25 + $0x34] ss:$8 sps:$4 sm:$0xff]   ;;  %v926_v9 = vld [vmem:[%s1066_s25 + $0x30] ss:$8 sps:$4 sm:$0xff]  }
  0x1b   : > { %589 = vmatprep.subr.bf16.mxu0 %v918_v4  ;;  %v939_v10 = vld [vmem:[%s1066_s25 + $0x104] ss:$8 sps:$4 sm:$0xff]   ;;  %v941_v11 = vld [vmem:[%s1066_s25 + $0x100] ss:$8 sps:$4 sm:$0xff]   ;;  %v945_v13 = vld [vmem:[%s1066_s25 + $0x114] ss:$8 sps:$4 sm:$0xff]   ;;  %v681_v4 = vlaneseq (!%p881_p7) }
  0x1c   : > { %v927_v12 = vld [vmem:[%s1066_s25 + $0x44] ss:$8 sps:$4 sm:$0xff]   ;;  %628 = vmatprep.subr.bf16.mxu1 %v939_v10  ;;  %v947_v14 = vld [vmem:[%s1066_s25 + $0x110] ss:$8 sps:$4 sm:$0xff]   ;;  %v929_v15 = vld [vmem:[%s1066_s25 + $0x40] ss:$8 sps:$4 sm:$0xff]  }
  0x1d   : > { %629 = vmatpush1.bf16.msra.mxu1 %v941_v11  ;;  %v930_v16 = vld [vmem:[%s1066_s25 + $0x54] ss:$8 sps:$4 sm:$0xff]   ;;  %v951_v17 = vld [vmem:[%s1066_s25 + $0x124] ss:$8 sps:$4 sm:$0xff]   ;;  %v953_v18 = vld [vmem:[%s1066_s25 + $0x120] ss:$8 sps:$4 sm:$0xff]  }
  0x1e   : > { %590 = vmatpush1.bf16.msra.mxu0 %v920_v5  ;;  %630 = vmatprep.subr.bf16.mxu1 %v945_v13  ;;  %v932_v19 = vld [vmem:[%s1066_s25 + $0x50] ss:$8 sps:$4 sm:$0xff]   ;;  %v957_v20 = vld [vmem:[%s1066_s25 + $0x134] ss:$8 sps:$4 sm:$0xff]   ;;  %v933_v21 = vld [vmem:[%s1066_s25 + $0x64] ss:$8 sps:$4 sm:$0xff]  }
  0x1f   : > { %591 = vmatprep.subr.bf16.mxu0 %v921_v6  ;;  %v959_v22 = vld [vmem:[%s1066_s25 + $0x130] ss:$8 sps:$4 sm:$0xff]   ;;  %v935_v23 = vld [vmem:[%s1066_s25 + $0x60] ss:$8 sps:$4 sm:$0xff]   ;;  %v963_v24 = vld [vmem:[%s1066_s25 + $0x144] ss:$8 sps:$4 sm:$0xff]  }
  0x20   : > { %v936_v25 = vld [vmem:[%s1066_s25 + $0x74] ss:$8 sps:$4 sm:$0xff]   ;;  %v965_v26 = vld [vmem:[%s1066_s25 + $0x140] ss:$8 sps:$4 sm:$0xff]   ;;  %v938_v27 = vld [vmem:[%s1066_s25 + $0x70] ss:$8 sps:$4 sm:$0xff]  }
  0x21   : > { %631 = vmatpush1.bf16.msra.mxu1 %v947_v14  ;;  %v969_v28 = vld [vmem:[%s1066_s25 + $0x154] ss:$8 sps:$4 sm:$0xff]   ;;  %v942_v29 = vld [vmem:[%s1066_s25 + $0x84] ss:$8 sps:$4 sm:$0xff]   ;;  %v971_v30 = vld [vmem:[%s1066_s25 + $0x150] ss:$8 sps:$4 sm:$0xff]  }
  0x22   : > { %592 = vmatpush1.bf16.msra.mxu0 %v923_v7  ;;  %632 = vmatprep.subr.bf16.mxu1 %v951_v17  ;;  %v944_v31 = vld [vmem:[%s1066_s25 + $0x80] ss:$8 sps:$4 sm:$0xff]   ;;  %v975_v32 = vld [vmem:[%s1066_s25 + $0x164] ss:$8 sps:$4 sm:$0xff]   ;;  %v948_v33 = vld [vmem:[%s1066_s25 + $0x94] ss:$8 sps:$4 sm:$0xff]  }
  0x23   : > { %593 = vmatprep.subr.bf16.mxu0 %v924_v8  ;;  %v286_v34 = vld [vmem:[%s1061_s21] sm:$0xff]  ;;  %v950_v37 = vld [vmem:[%s1066_s25 + $0x90] ss:$8 sps:$4 sm:$0xff]   ;;  %v981_v38 = vld [vmem:[%s1066_s25 + $0x174] ss:$8 sps:$4 sm:$0xff]   ;;  %v682_v5 = vshrl.u32 (!%p881_p7), %v681_v4, 7 }
  0x24   : > { %v831_v35 = vcombine.high %v286_v34, %v286_v34  ;;  %v977_v36 = vld [vmem:[%s1066_s25 + $0x160] ss:$8 sps:$4 sm:$0xff]   ;;  %v954_v39 = vld [vmem:[%s1066_s25 + $0xa4] ss:$8 sps:$4 sm:$0xff]   ;;  %v983_v40 = vld [vmem:[%s1066_s25 + $0x170] ss:$8 sps:$4 sm:$0xff]   ;;  %v830_v53 = vcombine.low %v286_v34, %v286_v34 }
  0x25   : > { %633 = vmatpush1.bf16.msra.mxu1 %v953_v18  ;;  %v956_v41 = vld [vmem:[%s1066_s25 + $0xa0] ss:$8 sps:$4 sm:$0xff]   ;;  %v960_v42 = vld [vmem:[%s1066_s25 + $0xb4] ss:$8 sps:$4 sm:$0xff]   ;;  %v962_v44 = vld [vmem:[%s1066_s25 + $0xb0] ss:$8 sps:$4 sm:$0xff]  }
  0x26   : > { %594 = vmatpush1.bf16.msra.mxu0 %v926_v9  ;;  %634 = vmatprep.subr.bf16.mxu1 %v957_v20  ;;  %v987_v43 = vld [vmem:[%s1061_s21 + $0x8] ss:$0 sps:$4 sm:$0xff]   ;;  %v966_v45 = vld [vmem:[%s1066_s25 + $0xc4] ss:$8 sps:$4 sm:$0xff]   ;;  %v972_v47 = vld [vmem:[%s1066_s25 + $0xd4] ss:$8 sps:$4 sm:$0xff]  }
  0x27   : > { %595 = vmatprep.subr.bf16.mxu0 %v927_v12  ;;  %619 = vmatprep.mubr.bf16.mxu0 %v831_v35  ;;  %v968_v46 = vld [vmem:[%s1066_s25 + $0xc0] ss:$8 sps:$4 sm:$0xff]   ;;  %v974_v48 = vld [vmem:[%s1066_s25 + $0xd0] ss:$8 sps:$4 sm:$0xff]   ;;  %v978_v49 = vld [vmem:[%s1066_s25 + $0xe4] ss:$8 sps:$4 sm:$0xff]  }
  0x28   : > { %v980_v50 = vld [vmem:[%s1066_s25 + $0xe0] ss:$8 sps:$4 sm:$0xff]   ;;  %v984_v51 = vld [vmem:[%s1066_s25 + $0xf4] ss:$8 sps:$4 sm:$0xff]   ;;  %v986_v52 = vld [vmem:[%s1066_s25 + $0xf0] ss:$8 sps:$4 sm:$0xff]  }
  0x29   : > { %635 = vmatpush1.bf16.msra.mxu1 %v959_v22  ;;  %v284_v58 = vld [vmem:[#allocation2] sm:$0xff]  ;;  %v285_v61 = vld [vmem:[#allocation2 + $0x8] sm:$0xff]  ;;  %v683_v7 = vsub.s32 (!%p881_p7), 0, %v682_v5  ;;  %v687_v8 = vsub.s32 (!%p881_p7), 1, %v682_v5 }
  0x2a   : > { %596 = vmatpush1.bf16.msra.mxu0 %v929_v15  ;;  %636 = vmatprep.subr.bf16.mxu1 %v963_v24  ;;  %v679_v6 = vld [vmem:[%s1137_s2] sm:$0x3] (!%p881_p7) }
  0x2b   : > { %597 = vmatprep.subr.bf16.mxu0 %v930_v16  ;;  %v684_v11 = vrot.slane (!%p881_p7), %v679_v6, %v683_v7  ;;  %v688_v12 = vrot.slane (!%p881_p7), %v679_v6, %v687_v8 }
  0x2d   : > { %637 = vmatpush1.bf16.msra.mxu1 %v965_v26 }
  0x2e   : > { %598 = vmatpush1.bf16.msra.mxu0 %v932_v19  ;;  %638 = vmatprep.subr.bf16.mxu1 %v969_v28 }
  0x2f   : > { %599 = vmatprep.subr.bf16.mxu0 %v933_v21 }
  0x31   : > { %639 = vmatpush1.bf16.msra.mxu1 %v971_v30 }
  0x32   : > { %600 = vmatpush1.bf16.msra.mxu0 %v935_v23  ;;  %640 = vmatprep.subr.bf16.mxu1 %v975_v32 }
  0x33   : > { %601 = vmatprep.subr.bf16.mxu0 %v936_v25 }
  0x35   : > { %641 = vmatpush1.bf16.msra.mxu1 %v977_v36 }
  0x36   : > { %602 = vmatpush1.bf16.msra.mxu0 %v938_v27  ;;  %642 = vmatprep.subr.bf16.mxu1 %v981_v38 }
  0x37   : > { %603 = vmatprep.subr.bf16.mxu0 %v942_v29 }
  0x39   : > { %643 = vmatpush1.bf16.msra.mxu1 %v983_v40 }
  0x3a   : > { %604 = vmatpush1.bf16.msra.mxu0 %v944_v31 }
  0x3b   : > { %605 = vmatprep.subr.bf16.mxu0 %v948_v33 }
  0x3c   : > { %661 = vmatmul.mubr.bf16.vlgmr.msra.gmra.mrb[0].mxu1 %v987_v43 }
  0x3e   : > { %606 = vmatpush1.bf16.msra.mxu0 %v950_v37 }
  0x3f   : > { %607 = vmatprep.subr.bf16.mxu0 %v954_v39 }
  0x42   : > { %608 = vmatpush1.bf16.msra.mxu0 %v956_v41 }
  0x43   : > { %609 = vmatprep.subr.bf16.mxu0 %v960_v42 }
  0x46   : > { %610 = vmatpush1.bf16.msra.mxu0 %v962_v44 }
  0x47   : > { %611 = vmatprep.subr.bf16.mxu0 %v966_v45 }
  0x4a   : > { %612 = vmatpush1.bf16.msra.mxu0 %v968_v46 }
  0x4b   : > { %613 = vmatprep.subr.bf16.mxu0 %v972_v47 }
  0x4e   : > { %614 = vmatpush1.bf16.msra.mxu0 %v974_v48 }
  0x4f   : > { %615 = vmatprep.subr.bf16.mxu0 %v978_v49 }
  0x52   : > { %616 = vmatpush1.bf16.msra.mxu0 %v980_v50 }
  0x53   : > { %617 = vmatprep.subr.bf16.mxu0 %v984_v51 }
  0x56   : > { %618 = vmatpush1.bf16.msra.mxu0 %v986_v52 }
  0x59   : > { %620 = vmatmul.mubr.bf16.vlgmr.msra.gmra.mrb[0].mxu0 %v830_v53 }
 0x10f   : > { %v662_v54 = vpop.f32.mrb[0].mxu1 }
 0x110   : > { %v664_v55 = vpop.f32.mrb[1].mxu1 }
 0x111   : > { %v666_v56 = vpop.f32.mrb[2].mxu1 }
 0x112   : > { %v667_v57 = vpop.f32.mrb[3].mxu1 }
 0x12c   : > { %v621_v59 = vpop.f32.mrb[0].mxu0  ;;  %676 = sbr.rel (%p881_p7) target bundleno = 321 (0x141), region = 40 }
 0x12d   : > { %v663_v60 = vadd.f32 %v662_v54, %v621_v59  ;;  %v623_v62 = vpop.f32.mrb[1].mxu0 }
 0x12e   : > { %v665_v63 = vadd.f32 %v664_v55, %v623_v62  ;;  %v625_v0 = vpop.f32.mrb[2].mxu0 }
 0x12f   : > { %v669_v1 = vadd.f32 %v663_v60, %v284_v58  ;;  %v626_v2 = vpop.f32.mrb[3].mxu0 }
 0x130   : > { %v670_v3 = vadd.f32 %v665_v63, %v285_v61 }
 0x131   : > { %671 = vst [vmem:[#allocation2] sm:$0xff] %v669_v1 }
 0x132   : > { %672 = vst [vmem:[#allocation2 + $0x8] sm:$0xff] %v670_v3 }
 0x138   : > { %v677_v9 = vld [vmem:[#allocation2] sm:$0xff] }
 0x139   : > { %v678_v10 = vld [vmem:[#allocation2 + $0x8] sm:$0xff]  ;;  %v691_v13 = vadd.f32 %v684_v11, %v677_v9 }
 0x13a   : > { %v692_v14 = vadd.f32 %v688_v12, %v678_v10 }
 0x13b   : > { %v693_v15 = vmax.f32 %v691_v13, 0.0 }
 0x13c   : > { %v694_v16 = vmax.f32 %v692_v14, 0.0 }
 0x13e   : > { %v888_v17 = vpack.c.bf16 %v694_v16, %v693_v15 }
 0x140   : > { %703 = vst [vmem:[%s1138_s3] sm:$0xff] %v888_v17 }
 0x141 PF: > { %s13_s14 = sadd.s32 1, %s1012_s14   ;;  %s1139_s12 = smov %s1008_s13 }
 0x142   : > { %p10_p8 = scmp.ge.s32.totalorder %s13_s14, 8   ;;  %s1140_s13 = smov %s1142_s15 }
 0x144   :  { %12 = sbr.rel (!%p10_p8) target bundleno = 2 (0x2), region = 76 }

// kernel: resnet18_forward.39
= control target key start
LH: loop header
LB: loop body
LE: loop exit
PB: predicated region body
PF: predicated region fallthrough
CT: control target
= control target key end

     0   :  { %s1131_s15 = smov 0   ;;  %s1133_s16 = smov 0   ;;  %s1233_s0 = inlined_call_operand.vmem [shape: bf16[8,2304], index: 0, kind: input, shape index: {}]   ;;  %s1234_s1 = inlined_call_operand.vmem [shape: bf16[2304,256], index: 1, kind: input, shape index: {}]   ;;  %s1235_s2 = inlined_call_operand.vmem [shape: f32[1,256], index: 2, kind: input, shape index: {}]   ;;  %s1236_s3 = inlined_call_operand.vmem [shape: bf16[8,256], index: 3, kind: input, shape index: {}]   ;;  %s1237_s4 = inlined_call_operand.vmem [shape: bf16[8,256], index: 4, kind: output, shape index: {}]  }
   0x1   :  { %s1135_s17 = smov 0  }
   0x2 LB: > { %s26_s18 = sadd.s32 1, %s1098_s16  ;;  %p915_p0 = scmp.ge.s32.totalorder %s1102_s17, 1  ;;  %s1102_s17 = sphi %s1135_s17, %s14_s17   ;;  %s1098_s16 = sphi %s1133_s16, %s1239_s16   ;;  %s1094_s15 = sphi %s1131_s15, %s1238_s15  }
   0x3   : > { %p27_p1 = scmp.ge.s32.totalorder %s26_s18, 6  ;;  %p236_p2 = scmp.lt.s32.totalorder %s1102_s17, 7 }
   0x5   : > { %s1241_s18 = smov (%p27_p1, %s26_s18), 0  ;;  %p237_p3 = pnand %p915_p0, %p236_p2 }
   0x6   : > { %s293_s19 = smul.u32 (!%p237_p3), 3, %s1094_s15  ;;  %p919_p6 = scmp.ne.s32.totalorder (!%p237_p3), %s1094_s15, 0 }
   0x7   : > { %240 = sbr.rel (%p237_p3) target bundleno = 323 (0x143), region = 36 }
   0x8   : > { %s303_s20 = smul.u32 (!%p237_p3), 48, %s1094_s15  ;;  %p296_p4 = scmp.lt.s32.totalorder (!%p237_p3), %s293_s19, 17 }
   0xa   : > { %p305_p5 = scmp.lt.s32.totalorder (!%p237_p3), %s303_s20, 287 }
   0xe   : > { %s1243_s19 = smov (!%p296_p4, %s293_s19), 17  ;;  %s1245_s20 = smov (!%p305_p5, %s303_s20), 287 }
   0xf   : > { %s916_s21 = sshll.u32 %s1243_s19, 2  ;;  %s977_s25 = sshll.u32 %s1245_s20, 3  ;;  %v1104_v0 = vmov (!%p919_p6), 0.0  }
  0x10   : > { %s1156_s24 = scalar_lea.vmem %s1233_s0, %s916_s21  ;;  %s1161_s28 = scalar_lea.vmem %s1234_s1, %s977_s25  ;;  %345 = vst [vmem:[#allocation2] sm:$0xff] (!%p919_p6), %v1104_v0  ;;  %346 = vst [vmem:[#allocation2 + $0x8] sm:$0xff] (!%p919_p6), %v1104_v0 }
  0x11   : > { %344 = sbr.rel (%p919_p6) target bundleno = 24 (0x18), region = 40 }
  0x18 PF: > { %v1005_v1 = vld [vmem:[%s1161_s28 + $0x4] ss:$8 sps:$4 sm:$0xff]   ;;  %v1007_v2 = vld [vmem:[%s1161_s28] ss:$8 sps:$4 sm:$0xff]   ;;  %v1105_v3 = vmov 0   ;;  %p971_p7 = scmp.ne.s32.totalorder %s1094_s15, 5 }
  0x19   : > { %723 = vmatprep.mubr.bf16.mxu1 %v1105_v3  ;;  %650 = vmatprep.subr.bf16.mxu0 %v1005_v1  ;;  %v1008_v4 = vld [vmem:[%s1161_s28 + $0x14] ss:$8 sps:$4 sm:$0xff]   ;;  %v1010_v5 = vld [vmem:[%s1161_s28 + $0x10] ss:$8 sps:$4 sm:$0xff]   ;;  %v1011_v6 = vld [vmem:[%s1161_s28 + $0x24] ss:$8 sps:$4 sm:$0xff]  }
  0x1a   : > { %651 = vmatpush1.bf16.msra.mxu0 %v1007_v2  ;;  %v1013_v7 = vld [vmem:[%s1161_s28 + $0x20] ss:$8 sps:$4 sm:$0xff]   ;;  %v1014_v8 = vld [vmem:[%s1161_s28 + $0x34] ss:$8 sps:$4 sm:$0xff]   ;;  %v1016_v9 = vld [vmem:[%s1161_s28 + $0x30] ss:$8 sps:$4 sm:$0xff]  }
  0x1b   : > { %652 = vmatprep.subr.bf16.mxu0 %v1008_v4  ;;  %v1029_v10 = vld [vmem:[%s1161_s28 + $0x104] ss:$8 sps:$4 sm:$0xff]   ;;  %v1031_v11 = vld [vmem:[%s1161_s28 + $0x100] ss:$8 sps:$4 sm:$0xff]   ;;  %v1035_v13 = vld [vmem:[%s1161_s28 + $0x114] ss:$8 sps:$4 sm:$0xff]   ;;  %v744_v4 = vlaneseq (!%p971_p7) }
  0x1c   : > { %v1017_v12 = vld [vmem:[%s1161_s28 + $0x44] ss:$8 sps:$4 sm:$0xff]   ;;  %691 = vmatprep.subr.bf16.mxu1 %v1029_v10  ;;  %v1037_v14 = vld [vmem:[%s1161_s28 + $0x110] ss:$8 sps:$4 sm:$0xff]   ;;  %v1019_v15 = vld [vmem:[%s1161_s28 + $0x40] ss:$8 sps:$4 sm:$0xff]  }
  0x1d   : > { %692 = vmatpush1.bf16.msra.mxu1 %v1031_v11  ;;  %v1020_v16 = vld [vmem:[%s1161_s28 + $0x54] ss:$8 sps:$4 sm:$0xff]   ;;  %v1041_v17 = vld [vmem:[%s1161_s28 + $0x124] ss:$8 sps:$4 sm:$0xff]   ;;  %v1043_v18 = vld [vmem:[%s1161_s28 + $0x120] ss:$8 sps:$4 sm:$0xff]  }
  0x1e   : > { %653 = vmatpush1.bf16.msra.mxu0 %v1010_v5  ;;  %693 = vmatprep.subr.bf16.mxu1 %v1035_v13  ;;  %v1022_v19 = vld [vmem:[%s1161_s28 + $0x50] ss:$8 sps:$4 sm:$0xff]   ;;  %v1047_v20 = vld [vmem:[%s1161_s28 + $0x134] ss:$8 sps:$4 sm:$0xff]   ;;  %v1023_v21 = vld [vmem:[%s1161_s28 + $0x64] ss:$8 sps:$4 sm:$0xff]  }
  0x1f   : > { %654 = vmatprep.subr.bf16.mxu0 %v1011_v6  ;;  %v1049_v22 = vld [vmem:[%s1161_s28 + $0x130] ss:$8 sps:$4 sm:$0xff]   ;;  %v1025_v23 = vld [vmem:[%s1161_s28 + $0x60] ss:$8 sps:$4 sm:$0xff]   ;;  %v1053_v24 = vld [vmem:[%s1161_s28 + $0x144] ss:$8 sps:$4 sm:$0xff]  }
  0x20   : > { %v1026_v25 = vld [vmem:[%s1161_s28 + $0x74] ss:$8 sps:$4 sm:$0xff]   ;;  %v1055_v26 = vld [vmem:[%s1161_s28 + $0x140] ss:$8 sps:$4 sm:$0xff]   ;;  %v1028_v27 = vld [vmem:[%s1161_s28 + $0x70] ss:$8 sps:$4 sm:$0xff]  }
  0x21   : > { %694 = vmatpush1.bf16.msra.mxu1 %v1037_v14  ;;  %v1059_v28 = vld [vmem:[%s1161_s28 + $0x154] ss:$8 sps:$4 sm:$0xff]   ;;  %v1032_v29 = vld [vmem:[%s1161_s28 + $0x84] ss:$8 sps:$4 sm:$0xff]   ;;  %v1061_v30 = vld [vmem:[%s1161_s28 + $0x150] ss:$8 sps:$4 sm:$0xff]  }
  0x22   : > { %655 = vmatpush1.bf16.msra.mxu0 %v1013_v7  ;;  %695 = vmatprep.subr.bf16.mxu1 %v1041_v17  ;;  %v1034_v31 = vld [vmem:[%s1161_s28 + $0x80] ss:$8 sps:$4 sm:$0xff]   ;;  %v1065_v32 = vld [vmem:[%s1161_s28 + $0x164] ss:$8 sps:$4 sm:$0xff]   ;;  %v1038_v33 = vld [vmem:[%s1161_s28 + $0x94] ss:$8 sps:$4 sm:$0xff]  }
  0x23   : > { %656 = vmatprep.subr.bf16.mxu0 %v1014_v8  ;;  %v349_v34 = vld [vmem:[%s1156_s24] sm:$0xff]  ;;  %v1040_v37 = vld [vmem:[%s1161_s28 + $0x90] ss:$8 sps:$4 sm:$0xff]   ;;  %v1071_v38 = vld [vmem:[%s1161_s28 + $0x174] ss:$8 sps:$4 sm:$0xff]   ;;  %v745_v5 = vshrl.u32 (!%p971_p7), %v744_v4, 7 }
  0x24   : > { %v921_v35 = vcombine.high %v349_v34, %v349_v34  ;;  %v1067_v36 = vld [vmem:[%s1161_s28 + $0x160] ss:$8 sps:$4 sm:$0xff]   ;;  %v1044_v39 = vld [vmem:[%s1161_s28 + $0xa4] ss:$8 sps:$4 sm:$0xff]   ;;  %v1073_v40 = vld [vmem:[%s1161_s28 + $0x170] ss:$8 sps:$4 sm:$0xff]   ;;  %v920_v53 = vcombine.low %v349_v34, %v349_v34 }
  0x25   : > { %696 = vmatpush1.bf16.msra.mxu1 %v1043_v18  ;;  %v1046_v41 = vld [vmem:[%s1161_s28 + $0xa0] ss:$8 sps:$4 sm:$0xff]   ;;  %v1050_v42 = vld [vmem:[%s1161_s28 + $0xb4] ss:$8 sps:$4 sm:$0xff]   ;;  %v1052_v44 = vld [vmem:[%s1161_s28 + $0xb0] ss:$8 sps:$4 sm:$0xff]  }
  0x26   : > { %657 = vmatpush1.bf16.msra.mxu0 %v1016_v9  ;;  %697 = vmatprep.subr.bf16.mxu1 %v1047_v20  ;;  %v1077_v43 = vld [vmem:[%s1156_s24 + $0x8] ss:$0 sps:$4 sm:$0xff]   ;;  %v1056_v45 = vld [vmem:[%s1161_s28 + $0xc4] ss:$8 sps:$4 sm:$0xff]   ;;  %v1062_v47 = vld [vmem:[%s1161_s28 + $0xd4] ss:$8 sps:$4 sm:$0xff]  }
  0x27   : > { %658 = vmatprep.subr.bf16.mxu0 %v1017_v12  ;;  %682 = vmatprep.mubr.bf16.mxu0 %v921_v35  ;;  %v1058_v46 = vld [vmem:[%s1161_s28 + $0xc0] ss:$8 sps:$4 sm:$0xff]   ;;  %v1064_v48 = vld [vmem:[%s1161_s28 + $0xd0] ss:$8 sps:$4 sm:$0xff]   ;;  %v1068_v49 = vld [vmem:[%s1161_s28 + $0xe4] ss:$8 sps:$4 sm:$0xff]  }
  0x28   : > { %v1070_v50 = vld [vmem:[%s1161_s28 + $0xe0] ss:$8 sps:$4 sm:$0xff]   ;;  %v1074_v51 = vld [vmem:[%s1161_s28 + $0xf4] ss:$8 sps:$4 sm:$0xff]   ;;  %v1076_v52 = vld [vmem:[%s1161_s28 + $0xf0] ss:$8 sps:$4 sm:$0xff]  }
  0x29   : > { %698 = vmatpush1.bf16.msra.mxu1 %v1049_v22  ;;  %v347_v58 = vld [vmem:[#allocation2] sm:$0xff]  ;;  %v348_v61 = vld [vmem:[#allocation2 + $0x8] sm:$0xff]  ;;  %v746_v8 = vsub.s32 (!%p971_p7), 0, %v745_v5  ;;  %v750_v9 = vsub.s32 (!%p971_p7), 1, %v745_v5 }
  0x2a   : > { %659 = vmatpush1.bf16.msra.mxu0 %v1019_v15  ;;  %699 = vmatprep.subr.bf16.mxu1 %v1053_v24  ;;  %v742_v6 = vld [vmem:[%s1235_s2] sm:$0x3] (!%p971_p7) }
  0x2b   : > { %660 = vmatprep.subr.bf16.mxu0 %v1020_v16  ;;  %v756_v7 = vld [vmem:[%s1236_s3] sm:$0xff] (!%p971_p7)  ;;  %v747_v12 = vrot.slane (!%p971_p7), %v742_v6, %v746_v8  ;;  %v751_v13 = vrot.slane (!%p971_p7), %v742_v6, %v750_v9 }
  0x2c   : > { %v757_v14 = vunpack.c.l.bf16 (!%p971_p7), %v756_v7  ;;  %v758_v15 = vunpack.c.h.bf16 (!%p971_p7), %v756_v7 }
  0x2d   : > { %700 = vmatpush1.bf16.msra.mxu1 %v1055_v26 }
  0x2e   : > { %661 = vmatpush1.bf16.msra.mxu0 %v1022_v19  ;;  %701 = vmatprep.subr.bf16.mxu1 %v1059_v28 }
  0x2f   : > { %662 = vmatprep.subr.bf16.mxu0 %v1023_v21 }
  0x31   : > { %702 = vmatpush1.bf16.msra.mxu1 %v1061_v30 }
  0x32   : > { %663 = vmatpush1.bf16.msra.mxu0 %v1025_v23  ;;  %703 = vmatprep.subr.bf16.mxu1 %v1065_v32 }
  0x33   : > { %664 = vmatprep.subr.bf16.mxu0 %v1026_v25 }
  0x35   : > { %704 = vmatpush1.bf16.msra.mxu1 %v1067_v36 }
  0x36   : > { %665 = vmatpush1.bf16.msra.mxu0 %v1028_v27  ;;  %705 = vmatprep.subr.bf16.mxu1 %v1071_v38 }
  0x37   : > { %666 = vmatprep.subr.bf16.mxu0 %v1032_v29 }
  0x39   : > { %706 = vmatpush1.bf16.msra.mxu1 %v1073_v40 }
  0x3a   : > { %667 = vmatpush1.bf16.msra.mxu0 %v1034_v31 }
  0x3b   : > { %668 = vmatprep.subr.bf16.mxu0 %v1038_v33 }
  0x3c   : > { %724 = vmatmul.mubr.bf16.vlgmr.msra.gmra.mrb[0].mxu1 %v1077_v43 }
  0x3e   : > { %669 = vmatpush1.bf16.msra.mxu0 %v1040_v37 }
  0x3f   : > { %670 = vmatprep.subr.bf16.mxu0 %v1044_v39 }
  0x42   : > { %671 = vmatpush1.bf16.msra.mxu0 %v1046_v41 }
  0x43   : > { %672 = vmatprep.subr.bf16.mxu0 %v1050_v42 }
  0x46   : > { %673 = vmatpush1.bf16.msra.mxu0 %v1052_v44 }
  0x47   : > { %674 = vmatprep.subr.bf16.mxu0 %v1056_v45 }
  0x4a   : > { %675 = vmatpush1.bf16.msra.mxu0 %v1058_v46 }
  0x4b   : > { %676 = vmatprep.subr.bf16.mxu0 %v1062_v47 }
  0x4e   : > { %677 = vmatpush1.bf16.msra.mxu0 %v1064_v48 }
  0x4f   : > { %678 = vmatprep.subr.bf16.mxu0 %v1068_v49 }
  0x52   : > { %679 = vmatpush1.bf16.msra.mxu0 %v1070_v50 }
  0x53   : > { %680 = vmatprep.subr.bf16.mxu0 %v1074_v51 }
  0x56   : > { %681 = vmatpush1.bf16.msra.mxu0 %v1076_v52 }
  0x59   : > { %683 = vmatmul.mubr.bf16.vlgmr.msra.gmra.mrb[0].mxu0 %v920_v53 }
 0x10f   : > { %v725_v54 = vpop.f32.mrb[0].mxu1 }
 0x110   : > { %v727_v55 = vpop.f32.mrb[1].mxu1 }
 0x111   : > { %v729_v56 = vpop.f32.mrb[2].mxu1 }
 0x112   : > { %v730_v57 = vpop.f32.mrb[3].mxu1 }
 0x12c   : > { %v684_v59 = vpop.f32.mrb[0].mxu0  ;;  %739 = sbr.rel (%p971_p7) target bundleno = 323 (0x143), region = 44 }
 0x12d   : > { %v726_v60 = vadd.f32 %v725_v54, %v684_v59  ;;  %v686_v62 = vpop.f32.mrb[1].mxu0 }
 0x12e   : > { %v728_v63 = vadd.f32 %v727_v55, %v686_v62  ;;  %v688_v0 = vpop.f32.mrb[2].mxu0 }
 0x12f   : > { %v732_v1 = vadd.f32 %v726_v60, %v347_v58  ;;  %v689_v2 = vpop.f32.mrb[3].mxu0 }
 0x130   : > { %v733_v3 = vadd.f32 %v728_v63, %v348_v61 }
 0x131   : > { %734 = vst [vmem:[#allocation2] sm:$0xff] %v732_v1 }
 0x132   : > { %735 = vst [vmem:[#allocation2 + $0x8] sm:$0xff] %v733_v3 }
 0x138   : > { %v740_v10 = vld [vmem:[#allocation2] sm:$0xff] }
 0x139   : > { %v741_v11 = vld [vmem:[#allocation2 + $0x8] sm:$0xff]  ;;  %v754_v16 = vadd.f32 %v747_v12, %v740_v10 }
 0x13a   : > { %v755_v17 = vadd.f32 %v751_v13, %v741_v11 }
 0x13b   : > { %v759_v18 = vadd.f32 %v757_v14, %v754_v16 }
 0x13c   : > { %v760_v19 = vadd.f32 %v758_v15, %v755_v17 }
 0x13d   : > { %v761_v20 = vmax.f32 %v759_v18, 0.0 }
 0x13e   : > { %v762_v21 = vmax.f32 %v760_v19, 0.0 }
 0x140   : > { %v978_v22 = vpack.c.bf16 %v762_v21, %v761_v20 }
 0x142   : > { %771 = vst [vmem:[%s1237_s4] sm:$0xff] %v978_v22 }
 0x143 PF: > { %s14_s17 = sadd.s32 1, %s1102_s17   ;;  %s1238_s15 = smov %s1098_s16 }
 0x144   : > { %p11_p8 = scmp.ge.s32.totalorder %s14_s17, 8   ;;  %s1239_s16 = smov %s1241_s18 }
 0x146   :  { %13 = sbr.rel (!%p11_p8) target bundleno = 2 (0x2), region = 83 }

</bundles_post_ra>
